<compile_context>
chip_gen: v5e
topology: v5e:2x2
jax: 0.10.0
libtpu: 0.0.40
codegen_flags: <defaults>
</compile_context>

<pallas_src>
import numpy as np
import jax
import jax.numpy as jnp
from jax import lax
from jax.experimental import pallas as pl
from jax.experimental.pallas import tpu as pltpu


VMEM_LIMIT = 48 * 1024 * 1024   # < v7x's 64 MiB physical, plenty of headroom on v5e/v6e


# ----------------------------------------------------------------------------
# helpers
# ----------------------------------------------------------------------------

def _pick_tile(n, preferred, multiple):
    """Largest tile <= preferred that divides n and is a multiple of `multiple`.
    Falls back to the full dimension (always a legal BlockSpec block)."""
    if n <= preferred:
        return n
    best = n
    for t in range(multiple, preferred + 1, multiple):
        if n % t == 0:
            best = t
    return best


def _pick_d_sub(D, T):
    """Feature-channel sub-block per TGM grid step.  c_out*d_sub is the M/K of the
    kron matmuls (256 = full v6e/v7x MXU width, 2x128 passes on v5e).  Shrinks for
    large T so the fused in-VMEM activations stay small (v7x: 64 MiB physical)."""
    if D % 8 != 0:
        return D
    for d in (32, 16, 8):
        if D % d != 0:
            continue
        est = (8 * d * (T + 12) * (3 * 2 + 4)        # bf16 a1/a2/a3 + f32 tap accum
               + 2 * d * (T + 12) * 4                # double-buffered padded input
               + 2 * d * T * 2                       # double-buffered bf16 output
               + 2 * 2 * 5 * (8 * d) * (8 * d) * 2)  # kron weights (k2,k3), dbl-buf
        if est <= 20 * 1024 * 1024 or d == 8:
            return d
    return 8


def _kron_taps(k, d_sub, dtype):
    """(c_out, c_in, L) TGM kernel -> (L, c_out*d_sub, c_in*d_sub) kron(k_l, I_dsub)."""
    c_out, c_in, L = k.shape
    eye = jnp.eye(d_sub, dtype=k.dtype)
    big = jnp.einsum('ocl,ij->loicj', k, eye)
    return big.reshape(L, c_out * d_sub, c_in * d_sub).astype(dtype)


# ----------------------------------------------------------------------------
# 1) fused sub-event path: 3 TGM layers as kron/MXU matmuls + channel max,
#    with the super-event TSF pooling fused in (single HBM read of the video).
# ----------------------------------------------------------------------------

def _edge_mask(w, edge):
    """(1, w) bool mask: True inside [edge, w-edge) -- temporal positions inside [0,T)."""
    idx = lax.broadcasted_iota(jnp.int32, (1, w), 1)
    return jnp.logical_and(idx >= edge, idx < w - edge)


def _kron_conv(x, kk_ref, w_out):
    """One TGM layer as L MXU matmuls ('valid' conv on the padded activation).
    x: (c_in*d_sub, w_in) ; kk_ref: (L, c_out*d_sub, c_in*d_sub).
    Returns f32 (c_out*d_sub, w_out); tap 0 initializes the accumulator (no zeros)."""
    L = kk_ref.shape[0]
    acc = jnp.dot(kk_ref[0], x[:, 0:w_out], preferred_element_type=jnp.float32)
    for l in range(1, L):
        acc = acc + jnp.dot(kk_ref[l], x[:, l:l + w_out],
                            preferred_element_type=jnp.float32)
    return acc


def tgm_stack_kernel(vp_ref, f_ref, k1_ref, k2_ref, k3_ref, sub_ref, pool_ref):
    """vp_ref:(1,d_sub,T+6*pad) padded video block; f_ref:(1,T,2) TSF filters;
    k*_ref:(L, c_out*d_sub, c_in*d_sub) kron kernels; sub_ref:(1,d_sub,T) bf16;
    pool_ref:(1,d_sub,2) fused super-event partial pooling."""
    T = sub_ref.shape[-1]
    d_sub = sub_ref.shape[1]
    L = k1_ref.shape[0]
    pad = L // 2
    c_out = k3_ref.shape[1] // d_sub

    x32 = vp_ref[0]                                            # (d_sub, T+6p), f32

    # fused super-event TSF attention pooling on the un-padded slice (contract T on MXU)
    pool_ref[0] = jnp.dot(x32[:, 3 * pad:3 * pad + T], f_ref[0],
                          preferred_element_type=jnp.float32)  # (d_sub, 2)

    cdt = k1_ref.dtype                                         # bf16 compute dtype
    x = x32.astype(cdt)
    # layer 1: width T+6p -> T+4p, then zero the positions outside [0, T)
    a1 = _kron_conv(x, k1_ref, T + 4 * pad)
    a1 = jnp.where(_edge_mask(T + 4 * pad, 2 * pad), a1, 0.0).astype(cdt)
    # layer 2: width T+4p -> T+2p
    a2 = _kron_conv(a1, k2_ref, T + 2 * pad)
    a2 = jnp.where(_edge_mask(T + 2 * pad, pad), a2, 0.0).astype(cdt)
    # layer 3: width T+2p -> T  (f32 accumulation)
    a3 = _kron_conv(a2, k3_ref, T)                             # (c_out*d_sub, T)

    # max over output channels (rows are c-major, d-minor -> static sublane slices)
    m = a3[0:d_sub, :]
    for o in range(1, c_out):
        m = jnp.maximum(m, a3[o * d_sub:(o + 1) * d_sub, :])
    sub_ref[0] = m.astype(sub_ref.dtype)


def tgm_and_pool(video, filt, k1k, k2k, k3k, d_sub):
    B, D, T = video.shape
    L = k1k.shape[0]
    pad = L // 2
    # pad only the raw video once in XLA; intermediates are narrowed inside the kernel
    vp = jnp.pad(video, ((0, 0), (0, 0), (3 * pad, 3 * pad)))
    Wv = T + 6 * pad
    return pl.pallas_call(
        tgm_stack_kernel,
        out_shape=(jax.ShapeDtypeStruct((B, D, T), jnp.bfloat16),   # sub_event (bf16)
                   jax.ShapeDtypeStruct((B, D, 2), jnp.float32)),   # TSF-pooled video
        grid=(B, D // d_sub),
        in_specs=[pl.BlockSpec((1, d_sub, Wv), lambda b, d: (b, d, 0)),
                  pl.BlockSpec((1, T, 2), lambda b, d: (b, 0, 0)),
                  pl.BlockSpec(k1k.shape, lambda b, d: (0, 0, 0)),
                  pl.BlockSpec(k2k.shape, lambda b, d: (0, 0, 0)),
                  pl.BlockSpec(k3k.shape, lambda b, d: (0, 0, 0))],
        out_specs=(pl.BlockSpec((1, d_sub, T), lambda b, d: (b, d, 0)),
                   pl.BlockSpec((1, d_sub, 2), lambda b, d: (b, d, 0))),
        compiler_params=pltpu.CompilerParams(
            dimension_semantics=("parallel", "parallel"),
            vmem_limit_bytes=VMEM_LIMIT),
    )(vp, filt, k1k, k2k, k3k)


# ----------------------------------------------------------------------------
# 2) classification head: concat fused away, bf16 lane-dense 1x1-conv matmuls
# ----------------------------------------------------------------------------

def head_kernel(v_ref, s_ref, seb_ref, whv_ref, whs_ref, bh_ref, wc_ref, bc_ref, o_ref):
    """relu(cat[f, sub, sup]) -> relu(h) -> classify; h's weight is split column-wise
    and the super-event branch is a precomputed per-batch bias seb:(1,H,1)."""
    wdt = whv_ref.dtype
    rv = jnp.maximum(v_ref[0], 0.0).astype(wdt)                # relu(f)        (D, tT)
    rs = jnp.maximum(s_ref[0], 0.0).astype(wdt)                # relu(sub)      (D, tT)
    h = (jnp.dot(whv_ref[...], rv, preferred_element_type=jnp.float32)
         + jnp.dot(whs_ref[...], rs, preferred_element_type=jnp.float32)
         + seb_ref[0] + bh_ref[...])
    h = jnp.maximum(h, 0.0).astype(wc_ref.dtype)
    o_ref[0] = jnp.dot(wc_ref[...], h, preferred_element_type=jnp.float32) + bc_ref[...]


def classify_head(video, sub_event, se_bias, whv, whs, bh, wc, bc):
    B, D, T = video.shape
    H = whv.shape[0]
    classes = wc.shape[0]
    t_tile = _pick_tile(T, 1024, 128)
    return pl.pallas_call(
        head_kernel,
        out_shape=jax.ShapeDtypeStruct((B, classes, T), jnp.float32),
        grid=(B, T // t_tile),
        in_specs=[pl.BlockSpec((1, D, t_tile), lambda b, t: (b, 0, t)),
                  pl.BlockSpec((1, D, t_tile), lambda b, t: (b, 0, t)),
                  pl.BlockSpec((1, H, 1), lambda b, t: (b, 0, 0)),
                  pl.BlockSpec((H, D), lambda b, t: (0, 0)),
                  pl.BlockSpec((H, D), lambda b, t: (0, 0)),
                  pl.BlockSpec((H, 1), lambda b, t: (0, 0)),
                  pl.BlockSpec((classes, H), lambda b, t: (0, 0)),
                  pl.BlockSpec((classes, 1), lambda b, t: (0, 0))],
        out_specs=pl.BlockSpec((1, classes, t_tile), lambda b, t: (b, 0, t)),
        compiler_params=pltpu.CompilerParams(
            dimension_semantics=("parallel", "parallel"),
            vmem_limit_bytes=VMEM_LIMIT),
    )(video, sub_event, se_bias, whv, whs, bh, wc, bc)


# ----------------------------------------------------------------------------
# JAX glue: TSF filter generation, TGM kernel mixing (tiny, stays in XLA)
# ----------------------------------------------------------------------------

def tsf_pool_filters(p, lengths, T, N=3):
    """Per-video temporal pooling filter (B, T) from a TSF(N) module."""
    c = jnp.tanh(p["center"])
    g = jnp.tanh(p["gamma"])
    centers = (lengths[:, None] - 1.0) * (c[None, :] + 1.0) / 2.0        # (B, N)
    gammas = jnp.exp(1.5 - 2.0 * jnp.abs(g))                             # (N,)
    t = jnp.arange(T, dtype=jnp.float32)
    f = (t[None, None, :] - centers[:, :, None]) / gammas[None, :, None]
    f = np.pi * gammas[None, :, None] * (f ** 2 + 1.0)
    f = 1.0 / f
    f = f / (jnp.sum(f, axis=2, keepdims=True) + 1e-6)                   # (B, N, T)
    return jnp.mean(f, axis=1)                                           # (B, T)


def tgm_mixed_kernels(p, c_in, c_out):
    """Build (c_out, c_in, L) temporal kernels from num_f Cauchy bases + soft attn."""
    L = 5
    c = jnp.tanh(p["center"])
    g = jnp.tanh(p["gamma"])
    centers = (L - 1) * (c + 1.0) / 2.0
    gammas = jnp.exp(1.5 - 2.0 * jnp.abs(g))
    t = jnp.arange(L, dtype=jnp.float32)
    f = (t[None, :] - centers[:, None]) / gammas[:, None]
    f = np.pi * gammas[:, None] * (f ** 2 + 1.0)
    f = 1.0 / f
    f = f / (jnp.sum(f, axis=1, keepdims=True) + 1e-6)                   # (num_f, L)
    attn = jax.nn.softmax(p["soft_attn"], axis=1)                        # soft=False
    k = attn @ f
    return k.reshape(c_out, c_in, L)


# ----------------------------------------------------------------------------
# Hierarchy forward (B > 1 branch of the PyTorch module; Dropout(p=0) == identity)
# ----------------------------------------------------------------------------

def hierarchy_forward(params, video, lengths, *, matmul_dtype=jnp.bfloat16):
    B, D, T = video.shape
    classes = params["cls_wts"].shape[0]

    # ---- TSF attention filters for the two super-event poolers ----
    f1 = tsf_pool_filters(params["sup1"], lengths, T)
    f2 = tsf_pool_filters(params["sup2"], lengths, T)
    filt = jnp.stack([f1, f2], axis=-1)                        # (B, T, 2)

    # ---- sub-event path (3 fused TGM layers on the MXU) + fused TSF pooling ----
    k1 = tgm_mixed_kernels(params["tgm1"], 1, 8)
    k2 = tgm_mixed_kernels(params["tgm2"], 8, 8)
    k3 = tgm_mixed_kernels(params["tgm3"], 8, 8)
    d_sub = _pick_d_sub(D, T)
    k1k = _kron_taps(k1, d_sub, matmul_dtype)
    k2k = _kron_taps(k2, d_sub, matmul_dtype)
    k3k = _kron_taps(k3, d_sub, matmul_dtype)
    sub_event, pooled = tgm_and_pool(video, filt, k1k, k2k, k3k, d_sub)  # bf16, f32

    # ---- super-event mixing (tiny, XLA): pooled (B,D,2) -> (B, classes) ----
    sig = jax.nn.sigmoid(params["cls_wts"])
    cw = jnp.stack([sig, 1.0 - sig], axis=1)                   # (classes, 2)
    sup_c = params["sup_mat"][0]                               # (classes, D)
    q = jnp.einsum('cd,bdk->bck', sup_c, pooled)               # (B, classes, 2)
    super_event = jnp.sum(q * cw[None], axis=2)                # (B, classes)

    # ---- head: super-event branch hoisted to a per-batch rank-1 bias ----
    hw = params["h_w"]                                         # (512, 2D + classes)
    whv, whs, whc = hw[:, :D], hw[:, D:2 * D], hw[:, 2 * D:]
    se_bias = jnp.einsum('hc,bc->bh', whc,
                         jax.nn.relu(super_event))[:, :, None]  # (B, H, 1)

    return classify_head(video, sub_event, se_bias,
                         whv.astype(matmul_dtype), whs.astype(matmul_dtype),
                         params["h_b"][:, None],
                         params["c_w"].astype(matmul_dtype),
                         params["c_b"][:, None])


# ----------------------------------------------------------------------------
# Deterministic parameter init (shapes follow Hierarchy.__init__)
# ----------------------------------------------------------------------------

def init_params(key, inp, classes, num_f=16, hidden=512):
    keys = iter(jax.random.split(key, 32))
    nxt = lambda: next(keys)

    def tsf_init(n=3):
        return dict(center=0.5 * jax.random.normal(nxt(), (n,)),
                    delta=0.01 * jax.random.normal(nxt(), (n,)),
                    gamma=1e-4 * jax.random.normal(nxt(), (n,)))

    def tgm_init(c_in, c_out):
        return dict(center=0.5 * jax.random.normal(nxt(), (num_f,)),
                    delta=0.01 * jax.random.normal(nxt(), (num_f,)),
                    gamma=1e-4 * jax.random.normal(nxt(), (num_f,)),
                    soft_attn=0.01 * jax.random.normal(nxt(), (c_out * c_in, num_f)))

    p = {}
    p["sup1"] = tsf_init()
    p["sup2"] = tsf_init()
    p["cls_wts"] = 0.1 * jax.random.normal(nxt(), (classes,))
    stdv = 1.0 / np.sqrt(inp + inp)
    p["sup_mat"] = jax.random.uniform(nxt(), (1, classes, inp), minval=-stdv, maxval=stdv)
    p["tgm1"] = tgm_init(1, 8)
    p["tgm2"] = tgm_init(8, 8)
    p["tgm3"] = tgm_init(8, 8)
    c_h = inp + inp + classes
    s_h = 1.0 / np.sqrt(c_h)
    p["h_w"] = jax.random.uniform(nxt(), (hidden, c_h), minval=-s_h, maxval=s_h)
    p["h_b"] = jax.random.uniform(nxt(), (hidden,), minval=-s_h, maxval=s_h)
    s_c = 1.0 / np.sqrt(hidden)
    p["c_w"] = jax.random.uniform(nxt(), (classes, hidden), minval=-s_c, maxval=s_c)
    p["c_b"] = jax.random.uniform(nxt(), (classes,), minval=-s_c, maxval=s_c)
    return p


if __name__ == "__main__":
    B, D, T, classes = 2, 32, 16, 8
    key = jax.random.PRNGKey(0)
    k_param, k_vid = jax.random.split(key)
    params = init_params(k_param, D, classes)
    video = jax.random.normal(k_vid, (B, D, T), dtype=jnp.float32)
    lengths = jnp.array([T, T - 4], dtype=jnp.float32)

    out = jax.jit(hierarchy_forward)(params, video, lengths)
    out = jax.block_until_ready(out)
    assert out.shape == (B, classes, T) and out.dtype == jnp.float32
    assert bool(jnp.all(jnp.isfinite(out)))
    print("KERNEL_OK")
</pallas_src>

<mosaic_0001>
module attributes {stable_mosaic.version = 11 : i64} {
  func.func @tgm_stack_kernel(%arg0: i32, %arg1: i32, %arg2: memref<1x32x28xf32, #tpu.memory_space<vmem>>, %arg3: memref<1x16x2xf32, #tpu.memory_space<vmem>>, %arg4: memref<5x256x32xbf16, #tpu.memory_space<vmem>>, %arg5: memref<5x256x256xbf16, #tpu.memory_space<vmem>>, %arg6: memref<5x256x256xbf16, #tpu.memory_space<vmem>>, %arg7: memref<1x32x16xbf16, #tpu.memory_space<vmem>>, %arg8: memref<1x32x2xf32, #tpu.memory_space<vmem>>) attributes {dimension_semantics = [#tpu.dimension_semantics<parallel>, #tpu.dimension_semantics<parallel>], iteration_bounds = array<i64: 2, 1>, scalar_prefetch = 0 : i64, scratch_operands = 0 : i64, tpu.core_type = #tpu.core_type<tc>, window_params = [{transform_indices = @transform_0, window_bounds = array<i64: 1, 32, 28>}, {transform_indices = @transform_1, window_bounds = array<i64: 1, 16, 2>}, {pipeline_mode = #tpu.pipeline_mode<synchronous>, transform_indices = @transform_2, window_bounds = array<i64: 5, 256, 32>}, {pipeline_mode = #tpu.pipeline_mode<synchronous>, transform_indices = @transform_3, window_bounds = array<i64: 5, 256, 256>}, {pipeline_mode = #tpu.pipeline_mode<synchronous>, transform_indices = @transform_4, window_bounds = array<i64: 5, 256, 256>}, {transform_indices = @transform_5, window_bounds = array<i64: 1, 32, 16>}, {transform_indices = @transform_6, window_bounds = array<i64: 1, 32, 2>}]} {
    %c0 = arith.constant 0 : index
    %c0_0 = arith.constant 0 : index
    %c0_1 = arith.constant 0 : index
    %0 = vector.load %arg2[%c0, %c0_0, %c0_1] : memref<1x32x28xf32, #tpu.memory_space<vmem>>, vector<1x32x28xf32>
    %1 = vector.shape_cast %0 : vector<1x32x28xf32> to vector<32x28xf32>
    %2 = vector.extract_strided_slice %1 {offsets = [0, 6], sizes = [32, 16], strides = [1, 1]} : vector<32x28xf32> to vector<32x16xf32>
    %c0_2 = arith.constant 0 : index
    %c0_3 = arith.constant 0 : index
    %c0_4 = arith.constant 0 : index
    %3 = vector.load %arg3[%c0_2, %c0_3, %c0_4] : memref<1x16x2xf32, #tpu.memory_space<vmem>>, vector<1x16x2xf32>
    %4 = vector.shape_cast %3 : vector<1x16x2xf32> to vector<16x2xf32>
    %cst = arith.constant dense<0.000000e+00> : vector<32x2xf32>
    %5 = tpu.matmul %2, %4, %cst {dimension_numbers = #tpu.dot_dimension_numbers<[1], [0], [0], [1], [0, 0, 1, 1], [], []>} : vector<32x16xf32>, vector<16x2xf32>, vector<32x2xf32> -> vector<32x2xf32>
    %c0_5 = arith.constant 0 : index
    %c0_6 = arith.constant 0 : index
    %c0_7 = arith.constant 0 : index
    %6 = vector.load %arg8[%c0_5, %c0_6, %c0_7] : memref<1x32x2xf32, #tpu.memory_space<vmem>>, vector<1x32x2xf32>
    %7 = vector.shape_cast %6 : vector<1x32x2xf32> to vector<32x2xf32>
    %8 = vector.shape_cast %5 : vector<32x2xf32> to vector<1x32x2xf32>
    tpu.vector_store %arg8[%c0_5, %c0_6, %c0_7], %8 {strides = array<i32>} : memref<1x32x2xf32, #tpu.memory_space<vmem>>, vector<1x32x2xf32>,
    %9 = arith.truncf %1 : vector<32x28xf32> to vector<32x28xbf16>
    %c0_8 = arith.constant 0 : index
    %c0_9 = arith.constant 0 : index
    %c0_10 = arith.constant 0 : index
    %10 = vector.load %arg4[%c0_8, %c0_9, %c0_10] : memref<5x256x32xbf16, #tpu.memory_space<vmem>>, vector<1x256x32xbf16>
    %11 = vector.shape_cast %10 : vector<1x256x32xbf16> to vector<256x32xbf16>
    %12 = vector.extract_strided_slice %9 {offsets = [0, 0], sizes = [32, 24], strides = [1, 1]} : vector<32x28xbf16> to vector<32x24xbf16>
    %cst_11 = arith.constant dense<0.000000e+00> : vector<256x24xf32>
    %13 = tpu.matmul %11, %12, %cst_11 {dimension_numbers = #tpu.dot_dimension_numbers<[1], [0], [0], [1], [0, 0, 1, 1], [], []>} : vector<256x32xbf16>, vector<32x24xbf16>, vector<256x24xf32> -> vector<256x24xf32>
    %c1 = arith.constant 1 : index
    %c0_12 = arith.constant 0 : index
    %c0_13 = arith.constant 0 : index
    %14 = vector.load %arg4[%c1, %c0_12, %c0_13] : memref<5x256x32xbf16, #tpu.memory_space<vmem>>, vector<1x256x32xbf16>
    %15 = vector.shape_cast %14 : vector<1x256x32xbf16> to vector<256x32xbf16>
    %16 = vector.extract_strided_slice %9 {offsets = [0, 1], sizes = [32, 24], strides = [1, 1]} : vector<32x28xbf16> to vector<32x24xbf16>
    %cst_14 = arith.constant dense<0.000000e+00> : vector<256x24xf32>
    %17 = tpu.matmul %15, %16, %cst_14 {dimension_numbers = #tpu.dot_dimension_numbers<[1], [0], [0], [1], [0, 0, 1, 1], [], []>} : vector<256x32xbf16>, vector<32x24xbf16>, vector<256x24xf32> -> vector<256x24xf32>
    %18 = arith.addf %13, %17 : vector<256x24xf32>
    %c2 = arith.constant 2 : index
    %c0_15 = arith.constant 0 : index
    %c0_16 = arith.constant 0 : index
    %19 = vector.load %arg4[%c2, %c0_15, %c0_16] : memref<5x256x32xbf16, #tpu.memory_space<vmem>>, vector<1x256x32xbf16>
    %20 = vector.shape_cast %19 : vector<1x256x32xbf16> to vector<256x32xbf16>
    %21 = vector.extract_strided_slice %9 {offsets = [0, 2], sizes = [32, 24], strides = [1, 1]} : vector<32x28xbf16> to vector<32x24xbf16>
    %cst_17 = arith.constant dense<0.000000e+00> : vector<256x24xf32>
    %22 = tpu.matmul %20, %21, %cst_17 {dimension_numbers = #tpu.dot_dimension_numbers<[1], [0], [0], [1], [0, 0, 1, 1], [], []>} : vector<256x32xbf16>, vector<32x24xbf16>, vector<256x24xf32> -> vector<256x24xf32>
    %23 = arith.addf %18, %22 : vector<256x24xf32>
    %c3 = arith.constant 3 : index
    %c0_18 = arith.constant 0 : index
    %c0_19 = arith.constant 0 : index
    %24 = vector.load %arg4[%c3, %c0_18, %c0_19] : memref<5x256x32xbf16, #tpu.memory_space<vmem>>, vector<1x256x32xbf16>
    %25 = vector.shape_cast %24 : vector<1x256x32xbf16> to vector<256x32xbf16>
    %26 = vector.extract_strided_slice %9 {offsets = [0, 3], sizes = [32, 24], strides = [1, 1]} : vector<32x28xbf16> to vector<32x24xbf16>
    %cst_20 = arith.constant dense<0.000000e+00> : vector<256x24xf32>
    %27 = tpu.matmul %25, %26, %cst_20 {dimension_numbers = #tpu.dot_dimension_numbers<[1], [0], [0], [1], [0, 0, 1, 1], [], []>} : vector<256x32xbf16>, vector<32x24xbf16>, vector<256x24xf32> -> vector<256x24xf32>
    %28 = arith.addf %23, %27 : vector<256x24xf32>
    %c4 = arith.constant 4 : index
    %c0_21 = arith.constant 0 : index
    %c0_22 = arith.constant 0 : index
    %29 = vector.load %arg4[%c4, %c0_21, %c0_22] : memref<5x256x32xbf16, #tpu.memory_space<vmem>>, vector<1x256x32xbf16>
    %30 = vector.shape_cast %29 : vector<1x256x32xbf16> to vector<256x32xbf16>
    %31 = vector.extract_strided_slice %9 {offsets = [0, 4], sizes = [32, 24], strides = [1, 1]} : vector<32x28xbf16> to vector<32x24xbf16>
    %cst_23 = arith.constant dense<0.000000e+00> : vector<256x24xf32>
    %32 = tpu.matmul %30, %31, %cst_23 {dimension_numbers = #tpu.dot_dimension_numbers<[1], [0], [0], [1], [0, 0, 1, 1], [], []>} : vector<256x32xbf16>, vector<32x24xbf16>, vector<256x24xf32> -> vector<256x24xf32>
    %33 = arith.addf %28, %32 : vector<256x24xf32>
    %34 = tpu.iota {dimensions = array<i32: 1>} : vector<1x24xi32>
    %c4_i32 = arith.constant 4 : i32
    %35 = vector.broadcast %c4_i32 : i32 to vector<1x24xi32>
    %36 = arith.cmpi sge, %34, %35 : vector<1x24xi32>
    %c20_i32 = arith.constant 20 : i32
    %37 = vector.broadcast %c20_i32 : i32 to vector<1x24xi32>
    %38 = arith.cmpi slt, %34, %37 : vector<1x24xi32>
    %39 = arith.andi %36, %38 : vector<1x24xi1>
    %cst_24 = arith.constant 0.000000e+00 : f32
    %40 = vector.shape_cast %39 : vector<1x24xi1> to vector<1x24xi1>
    %41 = vector.broadcast %40 : vector<1x24xi1> to vector<256x24xi1>
    %42 = vector.broadcast %cst_24 : f32 to vector<256x24xf32>
    %43 = arith.select %41, %33, %42 : vector<256x24xi1>, vector<256x24xf32>
    %44 = arith.truncf %43 : vector<256x24xf32> to vector<256x24xbf16>
    %c0_25 = arith.constant 0 : index
    %c0_26 = arith.constant 0 : index
    %c0_27 = arith.constant 0 : index
    %45 = vector.load %arg5[%c0_25, %c0_26, %c0_27] : memref<5x256x256xbf16, #tpu.memory_space<vmem>>, vector<1x256x256xbf16>
    %46 = vector.shape_cast %45 : vector<1x256x256xbf16> to vector<256x256xbf16>
    %47 = vector.extract_strided_slice %44 {offsets = [0, 0], sizes = [256, 20], strides = [1, 1]} : vector<256x24xbf16> to vector<256x20xbf16>
    %cst_28 = arith.constant dense<0.000000e+00> : vector<256x20xf32>
    %48 = tpu.matmul %46, %47, %cst_28 {dimension_numbers = #tpu.dot_dimension_numbers<[1], [0], [0], [1], [0, 0, 1, 1], [], []>} : vector<256x256xbf16>, vector<256x20xbf16>, vector<256x20xf32> -> vector<256x20xf32>
    %c1_29 = arith.constant 1 : index
    %c0_30 = arith.constant 0 : index
    %c0_31 = arith.constant 0 : index
    %49 = vector.load %arg5[%c1_29, %c0_30, %c0_31] : memref<5x256x256xbf16, #tpu.memory_space<vmem>>, vector<1x256x256xbf16>
    %50 = vector.shape_cast %49 : vector<1x256x256xbf16> to vector<256x256xbf16>
    %51 = vector.extract_strided_slice %44 {offsets = [0, 1], sizes = [256, 20], strides = [1, 1]} : vector<256x24xbf16> to vector<256x20xbf16>
    %cst_32 = arith.constant dense<0.000000e+00> : vector<256x20xf32>
    %52 = tpu.matmul %50, %51, %cst_32 {dimension_numbers = #tpu.dot_dimension_numbers<[1], [0], [0], [1], [0, 0, 1, 1], [], []>} : vector<256x256xbf16>, vector<256x20xbf16>, vector<256x20xf32> -> vector<256x20xf32>
    %53 = arith.addf %48, %52 : vector<256x20xf32>
    %c2_33 = arith.constant 2 : index
    %c0_34 = arith.constant 0 : index
    %c0_35 = arith.constant 0 : index
    %54 = vector.load %arg5[%c2_33, %c0_34, %c0_35] : memref<5x256x256xbf16, #tpu.memory_space<vmem>>, vector<1x256x256xbf16>
    %55 = vector.shape_cast %54 : vector<1x256x256xbf16> to vector<256x256xbf16>
    %56 = vector.extract_strided_slice %44 {offsets = [0, 2], sizes = [256, 20], strides = [1, 1]} : vector<256x24xbf16> to vector<256x20xbf16>
    %cst_36 = arith.constant dense<0.000000e+00> : vector<256x20xf32>
    %57 = tpu.matmul %55, %56, %cst_36 {dimension_numbers = #tpu.dot_dimension_numbers<[1], [0], [0], [1], [0, 0, 1, 1], [], []>} : vector<256x256xbf16>, vector<256x20xbf16>, vector<256x20xf32> -> vector<256x20xf32>
    %58 = arith.addf %53, %57 : vector<256x20xf32>
    %c3_37 = arith.constant 3 : index
    %c0_38 = arith.constant 0 : index
    %c0_39 = arith.constant 0 : index
    %59 = vector.load %arg5[%c3_37, %c0_38, %c0_39] : memref<5x256x256xbf16, #tpu.memory_space<vmem>>, vector<1x256x256xbf16>
    %60 = vector.shape_cast %59 : vector<1x256x256xbf16> to vector<256x256xbf16>
    %61 = vector.extract_strided_slice %44 {offsets = [0, 3], sizes = [256, 20], strides = [1, 1]} : vector<256x24xbf16> to vector<256x20xbf16>
    %cst_40 = arith.constant dense<0.000000e+00> : vector<256x20xf32>
    %62 = tpu.matmul %60, %61, %cst_40 {dimension_numbers = #tpu.dot_dimension_numbers<[1], [0], [0], [1], [0, 0, 1, 1], [], []>} : vector<256x256xbf16>, vector<256x20xbf16>, vector<256x20xf32> -> vector<256x20xf32>
    %63 = arith.addf %58, %62 : vector<256x20xf32>
    %c4_41 = arith.constant 4 : index
    %c0_42 = arith.constant 0 : index
    %c0_43 = arith.constant 0 : index
    %64 = vector.load %arg5[%c4_41, %c0_42, %c0_43] : memref<5x256x256xbf16, #tpu.memory_space<vmem>>, vector<1x256x256xbf16>
    %65 = vector.shape_cast %64 : vector<1x256x256xbf16> to vector<256x256xbf16>
    %66 = vector.extract_strided_slice %44 {offsets = [0, 4], sizes = [256, 20], strides = [1, 1]} : vector<256x24xbf16> to vector<256x20xbf16>
    %cst_44 = arith.constant dense<0.000000e+00> : vector<256x20xf32>
    %67 = tpu.matmul %65, %66, %cst_44 {dimension_numbers = #tpu.dot_dimension_numbers<[1], [0], [0], [1], [0, 0, 1, 1], [], []>} : vector<256x256xbf16>, vector<256x20xbf16>, vector<256x20xf32> -> vector<256x20xf32>
    %68 = arith.addf %63, %67 : vector<256x20xf32>
    %69 = tpu.iota {dimensions = array<i32: 1>} : vector<1x20xi32>
    %c2_i32 = arith.constant 2 : i32
    %70 = vector.broadcast %c2_i32 : i32 to vector<1x20xi32>
    %71 = arith.cmpi sge, %69, %70 : vector<1x20xi32>
    %c18_i32 = arith.constant 18 : i32
    %72 = vector.broadcast %c18_i32 : i32 to vector<1x20xi32>
    %73 = arith.cmpi slt, %69, %72 : vector<1x20xi32>
    %74 = arith.andi %71, %73 : vector<1x20xi1>
    %cst_45 = arith.constant 0.000000e+00 : f32
    %75 = vector.shape_cast %74 : vector<1x20xi1> to vector<1x20xi1>
    %76 = vector.broadcast %75 : vector<1x20xi1> to vector<256x20xi1>
    %77 = vector.broadcast %cst_45 : f32 to vector<256x20xf32>
    %78 = arith.select %76, %68, %77 : vector<256x20xi1>, vector<256x20xf32>
    %79 = arith.truncf %78 : vector<256x20xf32> to vector<256x20xbf16>
    %c0_46 = arith.constant 0 : index
    %c0_47 = arith.constant 0 : index
    %c0_48 = arith.constant 0 : index
    %80 = vector.load %arg6[%c0_46, %c0_47, %c0_48] : memref<5x256x256xbf16, #tpu.memory_space<vmem>>, vector<1x256x256xbf16>
    %81 = vector.shape_cast %80 : vector<1x256x256xbf16> to vector<256x256xbf16>
    %82 = vector.extract_strided_slice %79 {offsets = [0, 0], sizes = [256, 16], strides = [1, 1]} : vector<256x20xbf16> to vector<256x16xbf16>
    %cst_49 = arith.constant dense<0.000000e+00> : vector<256x16xf32>
    %83 = tpu.matmul %81, %82, %cst_49 {dimension_numbers = #tpu.dot_dimension_numbers<[1], [0], [0], [1], [0, 0, 1, 1], [], []>} : vector<256x256xbf16>, vector<256x16xbf16>, vector<256x16xf32> -> vector<256x16xf32>
    %c1_50 = arith.constant 1 : index
    %c0_51 = arith.constant 0 : index
    %c0_52 = arith.constant 0 : index
    %84 = vector.load %arg6[%c1_50, %c0_51, %c0_52] : memref<5x256x256xbf16, #tpu.memory_space<vmem>>, vector<1x256x256xbf16>
    %85 = vector.shape_cast %84 : vector<1x256x256xbf16> to vector<256x256xbf16>
    %86 = vector.extract_strided_slice %79 {offsets = [0, 1], sizes = [256, 16], strides = [1, 1]} : vector<256x20xbf16> to vector<256x16xbf16>
    %cst_53 = arith.constant dense<0.000000e+00> : vector<256x16xf32>
    %87 = tpu.matmul %85, %86, %cst_53 {dimension_numbers = #tpu.dot_dimension_numbers<[1], [0], [0], [1], [0, 0, 1, 1], [], []>} : vector<256x256xbf16>, vector<256x16xbf16>, vector<256x16xf32> -> vector<256x16xf32>
    %88 = arith.addf %83, %87 : vector<256x16xf32>
    %c2_54 = arith.constant 2 : index
    %c0_55 = arith.constant 0 : index
    %c0_56 = arith.constant 0 : index
    %89 = vector.load %arg6[%c2_54, %c0_55, %c0_56] : memref<5x256x256xbf16, #tpu.memory_space<vmem>>, vector<1x256x256xbf16>
    %90 = vector.shape_cast %89 : vector<1x256x256xbf16> to vector<256x256xbf16>
    %91 = vector.extract_strided_slice %79 {offsets = [0, 2], sizes = [256, 16], strides = [1, 1]} : vector<256x20xbf16> to vector<256x16xbf16>
    %cst_57 = arith.constant dense<0.000000e+00> : vector<256x16xf32>
    %92 = tpu.matmul %90, %91, %cst_57 {dimension_numbers = #tpu.dot_dimension_numbers<[1], [0], [0], [1], [0, 0, 1, 1], [], []>} : vector<256x256xbf16>, vector<256x16xbf16>, vector<256x16xf32> -> vector<256x16xf32>
    %93 = arith.addf %88, %92 : vector<256x16xf32>
    %c3_58 = arith.constant 3 : index
    %c0_59 = arith.constant 0 : index
    %c0_60 = arith.constant 0 : index
    %94 = vector.load %arg6[%c3_58, %c0_59, %c0_60] : memref<5x256x256xbf16, #tpu.memory_space<vmem>>, vector<1x256x256xbf16>
    %95 = vector.shape_cast %94 : vector<1x256x256xbf16> to vector<256x256xbf16>
    %96 = vector.extract_strided_slice %79 {offsets = [0, 3], sizes = [256, 16], strides = [1, 1]} : vector<256x20xbf16> to vector<256x16xbf16>
    %cst_61 = arith.constant dense<0.000000e+00> : vector<256x16xf32>
    %97 = tpu.matmul %95, %96, %cst_61 {dimension_numbers = #tpu.dot_dimension_numbers<[1], [0], [0], [1], [0, 0, 1, 1], [], []>} : vector<256x256xbf16>, vector<256x16xbf16>, vector<256x16xf32> -> vector<256x16xf32>
    %98 = arith.addf %93, %97 : vector<256x16xf32>
    %c4_62 = arith.constant 4 : index
    %c0_63 = arith.constant 0 : index
    %c0_64 = arith.constant 0 : index
    %99 = vector.load %arg6[%c4_62, %c0_63, %c0_64] : memref<5x256x256xbf16, #tpu.memory_space<vmem>>, vector<1x256x256xbf16>
    %100 = vector.shape_cast %99 : vector<1x256x256xbf16> to vector<256x256xbf16>
    %101 = vector.extract_strided_slice %79 {offsets = [0, 4], sizes = [256, 16], strides = [1, 1]} : vector<256x20xbf16> to vector<256x16xbf16>
    %cst_65 = arith.constant dense<0.000000e+00> : vector<256x16xf32>
    %102 = tpu.matmul %100, %101, %cst_65 {dimension_numbers = #tpu.dot_dimension_numbers<[1], [0], [0], [1], [0, 0, 1, 1], [], []>} : vector<256x256xbf16>, vector<256x16xbf16>, vector<256x16xf32> -> vector<256x16xf32>
    %103 = arith.addf %98, %102 : vector<256x16xf32>
    %104 = vector.extract_strided_slice %103 {offsets = [0, 0], sizes = [32, 16], strides = [1, 1]} : vector<256x16xf32> to vector<32x16xf32>
    %105 = vector.extract_strided_slice %103 {offsets = [32, 0], sizes = [32, 16], strides = [1, 1]} : vector<256x16xf32> to vector<32x16xf32>
    %106 = arith.maximumf %104, %105 : vector<32x16xf32>
    %107 = vector.extract_strided_slice %103 {offsets = [64, 0], sizes = [32, 16], strides = [1, 1]} : vector<256x16xf32> to vector<32x16xf32>
    %108 = arith.maximumf %106, %107 : vector<32x16xf32>
    %109 = vector.extract_strided_slice %103 {offsets = [96, 0], sizes = [32, 16], strides = [1, 1]} : vector<256x16xf32> to vector<32x16xf32>
    %110 = arith.maximumf %108, %109 : vector<32x16xf32>
    %111 = vector.extract_strided_slice %103 {offsets = [128, 0], sizes = [32, 16], strides = [1, 1]} : vector<256x16xf32> to vector<32x16xf32>
    %112 = arith.maximumf %110, %111 : vector<32x16xf32>
    %113 = vector.extract_strided_slice %103 {offsets = [160, 0], sizes = [32, 16], strides = [1, 1]} : vector<256x16xf32> to vector<32x16xf32>
    %114 = arith.maximumf %112, %113 : vector<32x16xf32>
    %115 = vector.extract_strided_slice %103 {offsets = [192, 0], sizes = [32, 16], strides = [1, 1]} : vector<256x16xf32> to vector<32x16xf32>
    %116 = arith.maximumf %114, %115 : vector<32x16xf32>
    %117 = vector.extract_strided_slice %103 {offsets = [224, 0], sizes = [32, 16], strides = [1, 1]} : vector<256x16xf32> to vector<32x16xf32>
    %118 = arith.maximumf %116, %117 : vector<32x16xf32>
    %119 = arith.truncf %118 : vector<32x16xf32> to vector<32x16xbf16>
    %c0_66 = arith.constant 0 : index
    %c0_67 = arith.constant 0 : index
    %c0_68 = arith.constant 0 : index
    %120 = vector.load %arg7[%c0_66, %c0_67, %c0_68] : memref<1x32x16xbf16, #tpu.memory_space<vmem>>, vector<1x32x16xbf16>
    %121 = vector.shape_cast %120 : vector<1x32x16xbf16> to vector<32x16xbf16>
    %122 = vector.shape_cast %119 : vector<32x16xbf16> to vector<1x32x16xbf16>
    tpu.vector_store %arg7[%c0_66, %c0_67, %c0_68], %122 {strides = array<i32>} : memref<1x32x16xbf16, #tpu.memory_space<vmem>>, vector<1x32x16xbf16>,
    return
  }
  func.func @transform_0(%arg0: i32, %arg1: i32) -> (i32, i32, i32) {
    %c0_i32 = arith.constant 0 : i32
    %c0_i32_0 = arith.constant 0 : i32
    return %arg0, %arg1, %c0_i32 : i32, i32, i32
  }
  func.func @transform_1(%arg0: i32, %arg1: i32) -> (i32, i32, i32) {
    %c0_i32 = arith.constant 0 : i32
    %c0_i32_0 = arith.constant 0 : i32
    %c0_i32_1 = arith.constant 0 : i32
    return %arg0, %c0_i32, %c0_i32_0 : i32, i32, i32
  }
  func.func @transform_2(%arg0: i32, %arg1: i32) -> (i32, i32, i32) {
    %c0_i32 = arith.constant 0 : i32
    %c0_i32_0 = arith.constant 0 : i32
    %c0_i32_1 = arith.constant 0 : i32
    %c0_i32_2 = arith.constant 0 : i32
    return %c0_i32, %c0_i32_0, %c0_i32_1 : i32, i32, i32
  }
  func.func @transform_3(%arg0: i32, %arg1: i32) -> (i32, i32, i32) {
    %c0_i32 = arith.constant 0 : i32
    %c0_i32_0 = arith.constant 0 : i32
    %c0_i32_1 = arith.constant 0 : i32
    %c0_i32_2 = arith.constant 0 : i32
    return %c0_i32, %c0_i32_0, %c0_i32_1 : i32, i32, i32
  }
  func.func @transform_4(%arg0: i32, %arg1: i32) -> (i32, i32, i32) {
    %c0_i32 = arith.constant 0 : i32
    %c0_i32_0 = arith.constant 0 : i32
    %c0_i32_1 = arith.constant 0 : i32
    %c0_i32_2 = arith.constant 0 : i32
    return %c0_i32, %c0_i32_0, %c0_i32_1 : i32, i32, i32
  }
  func.func @transform_5(%arg0: i32, %arg1: i32) -> (i32, i32, i32) {
    %c0_i32 = arith.constant 0 : i32
    %c0_i32_0 = arith.constant 0 : i32
    return %arg0, %arg1, %c0_i32 : i32, i32, i32
  }
  func.func @transform_6(%arg0: i32, %arg1: i32) -> (i32, i32, i32) {
    %c0_i32 = arith.constant 0 : i32
    %c0_i32_0 = arith.constant 0 : i32
    return %arg0, %arg1, %c0_i32 : i32, i32, i32
  }
}

module attributes {stable_mosaic.version = 11 : i64} {
  func.func @head_kernel(%arg0: i32, %arg1: i32, %arg2: memref<1x32x16xf32, #tpu.memory_space<vmem>>, %arg3: memref<1x32x16xbf16, #tpu.memory_space<vmem>>, %arg4: memref<1x512x1xf32, #tpu.memory_space<vmem>>, %arg5: memref<512x32xbf16, #tpu.memory_space<vmem>>, %arg6: memref<512x32xbf16, #tpu.memory_space<vmem>>, %arg7: memref<512x1xf32, #tpu.memory_space<vmem>>, %arg8: memref<8x512xbf16, #tpu.memory_space<vmem>>, %arg9: memref<8x1xf32, #tpu.memory_space<vmem>>, %arg10: memref<1x8x16xf32, #tpu.memory_space<vmem>>) attributes {dimension_semantics = [#tpu.dimension_semantics<parallel>, #tpu.dimension_semantics<parallel>], iteration_bounds = array<i64: 2, 1>, scalar_prefetch = 0 : i64, scratch_operands = 0 : i64, tpu.core_type = #tpu.core_type<tc>, window_params = [{transform_indices = @transform_0, window_bounds = array<i64: 1, 32, 16>}, {transform_indices = @transform_1, window_bounds = array<i64: 1, 32, 16>}, {transform_indices = @transform_2, window_bounds = array<i64: 1, 512, 1>}, {pipeline_mode = #tpu.pipeline_mode<synchronous>, transform_indices = @transform_3, window_bounds = array<i64: 512, 32>}, {pipeline_mode = #tpu.pipeline_mode<synchronous>, transform_indices = @transform_4, window_bounds = array<i64: 512, 32>}, {pipeline_mode = #tpu.pipeline_mode<synchronous>, transform_indices = @transform_5, window_bounds = array<i64: 512, 1>}, {pipeline_mode = #tpu.pipeline_mode<synchronous>, transform_indices = @transform_6, window_bounds = array<i64: 8, 512>}, {pipeline_mode = #tpu.pipeline_mode<synchronous>, transform_indices = @transform_7, window_bounds = array<i64: 8, 1>}, {transform_indices = @transform_8, window_bounds = array<i64: 1, 8, 16>}]} {
    %c0 = arith.constant 0 : index
    %c0_0 = arith.constant 0 : index
    %c0_1 = arith.constant 0 : index
    %0 = vector.load %arg2[%c0, %c0_0, %c0_1] : memref<1x32x16xf32, #tpu.memory_space<vmem>>, vector<1x32x16xf32>
    %1 = vector.shape_cast %0 : vector<1x32x16xf32> to vector<32x16xf32>
    %cst = arith.constant 0.000000e+00 : f32
    %2 = vector.broadcast %cst : f32 to vector<32x16xf32>
    %3 = arith.maximumf %1, %2 : vector<32x16xf32>
    %4 = arith.truncf %3 : vector<32x16xf32> to vector<32x16xbf16>
    %c0_2 = arith.constant 0 : index
    %c0_3 = arith.constant 0 : index
    %c0_4 = arith.constant 0 : index
    %5 = vector.load %arg3[%c0_2, %c0_3, %c0_4] : memref<1x32x16xbf16, #tpu.memory_space<vmem>>, vector<1x32x16xbf16>
    %6 = vector.shape_cast %5 : vector<1x32x16xbf16> to vector<32x16xbf16>
    %cst_5 = arith.constant 0.000000e+00 : bf16
    %7 = vector.broadcast %cst_5 : bf16 to vector<32x16xbf16>
    %8 = arith.maximumf %6, %7 : vector<32x16xbf16>
    %c0_6 = arith.constant 0 : index
    %c0_7 = arith.constant 0 : index
    %9 = vector.load %arg5[%c0_6, %c0_7] : memref<512x32xbf16, #tpu.memory_space<vmem>>, vector<512x32xbf16>
    %cst_8 = arith.constant dense<0.000000e+00> : vector<512x16xf32>
    %10 = tpu.matmul %9, %4, %cst_8 {dimension_numbers = #tpu.dot_dimension_numbers<[1], [0], [0], [1], [0, 0, 1, 1], [], []>} : vector<512x32xbf16>, vector<32x16xbf16>, vector<512x16xf32> -> vector<512x16xf32>
    %c0_9 = arith.constant 0 : index
    %c0_10 = arith.constant 0 : index
    %11 = vector.load %arg6[%c0_9, %c0_10] : memref<512x32xbf16, #tpu.memory_space<vmem>>, vector<512x32xbf16>
    %cst_11 = arith.constant dense<0.000000e+00> : vector<512x16xf32>
    %12 = tpu.matmul %11, %8, %cst_11 {dimension_numbers = #tpu.dot_dimension_numbers<[1], [0], [0], [1], [0, 0, 1, 1], [], []>} : vector<512x32xbf16>, vector<32x16xbf16>, vector<512x16xf32> -> vector<512x16xf32>
    %13 = arith.addf %10, %12 : vector<512x16xf32>
    %c0_12 = arith.constant 0 : index
    %c0_13 = arith.constant 0 : index
    %c0_14 = arith.constant 0 : index
    %14 = vector.load %arg4[%c0_12, %c0_13, %c0_14] : memref<1x512x1xf32, #tpu.memory_space<vmem>>, vector<1x512x1xf32>
    %15 = vector.shape_cast %14 : vector<1x512x1xf32> to vector<512x1xf32>
    %16 = vector.broadcast %15 : vector<512x1xf32> to vector<512x16xf32>
    %17 = arith.addf %13, %16 : vector<512x16xf32>
    %c0_15 = arith.constant 0 : index
    %c0_16 = arith.constant 0 : index
    %18 = vector.load %arg7[%c0_15, %c0_16] : memref<512x1xf32, #tpu.memory_space<vmem>>, vector<512x1xf32>
    %19 = vector.broadcast %18 : vector<512x1xf32> to vector<512x16xf32>
    %20 = arith.addf %17, %19 : vector<512x16xf32>
    %cst_17 = arith.constant 0.000000e+00 : f32
    %21 = vector.broadcast %cst_17 : f32 to vector<512x16xf32>
    %22 = arith.maximumf %20, %21 : vector<512x16xf32>
    %23 = arith.truncf %22 : vector<512x16xf32> to vector<512x16xbf16>
    %c0_18 = arith.constant 0 : index
    %c0_19 = arith.constant 0 : index
    %24 = vector.load %arg8[%c0_18, %c0_19] : memref<8x512xbf16, #tpu.memory_space<vmem>>, vector<8x512xbf16>
    %cst_20 = arith.constant dense<0.000000e+00> : vector<8x16xf32>
    %25 = tpu.matmul %24, %23, %cst_20 {dimension_numbers = #tpu.dot_dimension_numbers<[1], [0], [0], [1], [0, 0, 1, 1], [], []>} : vector<8x512xbf16>, vector<512x16xbf16>, vector<8x16xf32> -> vector<8x16xf32>
    %c0_21 = arith.constant 0 : index
    %c0_22 = arith.constant 0 : index
    %26 = vector.load %arg9[%c0_21, %c0_22] : memref<8x1xf32, #tpu.memory_space<vmem>>, vector<8x1xf32>
    %27 = vector.broadcast %26 : vector<8x1xf32> to vector<8x16xf32>
    %28 = arith.addf %25, %27 : vector<8x16xf32>
    %c0_23 = arith.constant 0 : index
    %c0_24 = arith.constant 0 : index
    %c0_25 = arith.constant 0 : index
    %29 = vector.load %arg10[%c0_23, %c0_24, %c0_25] : memref<1x8x16xf32, #tpu.memory_space<vmem>>, vector<1x8x16xf32>
    %30 = vector.shape_cast %29 : vector<1x8x16xf32> to vector<8x16xf32>
    %31 = vector.shape_cast %28 : vector<8x16xf32> to vector<1x8x16xf32>
    tpu.vector_store %arg10[%c0_23, %c0_24, %c0_25], %31 {strides = array<i32>} : memref<1x8x16xf32, #tpu.memory_space<vmem>>, vector<1x8x16xf32>,
    return
  }
  func.func @transform_0(%arg0: i32, %arg1: i32) -> (i32, i32, i32) {
    %c0_i32 = arith.constant 0 : i32
    %c0_i32_0 = arith.constant 0 : i32
    return %arg0, %c0_i32, %arg1 : i32, i32, i32
  }
  func.func @transform_1(%arg0: i32, %arg1: i32) -> (i32, i32, i32) {
    %c0_i32 = arith.constant 0 : i32
    %c0_i32_0 = arith.constant 0 : i32
    return %arg0, %c0_i32, %arg1 : i32, i32, i32
  }
  func.func @transform_2(%arg0: i32, %arg1: i32) -> (i32, i32, i32) {
    %c0_i32 = arith.constant 0 : i32
    %c0_i32_0 = arith.constant 0 : i32
    %c0_i32_1 = arith.constant 0 : i32
    return %arg0, %c0_i32, %c0_i32_0 : i32, i32, i32
  }
  func.func @transform_3(%arg0: i32, %arg1: i32) -> (i32, i32) {
    %c0_i32 = arith.constant 0 : i32
    %c0_i32_0 = arith.constant 0 : i32
    %c0_i32_1 = arith.constant 0 : i32
    return %c0_i32, %c0_i32_0 : i32, i32
  }
  func.func @transform_4(%arg0: i32, %arg1: i32) -> (i32, i32) {
    %c0_i32 = arith.constant 0 : i32
    %c0_i32_0 = arith.constant 0 : i32
    %c0_i32_1 = arith.constant 0 : i32
    return %c0_i32, %c0_i32_0 : i32, i32
  }
  func.func @transform_5(%arg0: i32, %arg1: i32) -> (i32, i32) {
    %c0_i32 = arith.constant 0 : i32
    %c0_i32_0 = arith.constant 0 : i32
    %c0_i32_1 = arith.constant 0 : i32
    return %c0_i32, %c0_i32_0 : i32, i32
  }
  func.func @transform_6(%arg0: i32, %arg1: i32) -> (i32, i32) {
    %c0_i32 = arith.constant 0 : i32
    %c0_i32_0 = arith.constant 0 : i32
    %c0_i32_1 = arith.constant 0 : i32
    return %c0_i32, %c0_i32_0 : i32, i32
  }
  func.func @transform_7(%arg0: i32, %arg1: i32) -> (i32, i32) {
    %c0_i32 = arith.constant 0 : i32
    %c0_i32_0 = arith.constant 0 : i32
    %c0_i32_1 = arith.constant 0 : i32
    return %c0_i32, %c0_i32_0 : i32, i32
  }
  func.func @transform_8(%arg0: i32, %arg1: i32) -> (i32, i32, i32) {
    %c0_i32 = arith.constant 0 : i32
    %c0_i32_0 = arith.constant 0 : i32
    return %arg0, %c0_i32, %arg1 : i32, i32, i32
  }
}

</mosaic_0001>

<bundles_post_ra>
// kernel: hierarchy_forward.3
= control target key start
LH: loop header
LB: loop body
LE: loop exit
PB: predicated region body
PF: predicated region fallthrough
CT: control target
= control target key end

     0   :  { %13 = vsyncpa [#allocation3], 0  ;;  %s4245_s0 = inlined_call_operand.vmem [shape: f32[2,32,16], index: 0, kind: input, shape index: {}]   ;;  %s4246_s1 = inlined_call_operand.vmem [shape: bf16[2,32,16], index: 1, kind: input, shape index: {}]   ;;  %s4247_s2 = inlined_call_operand.vmem [shape: f32[2,512,1], index: 2, kind: input, shape index: {}]   ;;  %s4248_s3 = inlined_call_operand.vmem [shape: bf16[512,32], index: 3, kind: input, shape index: {}]   ;;  %s4249_s4 = inlined_call_operand.vmem [shape: bf16[512,32], index: 4, kind: input, shape index: {}]   ;;  %s4250_s5 = inlined_call_operand.vmem [shape: f32[512,1], index: 5, kind: input, shape index: {}]   ;;  %s4251_s6 = inlined_call_operand.vmem [shape: bf16[8,512], index: 6, kind: input, shape index: {}]   ;;  %s4252_s7 = inlined_call_operand.vmem [shape: f32[8,1], index: 7, kind: input, shape index: {}]   ;;  %s4253_s8 = inlined_call_operand.hbm [shape: f32[2,8,16], index: 8, kind: output, shape index: {}]  }
   0x1   :  { %15 = vsyncpa [#allocation3 + $0x1], 0  ;;  %s3174_s27 = smov 0   ;;  %s3176_s28 = smov 0  }
   0x2   :  { %s3178_s29 = smov 0   ;;  %s3180_s30 = smov 0  }
   0x3   :  { %s3182_s9 = smov 0   ;;  %s3184_s10 = smov 0  }
   0x4 LB: > { %s2573_s11 = sadd.s32 4294967295, %s3126_s10   ;;  %s2574_s12 = sadd.s32 4294967294, %s3126_s10   ;;  %s3126_s10 = sphi %s3184_s10, %s21_s10   ;;  %s3122_s9 = sphi %s3182_s9, %s4332_s9   ;;  %s3118_s30 = sphi %s3180_s30, %s4331_s30   ;;  %s3114_s29 = sphi %s3178_s29, %s4330_s29   ;;  %s3110_s28 = sphi %s3176_s28, %s4329_s28   ;;  %s3106_s27 = sphi %s3174_s27, %s4328_s27  }
   0x5   : > { %s33_s13 = sadd.s32 1, %s3122_s9  ;;  %s229_s14 = sadd.s32 1, %s3114_s29 }
   0x6   : > { %p35_p0 = scmp.ge.s32.totalorder %s33_s13, 2  ;;  %p239_p1 = scmp.ne.s32.totalorder %s3114_s29, %s3110_s28 }
   0x7   : > { %p240_p2 = scmp.eq.s32.totalorder %s2573_s11, 1  ;;  %p245_p3 = scmp.ne.s32.totalorder %s3110_s28, %s3106_s27 }
   0x8   : > { %s4334_s13 = smov (%p35_p0, %s33_s13), 0  ;;  %p246_p5 = scmp.eq.s32.totalorder %s2574_s12, 1 }
   0x9   : > { %p3214_p4 = por %p240_p2, %p239_p1  ;;  %s224_s16 = ssub.s32 %s3122_s9, %s4334_s13 }
   0xa   : > { %p2577_p6 = scmp.ge.s32.totalorder %s3126_s10, 1  ;;  %p227_p7 = scmp.eq.s32.totalorder %s224_s16, 0 }
   0xb   : > { %p3221_p8 = por %p246_p5, %p245_p3  ;;  %p309_p9 = scmp.lt.s32.totalorder %s3126_s10, 3 }
   0xc   : > { %s3227_s18 = scalar_select %p227_p7, %s3114_s29, %s229_s14  }
   0xd   : > { %p310_p10 = pnand %p2577_p6, %p309_p9 }
   0xf   : > { %313 = sbr.rel (%p310_p10) target bundleno = 629 (0x275), region = 52 }
  0x14   : > { %p359_p11 = scmp.lt.s32.totalorder %s3118_s30, 1  ;;  %v3128_v0 = vmov 0   ;;  %v2912_v29 = vld [vmem:[%s4248_s3] sm:$0xff]  ;;  %vm693_vm0 = vcmask 261120   ;;  %v2930_v30 = vld [vmem:[%s4248_s3 + $0x90] sm:$0xff]  ;;  %v2913_v39 = vld [vmem:[%s4248_s3 + $0x8] sm:$0xff] }
  0x15   : > { %3047 = vset.pattern.permute.xlu2 %v3128_v0  ;;  %3046 = vset.pattern.permute.xlu1 %v3128_v0  ;;  %v2944_v31 = vld [vmem:[%s4249_s4] sm:$0xff]  ;;  %v2962_v32 = vld [vmem:[%s4249_s4 + $0x90] sm:$0xff]  ;;  %v2931_v40 = vld [vmem:[%s4248_s3 + $0x98] sm:$0xff]  ;;  %s356_s26 = sand.u32 1, %s3110_s28   ;;  %vm2450_vm1 = vcmask 130048  }
  0x16   : > { %3045 = vset.pattern.permute.xlu0 %v3128_v0  ;;  %s360_s19 = scalar_select %p359_p11, %s3118_s30, 1  ;;  %v2945_v41 = vld [vmem:[%s4249_s4 + $0x8] sm:$0xff]  ;;  %v2963_v42 = vld [vmem:[%s4249_s4 + $0x98] sm:$0xff]  ;;  %v2914_v49 = vld [vmem:[%s4248_s3 + $0x10] sm:$0xff] }
  0x17   : > { %v2932_v50 = vld [vmem:[%s4248_s3 + $0xa0] sm:$0xff]  ;;  %v2946_v51 = vld [vmem:[%s4249_s4 + $0x10] sm:$0xff]  ;;  %v2915_v59 = vld [vmem:[%s4248_s3 + $0x18] sm:$0xff] }
  0x18   : > { %s2911_s20 = sshll.u32 %s360_s19, 9  ;;  %s2909_s21 = sshll.u32 %s360_s19, 5  ;;  %v2964_v52 = vld [vmem:[%s4249_s4 + $0xa0] sm:$0xff]  ;;  %v2933_v60 = vld [vmem:[%s4248_s3 + $0xa8] sm:$0xff]  ;;  %v2947_v61 = vld [vmem:[%s4249_s4 + $0x18] sm:$0xff] }
  0x19   : > { %s3234_s24 = scalar_lea.vmem %s4247_s2, %s2911_s20  ;;  %s366_s11 = scalar_lea.vmem %s4245_s0, %s2909_s21  ;;  %v2965_v62 = vld [vmem:[%s4249_s4 + $0xa8] sm:$0xff] }
  0x1a   : > { %v1388_v1 = vld [vmem:[%s3234_s24 + $0x20] sm:$0xff]  ;;  %v1386_v2 = vld [vmem:[%s3234_s24 + $0x10] sm:$0xff]  ;;  %s2910_s12 = sshll.u32 %s360_s19, 4  ;;  %v384_v5 = vld [vmem:[%s366_s11 + $0x18] sm:$0xff] }
  0x1b   : > { %v1384_v3 = vld [vmem:[%s3234_s24] sm:$0xff]  ;;  %1470 = vperm.xlu2 %3047, %v1388_v1   ;;  %1460 = vperm.xlu1 %3046, %v1386_v2   ;;  %v383_v4 = vld [vmem:[%s366_s11 + $0x10] sm:$0xff]  ;;  %s374_s20 = scalar_lea.vmem %s4246_s1, %s2910_s12  ;;  %v388_v7 = vmax.f32 %v384_v5, 0.0  ;;  %v382_v12 = vld [vmem:[%s366_s11 + $0x8] sm:$0xff]  ;;  %s2578_s12 = sshll.u32 %s356_s26, 3 }
  0x1c   : > { %1450 = vperm.xlu0 %3045, %v1384_v3   ;;  %v387_v6 = vmax.f32 %v383_v4, 0.0  ;;  %v2984_v8 = vld [vmem:[%s374_s20 + $0x8] sm:$0xff]   ;;  %v381_v11 = vld [vmem:[%s366_s11] sm:$0xff]  ;;  %v386_v16 = vmax.f32 %v382_v12, 0.0  ;;  %v1387_v24 = vld [vmem:[%s3234_s24 + $0x18] sm:$0xff]  ;;  %s2906_s11 = sshll.u32 %s3118_s30, 3 }
  0x1d   : > { %v2982_v9 = vunpack.c.l.bf16 %v2984_v8  ;;  %v2983_v10 = vunpack.c.h.bf16 %v2984_v8  ;;  %v2977_v13 = vld [vmem:[%s374_s20] sm:$0xff]   ;;  %v385_v15 = vmax.f32 %v381_v11, 0.0  ;;  %v1389_v23 = vld [vmem:[%s3234_s24 + $0x28] sm:$0xff]  ;;  %v1391_v34 = vld [vmem:[%s3234_s24 + $0x38] sm:$0xff]  ;;  %s2464_s20 = scalar_lea.hbm %s4253_s8, %s2906_s11  ;;  %s2453_s30 = scalar_lea.sflag [#allocation3], %s356_s26 }
  0x1e   : > { %v390_v14 = vpack.c.bf16 %v388_v7, %v387_v6  ;;  %v2978_v17 = vunpack.c.l.bf16 %v2977_v13  ;;  %v2979_v20 = vunpack.c.h.bf16 %v2977_v13  ;;  %v1385_v27 = vld [vmem:[%s3234_s24 + $0x8] sm:$0xff]  ;;  %v1392_v33 = vld [vmem:[%s3234_s24 + $0x40] sm:$0xff]  ;;  %v1390_v35 = vld [vmem:[%s3234_s24 + $0x30] sm:$0xff]  ;;  %s2468_s21 = sshll.u32 %s2464_s20, 4  ;;  %s2469_s21 = int_to_ptr.hbm [resolvable:$true] %s2468_s21 }
  0x1f   : > { %v401_v18 = vmax.f32 %v2982_v9, 0.0  ;;  %v402_v19 = vmax.f32 %v2983_v10, 0.0  ;;  %v389_v25 = vpack.c.bf16 %v386_v16, %v385_v15  ;;  %v1395_v36 = vld [vmem:[%s3234_s24 + $0x58] sm:$0xff]  ;;  %v1394_v37 = vld [vmem:[%s3234_s24 + $0x50] sm:$0xff]  ;;  %v1393_v38 = vld [vmem:[%s3234_s24 + $0x48] sm:$0xff]  ;;  %s3062_s22 = sshra.s32 %s2469_s21, 4  ;;  %s3063_s22 = int_to_ptr.hbm [resolvable:$true] %s3062_s22 }
  0x20   : > { %1221 = vmatpush.bf16.msra.mxu1 %v390_v14  ;;  %2987 = vmatpush.bf16.msra.mxu3 %v390_v14  ;;  %v399_v21 = vmax.f32 %v2978_v17, 0.0  ;;  %v400_v26 = vmax.f32 %v2979_v20, 0.0  ;;  %v1398_v43 = vld [vmem:[%s3234_s24 + $0x70] sm:$0xff]  ;;  %v1397_v44 = vld [vmem:[%s3234_s24 + $0x68] sm:$0xff]  ;;  %v1396_v45 = vld [vmem:[%s3234_s24 + $0x60] sm:$0xff]  ;;  %s3064_s23 = scalar_lea.hbm %s3063_s22, 8  ;;  %p3069_p1 = scmp.lt.s32.totalorder %s3063_s22, %s4253_s8 }
  0x21   : > { %v404_v22 = vpack.c.bf16 %v402_v19, %v401_v18  ;;  %v1401_v46 = vld [vmem:[%s3234_s24 + $0x88] sm:$0xff]  ;;  %v1400_v47 = vld [vmem:[%s3234_s24 + $0x80] sm:$0xff]  ;;  %v1399_v48 = vld [vmem:[%s3234_s24 + $0x78] sm:$0xff]  ;;  %p3065_p12 = scmp.ne.s32.totalorder %s3063_s22, %s3064_s23 }
  0x22   : > { %v403_v28 = vpack.c.bf16 %v400_v26, %v399_v21  ;;  %v1404_v53 = vld [vmem:[%s3234_s24 + $0xa0] sm:$0xff]  ;;  %v1403_v54 = vld [vmem:[%s3234_s24 + $0x98] sm:$0xff]  ;;  %v1402_v55 = vld [vmem:[%s3234_s24 + $0x90] sm:$0xff] }
  0x23   : > { %796 = vmatpush.bf16.msra.mxu0 %v404_v22  ;;  %2985 = vmatpush.bf16.msra.mxu2 %v404_v22  ;;  %v1407_v56 = vld [vmem:[%s3234_s24 + $0xb8] sm:$0xff]  ;;  %v1406_v57 = vld [vmem:[%s3234_s24 + $0xb0] sm:$0xff]  ;;  %v1405_v58 = vld [vmem:[%s3234_s24 + $0xa8] sm:$0xff]  ;;  %p3066_p13 = pnand %p3065_p12, %p3214_p4 }
  0x24   : > { %1475 = vperm.xlu2 %3047, %v1389_v23   ;;  %1465 = vperm.xlu1 %3046, %v1387_v24   ;;  %v1410_v63 = vld [vmem:[%s3234_s24 + $0xd0] sm:$0xff]  ;;  %v1409_v0 = vld [vmem:[%s3234_s24 + $0xc8] sm:$0xff]  ;;  %v1408_v1 = vld [vmem:[%s3234_s24 + $0xc0] sm:$0xff] }
  0x25   : > { %1455 = vperm.xlu0 %3045, %v1385_v27   ;;  %1222 = vmatpush.bf16.msra.mxu1 %v389_v25  ;;  %v1413_v2 = vld [vmem:[%s3234_s24 + $0xe8] sm:$0xff]  ;;  %v1412_v3 = vld [vmem:[%s3234_s24 + $0xe0] sm:$0xff]  ;;  %v1411_v4 = vld [vmem:[%s3234_s24 + $0xd8] sm:$0xff]  ;;  %p3067_p0 = pneg %p3066_p13 }
  0x26   : > { %2988 = vmatpush.bf16.msra.mxu3 %v389_v25  ;;  %v2916_v5 = vld [vmem:[%s4248_s3 + $0x20] sm:$0xff]  ;;  %v2934_v6 = vld [vmem:[%s4248_s3 + $0xb0] sm:$0xff]  ;;  %v1415_v10 = vld [vmem:[%s3234_s24 + $0xf8] sm:$0xff] }
  0x27   : > { %797 = vmatpush.bf16.msra.mxu0 %v403_v28  ;;  %2986 = vmatpush.bf16.msra.mxu2 %v403_v28  ;;  %v2948_v7 = vld [vmem:[%s4249_s4 + $0x20] sm:$0xff]  ;;  %v2966_v8 = vld [vmem:[%s4249_s4 + $0xb0] sm:$0xff]  ;;  %v1419_v12 = vld [vmem:[%s3234_s24 + $0x118] sm:$0xff] }
  0x28   : > { %2873 = vmatmul.msk.bf16.vlgmr.msra.gmra.mxu1 %vm693_vm0, %v2912_v29  ;;  %v1416_v9 = vld [vmem:[%s3234_s24 + $0x100] sm:$0xff]  ;;  %v1414_v11 = vld [vmem:[%s3234_s24 + $0xf0] sm:$0xff]  ;;  %v1417_v14 = vld [vmem:[%s3234_s24 + $0x108] sm:$0xff] }
  0x29   : > { %2891 = vmatmul.msk.bf16.vlgmr.msra.gmra.mxu3 %vm693_vm0, %v2930_v30  ;;  %v1418_v13 = vld [vmem:[%s3234_s24 + $0x110] sm:$0xff]  ;;  %v2917_v15 = vld [vmem:[%s4248_s3 + $0x28] sm:$0xff]  ;;  %v2935_v17 = vld [vmem:[%s4248_s3 + $0xb8] sm:$0xff] }
  0x2a   : > { %2713 = vmatmul.msk.bf16.vlgmr.msra.gmra.mxu0 %vm693_vm0, %v2944_v31  ;;  %2731 = vmatmul.msk.bf16.vlgmr.msra.gmra.mxu2 %vm693_vm0, %v2962_v32  ;;  %v2949_v18 = vld [vmem:[%s4249_s4 + $0x28] sm:$0xff]  ;;  %v2967_v19 = vld [vmem:[%s4249_s4 + $0xb8] sm:$0xff]  ;;  %v1422_v20 = vld [vmem:[%s3234_s24 + $0x130] sm:$0xff] }
  0x2b   : > { %v1421_v21 = vld [vmem:[%s3234_s24 + $0x128] sm:$0xff]  ;;  %v1420_v22 = vld [vmem:[%s3234_s24 + $0x120] sm:$0xff]  ;;  %v1423_v26 = vld [vmem:[%s3234_s24 + $0x138] sm:$0xff] }
  0x2c   : > { %1490 = vperm.xlu2 %3047, %v1392_v33   ;;  %1485 = vperm.xlu1 %3046, %v1391_v34   ;;  %v1425_v24 = vld [vmem:[%s3234_s24 + $0x148] sm:$0xff]  ;;  %v1424_v25 = vld [vmem:[%s3234_s24 + $0x140] sm:$0xff]  ;;  %v2918_v27 = vld [vmem:[%s4248_s3 + $0x30] sm:$0xff] }
  0x2d   : > { %1480 = vperm.xlu0 %3045, %v1390_v35   ;;  %v2936_v28 = vld [vmem:[%s4248_s3 + $0xc0] sm:$0xff]  ;;  %v2950_v30 = vld [vmem:[%s4249_s4 + $0x30] sm:$0xff]  ;;  %v1427_v33 = vld [vmem:[%s3234_s24 + $0x158] sm:$0xff] }
  0x2e   : > { %v2968_v31 = vld [vmem:[%s4249_s4 + $0xc0] sm:$0xff]  ;;  %v1426_v34 = vld [vmem:[%s3234_s24 + $0x150] sm:$0xff] }
  0x2f   : > { %v1428_v32 = vld [vmem:[%s3234_s24 + $0x160] sm:$0xff] }
  0x34   : > { %1505 = vperm.xlu2 %3047, %v1395_v36   ;;  %1500 = vperm.xlu1 %3046, %v1394_v37  }
  0x35   : > { %1495 = vperm.xlu0 %3045, %v1393_v38   ;;  %v1431_v38 = vld [vmem:[%s3234_s24 + $0x178] sm:$0xff] }
  0x38   : > { %2874 = vmatmul.msk.bf16.gmra.mxu1 %vm693_vm0, %v2913_v39  ;;  %v1430_v39 = vld [vmem:[%s3234_s24 + $0x170] sm:$0xff] }
  0x39   : > { %2892 = vmatmul.msk.bf16.gmra.mxu3 %vm693_vm0, %v2931_v40  ;;  %v1429_v40 = vld [vmem:[%s3234_s24 + $0x168] sm:$0xff] }
  0x3a   : > { %2714 = vmatmul.msk.bf16.gmra.mxu0 %vm693_vm0, %v2945_v41  ;;  %2732 = vmatmul.msk.bf16.gmra.mxu2 %vm693_vm0, %v2963_v42  ;;  %v2919_v41 = vld [vmem:[%s4248_s3 + $0x38] sm:$0xff]  ;;  %v2937_v42 = vld [vmem:[%s4248_s3 + $0xc8] sm:$0xff] }
  0x3c   : > { %1520 = vperm.xlu2 %3047, %v1398_v43   ;;  %1515 = vperm.xlu1 %3046, %v1397_v44  }
  0x3d   : > { %1510 = vperm.xlu0 %3045, %v1396_v45   ;;  %v2951_v45 = vld [vmem:[%s4249_s4 + $0x38] sm:$0xff] }
  0x44   : > { %1535 = vperm.xlu2 %3047, %v1401_v46   ;;  %1530 = vperm.xlu1 %3046, %v1400_v47   ;;  %v2969_v46 = vld [vmem:[%s4249_s4 + $0xc8] sm:$0xff] }
  0x45   : > { %1525 = vperm.xlu0 %3045, %v1399_v48   ;;  %v1434_v48 = vld [vmem:[%s3234_s24 + $0x190] sm:$0xff] }
  0x48   : > { %2875 = vmatmul.msk.bf16.gmra.mxu1 %vm693_vm0, %v2914_v49  ;;  %v1433_v49 = vld [vmem:[%s3234_s24 + $0x188] sm:$0xff] }
  0x49   : > { %2893 = vmatmul.msk.bf16.gmra.mxu3 %vm693_vm0, %v2932_v50  ;;  %v1432_v50 = vld [vmem:[%s3234_s24 + $0x180] sm:$0xff] }
  0x4a   : > { %2715 = vmatmul.msk.bf16.gmra.mxu0 %vm693_vm0, %v2946_v51  ;;  %2733 = vmatmul.msk.bf16.gmra.mxu2 %vm693_vm0, %v2964_v52 }
  0x4c   : > { %1550 = vperm.xlu2 %3047, %v1404_v53   ;;  %1545 = vperm.xlu1 %3046, %v1403_v54   ;;  %v1437_v54 = vld [vmem:[%s3234_s24 + $0x1a8] sm:$0xff] }
  0x4d   : > { %1540 = vperm.xlu0 %3045, %v1402_v55   ;;  %v1436_v55 = vld [vmem:[%s3234_s24 + $0x1a0] sm:$0xff] }
  0x54   : > { %1565 = vperm.xlu2 %3047, %v1407_v56   ;;  %1560 = vperm.xlu1 %3046, %v1406_v57   ;;  %v1435_v56 = vld [vmem:[%s3234_s24 + $0x198] sm:$0xff]  ;;  %v2920_v57 = vld [vmem:[%s4248_s3 + $0x40] sm:$0xff] }
  0x55   : > { %1555 = vperm.xlu0 %3045, %v1405_v58  }
  0x58   : > { %2876 = vmatmul.msk.bf16.gmra.mxu1 %vm693_vm0, %v2915_v59  ;;  %v2938_v59 = vld [vmem:[%s4248_s3 + $0xd0] sm:$0xff] }
  0x59   : > { %2894 = vmatmul.msk.bf16.gmra.mxu3 %vm693_vm0, %v2933_v60 }
  0x5a   : > { %2716 = vmatmul.msk.bf16.gmra.mxu0 %vm693_vm0, %v2947_v61  ;;  %2734 = vmatmul.msk.bf16.gmra.mxu2 %vm693_vm0, %v2965_v62  ;;  %v2952_v62 = vld [vmem:[%s4249_s4 + $0x40] sm:$0xff] }
  0x5c   : > { %1580 = vperm.xlu2 %3047, %v1410_v63   ;;  %1575 = vperm.xlu1 %3046, %v1409_v0   ;;  %v2970_v63 = vld [vmem:[%s4249_s4 + $0xd0] sm:$0xff] }
  0x5d   : > { %1570 = vperm.xlu0 %3045, %v1408_v1  }
  0x64   : > { %1595 = vperm.xlu2 %3047, %v1413_v2   ;;  %1590 = vperm.xlu1 %3046, %v1412_v3   ;;  %v1440_v3 = vld [vmem:[%s3234_s24 + $0x1c0] sm:$0xff] }
  0x65   : > { %1585 = vperm.xlu0 %3045, %v1411_v4   ;;  %v1439_v4 = vld [vmem:[%s3234_s24 + $0x1b8] sm:$0xff] }
  0x68   : > { %2877 = vmatmul.msk.bf16.gmra.mxu1 %vm693_vm0, %v2916_v5  ;;  %v1438_v5 = vld [vmem:[%s3234_s24 + $0x1b0] sm:$0xff] }
  0x69   : > { %2895 = vmatmul.msk.bf16.gmra.mxu3 %vm693_vm0, %v2934_v6 }
  0x6a   : > { %2717 = vmatmul.msk.bf16.gmra.mxu0 %vm693_vm0, %v2948_v7  ;;  %2735 = vmatmul.msk.bf16.gmra.mxu2 %vm693_vm0, %v2966_v8 }
  0x6c   : > { %1610 = vperm.xlu2 %3047, %v1416_v9   ;;  %1605 = vperm.xlu1 %3046, %v1415_v10  }
  0x6d   : > { %1600 = vperm.xlu0 %3045, %v1414_v11  }
  0x74   : > { %1625 = vperm.xlu2 %3047, %v1419_v12   ;;  %1620 = vperm.xlu1 %3046, %v1418_v13  }
  0x75   : > { %1615 = vperm.xlu0 %3045, %v1417_v14   ;;  %v3361_v16 = vpop.permute.xlu2 %1470 }
  0x78   : > { %2878 = vmatmul.msk.bf16.gmra.mxu1 %vm693_vm0, %v2917_v15 }
  0x79   : > { %2896 = vmatmul.msk.bf16.gmra.mxu3 %vm693_vm0, %v2935_v17  ;;  %v1443_v17 = vld [vmem:[%s3234_s24 + $0x1d8] sm:$0xff] }
  0x7a   : > { %2718 = vmatmul.msk.bf16.gmra.mxu0 %vm693_vm0, %v2949_v18  ;;  %2736 = vmatmul.msk.bf16.gmra.mxu2 %vm693_vm0, %v2967_v19  ;;  %v1442_v18 = vld [vmem:[%s3234_s24 + $0x1d0] sm:$0xff]  ;;  %v1441_v19 = vld [vmem:[%s3234_s24 + $0x1c8] sm:$0xff] }
  0x7c   : > { %1640 = vperm.xlu2 %3047, %v1422_v20   ;;  %1635 = vperm.xlu1 %3046, %v1421_v21  }
  0x7d   : > { %1630 = vperm.xlu0 %3045, %v1420_v22   ;;  %v2921_v22 = vld [vmem:[%s4248_s3 + $0x48] sm:$0xff] }
  0x7e   : > { %v3379_v23 = vpop.permute.xlu2 %1475 }
  0x84   : > { %1655 = vperm.xlu2 %3047, %v1425_v24   ;;  %1650 = vperm.xlu1 %3046, %v1424_v25  }
  0x85   : > { %1645 = vperm.xlu0 %3045, %v1423_v26   ;;  %v2939_v26 = vld [vmem:[%s4248_s3 + $0xd8] sm:$0xff] }
  0x86   : > { %v3390_v29 = vpop.permute.xlu2 %1490 }
  0x88   : > { %2879 = vmatmul.msk.bf16.gmra.mxu1 %vm693_vm0, %v2918_v27 }
  0x89   : > { %2897 = vmatmul.msk.bf16.gmra.mxu3 %vm693_vm0, %v2936_v28 }
  0x8a   : > { %2719 = vmatmul.msk.bf16.gmra.mxu0 %vm693_vm0, %v2950_v30  ;;  %2737 = vmatmul.msk.bf16.gmra.mxu2 %vm693_vm0, %v2968_v31  ;;  %v2953_v31 = vld [vmem:[%s4249_s4 + $0x48] sm:$0xff] }
  0x8c   : > { %1670 = vperm.xlu2 %3047, %v1428_v32   ;;  %1665 = vperm.xlu1 %3046, %v1427_v33   ;;  %v2971_v32 = vld [vmem:[%s4249_s4 + $0xd8] sm:$0xff] }
  0x8d   : > { %1660 = vperm.xlu0 %3045, %v1426_v34   ;;  %v3405_v35 = vpop.permute.xlu1 %1460 }
  0x8e   : > { %v3407_v36 = vpop.permute.xlu2 %1505  ;;  %v1451_v37 = vpop.permute.xlu0 %1450 }
  0x94   : > { %1685 = vperm.xlu2 %3047, %v1431_v38   ;;  %1680 = vperm.xlu1 %3046, %v1430_v39   ;;  %v1446_v38 = vld [vmem:[%s3234_s24 + $0x1f0] sm:$0xff]  ;;  %v1445_v39 = vld [vmem:[%s3234_s24 + $0x1e8] sm:$0xff] }
  0x95   : > { %1675 = vperm.xlu0 %3045, %v1429_v40   ;;  %v1444_v40 = vld [vmem:[%s3234_s24 + $0x1e0] sm:$0xff] }
  0x96   : > { %v3418_v43 = vpop.permute.xlu2 %1520  ;;  %v3420_v44 = vpop.permute.xlu1 %1465 }
  0x97   : > { %v1456_v47 = vpop.permute.xlu0 %1455 }
  0x98   : > { %2880 = vmatmul.msk.bf16.gmra.mxu1 %vm693_vm0, %v2919_v41 }
  0x99   : > { %2898 = vmatmul.msk.bf16.gmra.mxu3 %vm693_vm0, %v2937_v42 }
  0x9a   : > { %2720 = vmatmul.msk.bf16.gmra.mxu0 %vm693_vm0, %v2951_v45  ;;  %2738 = vmatmul.msk.bf16.gmra.mxu2 %vm693_vm0, %v2969_v46 }
  0x9c   : > { %1700 = vperm.xlu2 %3047, %v1434_v48   ;;  %1695 = vperm.xlu1 %3046, %v1433_v49  }
  0x9d   : > { %1690 = vperm.xlu0 %3045, %v1432_v50  }
  0x9e   : > { %v3435_v51 = vpop.permute.xlu2 %1535  ;;  %v3437_v52 = vpop.permute.xlu1 %1485 }
  0x9f   : > { %v3439_v53 = vpop.permute.xlu0 %1480 }
  0xa4   : > { %1715 = vperm.xlu2 %3047, %v1437_v54   ;;  %1710 = vperm.xlu1 %3046, %v1436_v55  }
  0xa5   : > { %1705 = vperm.xlu0 %3045, %v1435_v56   ;;  %v1224_v58 = vpop.f32.mrf.mxu1  ;;  %v1832_v56 = vld [vmem:[%s4250_s5] sm:$0xff] }
  0xa6   : > { %v3450_v60 = vpop.permute.xlu2 %1550  ;;  %v3452_v61 = vpop.permute.xlu1 %1500 }
  0xa7   : > { %v3460_v0 = vpop.permute.xlu0 %1495  ;;  %v799_v1 = vpop.f32.mrf.mxu0 }
  0xa8   : > { %v1225_v2 = vadd.f32 %v1224_v58, %v799_v1  ;;  %2881 = vmatmul.msk.bf16.gmra.mxu1 %vm693_vm0, %v2920_v57  ;;  %v1447_v57 = vld [vmem:[%s3234_s24 + $0x1f8] sm:$0xff]  ;;  %s358_s24 = scalar_lea.vmem [#allocation2], %s2578_s12  ;;  %s3068_s12 = scalar_lea.hbm %s4253_s8, 16 }
  0xa9   : > { %2899 = vmatmul.msk.bf16.gmra.mxu3 %vm693_vm0, %v2938_v59  ;;  %s2466_s19 = sshll.u32 %s358_s24, 4  ;;  %p3070_p2 = scmp.lt.s32.totalorder %s3068_s12, %s3064_s23  ;;  %s2467_s19 = int_to_ptr.vmem [resolvable:$true] %s2466_s19 }
  0xaa   : > { %2721 = vmatmul.msk.bf16.gmra.mxu0 %vm693_vm0, %v2952_v62  ;;  %2739 = vmatmul.msk.bf16.gmra.mxu2 %vm693_vm0, %v2970_v63  ;;  %v3469_v6 = vadd.f32 %v1451_v37, %v1225_v2  ;;  %v2922_v62 = vld [vmem:[%s4248_s3 + $0x50] sm:$0xff]  ;;  %v2940_v2 = vld [vmem:[%s4248_s3 + $0xe0] sm:$0xff] }
  0xab   : > { %p3071_p3 = por %p3070_p2, %p3069_p1 }
  0xac   : > { %1730 = vperm.xlu2 %3047, %v1440_v3   ;;  %1725 = vperm.xlu1 %3046, %v1439_v4   ;;  %v1314_v7 = vpop.f32.mrf.mxu3 }
  0xad   : > { %1720 = vperm.xlu0 %3045, %v1438_v5   ;;  %v889_v8 = vpop.f32.mrf.mxu2  ;;  %v1226_v9 = vpop.f32.mrf.mxu1  ;;  %v2954_v5 = vld [vmem:[%s4249_s4 + $0x50] sm:$0xff]  ;;  %p3072_p5 = pnand %p3071_p3, %p3067_p0 }
  0xae   : > { %v3471_v10 = vadd.f32 %v1314_v7, %v889_v8  ;;  %v3473_v11 = vpop.permute.xlu2 %1565  ;;  %v3475_v12 = vpop.permute.xlu1 %1515  ;;  %v2972_v7 = vld [vmem:[%s4249_s4 + $0xe0] sm:$0xff] }
  0xaf   : > { %v3477_v13 = vpop.permute.xlu0 %1510  ;;  %v801_v14 = vpop.f32.mrf.mxu0 }
  0xb0   : > { %v1227_v15 = vadd.f32 %v1226_v9, %v801_v14 }
  0xb2   : > { %v3482_v20 = vadd.f32 %v1456_v47, %v1227_v15  ;;  %v1836_v15 = vld [vmem:[%s4250_s5 + $0x20] sm:$0xff] }
  0xb4   : > { %1745 = vperm.xlu2 %3047, %v1443_v17   ;;  %1740 = vperm.xlu1 %3046, %v1442_v18   ;;  %v1316_v21 = vpop.f32.mrf.mxu3  ;;  %v1835_v17 = vld [vmem:[%s4250_s5 + $0x18] sm:$0xff]  ;;  %v1834_v18 = vld [vmem:[%s4250_s5 + $0x10] sm:$0xff] }
  0xb5   : > { %1735 = vperm.xlu0 %3045, %v1441_v19   ;;  %v891_v24 = vpop.f32.mrf.mxu2  ;;  %v1229_v25 = vpop.f32.mrf.mxu1 }
  0xb6   : > { %v3490_v27 = vadd.f32 %v1316_v21, %v891_v24  ;;  %v3492_v28 = vpop.permute.xlu2 %1580  ;;  %v3494_v30 = vpop.permute.xlu1 %1530 }
  0xb7   : > { %4256 = vst [vmem:[#allocation5_spill] sm:$0xff] %v3492_v28  ;;  %v3502_v33 = vpop.permute.xlu0 %1525  ;;  %v804_v34 = vpop.f32.mrf.mxu0  ;;  %v2960_v28 = vld [vmem:[%s4249_s4 + $0x80] sm:$0xff] }
  0xb8   : > { %v1230_v37 = vadd.f32 %v1229_v25, %v804_v34  ;;  %2882 = vmatmul.msk.bf16.gmra.mxu1 %vm693_vm0, %v2921_v22 }
  0xb9   : > { %2900 = vmatmul.msk.bf16.gmra.mxu3 %vm693_vm0, %v2939_v26 }
  0xba   : > { %2722 = vmatmul.msk.bf16.gmra.mxu0 %vm693_vm0, %v2953_v31  ;;  %2740 = vmatmul.msk.bf16.gmra.mxu2 %vm693_vm0, %v2971_v32  ;;  %v3512_v41 = vadd.f32 %v3405_v35, %v1230_v37  ;;  %v1833_v35 = vld [vmem:[%s4250_s5 + $0x8] sm:$0xff]  ;;  %v1839_v37 = vld [vmem:[%s4250_s5 + $0x38] sm:$0xff] }
  0xbc   : > { %1760 = vperm.xlu2 %3047, %v1446_v38   ;;  %1755 = vperm.xlu1 %3046, %v1445_v39   ;;  %v1319_v42 = vpop.f32.mrf.mxu3  ;;  %v1838_v38 = vld [vmem:[%s4250_s5 + $0x30] sm:$0xff]  ;;  %v1837_v39 = vld [vmem:[%s4250_s5 + $0x28] sm:$0xff] }
  0xbd   : > { %1750 = vperm.xlu0 %3045, %v1444_v40   ;;  %v894_v45 = vpop.f32.mrf.mxu2  ;;  %v1231_v46 = vpop.f32.mrf.mxu1 }
  0xbe   : > { %v1320_v47 = vadd.f32 %v1319_v42, %v894_v45  ;;  %v3514_v48 = vpop.permute.xlu2 %1595  ;;  %v3516_v49 = vpop.permute.xlu1 %1545  ;;  %v2923_v42 = vld [vmem:[%s4248_s3 + $0x58] sm:$0xff] }
  0xbf   : > { %v3518_v50 = vpop.permute.xlu0 %1540  ;;  %v806_v54 = vpop.f32.mrf.mxu0 }
  0xc0   : > { %v1232_v55 = vadd.f32 %v1231_v46, %v806_v54  ;;  %v2941_v54 = vld [vmem:[%s4248_s3 + $0xe8] sm:$0xff] }
  0xc2   : > { %v3528_v58 = vadd.f32 %v3420_v44, %v1232_v55 }
  0xc4   : > { %1903 = vperm.xlu2 %3047, %v1833_v35   ;;  %1898 = vperm.xlu1 %3046, %v1832_v56   ;;  %v1321_v59 = vpop.f32.mrf.mxu3  ;;  %v2955_v56 = vld [vmem:[%s4249_s4 + $0x58] sm:$0xff] }
  0xc5   : > { %1765 = vperm.xlu0 %3045, %v1447_v57   ;;  %v896_v63 = vpop.f32.mrf.mxu2  ;;  %v1234_v1 = vpop.f32.mrf.mxu1  ;;  %v2973_v57 = vld [vmem:[%s4249_s4 + $0xe8] sm:$0xff] }
  0xc6   : > { %v3536_v3 = vadd.f32 %v1321_v59, %v896_v63  ;;  %v3538_v4 = vpop.permute.xlu2 %1610  ;;  %v3540_v44 = vpop.permute.xlu1 %1560 }
  0xc7   : > { %4257 = vst [vmem:[#allocation6_spill] sm:$0xff] %v3538_v4  ;;  %v3548_v8 = vpop.permute.xlu0 %1555  ;;  %v809_v9 = vpop.f32.mrf.mxu0 }
  0xc8   : > { %v3550_v14 = vadd.f32 %v1234_v1, %v809_v9  ;;  %2883 = vmatmul.msk.bf16.gmra.mxu1 %vm693_vm0, %v2922_v62 }
  0xc9   : > { %2901 = vmatmul.msk.bf16.gmra.mxu3 %vm693_vm0, %v2940_v2  ;;  %v1842_v2 = vld [vmem:[%s4250_s5 + $0x50] sm:$0xff] }
  0xca   : > { %2723 = vmatmul.msk.bf16.gmra.mxu0 %vm693_vm0, %v2954_v5  ;;  %2741 = vmatmul.msk.bf16.gmra.mxu2 %vm693_vm0, %v2972_v7  ;;  %v1841_v5 = vld [vmem:[%s4250_s5 + $0x48] sm:$0xff] }
  0xcc   : > { %1918 = vperm.xlu2 %3047, %v1836_v15   ;;  %1913 = vperm.xlu1 %3046, %v1835_v17   ;;  %v1324_v19 = vpop.f32.mrf.mxu3 }
  0xcd   : > { %1908 = vperm.xlu0 %3045, %v1834_v18   ;;  %v899_v21 = vpop.f32.mrf.mxu2  ;;  %v1236_v22 = vpop.f32.mrf.mxu1 }
  0xce   : > { %v3565_v24 = vadd.f32 %v1324_v19, %v899_v21  ;;  %v3567_v25 = vpop.permute.xlu2 %1625  ;;  %v3569_v26 = vpop.permute.xlu1 %1575 }
  0xcf   : > { %4258 = vst [vmem:[#allocation7_spill] sm:$0xff] %v3567_v25  ;;  %v3571_v31 = vpop.permute.xlu0 %1570  ;;  %v811_v32 = vpop.f32.mrf.mxu0 }
  0xd0   : > { %4259 = vst [vmem:[#allocation8_spill] sm:$0xff] %v3569_v26  ;;  %v3573_v34 = vadd.f32 %v1236_v22, %v811_v32 }
  0xd1   : > { %4260 = vst [vmem:[#allocation9_spill] sm:$0xff] %v3571_v31 }
  0xd4   : > { %1933 = vperm.xlu2 %3047, %v1839_v37   ;;  %1928 = vperm.xlu1 %3046, %v1838_v38   ;;  %v3584_v40 = vpop.f32.mrf.mxu3  ;;  %v1844_v38 = vld [vmem:[%s4250_s5 + $0x60] sm:$0xff] }
  0xd5   : > { %4261 = vst [vmem:[#allocation10_spill] sm:$0xff] %v3584_v40  ;;  %1923 = vperm.xlu0 %3045, %v1837_v39   ;;  %v3589_v45 = vpop.f32.mrf.mxu2  ;;  %v1239_v46 = vpop.f32.mrf.mxu1  ;;  %v1843_v39 = vld [vmem:[%s4250_s5 + $0x58] sm:$0xff] }
  0xd6   : > { %4262 = vst [vmem:[#allocation11_spill] sm:$0xff] %v3589_v45  ;;  %v1641_v55 = vpop.permute.xlu2 %1640  ;;  %v3594_v35 = vpop.permute.xlu1 %1590 }
  0xd7   : > { %4263 = vst [vmem:[#allocation12_spill] sm:$0xff] %v3594_v35  ;;  %v3602_v59 = vadd.f32 %v1641_v55, %v1320_v47  ;;  %v3604_v62 = vpop.permute.xlu0 %1585  ;;  %v814_v63 = vpop.f32.mrf.mxu0  ;;  %v1840_v47 = vld [vmem:[%s4250_s5 + $0x40] sm:$0xff] }
  0xd8   : > { %4265 = vst [vmem:[#allocation14_spill] sm:$0xff] %v3604_v62  ;;  %v1240_v1 = vadd.f32 %v1239_v46, %v814_v63  ;;  %2884 = vmatmul.msk.bf16.gmra.mxu1 %vm693_vm0, %v2923_v42  ;;  %v1888_v35 = vld [vmem:[%s4250_s5 + $0x1c0] sm:$0xff] }
  0xd9   : > { %4264 = vst [vmem:[#allocation13_spill] sm:$0xff] %v3602_v59  ;;  %2902 = vmatmul.msk.bf16.gmra.mxu3 %vm693_vm0, %v2941_v54  ;;  %v2924_v54 = vld [vmem:[%s4248_s3 + $0x60] sm:$0xff]  ;;  %v2958_v59 = vld [vmem:[%s4249_s4 + $0x70] sm:$0xff] }
  0xda   : > { %2724 = vmatmul.msk.bf16.gmra.mxu0 %vm693_vm0, %v2955_v56  ;;  %2742 = vmatmul.msk.bf16.gmra.mxu2 %vm693_vm0, %v2973_v57  ;;  %v3620_v7 = vadd.f32 %v3439_v53, %v1240_v1  ;;  %v1845_v53 = vld [vmem:[%s4250_s5 + $0x68] sm:$0xff]  ;;  %v2942_v57 = vld [vmem:[%s4248_s3 + $0xf0] sm:$0xff] }
  0xdc   : > { %1948 = vperm.xlu2 %3047, %v1842_v2   ;;  %1943 = vperm.xlu1 %3046, %v1841_v5   ;;  %v1329_v9 = vpop.f32.mrf.mxu3  ;;  %v2974_v2 = vld [vmem:[%s4249_s4 + $0xf0] sm:$0xff] }
  0xdd   : > { %1938 = vperm.xlu0 %3045, %v1840_v47   ;;  %v904_v15 = vpop.f32.mrf.mxu2  ;;  %v1241_v17 = vpop.f32.mrf.mxu1 }
  0xde   : > { %v3622_v18 = vadd.f32 %v1329_v9, %v904_v15  ;;  %v3624_v19 = vpop.permute.xlu2 %1655  ;;  %v3626_v21 = vpop.permute.xlu1 %1605  ;;  %v1848_v15 = vld [vmem:[%s4250_s5 + $0x80] sm:$0xff] }
  0xdf   : > { %4266 = vst [vmem:[#allocation15_spill] sm:$0xff] %v3624_v19  ;;  %v3628_v22 = vpop.permute.xlu0 %1600  ;;  %v816_v32 = vpop.f32.mrf.mxu0 }
  0xe0   : > { %4267 = vst [vmem:[#allocation16_spill] sm:$0xff] %v3626_v21  ;;  %v1242_v37 = vadd.f32 %v1241_v17, %v816_v32  ;;  %v1847_v17 = vld [vmem:[%s4250_s5 + $0x78] sm:$0xff]  ;;  %v1846_v32 = vld [vmem:[%s4250_s5 + $0x70] sm:$0xff] }
  0xe2   : > { %v3640_v42 = vadd.f32 %v3437_v52, %v1242_v37  ;;  %v2956_v52 = vld [vmem:[%s4249_s4 + $0x60] sm:$0xff] }
  0xe4   : > { %1963 = vperm.xlu2 %3047, %v1845_v53   ;;  %1958 = vperm.xlu1 %3046, %v1844_v38   ;;  %v3642_v46 = vpop.f32.mrf.mxu3 }
  0xe5   : > { %4268 = vst [vmem:[#allocation17_spill] sm:$0xff] %v3642_v46  ;;  %1953 = vperm.xlu0 %3045, %v1843_v39   ;;  %v3647_v55 = vpop.f32.mrf.mxu2  ;;  %v1244_v56 = vpop.f32.mrf.mxu1 }
  0xe6   : > { %4269 = vst [vmem:[#allocation18_spill] sm:$0xff] %v3647_v55  ;;  %v1671_v63 = vpop.permute.xlu2 %1670  ;;  %v3652_v1 = vpop.permute.xlu1 %1620 }
  0xe7   : > { %4270 = vst [vmem:[#allocation19_spill] sm:$0xff] %v3652_v1  ;;  %v3660_v5 = vpop.permute.xlu0 %1615  ;;  %v819_v47 = vpop.f32.mrf.mxu0 }
  0xe8   : > { %4271 = vst [vmem:[#allocation20_spill] sm:$0xff] %v3660_v5  ;;  %v3662_v9 = vadd.f32 %v1244_v56, %v819_v47  ;;  %2885 = vmatmul.msk.bf16.gmra.mxu1 %vm693_vm0, %v2924_v54 }
  0xe9   : > { %2903 = vmatmul.msk.bf16.gmra.mxu3 %vm693_vm0, %v2942_v57 }
  0xea   : > { %2725 = vmatmul.msk.bf16.gmra.mxu0 %vm693_vm0, %v2956_v52  ;;  %2743 = vmatmul.msk.bf16.gmra.mxu2 %vm693_vm0, %v2974_v2 }
  0xec   : > { %1978 = vperm.xlu2 %3047, %v1848_v15   ;;  %1973 = vperm.xlu1 %3046, %v1847_v17   ;;  %v1334_v37 = vpop.f32.mrf.mxu3  ;;  %v1851_v17 = vld [vmem:[%s4250_s5 + $0x98] sm:$0xff] }
  0xed   : > { %1968 = vperm.xlu0 %3045, %v1846_v32   ;;  %v909_v53 = vpop.f32.mrf.mxu2  ;;  %v1246_v38 = vpop.f32.mrf.mxu1  ;;  %v1850_v32 = vld [vmem:[%s4250_s5 + $0x90] sm:$0xff] }
  0xee   : > { %v1335_v39 = vadd.f32 %v1334_v37, %v909_v53  ;;  %v3677_v54 = vpop.permute.xlu2 %1685  ;;  %v1636_v56 = vpop.permute.xlu1 %1635 }
  0xef   : > { %v3680_v57 = vadd.f32 %v1636_v56, %v3490_v27  ;;  %v1631_v52 = vpop.permute.xlu0 %1630  ;;  %v821_v47 = vpop.f32.mrf.mxu0  ;;  %v1849_v27 = vld [vmem:[%s4250_s5 + $0x88] sm:$0xff] }
  0xf0   : > { %v3683_v2 = vadd.f32 %v1631_v52, %v3471_v10  ;;  %v3685_v4 = vadd.f32 %v1246_v38, %v821_v47  ;;  %v3687_v15 = vadd.f32 %v1671_v63, %v1335_v39  ;;  %v2925_v63 = vld [vmem:[%s4248_s3 + $0x68] sm:$0xff]  ;;  %v2943_v38 = vld [vmem:[%s4248_s3 + $0xf8] sm:$0xff] }
  0xf1   : > { %4272 = vst [vmem:[#allocation21_spill] sm:$0xff] %v3680_v57  ;;  %v2957_v47 = vld [vmem:[%s4249_s4 + $0x68] sm:$0xff] }
  0xf2   : > { %4273 = vst [vmem:[#allocation22_spill] sm:$0xff] %v3683_v2 }
  0xf4   : > { %1993 = vperm.xlu2 %3047, %v1851_v17   ;;  %1988 = vperm.xlu1 %3046, %v1850_v32   ;;  %v1336_v10 = vpop.f32.mrf.mxu3  ;;  %v2975_v17 = vld [vmem:[%s4249_s4 + $0xf8] sm:$0xff] }
  0xf5   : > { %1983 = vperm.xlu0 %3045, %v1849_v27   ;;  %v911_v37 = vpop.f32.mrf.mxu2  ;;  %v1249_v53 = vpop.f32.mrf.mxu1 }
  0xf6   : > { %v1337_v39 = vadd.f32 %v1336_v10, %v911_v37  ;;  %v3704_v56 = vpop.permute.xlu2 %1700  ;;  %v1651_v52 = vpop.permute.xlu1 %1650  ;;  %v1854_v37 = vld [vmem:[%s4250_s5 + $0xb0] sm:$0xff] }
  0xf7   : > { %v3713_v32 = vadd.f32 %v1651_v52, %v3565_v24  ;;  %v1646_v27 = vpop.permute.xlu0 %1645  ;;  %v824_v5 = vpop.f32.mrf.mxu0  ;;  %v1853_v24 = vld [vmem:[%s4250_s5 + $0xa8] sm:$0xff] }
  0xf8   : > { %v3716_v1 = vadd.f32 %v1646_v27, %v3536_v3  ;;  %v3718_v10 = vadd.f32 %v1249_v53, %v824_v5  ;;  %2886 = vmatmul.msk.bf16.gmra.mxu1 %vm693_vm0, %v2925_v63  ;;  %v1852_v3 = vld [vmem:[%s4250_s5 + $0xa0] sm:$0xff] }
  0xf9   : > { %4274 = vst [vmem:[#allocation23_spill] sm:$0xff] %v3713_v32  ;;  %2904 = vmatmul.msk.bf16.gmra.mxu3 %vm693_vm0, %v2943_v38 }
  0xfa   : > { %4275 = vst [vmem:[#allocation24_spill] sm:$0xff] %v3716_v1  ;;  %2726 = vmatmul.msk.bf16.gmra.mxu0 %vm693_vm0, %v2957_v47  ;;  %2744 = vmatmul.msk.bf16.gmra.mxu2 %vm693_vm0, %v2975_v17 }
  0xfc   : > { %2008 = vperm.xlu2 %3047, %v1854_v37   ;;  %2003 = vperm.xlu1 %3046, %v1853_v24   ;;  %v1339_v5 = vpop.f32.mrf.mxu3  ;;  %v1857_v37 = vld [vmem:[%s4250_s5 + $0xc8] sm:$0xff]  ;;  %v1856_v24 = vld [vmem:[%s4250_s5 + $0xc0] sm:$0xff] }
  0xfd   : > { %1998 = vperm.xlu0 %3045, %v1852_v3   ;;  %v914_v63 = vpop.f32.mrf.mxu2  ;;  %v1251_v53 = vpop.f32.mrf.mxu1  ;;  %v1855_v3 = vld [vmem:[%s4250_s5 + $0xb8] sm:$0xff] }
  0xfe   : > { %v1340_v38 = vadd.f32 %v1339_v5, %v914_v63  ;;  %v3733_v52 = vpop.permute.xlu2 %1715  ;;  %v3735_v27 = vpop.permute.xlu1 %1665 }
  0xff   : > { %4276 = vst [vmem:[#allocation25_spill] sm:$0xff] %v3735_v27  ;;  %v1661_v25 = vpop.permute.xlu0 %1660  ;;  %v826_v57 = vpop.f32.mrf.mxu0 }
 0x100   : > { %v3738_v47 = vadd.f32 %v1661_v25, %v3622_v18  ;;  %v3740_v17 = vadd.f32 %v1251_v53, %v826_v57  ;;  %v2926_v25 = vld [vmem:[%s4248_s3 + $0x70] sm:$0xff] }
 0x102   : > { %4277 = vst [vmem:[#allocation26_spill] sm:$0xff] %v3738_v47 }
 0x104   : > { %2023 = vperm.xlu2 %3047, %v1857_v37   ;;  %2018 = vperm.xlu1 %3046, %v1856_v24   ;;  %v1341_v5 = vpop.f32.mrf.mxu3 }
 0x105   : > { %2013 = vperm.xlu0 %3045, %v1855_v3   ;;  %v916_v18 = vpop.f32.mrf.mxu2  ;;  %v1254_v57 = vpop.f32.mrf.mxu1 }
 0x106   : > { %v1342_v63 = vadd.f32 %v1341_v5, %v916_v18  ;;  %v3754_v53 = vpop.permute.xlu2 %1730  ;;  %v1681_v2 = vpop.permute.xlu1 %1680  ;;  %v1863_v5 = vld [vmem:[%s4250_s5 + $0xf8] sm:$0xff] }
 0x107   : > { %4278 = vst [vmem:[#allocation27_spill] sm:$0xff] %v3754_v53  ;;  %v3759_v1 = vadd.f32 %v1681_v2, %v1340_v38  ;;  %v1676_v37 = vpop.permute.xlu0 %1675  ;;  %v829_v24 = vpop.f32.mrf.mxu0  ;;  %v1862_v2 = vld [vmem:[%s4250_s5 + $0xf0] sm:$0xff] }
 0x108   : > { %v3761_v32 = vadd.f32 %v1676_v37, %v1337_v39  ;;  %v3763_v19 = vadd.f32 %v1254_v57, %v829_v24  ;;  %2887 = vmatmul.msk.bf16.gmra.mxu1 %vm693_vm0, %v2926_v25  ;;  %v3767_v3 = vadd.f32 %v3677_v54, %v1342_v63  ;;  %v1858_v39 = vld [vmem:[%s4250_s5 + $0xd0] sm:$0xff] }
 0x10a   : > { %2727 = vmatmul.msk.bf16.gmra.mxu0 %vm693_vm0, %v2958_v59  ;;  %v1859_v59 = vld [vmem:[%s4250_s5 + $0xd8] sm:$0xff] }
 0x10c   : > { %2053 = vperm.xlu2 %3047, %v1863_v5   ;;  %2048 = vperm.xlu1 %3046, %v1862_v2   ;;  %v1344_v38 = vpop.f32.mrf.mxu3  ;;  %v1861_v5 = vld [vmem:[%s4250_s5 + $0xe8] sm:$0xff]  ;;  %v1860_v2 = vld [vmem:[%s4250_s5 + $0xe0] sm:$0xff] }
 0x10d   : > { %2028 = vperm.xlu0 %3045, %v1858_v39   ;;  %v919_v54 = vpop.f32.mrf.mxu2  ;;  %v1256_v25 = vpop.f32.mrf.mxu1 }
 0x10e   : > { %v1345_v18 = vadd.f32 %v1344_v38, %v919_v54  ;;  %v3779_v57 = vpop.permute.xlu2 %1745  ;;  %v1696_v63 = vpop.permute.xlu1 %1695  ;;  %v2927_v38 = vld [vmem:[%s4248_s3 + $0x78] sm:$0xff] }
 0x10f   : > { %4279 = vst [vmem:[#allocation28_spill] sm:$0xff] %v3779_v57  ;;  %v1691_v37 = vpop.permute.xlu0 %1690  ;;  %v831_v24 = vpop.f32.mrf.mxu0 }
 0x110   : > { %v3781_v53 = vadd.f32 %v1691_v37, %v1345_v18  ;;  %v3783_v31 = vadd.f32 %v1256_v25, %v831_v24 }
 0x112   : > { %4280 = vst [vmem:[#allocation29_spill] sm:$0xff] %v3781_v53  ;;  %v2959_v53 = vld [vmem:[%s4249_s4 + $0x78] sm:$0xff] }
 0x114   : > { %2033 = vperm.xlu2 %3047, %v1859_v59   ;;  %2043 = vperm.xlu1 %3046, %v1861_v5   ;;  %v1346_v39 = vpop.f32.mrf.mxu3 }
 0x115   : > { %2038 = vperm.xlu0 %3045, %v1860_v2   ;;  %v921_v54 = vpop.f32.mrf.mxu2  ;;  %v1259_v25 = vpop.f32.mrf.mxu1  ;;  %v1894_v2 = vld [vmem:[%s4250_s5 + $0x1f0] sm:$0xff] }
 0x116   : > { %v1347_v18 = vadd.f32 %v1346_v39, %v921_v54  ;;  %v3797_v37 = vpop.permute.xlu2 %1760  ;;  %v1711_v24 = vpop.permute.xlu1 %1710  ;;  %v1879_v39 = vld [vmem:[%s4250_s5 + $0x178] sm:$0xff]  ;;  %v1878_v54 = vld [vmem:[%s4250_s5 + $0x170] sm:$0xff] }
 0x117   : > { %4281 = vst [vmem:[#allocation30_spill] sm:$0xff] %v3797_v37  ;;  %v1706_v57 = vpop.permute.xlu0 %1705  ;;  %v834_v26 = vpop.f32.mrf.mxu0 }
 0x118   : > { %v3802_v59 = vadd.f32 %v1259_v25, %v834_v26  ;;  %2888 = vmatmul.msk.bf16.gmra.mxu1 %vm693_vm0, %v2927_v38  ;;  %v3805_v5 = vadd.f32 %v1696_v63, %v1347_v18 }
 0x11a   : > { %4282 = vst [vmem:[#allocation31_spill] sm:$0xff] %v3805_v5  ;;  %2728 = vmatmul.msk.bf16.gmra.mxu0 %vm693_vm0, %v2959_v53 }
 0x11c   : > { %2208 = vperm.xlu2 %3047, %v1894_v2   ;;  %2133 = vperm.xlu1 %3046, %v1879_v39   ;;  %v1349_v26 = vpop.f32.mrf.mxu3  ;;  %v1877_v2 = vld [vmem:[%s4250_s5 + $0x168] sm:$0xff]  ;;  %v1876_v39 = vld [vmem:[%s4250_s5 + $0x160] sm:$0xff] }
 0x11d   : > { %2128 = vperm.xlu0 %3045, %v1878_v54   ;;  %v924_v63 = vpop.f32.mrf.mxu2  ;;  %v3817_v38 = vpop.f32.mrf.mxu1 }
 0x11e   : > { %v1350_v25 = vadd.f32 %v1349_v26, %v924_v63  ;;  %v1904_v18 = vpop.permute.xlu2 %1903  ;;  %v3819_v5 = vpop.permute.xlu1 %1725 }
 0x11f   : > { %v3822_v37 = vadd.f32 %v1904_v18, %v3482_v20  ;;  %v3824_v40 = vpop.permute.xlu0 %1720  ;;  %v3826_v53 = vpop.f32.mrf.mxu0  ;;  %v1895_v20 = vld [vmem:[%s4250_s5 + $0x1f8] sm:$0xff] }
 0x120   : > { %v3829_v45 = vadd.f32 %v3704_v56, %v1350_v25  ;;  %v2928_v56 = vld [vmem:[%s4248_s3 + $0x80] sm:$0xff] }
 0x122   : > { %4283 = vst [vmem:[#allocation32_spill] sm:$0xff] %v3829_v45 }
 0x124   : > { %2123 = vperm.xlu2 %3047, %v1877_v2   ;;  %2118 = vperm.xlu1 %3046, %v1876_v39   ;;  %v1351_v54 = vpop.f32.mrf.mxu3 }
 0x125   : > { %2213 = vperm.xlu0 %3045, %v1895_v20   ;;  %v926_v26 = vpop.f32.mrf.mxu2  ;;  %v1264_v63 = vpop.f32.mrf.mxu1  ;;  %v1874_v20 = vld [vmem:[%s4250_s5 + $0x150] sm:$0xff] }
 0x126   : > { %v1352_v25 = vadd.f32 %v1351_v54, %v926_v26  ;;  %v3843_v18 = vpop.permute.xlu2 %1918  ;;  %v3845_v45 = vpop.permute.xlu1 %1740  ;;  %v1893_v54 = vld [vmem:[%s4250_s5 + $0x1e8] sm:$0xff]  ;;  %v1892_v26 = vld [vmem:[%s4250_s5 + $0x1e0] sm:$0xff] }
 0x127   : > { %4284 = vst [vmem:[#allocation33_spill] sm:$0xff] %v3845_v45  ;;  %v3850_v47 = vpop.permute.xlu0 %1735  ;;  %v839_v2 = vpop.f32.mrf.mxu0 }
 0x128   : > { %4285 = vst [vmem:[#allocation34_spill] sm:$0xff] %v3850_v47  ;;  %v3852_v39 = vadd.f32 %v1264_v63, %v839_v2  ;;  %2889 = vmatmul.msk.bf16.gmra.mxu1 %vm693_vm0, %v2928_v56  ;;  %v3855_v27 = vadd.f32 %v1706_v57, %v1352_v25 }
 0x12a   : > { %4286 = vst [vmem:[#allocation35_spill] sm:$0xff] %v3855_v27  ;;  %2729 = vmatmul.msk.bf16.gmra.mxu0 %vm693_vm0, %v2960_v28 }
 0x12c   : > { %2108 = vperm.xlu2 %3047, %v1874_v20   ;;  %2203 = vperm.xlu1 %3046, %v1893_v54   ;;  %v1354_v63 = vpop.f32.mrf.mxu3  ;;  %v1891_v20 = vld [vmem:[%s4250_s5 + $0x1d8] sm:$0xff]  ;;  %v1890_v54 = vld [vmem:[%s4250_s5 + $0x1d0] sm:$0xff] }
 0x12d   : > { %2198 = vperm.xlu0 %3045, %v1892_v26   ;;  %v929_v57 = vpop.f32.mrf.mxu2  ;;  %v1266_v56 = vpop.f32.mrf.mxu1  ;;  %v1875_v26 = vld [vmem:[%s4250_s5 + $0x158] sm:$0xff] }
 0x12e   : > { %v1355_v25 = vadd.f32 %v1354_v63, %v929_v57  ;;  %v1934_v2 = vpop.permute.xlu2 %1933  ;;  %v3867_v27 = vpop.permute.xlu1 %1755 }
 0x12f   : > { %4287 = vst [vmem:[#allocation36_spill] sm:$0xff] %v3867_v27  ;;  %v3869_v45 = vpop.permute.xlu0 %1750  ;;  %v841_v47 = vpop.f32.mrf.mxu0 }
 0x130   : > { %4288 = vst [vmem:[#allocation37_spill] sm:$0xff] %v3869_v45  ;;  %v3871_v62 = vadd.f32 %v1266_v56, %v841_v47  ;;  %v3873_v28 = vadd.f32 %v1711_v24, %v1355_v25  ;;  %v2929_v47 = vld [vmem:[%s4248_s3 + $0x88] sm:$0xff] }
 0x131   : > { %v2961_v45 = vld [vmem:[%s4249_s4 + $0x88] sm:$0xff] }
 0x132   : > { %4289 = vst [vmem:[#allocation38_spill] sm:$0xff] %v3873_v28 }
 0x134   : > { %2193 = vperm.xlu2 %3047, %v1891_v20   ;;  %2188 = vperm.xlu1 %3046, %v1890_v54   ;;  %v1356_v63 = vpop.f32.mrf.mxu3 }
 0x135   : > { %2113 = vperm.xlu0 %3045, %v1875_v26   ;;  %v931_v24 = vpop.f32.mrf.mxu2  ;;  %v1269_v57 = vpop.f32.mrf.mxu1 }
 0x136   : > { %v1357_v56 = vadd.f32 %v1356_v63, %v931_v24  ;;  %v3887_v25 = vpop.permute.xlu2 %1948  ;;  %v1899_v28 = vpop.permute.xlu1 %1898  ;;  %v2281_v63 = vmax.f32 %v3822_v37, 0.0 }
 0x137   : > { %v2216_v27 = vadd.f32 %v1899_v28, %v3469_v6  ;;  %v3893_v20 = vpop.permute.xlu0 %1765  ;;  %v844_v54 = vpop.f32.mrf.mxu0  ;;  %v1873_v6 = vld [vmem:[%s4250_s5 + $0x148] sm:$0xff]  ;;  %v1872_v28 = vld [vmem:[%s4250_s5 + $0x140] sm:$0xff] }
 0x138   : > { %4290 = vst [vmem:[#allocation39_spill] sm:$0xff] %v3893_v20  ;;  %v3895_v21 = vadd.f32 %v1269_v57, %v844_v54  ;;  %2890 = vmatmul.msk.bf16.gmra.mxu1 %vm693_vm0, %v2929_v47  ;;  %v3899_v26 = vadd.f32 %v3733_v52, %v1357_v56 }
 0x139   : > { %v2280_v24 = vmax.f32 %v2216_v27, 0.0 }
 0x13a   : > { %4291 = vst [vmem:[#allocation40_spill] sm:$0xff] %v3899_v26  ;;  %2730 = vmatmul.msk.bf16.gmra.mxu0 %vm693_vm0, %v2961_v45 }
 0x13b   : > { %v3912_v47 = vpack.c.bf16 %v2281_v63, %v2280_v24  ;;  %v1871_v24 = vld [vmem:[%s4250_s5 + $0x138] sm:$0xff] }
 0x13c   : > { %2178 = vperm.xlu2 %3047, %v1888_v35   ;;  %2103 = vperm.xlu1 %3046, %v1873_v6   ;;  %v1359_v52 = vpop.f32.mrf.mxu3  ;;  %v1870_v6 = vld [vmem:[%s4250_s5 + $0x130] sm:$0xff] }
 0x13d   : > { %2098 = vperm.xlu0 %3045, %v1872_v28   ;;  %v934_v27 = vpop.f32.mrf.mxu2  ;;  %v1271_v37 = vpop.f32.mrf.mxu1 }
 0x13e   : > { %v1360_v57 = vadd.f32 %v1359_v52, %v934_v27  ;;  %v3914_v56 = vpop.permute.xlu2 %1963  ;;  %v1914_v54 = vpop.permute.xlu1 %1913 }
 0x13f   : > { %v2219_v26 = vadd.f32 %v1914_v54, %v3528_v58  ;;  %v1909_v20 = vpop.permute.xlu0 %1908  ;;  %v846_v45 = vpop.f32.mrf.mxu0  ;;  %v1889_v58 = vld [vmem:[%s4250_s5 + $0x1c8] sm:$0xff] }
 0x140   : > { %v2218_v46 = vadd.f32 %v1909_v20, %v3512_v41  ;;  %v1272_v55 = vadd.f32 %v1271_v37, %v846_v45  ;;  %v3919_v63 = vadd.f32 %v3824_v40, %v1360_v57  ;;  %v1772_v41 = vadd.f32 %v3361_v16, %v3550_v14 }
 0x141   : > { %v2283_v35 = vmax.f32 %v2219_v26, 0.0  ;;  %v2223_v26 = vadd.f32 %v1934_v2, %v3640_v42  ;;  %v1773_v16 = vadd.f32 %v3379_v23, %v3573_v34  ;;  %v1887_v23 = vld [vmem:[%s4250_s5 + $0x1b8] sm:$0xff] }
 0x142   : > { %v2282_v28 = vmax.f32 %v2218_v46, 0.0  ;;  %v1784_v46 = vadd.f32 %v3494_v30, %v3852_v39  ;;  %v2220_v37 = vadd.f32 %v3843_v18, %v1772_v41  ;;  %v1868_v39 = vld [vmem:[%s4250_s5 + $0x120] sm:$0xff] }
 0x143   : > { %v2287_v30 = vmax.f32 %v2223_v26, 0.0 }
 0x144   : > { %2093 = vperm.xlu2 %3047, %v1871_v24   ;;  %2088 = vperm.xlu1 %3046, %v1870_v6   ;;  %v1361_v40 = vpop.f32.mrf.mxu3  ;;  %v3932_v20 = vpack.c.bf16 %v2283_v35, %v2282_v28  ;;  %v2284_v34 = vmax.f32 %v2220_v37, 0.0 }
 0x145   : > { %2183 = vperm.xlu0 %3045, %v1889_v58   ;;  %v936_v52 = vpop.f32.mrf.mxu2  ;;  %v1274_v27 = vpop.f32.mrf.mxu1  ;;  %v1886_v58 = vld [vmem:[%s4250_s5 + $0x1b0] sm:$0xff] }
 0x146   : > { %v1362_v57 = vadd.f32 %v1361_v40, %v936_v52  ;;  %v1979_v54 = vpop.permute.xlu2 %1978  ;;  %v1929_v45 = vpop.permute.xlu1 %1928 }
 0x147   : > { %v3940_v14 = vadd.f32 %v1979_v54, %v1784_v46  ;;  %v2222_v35 = vadd.f32 %v1929_v45, %v3620_v7  ;;  %v1924_v24 = vpop.permute.xlu0 %1923  ;;  %v849_v42 = vpop.f32.mrf.mxu0  ;;  %v1777_v46 = vadd.f32 %v3460_v0, %v3685_v4  ;;  %v1776_v45 = vadd.f32 %v3390_v29, %v3662_v9  ;;  %v1885_v0 = vld [vmem:[%s4250_s5 + $0x1a8] sm:$0xff] }
 0x148   : > { %v2221_v2 = vadd.f32 %v1924_v24, %v1773_v16  ;;  %v3943_v6 = vadd.f32 %v1274_v27, %v849_v42  ;;  %v3946_v28 = vadd.f32 %v3819_v5, %v1362_v57  ;;  %v1787_v27 = vadd.f32 %v3516_v49, %v1272_v55  ;;  %v1884_v49 = vld [vmem:[%s4250_s5 + $0x1a0] sm:$0xff]  ;;  %v1869_v29 = vld [vmem:[%s4250_s5 + $0x128] sm:$0xff] }
 0x149   : > { %v2286_v18 = vmax.f32 %v2222_v35, 0.0  ;;  %v1781_v55 = vadd.f32 %v3475_v12, %v3783_v31  ;;  %v1778_v9 = vadd.f32 %v3452_v61, %v3718_v10  ;;  %v1779_v12 = vadd.f32 %v3407_v36, %v3740_v17 }
 0x14a   : > { %v2285_v7 = vmax.f32 %v2221_v2, 0.0 }
 0x14b   : > { %v3957_v41 = vpack.c.bf16 %v2287_v30, %v2286_v18 }
 0x14c   : > { %2078 = vperm.xlu2 %3047, %v1868_v39   ;;  %2173 = vperm.xlu1 %3046, %v1887_v23   ;;  %v1364_v5 = vpop.f32.mrf.mxu3  ;;  %v3959_v40 = vpack.c.bf16 %v2285_v7, %v2284_v34  ;;  %v2229_v23 = vadd.f32 %v3914_v56, %v1781_v55  ;;  %v1780_v7 = vadd.f32 %v3477_v13, %v3763_v19  ;;  %v1882_v13 = vld [vmem:[%s4250_s5 + $0x190] sm:$0xff]  ;;  %v1867_v19 = vld [vmem:[%s4250_s5 + $0x118] sm:$0xff] }
 0x14d   : > { %2168 = vperm.xlu0 %3045, %v1886_v58   ;;  %v939_v26 = vpop.f32.mrf.mxu2  ;;  %v1276_v52 = vpop.f32.mrf.mxu1  ;;  %v2226_v58 = vadd.f32 %v3887_v25, %v1778_v9  ;;  %v1262_v56 = vadd.f32 %v3817_v38, %v3826_v53  ;;  %v1865_v9 = vld [vmem:[%s4250_s5 + $0x108] sm:$0xff] }
 0x14e   : > { %v3964_v37 = vadd.f32 %v1364_v5, %v939_v26  ;;  %v1994_v57 = vpop.permute.xlu2 %1993  ;;  %v1944_v54 = vpop.permute.xlu1 %1943 }
 0x14f   : > { %v3968_v16 = vadd.f32 %v1994_v57, %v1787_v27  ;;  %v2225_v35 = vadd.f32 %v1944_v54, %v1777_v46  ;;  %v1939_v24 = vpop.permute.xlu0 %1938  ;;  %v851_v42 = vpop.f32.mrf.mxu0  ;;  %v2293_v46 = vmax.f32 %v2229_v23, 0.0  ;;  %v2290_v25 = vmax.f32 %v2226_v58, 0.0  ;;  %v1866_v54 = vld [vmem:[%s4250_s5 + $0x110] sm:$0xff] }
 0x150   : > { %v2224_v2 = vadd.f32 %v1939_v24, %v1776_v45  ;;  %v3970_v30 = vadd.f32 %v1276_v52, %v851_v42  ;;  %v1783_v24 = vadd.f32 %v3502_v33, %v1262_v56  ;;  %v1864_v33 = vld [vmem:[%s4250_s5 + $0x100] sm:$0xff] }
 0x151   : > { %v2289_v18 = vmax.f32 %v2225_v35, 0.0 }
 0x152   : > { %v2288_v4 = vmax.f32 %v2224_v2, 0.0 }
 0x154   : > { %2163 = vperm.xlu2 %3047, %v1885_v0   ;;  %2158 = vperm.xlu1 %3046, %v1884_v49   ;;  %v3985_v39 = vpack.c.bf16 %v2289_v18, %v2288_v4 }
 0x155   : > { %2083 = vperm.xlu0 %3045, %v1869_v29   ;;  %v1279_v34 = vpop.f32.mrf.mxu1 }
 0x156   : > { %v2009_v5 = vpop.permute.xlu2 %2008  ;;  %v1959_v26 = vpop.permute.xlu1 %1958 }
 0x157   : > { %v2228_v31 = vadd.f32 %v1959_v26, %v1780_v7  ;;  %v1954_v61 = vpop.permute.xlu0 %1953  ;;  %v854_v10 = vpop.f32.mrf.mxu0  ;;  %v1786_v7 = vadd.f32 %v3518_v50, %v3895_v21  ;;  %v1785_v26 = vadd.f32 %v3435_v51, %v3871_v62  ;;  %v2378_v50 = vld [vmem:[%s4252_s7] sm:$0xff]  ;;  %v1881_v21 = vld [vmem:[%s4250_s5 + $0x188] sm:$0xff] }
 0x158   : > { %v2227_v52 = vadd.f32 %v1954_v61, %v1779_v12  ;;  %v1280_v27 = vadd.f32 %v1279_v34, %v854_v10  ;;  %v1883_v34 = vld [vmem:[%s4250_s5 + $0x198] sm:$0xff]  ;;  %v1880_v62 = vld [vmem:[%s4250_s5 + $0x180] sm:$0xff] }
 0x159   : > { %v2292_v57 = vmax.f32 %v2228_v31, 0.0 }
 0x15a   : > { %v2291_v36 = vmax.f32 %v2227_v52, 0.0  ;;  %v1790_v17 = vadd.f32 %v3540_v44, %v1280_v27  ;;  %v1782_v44 = vadd.f32 %v3418_v43, %v3802_v59  ;;  %v2299_v27 = vmax.f32 %v3968_v16, 0.0 }
 0x15b   : > { %v2350_v45 = vpack.c.bf16 %v2293_v46, %v2292_v57  ;;  %v2296_v46 = vmax.f32 %v3940_v14, 0.0 }
 0x15c   : > { %2148 = vperm.xlu2 %3047, %v1882_v13   ;;  %2073 = vperm.xlu1 %3046, %v1867_v19   ;;  %v2349_v38 = vpack.c.bf16 %v2291_v36, %v2290_v25  ;;  %v4005_v53 = vadd.f32 %v2009_v5, %v1790_v17  ;;  %v1789_v19 = vadd.f32 %v3548_v8, %v3970_v30  ;;  %v4061_v30 = vpop.f32.mrf.mxu2 }
 0x15d   : > { %2068 = vperm.xlu0 %3045, %v1866_v54   ;;  %v1281_v35 = vpop.f32.mrf.mxu1  ;;  %v1788_v36 = vadd.f32 %v3450_v60, %v3943_v6 }
 0x15e   : > { %v4008_v42 = vpop.permute.xlu2 %2023  ;;  %v1974_v2 = vpop.permute.xlu1 %1973 }
 0x15f   : > { %v2231_v18 = vadd.f32 %v1974_v2, %v1783_v24  ;;  %v1969_v0 = vpop.permute.xlu0 %1968  ;;  %v856_v49 = vpop.f32.mrf.mxu0 }
 0x160   : > { %v2230_v4 = vadd.f32 %v1969_v0, %v1782_v44  ;;  %v1282_v29 = vadd.f32 %v1281_v35, %v856_v49  ;;  %v4055_v44 = vpop.f32.mrf.mxu3 }
 0x161   : > { %v2295_v55 = vmax.f32 %v2231_v18, 0.0 }
 0x162   : > { %v2294_v23 = vmax.f32 %v2230_v4, 0.0  ;;  %v1791_v6 = vadd.f32 %v3473_v11, %v1282_v29 }
 0x164   : > { %2063 = vperm.xlu2 %3047, %v1865_v9   ;;  %2058 = vperm.xlu1 %3046, %v1864_v33   ;;  %v2351_v43 = vpack.c.bf16 %v2295_v55, %v2294_v23  ;;  %v4075_v55 = vld [vmem:[%s4251_s6] sm:$0xff] }
 0x165   : > { %2153 = vperm.xlu0 %3045, %v1883_v34   ;;  %v1284_v59 = vpop.f32.mrf.mxu1  ;;  %v2386_v11 = vunpack.c.l.b16 %v4075_v55 }
 0x166   : > { %2398 = vmatpush.bf16.msrb.mxu2 %v2351_v43  ;;  %v4023_v58 = vpop.permute.xlu2 %2053  ;;  %v1989_v5 = vpop.permute.xlu1 %1988 }
 0x167   : > { %v2234_v12 = vadd.f32 %v1989_v5, %v1786_v7  ;;  %v1984_v31 = vpop.permute.xlu0 %1983  ;;  %v859_v61 = vpop.f32.mrf.mxu0 }
 0x168   : > { %v2233_v10 = vadd.f32 %v1984_v31, %v1785_v26  ;;  %v4027_v52 = vadd.f32 %v1284_v59, %v859_v61  ;;  %v4081_v29 = vpop.f32.mrf.mxu3  ;;  %v4086_v43 = vpop.f32.mrf.mxu2  ;;  %v2390_v59 = vpack.c.b16 %v2386_v11, %v2386_v11 }
 0x169   : > { %v2298_v56 = vmax.f32 %v2234_v12, 0.0 }
 0x16a   : > { %v2297_v51 = vmax.f32 %v2233_v10, 0.0  ;;  %2399 = vmatpush.bf16.msrb.mxu2 %v2350_v45 }
 0x16b   : > { %v4040_v57 = vpack.c.bf16 %v2299_v27, %v2298_v56 }
 0x16c   : > { %2381 = vperm.xlu2 %3047, %v2378_v50   ;;  %2143 = vperm.xlu1 %3046, %v1881_v21   ;;  %v4042_v16 = vpack.c.bf16 %v2297_v51, %v2296_v46 }
 0x16d   : > { %2138 = vperm.xlu0 %3045, %v1880_v62   ;;  %v4044_v13 = vpop.f32.mrf.mxu1 }
 0x16e   : > { %2400 = vmatpush.bf16.msrb.mxu2 %v2349_v38  ;;  %v4048_v14 = vpop.permute.xlu2 %2033  ;;  %v2004_v25 = vpop.permute.xlu1 %2003 }
 0x16f   : > { %v2237_v17 = vadd.f32 %v2004_v25, %v1789_v19  ;;  %v1999_v54 = vpop.permute.xlu0 %1998  ;;  %v4052_v45 = vpop.f32.mrf.mxu0 }
 0x170   : > { %v2236_v35 = vadd.f32 %v1999_v54, %v1788_v36  ;;  %v4089_v31 = vpop.f32.mrf.mxu3  ;;  %v4091_v61 = vpop.f32.mrf.mxu2 }
 0x171   : > { %v2301_v24 = vmax.f32 %v2237_v17, 0.0 }
 0x172   : > { %v2300_v2 = vmax.f32 %v2236_v35, 0.0  ;;  %2401 = vmatpush.bf16.msrb.mxu2 %v3985_v39 }
 0x174   : > { %v4057_v18 = vpack.c.bf16 %v2301_v24, %v2300_v2 }
 0x175   : > { %v4059_v8 = vpop.f32.mrf.mxu1 }
 0x176   : > { %2402 = vmatpush.bf16.msrb.mxu2 %v3957_v41  ;;  %v4064_v60 = vpop.permute.xlu1 %2018  ;;  %v4069_v49 = vpop.permute.xlu2 %2208  ;;  %v2302_v41 = vmax.f32 %v4005_v53, 0.0 }
 0x177   : > { %v2014_v38 = vpop.permute.xlu0 %2013  ;;  %v4067_v0 = vpop.f32.mrf.mxu0 }
 0x178   : > { %v2239_v39 = vadd.f32 %v2014_v38, %v1791_v6  ;;  %v4095_v62 = vpop.f32.mrf.mxu3  ;;  %v4097_v25 = vpop.f32.mrf.mxu2 }
 0x17a   : > { %v2303_v4 = vmax.f32 %v2239_v39, 0.0  ;;  %2403 = vmatpush.bf16.msrb.mxu2 %v3959_v40 }
 0x17c   : > { %v4078_v9 = vpack.c.bf16 %v2303_v4, %v2302_v41 }
 0x17d   : > { %v1291_v33 = vpop.f32.mrf.mxu1 }
 0x17e   : > { %2404 = vmatpush.bf16.msrb.mxu2 %v3932_v20  ;;  %v2049_v23 = vpop.permute.xlu1 %2048  ;;  %v2124_v7 = vpop.permute.xlu2 %2123 }
 0x17f   : > { %v4084_v34 = vpop.permute.xlu0 %2028  ;;  %v866_v40 = vpop.f32.mrf.mxu0  ;;  %v2261_v36 = vadd.f32 %v2124_v7, %v3761_v32 }
 0x180   : > { %v4105_v41 = vpop.f32.mrf.mxu3 }
 0x182   : > { %2405 = vmatpush.bf16.msrb.mxu2 %v3912_v47 }
 0x185   : > { %v1294_v53 = vpop.f32.mrf.mxu1  ;;  %2406 = vmatmul.bf16.vlgmr.msrb.gmra.mxu2 %v2390_v59 }
 0x186   : > { %v2044_v5 = vpop.permute.xlu1 %2043  ;;  %v2109_v20 = vpop.permute.xlu2 %2108 }
 0x187   : > { %v2039_v26 = vpop.permute.xlu0 %2038  ;;  %v869_v12 = vpop.f32.mrf.mxu0 }
 0x188   : > { %v1295_v11 = vadd.f32 %v1294_v53, %v869_v12  ;;  %v4294_v53 = vld [vmem:[#allocation12_spill] sm:$0xff] }
 0x18a   : > { %v1796_v12 = vadd.f32 %v4294_v53, %v1295_v11  ;;  %v1379_v53 = vpop.f32.mrf.mxu3 }
 0x18d   : > { %v1296_v10 = vpop.f32.mrf.mxu1 }
 0x18e   : > { %v2134_v27 = vpop.permute.xlu1 %2133  ;;  %v4100_v54 = vpop.permute.xlu2 %2193 }
 0x18f   : > { %v2263_v56 = vadd.f32 %v2134_v27, %v3767_v3  ;;  %v2129_v50 = vpop.permute.xlu0 %2128  ;;  %v871_v21 = vpop.f32.mrf.mxu0 }
 0x190   : > { %v2262_v46 = vadd.f32 %v2129_v50, %v3759_v1  ;;  %v2325_v1 = vmax.f32 %v2261_v36, 0.0  ;;  %v1297_v4 = vadd.f32 %v1296_v10, %v871_v21  ;;  %v1292_v50 = vadd.f32 %v1291_v33, %v866_v40  ;;  %v4292_v21 = vld [vmem:[#allocation18_spill] sm:$0xff] }
 0x191   : > { %v2327_v51 = vmax.f32 %v2263_v56, 0.0  ;;  %v4112_v56 = vpop.f32.mrf.mxu2 }
 0x192   : > { %v2326_v47 = vmax.f32 %v2262_v46, 0.0  ;;  %v1797_v46 = vadd.f32 %v3514_v48, %v1297_v4  ;;  %v4297_v48 = vld [vmem:[#allocation25_spill] sm:$0xff] }
 0x194   : > { %v2367_v19 = vpack.c.bf16 %v2327_v51, %v2326_v47  ;;  %v4293_v47 = vld [vmem:[#allocation17_spill] sm:$0xff]  ;;  %v2245_v40 = vadd.f32 %v2044_v5, %v1797_v46 }
 0x195   : > { %v1299_v17 = vpop.f32.mrf.mxu1 }
 0x196   : > { %2424 = vmatpush.bf16.msra.mxu2 %v2367_v19  ;;  %v2119_v35 = vpop.permute.xlu1 %2118  ;;  %v4115_v51 = vpop.permute.xlu2 %2178  ;;  %v1332_v19 = vadd.f32 %v4293_v47, %v4292_v21  ;;  %v2309_v46 = vmax.f32 %v2245_v40, 0.0  ;;  %v4302_v21 = vld [vmem:[#allocation8_spill] sm:$0xff] }
 0x197   : > { %v2260_v3 = vadd.f32 %v2119_v35, %v3687_v15  ;;  %v4103_v24 = vpop.permute.xlu0 %2213  ;;  %v874_v2 = vpop.f32.mrf.mxu0  ;;  %v1290_v35 = vadd.f32 %v4059_v8, %v4067_v0 }
 0x198   : > { %v1300_v38 = vadd.f32 %v1299_v17, %v874_v2 }
 0x199   : > { %v2324_v6 = vmax.f32 %v2260_v3, 0.0  ;;  %v4296_v3 = vld [vmem:[#allocation14_spill] sm:$0xff] }
 0x19a   : > { %v1798_v32 = vadd.f32 %v3628_v22, %v1300_v38  ;;  %v4295_v22 = vld [vmem:[#allocation16_spill] sm:$0xff]  ;;  %v1795_v2 = vadd.f32 %v4296_v3, %v1292_v50  ;;  %v4298_v38 = vld [vmem:[#allocation26_spill] sm:$0xff] }
 0x19b   : > { %v2366_v39 = vpack.c.bf16 %v2325_v1, %v2324_v6  ;;  %v1811_v1 = vadd.f32 %v4297_v48, %v1332_v19  ;;  %v1287_v6 = vadd.f32 %v4044_v13, %v4052_v45  ;;  %v4300_v13 = vld [vmem:[#allocation11_spill] sm:$0xff]  ;;  %v4301_v45 = vld [vmem:[#allocation10_spill] sm:$0xff]  ;;  %v4303_v19 = vld [vmem:[#allocation9_spill] sm:$0xff] }
 0x19c   : > { %v2246_v17 = vadd.f32 %v2049_v23, %v1798_v32  ;;  %v2244_v23 = vadd.f32 %v2039_v26, %v1796_v12  ;;  %v4299_v32 = vld [vmem:[#allocation5_spill] sm:$0xff]  ;;  %v1792_v26 = vadd.f32 %v4303_v19, %v4027_v52  ;;  %v954_v12 = vpop.f32.mrf.mxu2  ;;  %v4304_v48 = vld [vmem:[#allocation15_spill] sm:$0xff]  ;;  %v4307_v19 = vld [vmem:[#allocation24_spill] sm:$0xff] }
 0x19d   : > { %2425 = vmatpush.bf16.msra.mxu2 %v2366_v39  ;;  %v1301_v59 = vpop.f32.mrf.mxu1  ;;  %v2258_v39 = vadd.f32 %v2109_v20, %v4298_v38  ;;  %v1327_v20 = vadd.f32 %v4301_v45, %v4300_v13  ;;  %v1793_v47 = vadd.f32 %v4302_v21, %v1287_v6 }
 0x19e   : > { %v4108_v7 = vpop.permute.xlu1 %2203  ;;  %v2310_v11 = vmax.f32 %v2246_v17, 0.0  ;;  %v2094_v17 = vpop.permute.xlu2 %2093  ;;  %v2308_v3 = vmax.f32 %v2244_v23, 0.0 }
 0x19f   : > { %v4110_v27 = vpop.permute.xlu0 %2198  ;;  %v876_v15 = vpop.f32.mrf.mxu0  ;;  %v2241_v38 = vadd.f32 %v4008_v42, %v1793_v47  ;;  %v4306_v42 = vld [vmem:[#allocation27_spill] sm:$0xff] }
 0x1a0   : > { %v1302_v10 = vadd.f32 %v1301_v59, %v876_v15  ;;  %v1794_v15 = vadd.f32 %v4299_v32, %v1290_v35  ;;  %v1824_v45 = vadd.f32 %v4306_v42, %v3964_v37 }
 0x1a2   : > { %v1799_v36 = vadd.f32 %v4295_v22, %v1302_v10  ;;  %v2243_v10 = vadd.f32 %v4048_v14, %v1795_v2  ;;  %v2242_v22 = vadd.f32 %v4084_v34, %v1794_v15  ;;  %v2358_v2 = vpack.c.bf16 %v2309_v46, %v2308_v3 }
 0x1a3   : > { %v2305_v46 = vmax.f32 %v2241_v38, 0.0 }
 0x1a4   : > { %v2247_v33 = vadd.f32 %v4023_v58, %v1799_v36  ;;  %v2322_v36 = vmax.f32 %v2258_v39, 0.0  ;;  %v2307_v40 = vmax.f32 %v2243_v10, 0.0  ;;  %v2306_v6 = vmax.f32 %v2242_v22, 0.0  ;;  %v1381_v10 = vpop.f32.mrf.mxu3  ;;  %v956_v13 = vpop.f32.mrf.mxu2 }
 0x1a5   : > { %v4132_v0 = vpop.f32.mrf.mxu1  ;;  %v2272_v22 = vadd.f32 %v4115_v51, %v1824_v45  ;;  %v1382_v3 = vadd.f32 %v1381_v10, %v956_v13 }
 0x1a6   : > { %v4129_v4 = vpop.permute.xlu1 %2188  ;;  %v2311_v59 = vmax.f32 %v2247_v33, 0.0  ;;  %v2240_v33 = vadd.f32 %v4064_v60, %v1792_v26  ;;  %v2357_v15 = vpack.c.bf16 %v2307_v40, %v2306_v6  ;;  %v1367_v60 = vadd.f32 %v4055_v44, %v4061_v30  ;;  %v4308_v30 = vld [vmem:[#allocation34_spill] sm:$0xff] }
 0x1a7   : > { %v2114_v8 = vpop.permute.xlu0 %2113  ;;  %v4134_v58 = vpop.f32.mrf.mxu0  ;;  %v2255_v26 = vadd.f32 %v2094_v17, %v4307_v19  ;;  %v1377_v17 = vadd.f32 %v4105_v41, %v4112_v56  ;;  %v2336_v51 = vmax.f32 %v2272_v22, 0.0  ;;  %v4316_v22 = vld [vmem:[#allocation40_spill] sm:$0xff] }
 0x1a8   : > { %v2259_v50 = vadd.f32 %v2114_v8, %v1811_v1  ;;  %v2359_v5 = vpack.c.bf16 %v2311_v59, %v2310_v11  ;;  %v1809_v1 = vadd.f32 %v4304_v48, %v1327_v20  ;;  %v2304_v39 = vmax.f32 %v2240_v33, 0.0  ;;  %v4305_v59 = vld [vmem:[#allocation23_spill] sm:$0xff]  ;;  %v2079_v20 = vpop.permute.xlu2 %2078  ;;  %v4309_v33 = vld [vmem:[#allocation13_spill] sm:$0xff] }
 0x1a9   : > { %v2319_v48 = vmax.f32 %v2255_v26, 0.0 }
 0x1aa   : > { %v2323_v35 = vmax.f32 %v2259_v50, 0.0  ;;  %2411 = vmatpush.bf16.msrb.mxu3 %v2359_v5  ;;  %v2356_v47 = vpack.c.bf16 %v2305_v46, %v2304_v39 }
 0x1ac   : > { %v2365_v14 = vpack.c.bf16 %v2323_v35, %v2322_v36  ;;  %v1825_v36 = vadd.f32 %v4308_v30, %v1367_v60  ;;  %v1380_v35 = vadd.f32 %v1379_v53, %v954_v12  ;;  %v4311_v53 = vld [vmem:[#allocation39_spill] sm:$0xff] }
 0x1ad   : > { %v4147_v8 = vpop.f32.mrf.mxu1  ;;  %v1831_v12 = vadd.f32 %v4311_v53, %v1382_v3 }
 0x1ae   : > { %2412 = vmatpush.bf16.msrb.mxu3 %v2358_v2  ;;  %2426 = vmatpush.bf16.msra.mxu2 %v2365_v14  ;;  %v2104_v52 = vpop.permute.xlu1 %2103 }
 0x1af   : > { %v2257_v11 = vadd.f32 %v2104_v52, %v1809_v1  ;;  %v2099_v34 = vpop.permute.xlu0 %2098  ;;  %v4151_v5 = vpop.f32.mrf.mxu0  ;;  %v1375_v1 = vadd.f32 %v4095_v62, %v4097_v25  ;;  %v4310_v52 = vld [vmem:[#allocation30_spill] sm:$0xff]  ;;  %v4312_v62 = vld [vmem:[#allocation36_spill] sm:$0xff] }
 0x1b0   : > { %v2256_v32 = vadd.f32 %v2099_v34, %v4305_v59  ;;  %v1830_v38 = vadd.f32 %v4310_v52, %v1380_v35  ;;  %v1829_v25 = vadd.f32 %v4312_v62, %v1377_v17  ;;  %v2164_v56 = vpop.permute.xlu2 %2163 }
 0x1b1   : > { %v2321_v23 = vmax.f32 %v2257_v11, 0.0 }
 0x1b2   : > { %v2320_v50 = vmax.f32 %v2256_v32, 0.0  ;;  %2413 = vmatpush.bf16.msrb.mxu3 %v2357_v15  ;;  %v2279_v32 = vadd.f32 %v4103_v24, %v1831_v12  ;;  %v4313_v15 = vld [vmem:[#allocation37_spill] sm:$0xff]  ;;  %v2278_v60 = vadd.f32 %v4069_v49, %v1830_v38  ;;  %v1372_v24 = vadd.f32 %v4089_v31, %v4091_v61 }
 0x1b3   : > { %v1828_v41 = vadd.f32 %v4313_v15, %v1375_v1  ;;  %v2277_v10 = vadd.f32 %v4108_v7, %v1829_v25  ;;  %v4321_v25 = vld [vmem:[#allocation19_spill] sm:$0xff] }
 0x1b4   : > { %v2364_v21 = vpack.c.bf16 %v2321_v23, %v2320_v50  ;;  %v1370_v23 = vadd.f32 %v4081_v29, %v4086_v43  ;;  %v2343_v45 = vmax.f32 %v2279_v32, 0.0  ;;  %v2342_v49 = vmax.f32 %v2278_v60, 0.0  ;;  %v4314_v29 = vld [vmem:[#allocation33_spill] sm:$0xff]  ;;  %v4315_v43 = vld [vmem:[#allocation28_spill] sm:$0xff] }
 0x1b5   : > { %v1309_v34 = vpop.f32.mrf.mxu1  ;;  %v2276_v13 = vadd.f32 %v4110_v27, %v1828_v41  ;;  %v1827_v19 = vadd.f32 %v4315_v43, %v1372_v24  ;;  %v2341_v26 = vmax.f32 %v2277_v10, 0.0  ;;  %v1307_v41 = vadd.f32 %v4147_v8, %v4151_v5  ;;  %v2377_v8 = vld [vmem:[%s4251_s6 + $0x8] sm:$0xff] }
 0x1b6   : > { %2414 = vmatpush.bf16.msrb.mxu3 %v2356_v47  ;;  %2427 = vmatpush.bf16.msra.mxu2 %v2364_v21  ;;  %v2089_v44 = vpop.permute.xlu1 %2088  ;;  %v2387_v21 = vunpack.c.h.b16 %v4075_v55  ;;  %v2375_v7 = vpack.c.bf16 %v2343_v45, %v2342_v49  ;;  %v4324_v5 = vld [vmem:[#allocation32_spill] sm:$0xff] }
 0x1b7   : > { %v2254_v14 = vadd.f32 %v2089_v44, %v4309_v33  ;;  %v2184_v2 = vpop.permute.xlu0 %2183  ;;  %v884_v59 = vpop.f32.mrf.mxu0  ;;  %v2340_v31 = vmax.f32 %v2276_v13, 0.0  ;;  %v2275_v3 = vadd.f32 %v4100_v54, %v1827_v19  ;;  %v4318_v33 = vld [vmem:[#allocation38_spill] sm:$0xff] }
 0x1b8   : > { %v2273_v40 = vadd.f32 %v2184_v2, %v1825_v36  ;;  %v2391_v30 = vpack.c.b16 %v2387_v21, %v2387_v21  ;;  %v4317_v36 = vld [vmem:[#allocation22_spill] sm:$0xff]  ;;  %v1310_v52 = vadd.f32 %v1309_v34, %v884_v59  ;;  %v1305_v34 = vadd.f32 %v4132_v0, %v4134_v58 }
 0x1b9   : > { %v2318_v37 = vmax.f32 %v2254_v14, 0.0  ;;  %v2252_v55 = vadd.f32 %v2079_v20, %v4317_v36 }
 0x1ba   : > { %v2337_v6 = vmax.f32 %v2273_v40, 0.0  ;;  %2415 = vmatpush.bf16.msrb.mxu3 %v4078_v9  ;;  %v2374_v40 = vpack.c.bf16 %v2341_v26, %v2340_v31  ;;  %v1802_v15 = vadd.f32 %v4321_v25, %v1310_v52 }
 0x1bb   : > { %v2363_v11 = vpack.c.bf16 %v2319_v48, %v2318_v37  ;;  %v2149_v48 = vpop.permute.xlu2 %2148  ;;  %v4319_v37 = vld [vmem:[#allocation21_spill] sm:$0xff]  ;;  %v2316_v20 = vmax.f32 %v2252_v55, 0.0  ;;  %v2389_v55 = vunpack.c.h.b16 %v2377_v8 }
 0x1bc   : > { %v4166_v39 = vpack.c.bf16 %v2337_v6, %v2336_v51 }
 0x1bd   : > { %2428 = vmatpush.bf16.msra.mxu2 %v2363_v11  ;;  %v1311_v44 = vpop.f32.mrf.mxu1  ;;  %v4320_v11 = vld [vmem:[#allocation7_spill] sm:$0xff] }
 0x1be   : > { %2416 = vmatpush.bf16.msrb.mxu3 %v4057_v18  ;;  %v2174_v9 = vpop.permute.xlu1 %2173 }
 0x1bf   : > { %v2271_v50 = vadd.f32 %v2174_v9, %v3946_v28  ;;  %v2169_v46 = vpop.permute.xlu0 %2168  ;;  %v1826_v28 = vadd.f32 %v4314_v29, %v1370_v23  ;;  %v886_v35 = vpop.f32.mrf.mxu0  ;;  %v2388_v29 = vunpack.c.l.b16 %v2377_v8 }
 0x1c0   : > { %v2270_v42 = vadd.f32 %v2169_v46, %v3919_v63  ;;  %v2269_v63 = vadd.f32 %v2164_v56, %v4316_v22  ;;  %v1312_v51 = vadd.f32 %v1311_v44, %v886_v35  ;;  %v4322_v46 = vld [vmem:[#allocation20_spill] sm:$0xff]  ;;  %v4326_v22 = vld [vmem:[#allocation31_spill] sm:$0xff] }
 0x1c1   : > { %v2335_v18 = vmax.f32 %v2271_v50, 0.0  ;;  %v2274_v27 = vadd.f32 %v4129_v4, %v1826_v28  ;;  %v1801_v24 = vadd.f32 %v4322_v46, %v1307_v41 }
 0x1c2   : > { %v2334_v47 = vmax.f32 %v2270_v42, 0.0  ;;  %2417 = vmatpush.bf16.msrb.mxu3 %v4040_v57  ;;  %v2333_v17 = vmax.f32 %v2269_v63, 0.0  ;;  %v1803_v32 = vadd.f32 %v4320_v11, %v1312_v51  ;;  %v4323_v42 = vld [vmem:[#allocation6_spill] sm:$0xff] }
 0x1c3   : > { %v2338_v1 = vmax.f32 %v2274_v27, 0.0  ;;  %v2064_v60 = vpop.permute.xlu2 %2063  ;;  %v1800_v45 = vadd.f32 %v4323_v42, %v1305_v34 }
 0x1c4   : > { %v2371_v61 = vpack.c.bf16 %v2335_v18, %v2334_v47  ;;  %v2249_v13 = vadd.f32 %v2064_v60, %v1801_v24  ;;  %v2266_v18 = vadd.f32 %v2149_v48, %v4324_v5  ;;  %v4325_v47 = vld [vmem:[#allocation35_spill] sm:$0xff] }
 0x1c6   : > { %2418 = vmatpush.bf16.msrb.mxu3 %v4042_v16  ;;  %v2159_v57 = vpop.permute.xlu1 %2158  ;;  %v2339_v16 = vmax.f32 %v2275_v3, 0.0  ;;  %v2313_v28 = vmax.f32 %v2249_v13, 0.0  ;;  %v2330_v43 = vmax.f32 %v2266_v18, 0.0  ;;  %v2393_v3 = vpack.c.b16 %v2389_v55, %v2389_v55 }
 0x1c7   : > { %v2268_v14 = vadd.f32 %v2159_v57, %v4318_v33  ;;  %v2084_v2 = vpop.permute.xlu0 %2083 }
 0x1c8   : > { %v2253_v4 = vadd.f32 %v2084_v2, %v4319_v37  ;;  %v2373_v12 = vpack.c.bf16 %v2339_v16, %v2338_v1 }
 0x1c9   : > { %v2332_v6 = vmax.f32 %v2268_v14, 0.0  ;;  %2419 = vmatmul.bf16.vlgmr.msrb.gmra.mxu3 %v2391_v30  ;;  %v4327_v30 = vld [vmem:[#allocation29_spill] sm:$0xff] }
 0x1ca   : > { %2437 = vmatpush.bf16.msra.mxu3 %v2375_v7  ;;  %v2317_v38 = vmax.f32 %v2253_v4, 0.0  ;;  %v2392_v7 = vpack.c.b16 %v2388_v29, %v2388_v29 }
 0x1cb   : > { %v2370_v53 = vpack.c.bf16 %v2333_v17, %v2332_v6  ;;  %v2382_v37 = vpop.permute.xlu2 %2381 }
 0x1cc   : > { %v2362_v54 = vpack.c.bf16 %v2317_v38, %v2316_v20 }
 0x1ce   : > { %2438 = vmatpush.bf16.msra.mxu3 %v2374_v40  ;;  %2429 = vmatpush.bf16.msra.mxu2 %v2362_v54  ;;  %v2074_v62 = vpop.permute.xlu1 %2073 }
 0x1cf   : > { %v2251_v56 = vadd.f32 %v2074_v62, %v1803_v32  ;;  %v2069_v9 = vpop.permute.xlu0 %2068 }
 0x1d0   : > { %v2250_v23 = vadd.f32 %v2069_v9, %v1802_v15 }
 0x1d1   : > { %v2315_v59 = vmax.f32 %v2251_v56, 0.0 }
 0x1d2   : > { %2439 = vmatpush.bf16.msra.mxu3 %v2373_v12  ;;  %v2314_v50 = vmax.f32 %v2250_v23, 0.0 }
 0x1d4   : > { %v2361_v10 = vpack.c.bf16 %v2315_v59, %v2314_v50 }
 0x1d6   : > { %2440 = vmatpush.bf16.msra.mxu3 %v4166_v39  ;;  %2430 = vmatpush.bf16.msra.mxu2 %v2361_v10  ;;  %v2059_v21 = vpop.permute.xlu1 %2058 }
 0x1d7   : > { %v2248_v0 = vadd.f32 %v2059_v21, %v1800_v45  ;;  %v2154_v58 = vpop.permute.xlu0 %2153 }
 0x1d8   : > { %v2267_v49 = vadd.f32 %v2154_v58, %v4325_v47 }
 0x1d9   : > { %v2312_v39 = vmax.f32 %v2248_v0, 0.0 }
 0x1da   : > { %2441 = vmatpush.bf16.msra.mxu3 %v2371_v61  ;;  %v2331_v19 = vmax.f32 %v2267_v49, 0.0 }
 0x1db   : > { %v2360_v26 = vpack.c.bf16 %v2313_v28, %v2312_v39 }
 0x1dc   : > { %v2369_v31 = vpack.c.bf16 %v2331_v19, %v2330_v43 }
 0x1dd   : > { %2431 = vmatpush.bf16.msra.mxu2 %v2360_v26 }
 0x1de   : > { %2442 = vmatpush.bf16.msra.mxu3 %v2370_v53  ;;  %v2144_v27 = vpop.permute.xlu1 %2143 }
 0x1df   : > { %v2265_v63 = vadd.f32 %v2144_v27, %v4326_v22  ;;  %v2139_v44 = vpop.permute.xlu0 %2138 }
 0x1e0   : > { %v2264_v61 = vadd.f32 %v2139_v44, %v4327_v30  ;;  %2432 = vmatmul.bf16.vlgmr.msra.gmra.mxu2 %v2392_v7 }
 0x1e1   : > { %v2329_v36 = vmax.f32 %v2265_v63, 0.0 }
 0x1e2   : > { %2443 = vmatpush.bf16.msra.mxu3 %v2369_v31  ;;  %v2328_v35 = vmax.f32 %v2264_v61, 0.0 }
 0x1e4   : > { %v2368_v57 = vpack.c.bf16 %v2329_v36, %v2328_v35 }
 0x1e6   : > { %2444 = vmatpush.bf16.msra.mxu3 %v2368_v57 }
 0x1e9   : > { %2445 = vmatmul.bf16.vlgmr.msra.gmra.mxu3 %v2393_v3 }
 0x208   : > { %v2407_v33 = vpop.f32.mrf.mxu2 }
 0x209   : > { %v2408_v4 = vadd.f32 %v2407_v33, %v2382_v37 }
 0x210   : > { %v2409_v14 = vpop.f32.mrf.mxu2 }
 0x24c   : > { %v2420_v2 = vpop.f32.mrf.mxu3 }
 0x24d   : > { %v2421_v1 = vadd.f32 %v2420_v2, %v2408_v4 }
 0x254   : > { %v2422_v40 = vpop.f32.mrf.mxu3 }
 0x263   : > { %v2433_v48 = vpop.f32.mrf.mxu2 }
 0x264   : > { %v2434_v17 = vadd.f32 %v2433_v48, %v2421_v1 }
 0x26b   : > { %v2435_v51 = vpop.f32.mrf.mxu2 }
 0x26c   : > { %v2446_v6 = vpop.f32.mrf.mxu3 }
 0x26d   : > { %v2447_v20 = vadd.f32 %v2446_v6, %v2434_v17 }
 0x26f   : > { %2451 = vst.msk [vmem:[%s358_s24] sm:$0xff] %vm2450_vm1, %v2447_v20 }
 0x270   : > { %3075 = shalt.err (!%p3072_p5)
}
 0x271   : > { %2989 = dma.vmem_to_hbm [thread:$0]  (%p3214_p4), %s2467_s19, 128, %s2469_s21, %s2453_s30  }
 0x274   : > { %v2448_v52 = vpop.f32.mrf.mxu3 }
 0x275 PF: > { %p2995_p6 = scmp.ge.s32.totalorder %s3126_s10, 2  ;;  %s2480_s26 = sand.u32 1, %s3106_s27  }
 0x276   : > { %s2481_s20 = scalar_lea.sflag [#allocation3], %s2480_s26 }
 0x277   : > { %p2992_p7 = pnand %p2995_p6, %p3221_p8 }
 0x279   : > { %p2993_p9 = pneg %p2992_p7 }
 0x27b   : > { %3101 = dma.done.wait (%p2993_p9), %s2481_s20, 128  }
 0x27c   : > { %3103 = vsyncadd (%p2993_p9), %s2481_s20, 4294967168  ;;  %s21_s10 = sadd.s32 1, %s3126_s10   ;;  %s4328_s27 = smov %s3110_s28 }
 0x27d   : > { %p18_p10 = scmp.ge.s32.totalorder %s21_s10, 4   ;;  %s4329_s28 = smov %s3114_s29 }
 0x27e   : > { %s4330_s29 = smov %s3227_s18  ;;  %s4331_s30 = smov %s3122_s9 }
 0x27f   : > { %s4332_s9 = smov %s4334_s13  ;;  %20 = sbr.rel (!%p18_p10) target bundleno = 4 (0x4), region = 93 }
 0x284   :  { %2487 = vsyncpa [#allocation3], 1 }
 0x285   :  { %2489 = vsyncpa [#allocation3 + $0x1], 1 }

// kernel: hierarchy_forward.2
= control target key start
LH: loop header
LB: loop body
LE: loop exit
PB: predicated region body
PF: predicated region fallthrough
CT: control target
= control target key end

     0   :  { %s9171_s21 = smov 0   ;;  %s9173_s22 = smov 0   ;;  %s12711_s0 = inlined_call_operand.vmem [shape: f32[2,32,28], index: 0, kind: input, shape index: {}]   ;;  %s12712_s1 = inlined_call_operand.vmem [shape: f32[2,16,2], index: 1, kind: input, shape index: {}]   ;;  %s12713_s2 = inlined_call_operand.vmem [shape: bf16[5,256,32], index: 2, kind: input, shape index: {}]   ;;  %s12714_s3 = inlined_call_operand.vmem [shape: bf16[5,256,256], index: 3, kind: input, shape index: {}]   ;;  %s12715_s4 = inlined_call_operand.vmem [shape: bf16[5,256,256], index: 4, kind: input, shape index: {}]   ;;  %s12716_s5 = inlined_call_operand.vmem [shape: bf16[2,32,16], index: 5, kind: output, shape index: {0}]   ;;  %s12717_s6 = inlined_call_operand.vmem [shape: f32[2,32,2], index: 6, kind: output, shape index: {1}]  }
   0x1   :  { %s9175_s23 = smov 0  }
   0x2 LB: > { %s29_s24 = sadd.s32 1, %s9125_s22  ;;  %p6589_p0 = scmp.ge.s32.totalorder %s9129_s23, 1  ;;  %s9129_s23 = sphi %s9175_s23, %s17_s23   ;;  %s9125_s22 = sphi %s9173_s22, %s12753_s22   ;;  %s9121_s21 = sphi %s9171_s21, %s12752_s21  }
   0x3   : > { %p31_p1 = scmp.ge.s32.totalorder %s29_s24, 2  ;;  %p248_p2 = scmp.lt.s32.totalorder %s9129_s23, 3 }
   0x5   : > { %s12755_s24 = smov (%p31_p1, %s29_s24), 0  ;;  %p249_p3 = pnand %p6589_p0, %p248_p2 }
   0x7   : > { %252 = sbr.rel (%p249_p3) target bundleno = 2698 (0xa8a), region = 40 }
   0xc   : > { %p301_p4 = scmp.lt.s32.totalorder %s9121_s21, 1  ;;  %s9131_s9 = smov 122   ;;  %v8689_v18 = vld [vmem:[%s12713_s2 + $0x88] sm:$0xff]  ;;  %v8694_v19 = vld [vmem:[%s12713_s2 + $0xb0] sm:$0xff]  ;;  %v8699_v20 = vld [vmem:[%s12713_s2 + $0xd8] sm:$0xff]  ;;  %vm562_vm0 = vcmask 261120  }
   0xd   : > { %s9132_s10 = smov 127   ;;  %s9133_s11 = smov 126   ;;  %vm354_vm1 = vcmask 130048   ;;  %v8690_v23 = vld [vmem:[%s12713_s2 + $0x90] sm:$0xff]  ;;  %v8695_v24 = vld [vmem:[%s12713_s2 + $0xb8] sm:$0xff]  ;;  %v8700_v25 = vld [vmem:[%s12713_s2 + $0xe0] sm:$0xff] }
   0xe   : > { %s12757_s21 = smov (!%p301_p4, %s9121_s21), 1  ;;  %s9134_s12 = smov 125   ;;  %v8691_v28 = vld [vmem:[%s12713_s2 + $0x98] sm:$0xff]  ;;  %v8696_v29 = vld [vmem:[%s12713_s2 + $0xc0] sm:$0xff]  ;;  %v8701_v30 = vld [vmem:[%s12713_s2 + $0xe8] sm:$0xff]  ;;  %vm392_vm2 = vcmask 15360  }
   0xf   : > { %s8668_s25 = sshll.u32 %s12757_s21, 5  ;;  %s8669_s26 = sshll.u32 %s12757_s21, 4  ;;  %v8688_v31 = vld [vmem:[%s12713_s2 + $0x80] sm:$0xff]  ;;  %v8697_v39 = vld [vmem:[%s12713_s2 + $0xc8] sm:$0xff]  ;;  %v8702_v40 = vld [vmem:[%s12713_s2 + $0xf0] sm:$0xff]  ;;  %vm6431_vm9 = vcmask 125952  }
  0x10   : > { %s308_s29 = scalar_lea.vmem %s12711_s0, %s8668_s25  ;;  %s314_s8 = scalar_lea.vmem %s12712_s1, %s8669_s26  ;;  %v8692_v38 = vld [vmem:[%s12713_s2 + $0xa0] sm:$0xff]  ;;  %v8693_v42 = vld [vmem:[%s12713_s2 + $0xa8] sm:$0xff]  ;;  %v8698_v43 = vld [vmem:[%s12713_s2 + $0xd0] sm:$0xff] }
  0x11   : > { %v338_v0 = vld [vmem:[%s308_s29 + $0x10] sm:$0xff]  ;;  %v339_v1 = vld [vmem:[%s308_s29 + $0x18] sm:$0xff]  ;;  %v336_v2 = vld [vmem:[%s308_s29] sm:$0xff]  ;;  %s9135_s13 = smov 124  }
  0x12   : > { %v399_v3 = vpack.c.bf16 %v338_v0, %v338_v0  ;;  %v400_v4 = vpack.c.bf16 %v339_v1, %v339_v1  ;;  %v337_v5 = vld [vmem:[%s308_s29 + $0x8] sm:$0xff]  ;;  %346 = vrot.lane.b32.xlu1 %v336_v2, %s9131_s9  ;;  %350 = vrot.lane.b32.xlu2 %v338_v0, %s9131_s9  ;;  %v340_v7 = vld [vmem:[%s314_s8] sm:$0xff]  ;;  %v397_v10 = vpack.c.bf16 %v336_v2, %v336_v2 }
  0x13   : > { %v341_v6 = vld [vmem:[%s314_s8 + $0x8] sm:$0xff]  ;;  %v398_v11 = vpack.c.bf16 %v337_v5, %v337_v5  ;;  %v8720_v41 = vld [vmem:[%s12713_s2 + $0x180] sm:$0xff]  ;;  %v8703_v44 = vld [vmem:[%s12713_s2 + $0xf8] sm:$0xff]  ;;  %s9347_s8 = scalar_lea.vmem %s12717_s6, %s8668_s25 }
  0x14   : > { %377 = vmatpush.msra.mxu0 %v341_v6  ;;  %v552_v8 = vunpack.c.l.b16 %v399_v3  ;;  %v553_v9 = vunpack.c.l.b16 %v400_v4  ;;  %v550_v13 = vunpack.c.l.b16 %v397_v10  ;;  %v8721_v45 = vld [vmem:[%s12713_s2 + $0x188] sm:$0xff]  ;;  %v8736_v46 = vld [vmem:[%s12713_s2 + $0x200] sm:$0xff]  ;;  %v8722_v49 = vld [vmem:[%s12713_s2 + $0x190] sm:$0xff] }
  0x15   : > { %v551_v14 = vunpack.c.l.b16 %v398_v11  ;;  %v8672_v47 = vld [vmem:[%s12713_s2] sm:$0xff]  ;;  %v8737_v50 = vld [vmem:[%s12713_s2 + $0x208] sm:$0xff]  ;;  %v8723_v53 = vld [vmem:[%s12713_s2 + $0x198] sm:$0xff] }
  0x16   : > { %378 = vmatpush.msra.mxu0 %v340_v7  ;;  %v555_v12 = vpack.c.b16 %v553_v9, %v552_v8  ;;  %v8704_v48 = vld [vmem:[%s12713_s2 + $0x100] sm:$0xff]  ;;  %v8673_v51 = vld [vmem:[%s12713_s2 + $0x8] sm:$0xff]  ;;  %v8738_v54 = vld [vmem:[%s12713_s2 + $0x210] sm:$0xff] }
  0x17   : > { %v554_v15 = vpack.c.b16 %v551_v14, %v550_v13  ;;  %v8705_v52 = vld [vmem:[%s12713_s2 + $0x108] sm:$0xff]  ;;  %v8674_v55 = vld [vmem:[%s12713_s2 + $0x10] sm:$0xff]  ;;  %v8724_v57 = vld [vmem:[%s12713_s2 + $0x1a0] sm:$0xff] }
  0x18   : > { %558 = vrot.lane.b32.xlu0 %v555_v12, %s9132_s10  ;;  %v8706_v56 = vld [vmem:[%s12713_s2 + $0x110] sm:$0xff]  ;;  %v8739_v58 = vld [vmem:[%s12713_s2 + $0x218] sm:$0xff]  ;;  %v8725_v63 = vld [vmem:[%s12713_s2 + $0x1a8] sm:$0xff] }
  0x19   : > { %v8675_v59 = vld [vmem:[%s12713_s2 + $0x18] sm:$0xff]  ;;  %v8740_v6 = vld [vmem:[%s12713_s2 + $0x220] sm:$0xff]  ;;  %v8726_v11 = vld [vmem:[%s12713_s2 + $0x1b0] sm:$0xff] }
  0x1a   : > { %348 = vrot.lane.b32.xlu1 %v337_v5, %s9131_s9  ;;  %352 = vrot.lane.b32.xlu2 %v339_v1, %s9131_s9  ;;  %v8707_v60 = vld [vmem:[%s12713_s2 + $0x118] sm:$0xff]  ;;  %v8676_v7 = vld [vmem:[%s12713_s2 + $0x20] sm:$0xff] }
  0x1b   : > { %v8708_v8 = vld [vmem:[%s12713_s2 + $0x120] sm:$0xff] }
  0x20   : > { %556 = vrot.lane.b32.xlu0 %v554_v15, %s9132_s10 }
  0x22   : > { %1032 = vrot.lane.b32.xlu1 %v554_v15, %s9133_s11  ;;  %1322 = vrot.lane.b32.xlu2 %v555_v12, %s9134_s12 }
  0x28   : > { %1034 = vrot.lane.b32.xlu0 %v555_v12, %s9133_s11 }
  0x2a   : > { %1320 = vrot.lane.b32.xlu1 %v554_v15, %s9134_s12  ;;  %1608 = vrot.lane.b32.xlu2 %v554_v15, %s9135_s13 }
  0x30   : > { %1610 = vrot.lane.b32.xlu0 %v555_v12, %s9135_s13 }
  0x6c   : > { %v351_v26 = vpop.permute.xlu2 %350 }
  0x74   : > { %v353_v27 = vpop.permute.xlu2 %352 }
  0x7c   : > { %v1323_v34 = vpop.permute.xlu2 %1322 }
  0x84   : > { %v347_v21 = vpop.permute.xlu1 %346  ;;  %v1609_v37 = vpop.permute.xlu2 %1608 }
  0x85   : > { %6598 = vmatmul.msk.f32.vlgmr.msra.gmra.mxu0 %vm354_vm1, %v347_v21 }
  0x8a   : > { %v559_v16 = vpop.permute.xlu0 %558 }
  0x8b   : > { %617 = vmatpush.bf16.msrb.mxu0 %v559_v16  ;;  %9072 = vmatpush.bf16.msra.mxu1 %v559_v16 }
  0x8c   : > { %9073 = vmatpush.bf16.msra.mxu2 %v559_v16  ;;  %9074 = vmatpush.bf16.msra.mxu3 %v559_v16  ;;  %v349_v22 = vpop.permute.xlu1 %348 }
  0x8d   : > { %6599 = vmatmul.msk.f32.gmra.mxu0 %vm354_vm1, %v349_v22 }
  0x92   : > { %v557_v17 = vpop.permute.xlu0 %556 }
  0x93   : > { %618 = vmatpush.bf16.msrb.mxu0 %v557_v17  ;;  %9075 = vmatpush.bf16.msra.mxu1 %v557_v17 }
  0x94   : > { %9076 = vmatpush.bf16.msra.mxu2 %v557_v17  ;;  %9077 = vmatpush.bf16.msra.mxu3 %v557_v17  ;;  %v1033_v33 = vpop.permute.xlu1 %1032 }
  0x95   : > { %6600 = vmatmul.msk.f32.gmra.mxu0 %vm354_vm1, %v351_v26 }
  0x96   : > { %6699 = vmatmul.msk.bf16.vlgmr.msra.gmra.mxu1 %vm562_vm0, %v8689_v18  ;;  %v8741_v18 = vld [vmem:[%s12713_s2 + $0x228] sm:$0xff] }
  0x97   : > { %6704 = vmatmul.msk.bf16.vlgmr.msra.gmra.mxu2 %vm562_vm0, %v8694_v19  ;;  %6709 = vmatmul.msk.bf16.vlgmr.msra.gmra.mxu3 %vm562_vm0, %v8699_v20  ;;  %v8677_v19 = vld [vmem:[%s12713_s2 + $0x28] sm:$0xff] }
  0x98   : > { %836 = vmatpush.bf16.msrb.mxu2 %v555_v12  ;;  %1380 = vmatpush.bf16.msra.mxu0 %v1323_v34  ;;  %v8709_v20 = vld [vmem:[%s12713_s2 + $0x128] sm:$0xff] }
  0x9a   : > { %v1035_v32 = vpop.permute.xlu0 %1034 }
  0x9b   : > { %1092 = vmatpush.bf16.msrb.mxu3 %v1035_v32  ;;  %v8710_v32 = vld [vmem:[%s12713_s2 + $0x130] sm:$0xff] }
  0x9c   : > { %837 = vmatpush.bf16.msrb.mxu2 %v554_v15  ;;  %v1321_v36 = vpop.permute.xlu1 %1320 }
  0x9d   : > { %6601 = vmatmul.msk.f32.gmra.mxu0 %vm354_vm1, %v353_v27 }
  0x9e   : > { %1381 = vmatpush.bf16.msra.mxu0 %v1321_v36 }
  0x9f   : > { %1093 = vmatpush.bf16.msrb.mxu3 %v1033_v33 }
  0xa2   : > { %v1611_v35 = vpop.permute.xlu0 %1610 }
  0xa3   : > { %1668 = vmatpush.bf16.msrb.mxu1 %v1611_v35  ;;  %v8728_v35 = vld [vmem:[%s12713_s2 + $0x1c0] sm:$0xff] }
  0xa5   : > { %6698 = vmatmul.msk.bf16.vlgmr.msrb.gmra.mxu0 %vm562_vm0, %v8688_v31  ;;  %v8678_v31 = vld [vmem:[%s12713_s2 + $0x30] sm:$0xff] }
  0xa6   : > { %6700 = vmatmul.msk.bf16.gmra.mxu1 %vm562_vm0, %v8690_v23  ;;  %v8727_v23 = vld [vmem:[%s12713_s2 + $0x1b8] sm:$0xff] }
  0xa7   : > { %6705 = vmatmul.msk.bf16.gmra.mxu2 %vm562_vm0, %v8695_v24  ;;  %6710 = vmatmul.msk.bf16.gmra.mxu3 %vm562_vm0, %v8700_v25 }
  0xa8   : > { %1669 = vmatpush.bf16.msrb.mxu1 %v1609_v37 }
  0xb5   : > { %7002 = vmatmul.msk.bf16.vlgmr.msra.gmra.mxu0 %vm562_vm0, %v8720_v41 }
  0xb6   : > { %6701 = vmatmul.msk.bf16.gmra.mxu1 %vm562_vm0, %v8691_v28 }
  0xb7   : > { %6706 = vmatmul.msk.bf16.gmra.mxu2 %vm562_vm0, %v8696_v29  ;;  %6711 = vmatmul.msk.bf16.gmra.mxu3 %vm562_vm0, %v8701_v30  ;;  %v8742_v30 = vld [vmem:[%s12713_s2 + $0x230] sm:$0xff] }
  0xc5   : > { %7003 = vmatmul.msk.bf16.gmra.mxu0 %vm562_vm0, %v8721_v45 }
  0xc6   : > { %6702 = vmatmul.msk.bf16.gmra.mxu1 %vm562_vm0, %v8692_v38 }
  0xc7   : > { %6707 = vmatmul.msk.bf16.gmra.mxu2 %vm562_vm0, %v8697_v39  ;;  %6712 = vmatmul.msk.bf16.gmra.mxu3 %vm562_vm0, %v8702_v40 }
  0xd5   : > { %7004 = vmatmul.msk.bf16.gmra.mxu0 %vm562_vm0, %v8722_v49 }
  0xd6   : > { %6703 = vmatmul.msk.bf16.gmra.mxu1 %vm562_vm0, %v8693_v42  ;;  %v8743_v42 = vld [vmem:[%s12713_s2 + $0x238] sm:$0xff] }
  0xd7   : > { %6708 = vmatmul.msk.bf16.gmra.mxu2 %vm562_vm0, %v8698_v43  ;;  %6713 = vmatmul.msk.bf16.gmra.mxu3 %vm562_vm0, %v8703_v44  ;;  %v8679_v43 = vld [vmem:[%s12713_s2 + $0x38] sm:$0xff] }
  0xd8   : > { %v8711_v44 = vld [vmem:[%s12713_s2 + $0x138] sm:$0xff] }
  0xe5   : > { %7005 = vmatmul.msk.bf16.gmra.mxu0 %vm562_vm0, %v8723_v53 }
  0xe6   : > { %7114 = vmatmul.msk.bf16.vlgmr.msrb.gmra.mxu1 %vm562_vm0, %v8736_v46 }
  0xe7   : > { %6778 = vmatmul.msk.bf16.vlgmr.msrb.gmra.mxu2 %vm562_vm0, %v8672_v47  ;;  %6890 = vmatmul.msk.bf16.vlgmr.msrb.gmra.mxu3 %vm562_vm0, %v8704_v48  ;;  %v8729_v47 = vld [vmem:[%s12713_s2 + $0x1c8] sm:$0xff] }
  0xf5   : > { %7006 = vmatmul.msk.bf16.gmra.mxu0 %vm562_vm0, %v8724_v57 }
  0xf6   : > { %7115 = vmatmul.msk.bf16.gmra.mxu1 %vm562_vm0, %v8737_v50 }
  0xf7   : > { %6779 = vmatmul.msk.bf16.gmra.mxu2 %vm562_vm0, %v8673_v51  ;;  %6891 = vmatmul.msk.bf16.gmra.mxu3 %vm562_vm0, %v8705_v52 }
 0x102   : > { %v380_v62 = vpop.f32.mrf.mxu0 }
 0x103   : > { %393 = vst.msk [vmem:[%s9347_s8] sm:$0xff] %vm392_vm2, %v380_v62 }
 0x105   : > { %7007 = vmatmul.msk.bf16.gmra.mxu0 %vm562_vm0, %v8725_v63 }
 0x106   : > { %7116 = vmatmul.msk.bf16.gmra.mxu1 %vm562_vm0, %v8738_v54  ;;  %v8744_v54 = vld [vmem:[%s12713_s2 + $0x240] sm:$0xff] }
 0x107   : > { %6780 = vmatmul.msk.bf16.gmra.mxu2 %vm562_vm0, %v8674_v55  ;;  %6892 = vmatmul.msk.bf16.gmra.mxu3 %vm562_vm0, %v8706_v56  ;;  %v8680_v55 = vld [vmem:[%s12713_s2 + $0x40] sm:$0xff] }
 0x108   : > { %v8712_v56 = vld [vmem:[%s12713_s2 + $0x140] sm:$0xff] }
 0x10a   : > { %v383_v3 = vpop.f32.mrf.mxu0 }
 0x10b   : > { %394 = vst.msk [vmem:[%s9347_s8 + $0x8] sm:$0xff] %vm392_vm2, %v383_v3 }
 0x112   : > { %v386_v10 = vpop.f32.mrf.mxu0 }
 0x113   : > { %v9340_v61 = vpop.f32.mrf.mxu1  ;;  %395 = vst.msk [vmem:[%s9347_s8 + $0x10] sm:$0xff] %vm392_vm2, %v386_v10 }
 0x115   : > { %7008 = vmatmul.msk.bf16.gmra.mxu0 %vm562_vm0, %v8726_v11 }
 0x116   : > { %7117 = vmatmul.msk.bf16.gmra.mxu1 %vm562_vm0, %v8739_v58 }
 0x117   : > { %6781 = vmatmul.msk.bf16.gmra.mxu2 %vm562_vm0, %v8675_v59  ;;  %6893 = vmatmul.msk.bf16.gmra.mxu3 %vm562_vm0, %v8707_v60  ;;  %v8730_v59 = vld [vmem:[%s12713_s2 + $0x1d0] sm:$0xff]  ;;  %v1783_v60 = vlaneseq }
 0x11a   : > { %v9358_v0 = vpop.f32.mrf.mxu2  ;;  %v9360_v1 = vpop.f32.mrf.mxu3 }
 0x11b   : > { %v9362_v2 = vpop.f32.mrf.mxu1  ;;  %v389_v15 = vpop.f32.mrf.mxu0 }
 0x11c   : > { %396 = vst.msk [vmem:[%s9347_s8 + $0x18] sm:$0xff] %vm392_vm2, %v389_v15 }
 0x122   : > { %v9366_v4 = vpop.f32.mrf.mxu2  ;;  %v9368_v5 = vpop.f32.mrf.mxu3 }
 0x123   : > { %v9379_v9 = vpop.f32.mrf.mxu1  ;;  %v620_v22 = vpop.f32.mrf.mxu0 }
 0x125   : > { %7009 = vmatmul.msk.bf16.gmra.mxu0 %vm562_vm0, %v8727_v23 }
 0x126   : > { %7118 = vmatmul.msk.bf16.gmra.mxu1 %vm562_vm0, %v8740_v6 }
 0x127   : > { %6782 = vmatmul.msk.bf16.gmra.mxu2 %vm562_vm0, %v8676_v7  ;;  %6894 = vmatmul.msk.bf16.gmra.mxu3 %vm562_vm0, %v8708_v8  ;;  %v9506_v8 = vand.u32 127, %v1783_v60 }
 0x129   : > { %12722 = vst [vmem:[#allocation2_spill] sm:$0xff] %v9506_v8  ;;  %vm1785_vm3 = vcmp.ge.s32.totalorder %v9506_v8, 4  ;;  %vm1786_vm4 = vcmp.lt.s32.totalorder %v9506_v8, 20 }
 0x12a   : > { %v9390_v12 = vpop.f32.mrf.mxu2  ;;  %v9392_v13 = vpop.f32.mrf.mxu3  ;;  %vm9521_vm5 = vmand %vm1785_vm3, %vm1786_vm4 }
 0x12b   : > { %v9394_v14 = vpop.f32.mrf.mxu1  ;;  %v622_v27 = vpop.f32.mrf.mxu0 }
 0x132   : > { %v9398_v16 = vpop.f32.mrf.mxu2  ;;  %v9400_v17 = vpop.f32.mrf.mxu3 }
 0x133   : > { %v9411_v21 = vpop.f32.mrf.mxu1  ;;  %v1383_v34 = vpop.f32.mrf.mxu0 }
 0x135   : > { %7010 = vmatmul.msk.bf16.gmra.mxu0 %vm562_vm0, %v8728_v35 }
 0x136   : > { %7119 = vmatmul.msk.bf16.gmra.mxu1 %vm562_vm0, %v8741_v18 }
 0x137   : > { %6783 = vmatmul.msk.bf16.gmra.mxu2 %vm562_vm0, %v8677_v19  ;;  %6895 = vmatmul.msk.bf16.gmra.mxu3 %vm562_vm0, %v8709_v20  ;;  %v8745_v20 = vld [vmem:[%s12713_s2 + $0x248] sm:$0xff] }
 0x13a   : > { %v9420_v24 = vpop.f32.mrf.mxu2  ;;  %v9422_v25 = vpop.f32.mrf.mxu3 }
 0x13b   : > { %v9424_v26 = vpop.f32.mrf.mxu1  ;;  %v1385_v39 = vpop.f32.mrf.mxu0 }
 0x142   : > { %v9426_v28 = vpop.f32.mrf.mxu2  ;;  %v9428_v29 = vpop.f32.mrf.mxu3 }
 0x143   : > { %v9439_v33 = vpop.f32.mrf.mxu1  ;;  %v1388_v46 = vpop.f32.mrf.mxu0 }
 0x145   : > { %7011 = vmatmul.msk.bf16.gmra.mxu0 %vm562_vm0, %v8729_v47 }
 0x146   : > { %7120 = vmatmul.msk.bf16.gmra.mxu1 %vm562_vm0, %v8742_v30  ;;  %v8713_v30 = vld [vmem:[%s12713_s2 + $0x148] sm:$0xff] }
 0x147   : > { %6784 = vmatmul.msk.bf16.gmra.mxu2 %vm562_vm0, %v8678_v31  ;;  %6896 = vmatmul.msk.bf16.gmra.mxu3 %vm562_vm0, %v8710_v32 }
 0x14a   : > { %v9448_v36 = vpop.f32.mrf.mxu2  ;;  %v9450_v37 = vpop.f32.mrf.mxu3 }
 0x14b   : > { %v9452_v38 = vpop.f32.mrf.mxu1  ;;  %v9482_v51 = vpop.f32.mrf.mxu0 }
 0x152   : > { %v9454_v40 = vpop.f32.mrf.mxu2  ;;  %v9456_v41 = vpop.f32.mrf.mxu3 }
 0x153   : > { %v9467_v45 = vpop.f32.mrf.mxu1  ;;  %v9498_v58 = vpop.f32.mrf.mxu0 }
 0x155   : > { %7012 = vmatmul.msk.bf16.gmra.mxu0 %vm562_vm0, %v8730_v59 }
 0x156   : > { %7121 = vmatmul.msk.bf16.gmra.mxu1 %vm562_vm0, %v8743_v42 }
 0x157   : > { %6785 = vmatmul.msk.bf16.gmra.mxu2 %vm562_vm0, %v8679_v43  ;;  %6897 = vmatmul.msk.bf16.gmra.mxu3 %vm562_vm0, %v8711_v44  ;;  %v8731_v43 = vld [vmem:[%s12713_s2 + $0x1d8] sm:$0xff] }
 0x15a   : > { %v9476_v48 = vpop.f32.mrf.mxu2  ;;  %v9478_v49 = vpop.f32.mrf.mxu3 }
 0x15b   : > { %v9480_v50 = vpop.f32.mrf.mxu1  ;;  %v9508_v10 = vpop.f32.mrf.mxu0 }
 0x162   : > { %v9484_v52 = vpop.f32.mrf.mxu2  ;;  %v9486_v53 = vpop.f32.mrf.mxu3 }
 0x163   : > { %v1671_v57 = vpop.f32.mrf.mxu1  ;;  %v9526_v35 = vpop.f32.mrf.mxu0 }
 0x165   : > { %7013 = vmatmul.msk.bf16.gmra.mxu0 %vm562_vm0, %v8731_v43 }
 0x166   : > { %7122 = vmatmul.msk.bf16.gmra.mxu1 %vm562_vm0, %v8744_v54 }
 0x167   : > { %6786 = vmatmul.msk.bf16.gmra.mxu2 %vm562_vm0, %v8680_v55  ;;  %6898 = vmatmul.msk.bf16.gmra.mxu3 %vm562_vm0, %v8712_v56 }
 0x16a   : > { %v839_v62 = vpop.f32.mrf.mxu2  ;;  %v1095_v63 = vpop.f32.mrf.mxu3 }
 0x16b   : > { %v840_v3 = vadd.f32 %v839_v62, %v620_v22  ;;  %v1673_v6 = vpop.f32.mrf.mxu1  ;;  %v8681_v22 = vld [vmem:[%s12713_s2 + $0x48] sm:$0xff] }
 0x16d   : > { %v1175_v7 = vadd.f32 %v1095_v63, %v840_v3  ;;  %v9539_v3 = vpop.f32.mrf.mxu0 }
 0x16f   : > { %v1463_v11 = vadd.f32 %v1383_v34, %v1175_v7 }
 0x171   : > { %v1751_v15 = vadd.f32 %v1671_v57, %v1463_v11 }
 0x172   : > { %v841_v18 = vpop.f32.mrf.mxu2  ;;  %v1097_v19 = vpop.f32.mrf.mxu3 }
 0x173   : > { %v842_v23 = vadd.f32 %v841_v18, %v622_v27  ;;  %v1676_v31 = vpop.f32.mrf.mxu1  ;;  %v1790_v27 = vsel %vm9521_vm5, %v1751_v15, 0.0 }
 0x174   : > { %v1822_v47 = vpack.c.bf16 %v1790_v27, %v1790_v27 }
 0x175   : > { %v1176_v34 = vadd.f32 %v1097_v19, %v842_v23  ;;  %v8746_v19 = vld [vmem:[%s12713_s2 + $0x250] sm:$0xff] }
 0x176   : > { %7123 = vmatmul.msk.bf16.gmra.mxu1 %vm562_vm0, %v8745_v20  ;;  %v2111_v62 = vunpack.c.l.b16 %v1822_v47  ;;  %v8714_v23 = vld [vmem:[%s12713_s2 + $0x150] sm:$0xff] }
 0x177   : > { %v1464_v42 = vadd.f32 %v1385_v39, %v1176_v34  ;;  %6787 = vmatmul.msk.bf16.gmra.mxu2 %vm562_vm0, %v8681_v22  ;;  %6899 = vmatmul.msk.bf16.gmra.mxu3 %vm562_vm0, %v8713_v30  ;;  %v9554_v30 = vpop.f32.mrf.mxu0 }
 0x179   : > { %v1752_v44 = vadd.f32 %v1673_v6, %v1464_v42 }
 0x17a   : > { %v844_v54 = vpop.f32.mrf.mxu2  ;;  %v1100_v55 = vpop.f32.mrf.mxu3 }
 0x17b   : > { %v1791_v56 = vsel %vm9521_vm5, %v1752_v44, 0.0  ;;  %v845_v57 = vadd.f32 %v844_v54, %v9340_v61  ;;  %v1678_v39 = vpop.f32.mrf.mxu1  ;;  %v8682_v61 = vld [vmem:[%s12713_s2 + $0x50] sm:$0xff] }
 0x17c   : > { %v1823_v59 = vpack.c.bf16 %v1791_v56, %v1791_v56 }
 0x17d   : > { %v1177_v60 = vadd.f32 %v1100_v55, %v845_v57 }
 0x17e   : > { %v2112_v63 = vunpack.c.l.b16 %v1823_v59 }
 0x17f   : > { %v1465_v7 = vadd.f32 %v1388_v46, %v1177_v60  ;;  %v9568_v60 = vpop.f32.mrf.mxu0 }
 0x180   : > { %v9541_v11 = vpack.c.b16 %v2112_v63, %v2111_v62 }
 0x181   : > { %v1753_v6 = vadd.f32 %v1676_v31, %v1465_v7 }
 0x182   : > { %v846_v15 = vpop.f32.mrf.mxu2  ;;  %v1102_v18 = vpop.f32.mrf.mxu3 }
 0x183   : > { %v847_v20 = vadd.f32 %v846_v15, %v9362_v2  ;;  %v1681_v46 = vpop.f32.mrf.mxu1  ;;  %v1792_v31 = vsel %vm9521_vm5, %v1753_v6, 0.0  ;;  %v8732_v2 = vld [vmem:[%s12713_s2 + $0x1e0] sm:$0xff]  ;;  %v8747_v15 = vld [vmem:[%s12713_s2 + $0x258] sm:$0xff] }
 0x184   : > { %7014 = vmatmul.msk.bf16.gmra.mxu0 %vm562_vm0, %v8732_v2  ;;  %v1824_v42 = vpack.c.bf16 %v1792_v31, %v1792_v31 }
 0x185   : > { %v1178_v22 = vadd.f32 %v1102_v18, %v847_v20  ;;  %v8683_v18 = vld [vmem:[%s12713_s2 + $0x58] sm:$0xff] }
 0x186   : > { %7124 = vmatmul.msk.bf16.gmra.mxu1 %vm562_vm0, %v8746_v19  ;;  %v2113_v57 = vunpack.c.l.b16 %v1824_v42  ;;  %v8715_v19 = vld [vmem:[%s12713_s2 + $0x158] sm:$0xff] }
 0x187   : > { %v1466_v34 = vadd.f32 %v9482_v51, %v1178_v22  ;;  %6788 = vmatmul.msk.bf16.gmra.mxu2 %vm562_vm0, %v8682_v61  ;;  %6900 = vmatmul.msk.bf16.gmra.mxu3 %vm562_vm0, %v8714_v23  ;;  %v9584_v61 = vpop.f32.mrf.mxu0 }
 0x189   : > { %v1754_v27 = vadd.f32 %v1678_v39, %v1466_v34 }
 0x18a   : > { %v849_v43 = vpop.f32.mrf.mxu2  ;;  %v1105_v44 = vpop.f32.mrf.mxu3 }
 0x18b   : > { %v1793_v47 = vsel %vm9521_vm5, %v1754_v27, 0.0  ;;  %v850_v54 = vadd.f32 %v849_v43, %v9379_v9  ;;  %v1683_v51 = vpop.f32.mrf.mxu1 }
 0x18c   : > { %v1825_v55 = vpack.c.bf16 %v1793_v47, %v1793_v47 }
 0x18d   : > { %v1179_v56 = vadd.f32 %v1105_v44, %v850_v54 }
 0x18e   : > { %v2114_v59 = vunpack.c.l.b16 %v1825_v55 }
 0x18f   : > { %v1467_v62 = vadd.f32 %v9498_v58, %v1179_v56  ;;  %v9598_v55 = vpop.f32.mrf.mxu0 }
 0x190   : > { %v9571_v39 = vpack.c.b16 %v2114_v59, %v2113_v57 }
 0x191   : > { %v1755_v63 = vadd.f32 %v1681_v46, %v1467_v62 }
 0x192   : > { %v851_v7 = vpop.f32.mrf.mxu2  ;;  %v1107_v6 = vpop.f32.mrf.mxu3 }
 0x193   : > { %v852_v9 = vadd.f32 %v851_v7, %v9394_v14  ;;  %v1686_v58 = vpop.f32.mrf.mxu1  ;;  %v1794_v23 = vsel %vm9521_vm5, %v1755_v63, 0.0  ;;  %v8733_v14 = vld [vmem:[%s12713_s2 + $0x1e8] sm:$0xff]  ;;  %v8748_v63 = vld [vmem:[%s12713_s2 + $0x260] sm:$0xff] }
 0x194   : > { %7015 = vmatmul.msk.bf16.gmra.mxu0 %vm562_vm0, %v8733_v14  ;;  %v1826_v31 = vpack.c.bf16 %v1794_v23, %v1794_v23  ;;  %v8684_v7 = vld [vmem:[%s12713_s2 + $0x60] sm:$0xff] }
 0x195   : > { %v1180_v20 = vadd.f32 %v1107_v6, %v852_v9  ;;  %v8716_v6 = vld [vmem:[%s12713_s2 + $0x160] sm:$0xff] }
 0x196   : > { %7125 = vmatmul.msk.bf16.gmra.mxu1 %vm562_vm0, %v8747_v15  ;;  %v2115_v47 = vunpack.c.l.b16 %v1826_v31 }
 0x197   : > { %v1468_v46 = vadd.f32 %v9508_v10, %v1180_v20  ;;  %6789 = vmatmul.msk.bf16.gmra.mxu2 %vm562_vm0, %v8683_v18  ;;  %6901 = vmatmul.msk.bf16.gmra.mxu3 %vm562_vm0, %v8715_v19  ;;  %v8734_v19 = vld [vmem:[%s12713_s2 + $0x1f0] sm:$0xff] }
 0x199   : > { %v1756_v22 = vadd.f32 %v1683_v51, %v1468_v46 }
 0x19a   : > { %v854_v34 = vpop.f32.mrf.mxu2  ;;  %v1110_v2 = vpop.f32.mrf.mxu3 }
 0x19b   : > { %v1795_v27 = vsel %vm9521_vm5, %v1756_v22, 0.0  ;;  %v855_v42 = vadd.f32 %v854_v34, %v9411_v21  ;;  %v1688_v10 = vpop.f32.mrf.mxu1 }
 0x19c   : > { %v1827_v43 = vpack.c.bf16 %v1795_v27, %v1795_v27 }
 0x19d   : > { %v1181_v44 = vadd.f32 %v1110_v2, %v855_v42 }
 0x19e   : > { %v2116_v54 = vunpack.c.l.b16 %v1827_v43 }
 0x19f   : > { %v1469_v56 = vadd.f32 %v9526_v35, %v1181_v44 }
 0x1a0   : > { %v9601_v51 = vpack.c.b16 %v2116_v54, %v2115_v47  ;;  %v8749_v54 = vld [vmem:[%s12713_s2 + $0x268] sm:$0xff] }
 0x1a1   : > { %v1757_v57 = vadd.f32 %v1686_v58, %v1469_v56 }
 0x1a2   : > { %v856_v59 = vpop.f32.mrf.mxu2  ;;  %v1112_v62 = vpop.f32.mrf.mxu3 }
 0x1a3   : > { %v857_v21 = vadd.f32 %v856_v59, %v9424_v26  ;;  %v1691_v35 = vpop.f32.mrf.mxu1  ;;  %v1796_v9 = vsel %vm9521_vm5, %v1757_v57, 0.0  ;;  %v9619_v26 = vpop.f32.mrf.mxu0  ;;  %v8685_v57 = vld [vmem:[%s12713_s2 + $0x68] sm:$0xff] }
 0x1a4   : > { %7016 = vmatmul.msk.bf16.gmra.mxu0 %vm562_vm0, %v8734_v19  ;;  %v1828_v20 = vpack.c.bf16 %v1796_v9, %v1796_v9 }
 0x1a5   : > { %v1182_v15 = vadd.f32 %v1112_v62, %v857_v21 }
 0x1a6   : > { %7126 = vmatmul.msk.bf16.gmra.mxu1 %vm562_vm0, %v8748_v63  ;;  %v2117_v2 = vunpack.c.l.b16 %v1828_v20 }
 0x1a7   : > { %v1470_v18 = vadd.f32 %v9539_v3, %v1182_v15  ;;  %6790 = vmatmul.msk.bf16.gmra.mxu2 %vm562_vm0, %v8684_v7  ;;  %6902 = vmatmul.msk.bf16.gmra.mxu3 %vm562_vm0, %v8716_v6 }
 0x1a9   : > { %v1758_v58 = vadd.f32 %v1688_v10, %v1470_v18 }
 0x1aa   : > { %v859_v23 = vpop.f32.mrf.mxu2  ;;  %v1115_v46 = vpop.f32.mrf.mxu3 }
 0x1ab   : > { %v1797_v14 = vsel %vm9521_vm5, %v1758_v58, 0.0  ;;  %v860_v3 = vadd.f32 %v859_v23, %v9439_v33  ;;  %v1693_v22 = vpop.f32.mrf.mxu1  ;;  %v9631_v10 = vpop.f32.mrf.mxu0 }
 0x1ac   : > { %v1829_v31 = vpack.c.bf16 %v1797_v14, %v1797_v14 }
 0x1ad   : > { %v1183_v34 = vadd.f32 %v1115_v46, %v860_v3 }
 0x1ae   : > { %v2118_v27 = vunpack.c.l.b16 %v1829_v31 }
 0x1af   : > { %v1471_v42 = vadd.f32 %v9554_v30, %v1183_v34  ;;  %v8717_v30 = vld [vmem:[%s12713_s2 + $0x168] sm:$0xff] }
 0x1b0   : > { %v9629_v43 = vpack.c.b16 %v2118_v27, %v2117_v2  ;;  %v8686_v27 = vld [vmem:[%s12713_s2 + $0x70] sm:$0xff] }
 0x1b1   : > { %v1759_v56 = vadd.f32 %v1691_v35, %v1471_v42 }
 0x1b2   : > { %v861_v44 = vpop.f32.mrf.mxu2  ;;  %v1117_v47 = vpop.f32.mrf.mxu3 }
 0x1b3   : > { %v862_v33 = vadd.f32 %v861_v44, %v9452_v38  ;;  %v1696_v59 = vpop.f32.mrf.mxu1  ;;  %v1798_v63 = vsel %vm9521_vm5, %v1759_v56, 0.0  ;;  %v8735_v38 = vld [vmem:[%s12713_s2 + $0x1f8] sm:$0xff]  ;;  %v9656_v19 = vpop.f32.mrf.mxu0 }
 0x1b4   : > { %7017 = vmatmul.msk.bf16.gmra.mxu0 %vm562_vm0, %v8735_v38  ;;  %v1830_v6 = vpack.c.bf16 %v1798_v63, %v1798_v63 }
 0x1b5   : > { %v1184_v62 = vadd.f32 %v1117_v47, %v862_v33 }
 0x1b6   : > { %7127 = vmatmul.msk.bf16.gmra.mxu1 %vm562_vm0, %v8749_v54  ;;  %v2119_v23 = vunpack.c.l.b16 %v1830_v6 }
 0x1b7   : > { %v1472_v21 = vadd.f32 %v9568_v60, %v1184_v62  ;;  %6791 = vmatmul.msk.bf16.gmra.mxu2 %vm562_vm0, %v8685_v57  ;;  %6903 = vmatmul.msk.bf16.gmra.mxu3 %vm562_vm0, %v8717_v30 }
 0x1b9   : > { %v1760_v7 = vadd.f32 %v1693_v22, %v1472_v21 }
 0x1ba   : > { %v864_v35 = vpop.f32.mrf.mxu2  ;;  %v1120_v15 = vpop.f32.mrf.mxu3 }
 0x1bb   : > { %v1799_v9 = vsel %vm9521_vm5, %v1760_v7, 0.0  ;;  %v865_v18 = vadd.f32 %v864_v35, %v9467_v45  ;;  %v1698_v60 = vpop.f32.mrf.mxu1  ;;  %v8750_v45 = vld [vmem:[%s12713_s2 + $0x270] sm:$0xff]  ;;  %v1420_v47 = vpop.f32.mrf.mxu0 }
 0x1bc   : > { %v1831_v58 = vpack.c.bf16 %v1799_v9, %v1799_v9 }
 0x1bd   : > { %v1185_v20 = vadd.f32 %v1120_v15, %v865_v18 }
 0x1be   : > { %v2120_v46 = vunpack.c.l.b16 %v1831_v58 }
 0x1bf   : > { %v1473_v14 = vadd.f32 %v9584_v61, %v1185_v20  ;;  %v8718_v61 = vld [vmem:[%s12713_s2 + $0x170] sm:$0xff]  ;;  %v8687_v20 = vld [vmem:[%s12713_s2 + $0x78] sm:$0xff] }
 0x1c0   : > { %v9659_v3 = vpack.c.b16 %v2120_v46, %v2119_v23 }
 0x1c1   : > { %v1761_v34 = vadd.f32 %v1696_v59, %v1473_v14 }
 0x1c2   : > { %12725 = vst [vmem:[#allocation3_spill] sm:$0xff] %v9659_v3  ;;  %v866_v22 = vpop.f32.mrf.mxu2  ;;  %v1122_v31 = vpop.f32.mrf.mxu3  ;;  %2167 = vrot.lane.b32.xlu0 %v9659_v3, %s9132_s10 }
 0x1c3   : > { %v867_v2 = vadd.f32 %v866_v22, %v9480_v50  ;;  %v1701_v42 = vpop.f32.mrf.mxu1  ;;  %v1800_v54 = vsel %vm9521_vm5, %v1761_v34, 0.0  ;;  %v1423_v35 = vpop.f32.mrf.mxu0 }
 0x1c4   : > { %v1832_v33 = vpack.c.bf16 %v1800_v54, %v1800_v54 }
 0x1c5   : > { %v1186_v44 = vadd.f32 %v1122_v31, %v867_v2 }
 0x1c6   : > { %7128 = vmatmul.msk.bf16.gmra.mxu1 %vm562_vm0, %v8750_v45  ;;  %v2121_v7 = vunpack.c.l.b16 %v1832_v33 }
 0x1c7   : > { %v1474_v56 = vadd.f32 %v9598_v55, %v1186_v44  ;;  %6792 = vmatmul.msk.bf16.gmra.mxu2 %vm562_vm0, %v8686_v27  ;;  %6904 = vmatmul.msk.bf16.gmra.mxu3 %vm562_vm0, %v8718_v61 }
 0x1c9   : > { %v1762_v50 = vadd.f32 %v1698_v60, %v1474_v56  ;;  %v8751_v60 = vld [vmem:[%s12713_s2 + $0x278] sm:$0xff]  ;;  %v12726_v32 = vld [vmem:[#allocation3_spill] sm:$0xff] }
 0x1ca   : > { %v869_v57 = vpop.f32.mrf.mxu2  ;;  %v1125_v30 = vpop.f32.mrf.mxu3 }
 0x1cb   : > { %v1801_v59 = vsel %vm9521_vm5, %v1762_v50, 0.0  ;;  %v870_v62 = vadd.f32 %v869_v57, %v9358_v0  ;;  %v1703_v63 = vpop.f32.mrf.mxu1  ;;  %v9703_v31 = vpop.f32.mrf.mxu0 }
 0x1cc   : > { %v1833_v21 = vpack.c.bf16 %v1801_v59, %v1801_v59 }
 0x1cd   : > { %v1187_v38 = vadd.f32 %v1125_v30, %v870_v62 }
 0x1ce   : > { %v2122_v6 = vunpack.c.l.b16 %v1833_v21 }
 0x1cf   : > { %v1475_v55 = vadd.f32 %v9619_v26, %v1187_v38  ;;  %v8719_v26 = vld [vmem:[%s12713_s2 + $0x178] sm:$0xff] }
 0x1d0   : > { %v9683_v15 = vpack.c.b16 %v2122_v6, %v2121_v7 }
 0x1d1   : > { %v1763_v0 = vadd.f32 %v1701_v42, %v1475_v55 }
 0x1d2   : > { %v871_v9 = vpop.f32.mrf.mxu2  ;;  %v1127_v18 = vpop.f32.mrf.mxu3  ;;  %2169 = vrot.lane.b32.xlu1 %v9683_v15, %s9132_s10 }
 0x1d3   : > { %v872_v58 = vadd.f32 %v871_v9, %v9366_v4  ;;  %v1706_v23 = vpop.f32.mrf.mxu1  ;;  %v1802_v14 = vsel %vm9521_vm5, %v1763_v0, 0.0  ;;  %v1428_v21 = vpop.f32.mrf.mxu0 }
 0x1d4   : > { %v1834_v45 = vpack.c.bf16 %v1802_v14, %v1802_v14 }
 0x1d5   : > { %v1188_v46 = vadd.f32 %v1127_v18, %v872_v58 }
 0x1d6   : > { %7129 = vmatmul.msk.bf16.gmra.mxu1 %vm562_vm0, %v8751_v60  ;;  %v2123_v56 = vunpack.c.l.b16 %v1834_v45 }
 0x1d7   : > { %v1476_v22 = vadd.f32 %v9631_v10, %v1188_v46  ;;  %6793 = vmatmul.msk.bf16.gmra.mxu2 %vm562_vm0, %v8687_v20  ;;  %6905 = vmatmul.msk.bf16.gmra.mxu3 %vm562_vm0, %v8719_v26 }
 0x1d9   : > { %v1764_v4 = vadd.f32 %v1703_v63, %v1476_v22 }
 0x1da   : > { %v874_v34 = vpop.f32.mrf.mxu2  ;;  %v1130_v2 = vpop.f32.mrf.mxu3 }
 0x1db   : > { %v1803_v27 = vsel %vm9521_vm5, %v1764_v4, 0.0  ;;  %v875_v61 = vadd.f32 %v874_v34, %v9390_v12  ;;  %v1708_v42 = vpop.f32.mrf.mxu1  ;;  %v9721_v20 = vpop.f32.mrf.mxu0 }
 0x1dc   : > { %v1835_v44 = vpack.c.bf16 %v1803_v27, %v1803_v27 }
 0x1dd   : > { %v1189_v54 = vadd.f32 %v1130_v2, %v875_v61 }
 0x1de   : > { %v2124_v10 = vunpack.c.l.b16 %v1835_v44 }
 0x1df   : > { %v1477_v50 = vadd.f32 %v9656_v19, %v1189_v54 }
 0x1e0   : > { %v9709_v33 = vpack.c.b16 %v2124_v10, %v2123_v56 }
 0x1e1   : > { %v1765_v59 = vadd.f32 %v1706_v23, %v1477_v50 }
 0x1e2   : > { %v876_v57 = vpop.f32.mrf.mxu2  ;;  %v1132_v30 = vpop.f32.mrf.mxu3  ;;  %2171 = vrot.lane.b32.xlu2 %v9709_v33, %s9132_s10 }
 0x1e3   : > { %v877_v62 = vadd.f32 %v876_v57, %v9398_v16  ;;  %v1711_v63 = vpop.f32.mrf.mxu1  ;;  %v1804_v38 = vsel %vm9521_vm5, %v1765_v59, 0.0  ;;  %v1433_v45 = vpop.f32.mrf.mxu0 }
 0x1e4   : > { %v1836_v55 = vpack.c.bf16 %v1804_v38, %v1804_v38 }
 0x1e5   : > { %v1190_v12 = vadd.f32 %v1132_v30, %v877_v62 }
 0x1e6   : > { %v2125_v26 = vunpack.c.l.b16 %v1836_v55 }
 0x1e7   : > { %v1478_v7 = vadd.f32 %v1420_v47, %v1190_v12 }
 0x1e9   : > { %v1766_v6 = vadd.f32 %v1708_v42, %v1478_v7 }
 0x1ea   : > { %v879_v19 = vpop.f32.mrf.mxu2  ;;  %v1135_v9 = vpop.f32.mrf.mxu3 }
 0x1eb   : > { %v1805_v18 = vsel %vm9521_vm5, %v1766_v6, 0.0  ;;  %v880_v60 = vadd.f32 %v879_v19, %v9420_v24  ;;  %v9719_v0 = vpop.f32.mrf.mxu1  ;;  %v9742_v54 = vpop.f32.mrf.mxu0 }
 0x1ec   : > { %v1837_v58 = vpack.c.bf16 %v1805_v18, %v1805_v18 }
 0x1ed   : > { %v1191_v16 = vadd.f32 %v1135_v9, %v880_v60 }
 0x1ee   : > { %v2126_v23 = vunpack.c.l.b16 %v1837_v58 }
 0x1ef   : > { %v1479_v46 = vadd.f32 %v1423_v35, %v1191_v16 }
 0x1f0   : > { %v9723_v14 = vpack.c.b16 %v2126_v23, %v2125_v26 }
 0x1f1   : > { %v9725_v47 = vadd.f32 %v1711_v63, %v1479_v46 }
 0x1f2   : > { %v9727_v22 = vpop.f32.mrf.mxu2  ;;  %v9729_v4 = vpop.f32.mrf.mxu3  ;;  %2173 = vrot.lane.b32.xlu0 %v9723_v14, %s9132_s10  ;;  %2561 = vmatpush.bf16.msrb.mxu0 %v9723_v14 }
 0x1f3   : > { %v1716_v24 = vpop.f32.mrf.mxu1  ;;  %v1438_v62 = vpop.f32.mrf.mxu0 }
 0x1f6   : > { %2562 = vmatpush.bf16.msrb.mxu0 %v9709_v33 }
 0x1fa   : > { %v884_v34 = vpop.f32.mrf.mxu2  ;;  %v1140_v2 = vpop.f32.mrf.mxu3  ;;  %2563 = vmatpush.bf16.msrb.mxu0 %v9683_v15 }
 0x1fb   : > { %v885_v35 = vadd.f32 %v884_v34, %v9448_v36  ;;  %v9737_v27 = vpop.f32.mrf.mxu1  ;;  %v9757_v55 = vpop.f32.mrf.mxu0 }
 0x1fd   : > { %v1193_v61 = vadd.f32 %v1140_v2, %v885_v35 }
 0x1fe   : > { %2564 = vmatpush.bf16.msrb.mxu0 %v9659_v3 }
 0x1ff   : > { %v1481_v42 = vadd.f32 %v1428_v21, %v1193_v61 }
 0x201   : > { %v9740_v44 = vadd.f32 %v1716_v24, %v1481_v42 }
 0x202   : > { %v9744_v56 = vpop.f32.mrf.mxu2  ;;  %v9746_v10 = vpop.f32.mrf.mxu3  ;;  %2565 = vmatpush.bf16.msrb.mxu0 %v9629_v43 }
 0x203   : > { %v1721_v50 = vpop.f32.mrf.mxu1  ;;  %v1443_v16 = vpop.f32.mrf.mxu0 }
 0x206   : > { %2566 = vmatpush.bf16.msrb.mxu0 %v9601_v51 }
 0x20a   : > { %v889_v36 = vpop.f32.mrf.mxu2  ;;  %v1145_v57 = vpop.f32.mrf.mxu3  ;;  %2567 = vmatpush.bf16.msrb.mxu0 %v9571_v39 }
 0x20b   : > { %v890_v30 = vadd.f32 %v889_v36, %v9476_v48  ;;  %v9752_v59 = vpop.f32.mrf.mxu1 }
 0x20d   : > { %v1195_v63 = vadd.f32 %v1145_v57, %v890_v30 }
 0x20e   : > { %2568 = vmatpush.bf16.msrb.mxu0 %v9541_v11 }
 0x20f   : > { %v1483_v21 = vadd.f32 %v1433_v45, %v1195_v63  ;;  %v9764_v45 = vpop.f32.mrf.mxu0 }
 0x211   : > { %v9755_v12 = vadd.f32 %v1721_v50, %v1483_v21 }
 0x212   : > { %v891_v38 = vpop.f32.mrf.mxu2  ;;  %v1147_v7 = vpop.f32.mrf.mxu3 }
 0x213   : > { %v1726_v6 = vpop.f32.mrf.mxu1 }
 0x217   : > { %v1448_v30 = vpop.f32.mrf.mxu0 }
 0x21a   : > { %v894_v19 = vpop.f32.mrf.mxu2  ;;  %v1150_v9 = vpop.f32.mrf.mxu3 }
 0x21b   : > { %v895_v18 = vadd.f32 %v894_v19, %v9360_v1  ;;  %v9760_v60 = vpop.f32.mrf.mxu1 }
 0x21d   : > { %v1197_v48 = vadd.f32 %v1150_v9, %v895_v18 }
 0x21f   : > { %v1485_v58 = vadd.f32 %v1438_v62, %v1197_v48  ;;  %v1450_v9 = vpop.f32.mrf.mxu0 }
 0x221   : > { %v9762_v26 = vadd.f32 %v1726_v6, %v1485_v58 }
 0x222   : > { %v896_v23 = vpop.f32.mrf.mxu2  ;;  %v1152_v46 = vpop.f32.mrf.mxu3 }
 0x223   : > { %v1731_v24 = vpop.f32.mrf.mxu1 }
 0x22a   : > { %v899_v34 = vpop.f32.mrf.mxu2  ;;  %v1155_v2 = vpop.f32.mrf.mxu3 }
 0x22b   : > { %v900_v35 = vadd.f32 %v899_v34, %v9392_v13  ;;  %v9767_v61 = vpop.f32.mrf.mxu1 }
 0x22d   : > { %v1199_v42 = vadd.f32 %v1155_v2, %v900_v35 }
 0x22f   : > { %v1487_v1 = vadd.f32 %v1443_v16, %v1199_v42 }
 0x231   : > { %v9769_v50 = vadd.f32 %v1731_v24, %v1487_v1  ;;  %v892_v24 = vadd.f32 %v891_v38, %v9484_v52  ;;  %v1453_v1 = vpop.f32.mrf.mxu0  ;;  %v897_v38 = vadd.f32 %v896_v23, %v9368_v5 }
 0x232   : > { %v9771_v36 = vpop.f32.mrf.mxu2  ;;  %v9773_v57 = vpop.f32.mrf.mxu3 }
 0x233   : > { %v1736_v62 = vpop.f32.mrf.mxu1  ;;  %v1196_v8 = vadd.f32 %v1147_v7, %v892_v24 }
 0x235   : > { %v1484_v52 = vadd.f32 %v9742_v54, %v1196_v8 }
 0x23a   : > { %v904_v63 = vpop.f32.mrf.mxu2  ;;  %v1160_v21 = vpop.f32.mrf.mxu3 }
 0x23b   : > { %v905_v6 = vadd.f32 %v904_v63, %v9422_v25  ;;  %v1738_v13 = vpop.f32.mrf.mxu1 }
 0x23d   : > { %v1201_v19 = vadd.f32 %v1160_v21, %v905_v6 }
 0x23f   : > { %v1489_v18 = vadd.f32 %v1448_v30, %v1201_v19 }
 0x241   : > { %v1777_v34 = vadd.f32 %v1736_v62, %v1489_v18 }
 0x242   : > { %v906_v48 = vpop.f32.mrf.mxu2  ;;  %v1162_v58 = vpop.f32.mrf.mxu3 }
 0x243   : > { %v907_v16 = vadd.f32 %v906_v48, %v9428_v29  ;;  %v1816_v35 = vsel %vm9521_vm5, %v1777_v34, 0.0  ;;  %v1741_v25 = vpop.f32.mrf.mxu1  ;;  %v1455_v34 = vpop.f32.mrf.mxu0 }
 0x244   : > { %v1848_v63 = vpack.c.bf16 %v1816_v35, %v1816_v35 }
 0x245   : > { %v1202_v2 = vadd.f32 %v1162_v58, %v907_v16  ;;  %v1198_v58 = vadd.f32 %v1152_v46, %v897_v38 }
 0x246   : > { %v2137_v18 = vunpack.c.l.b16 %v1848_v63 }
 0x247   : > { %v1490_v42 = vadd.f32 %v1450_v9, %v1202_v2  ;;  %v1486_v54 = vadd.f32 %v9757_v55, %v1198_v58 }
 0x249   : > { %v1778_v3 = vadd.f32 %v1738_v13, %v1490_v42  ;;  %v1772_v13 = vadd.f32 %v9752_v59, %v1484_v52  ;;  %v1810_v59 = vsel %vm9521_vm5, %v9755_v12, 0.0  ;;  %v1774_v42 = vadd.f32 %v9760_v60, %v1486_v54 }
 0x24a   : > { %v909_v21 = vpop.f32.mrf.mxu2  ;;  %v1165_v30 = vpop.f32.mrf.mxu3  ;;  %v882_v60 = vadd.f32 %v9727_v22, %v9426_v28 }
 0x24b   : > { %v1817_v6 = vsel %vm9521_vm5, %v1778_v3, 0.0  ;;  %v910_v62 = vadd.f32 %v909_v21, %v9450_v37  ;;  %v1743_v3 = vpop.f32.mrf.mxu1  ;;  %v1811_v5 = vsel %vm9521_vm5, %v1772_v13, 0.0  ;;  %v1813_v52 = vsel %vm9521_vm5, %v1774_v42, 0.0  ;;  %v2172_v42 = vpop.permute.xlu2 %2171 }
 0x24c   : > { %v1849_v29 = vpack.c.bf16 %v1817_v6, %v1817_v6  ;;  %v1843_v35 = vpack.c.bf16 %v1811_v5, %v1811_v5  ;;  %v2168_v6 = vpop.permute.xlu0 %2167  ;;  %v1192_v22 = vadd.f32 %v9729_v4, %v882_v60  ;;  %v1814_v60 = vsel %vm9521_vm5, %v9769_v50, 0.0 }
 0x24d   : > { %v1203_v19 = vadd.f32 %v1165_v30, %v910_v62 }
 0x24e   : > { %v2138_v9 = vunpack.c.l.b16 %v1849_v29  ;;  %v2132_v30 = vunpack.c.l.b16 %v1843_v35  ;;  %v1458_v29 = vpop.f32.mrf.mxu0  ;;  %v1480_v54 = vadd.f32 %v9703_v31, %v1192_v22 }
 0x24f   : > { %v1491_v48 = vadd.f32 %v1453_v1, %v1203_v19 }
 0x250   : > { %v9785_v7 = vpack.c.b16 %v2138_v9, %v2137_v18  ;;  %v902_v18 = vadd.f32 %v9771_v36, %v9400_v17 }
 0x251   : > { %v1779_v37 = vadd.f32 %v1741_v25, %v1491_v48 }
 0x252   : > { %v911_v16 = vpop.f32.mrf.mxu2  ;;  %v1167_v24 = vpop.f32.mrf.mxu3  ;;  %2185 = vrot.lane.b32.xlu2 %v9785_v7, %s9132_s10 }
 0x253   : > { %v912_v8 = vadd.f32 %v911_v16, %v9456_v41  ;;  %v1818_v46 = vsel %vm9521_vm5, %v1779_v37, 0.0  ;;  %v1842_v41 = vpack.c.bf16 %v1810_v59, %v1810_v59  ;;  %v1746_v13 = vpop.f32.mrf.mxu1  ;;  %v1845_v16 = vpack.c.bf16 %v1813_v52, %v1813_v52 }
 0x254   : > { %v1850_v25 = vpack.c.bf16 %v1818_v46, %v1818_v46  ;;  %v1200_v37 = vadd.f32 %v9773_v57, %v902_v18 }
 0x255   : > { %v1204_v23 = vadd.f32 %v1167_v24, %v912_v8  ;;  %v2131_v19 = vunpack.c.l.b16 %v1842_v41  ;;  %v2134_v36 = vunpack.c.l.b16 %v1845_v16 }
 0x256   : > { %v2139_v9 = vunpack.c.l.b16 %v1850_v25  ;;  %v1488_v57 = vadd.f32 %v9764_v45, %v1200_v37  ;;  %v1460_v59 = vpop.f32.mrf.mxu0 }
 0x257   : > { %v1492_v2 = vadd.f32 %v1455_v34, %v1204_v23  ;;  %v9814_v34 = vpack.c.b16 %v2132_v30, %v2131_v19 }
 0x258   : > { %v1776_v31 = vadd.f32 %v9767_v61, %v1488_v57 }
 0x259   : > { %v1780_v1 = vadd.f32 %v1743_v3, %v1492_v2 }
 0x25a   : > { %v914_v63 = vpop.f32.mrf.mxu2  ;;  %v1170_v21 = vpop.f32.mrf.mxu3  ;;  %2165 = vrot.lane.b32.xlu2 %v9629_v43, %s9132_s10  ;;  %v1815_v61 = vsel %vm9521_vm5, %v1776_v31, 0.0  ;;  %v8754_v31 = vld [vmem:[%s12714_s3 + $0x14] sm:$0xf] }
 0x25b   : > { %v1819_v55 = vsel %vm9521_vm5, %v1780_v1, 0.0  ;;  %v915_v12 = vadd.f32 %v914_v63, %v9478_v49  ;;  %v1812_v49 = vsel %vm9521_vm5, %v9762_v26, 0.0  ;;  %v1748_v1 = vpop.f32.mrf.mxu1  ;;  %v2170_v63 = vpop.permute.xlu1 %2169 }
 0x25c   : > { %v1851_v62 = vpack.c.bf16 %v1819_v55, %v1819_v55  ;;  %v1844_v24 = vpack.c.bf16 %v1812_v49, %v1812_v49  ;;  %v1808_v49 = vsel %vm9521_vm5, %v9740_v44, 0.0 }
 0x25d   : > { %v1205_v38 = vadd.f32 %v1170_v21, %v915_v12 }
 0x25e   : > { %v2140_v48 = vunpack.c.l.b16 %v1851_v62  ;;  %v2133_v4 = vunpack.c.l.b16 %v1844_v24  ;;  %v1806_v62 = vsel %vm9521_vm5, %v9725_v47, 0.0 }
 0x25f   : > { %v1493_v58 = vadd.f32 %v1458_v29, %v1205_v38  ;;  %v1847_v38 = vpack.c.bf16 %v1815_v61, %v1815_v61  ;;  %v1838_v19 = vpack.c.bf16 %v1806_v62, %v1806_v62 }
 0x260   : > { %v9816_v28 = vpack.c.b16 %v2140_v48, %v2139_v9  ;;  %v9829_v35 = vpack.c.b16 %v2134_v36, %v2133_v4  ;;  %v7294_v4 = vld [vmem:[%s12714_s3 + $0x8] sm:$0xf0] }
 0x261   : > { %v1781_v17 = vadd.f32 %v1746_v13, %v1493_v58  ;;  %v2136_v50 = vunpack.c.l.b16 %v1847_v38  ;;  %v2127_v18 = vunpack.c.l.b16 %v1838_v19  ;;  %v8787_v38 = vld [vmem:[%s12714_s3 + $0x114] sm:$0xf0]  ;;  %v8757_v19 = vld [vmem:[%s12714_s3 + $0x24] sm:$0xf0] }
 0x262   : > { %v916_v8 = vpop.f32.mrf.mxu2  ;;  %2179 = vrot.lane.b32.xlu2 %v9814_v34, %s9132_s10  ;;  %2187 = vrot.lane.b32.xlu0 %v9816_v28, %s9132_s10  ;;  %v1172_v3 = vpop.f32.mrf.mxu3 }
 0x263   : > { %v917_v26 = vadd.f32 %v916_v8, %v9486_v53  ;;  %v1820_v46 = vsel %vm9521_vm5, %v1781_v17, 0.0  ;;  %v1768_v53 = vadd.f32 %v9719_v0, %v1480_v54  ;;  %v887_v0 = vadd.f32 %v9744_v56, %v9454_v40  ;;  %v8752_v54 = vld [vmem:[%s12714_s3 + $0x4] sm:$0xf] }
 0x264   : > { %v2174_v5 = vpop.permute.xlu0 %2173  ;;  %v1852_v25 = vpack.c.bf16 %v1820_v46, %v1820_v46  ;;  %v1846_v56 = vpack.c.bf16 %v1814_v60, %v1814_v60  ;;  %v7297_v46 = vor.u32 %v8752_v54, %v7294_v4  ;;  %v7324_v4 = vld [vmem:[%s12714_s3 + $0x40] sm:$0xf] }
 0x265   : > { %v1206_v23 = vadd.f32 %v1172_v3, %v917_v26  ;;  %2207 = vmatpush.bf16.msra.mxu2 %v2174_v5  ;;  %v1807_v55 = vsel %vm9521_vm5, %v1768_v53, 0.0  ;;  %v1194_v40 = vadd.f32 %v9746_v10, %v887_v0  ;;  %v8753_v5 = vld [vmem:[%s12714_s3 + $0x4] sm:$0xf0]  ;;  %v7164_v53 = vld [vmem:[%s12714_s3 + $0x100] sm:$0xf] }
 0x266   : > { %v2141_v12 = vunpack.c.l.b16 %v1852_v25  ;;  %v1839_v29 = vpack.c.bf16 %v1807_v55, %v1807_v55  ;;  %v2135_v9 = vunpack.c.l.b16 %v1846_v56 }
 0x267   : > { %v1494_v2 = vadd.f32 %v1460_v59, %v1206_v23 }
 0x268   : > { %v2128_v47 = vunpack.c.l.b16 %v1839_v29  ;;  %v2155_v48 = vpack.c.b16 %v2136_v50, %v2135_v9 }
 0x269   : > { %v1782_v41 = vadd.f32 %v1748_v1, %v1494_v2  ;;  %2208 = vmatpush.bf16.msra.mxu2 %v2172_v42 }
 0x26a   : > { %2159 = vrot.lane.b32.xlu2 %v9541_v11, %s9132_s10  ;;  %2181 = vrot.lane.b32.xlu0 %v9829_v35, %s9132_s10  ;;  %v9863_v10 = vpack.c.b16 %v2128_v47, %v2127_v18  ;;  %v7310_v47 = vld [vmem:[%s12714_s3 + $0x28] sm:$0xf0] }
 0x26b   : > { %v1821_v45 = vsel %vm9521_vm5, %v1782_v41, 0.0  ;;  %v8785_v41 = vld [vmem:[%s12714_s3 + $0x104] sm:$0xf0] }
 0x26c   : > { %v1853_v21 = vpack.c.bf16 %v1821_v45, %v1821_v45  ;;  %v7302_v45 = vld [vmem:[%s12714_s3 + $0x18] sm:$0xf0]  ;;  %v7165_v61 = vor.u32 %v8785_v41, %v7164_v53 }
 0x26d   : > { %2209 = vmatpush.bf16.msra.mxu2 %v2170_v63  ;;  %v7305_v55 = vor.u32 %v8754_v31, %v7302_v45  ;;  %v7196_v45 = vld [vmem:[%s12714_s3 + $0x140] sm:$0xf] }
 0x26e   : > { %v2142_v30 = vunpack.c.l.b16 %v1853_v21 }
 0x270   : > { %v9851_v52 = vpack.c.b16 %v2142_v30, %v2141_v12  ;;  %v8784_v12 = vld [vmem:[%s12714_s3 + $0x104] sm:$0xf] }
 0x271   : > { %2210 = vmatpush.bf16.msra.mxu2 %v2168_v6  ;;  %v1482_v6 = vadd.f32 %v9721_v20, %v1194_v40  ;;  %v8756_v40 = vld [vmem:[%s12714_s3 + $0x24] sm:$0xf] }
 0x272   : > { %2942 = vrot.lane.b32.xlu2 %v9683_v15, %s9133_s11  ;;  %2161 = vrot.lane.b32.xlu0 %v9571_v39, %s9132_s10 }
 0x273   : > { %2189 = vrot.lane.b32.xlu1 %v9851_v52, %s9132_s10  ;;  %2650 = vmatpush.bf16.msra.mxu1 %v9851_v52  ;;  %v1770_v13 = vadd.f32 %v9737_v27, %v1482_v6  ;;  %v1840_v27 = vpack.c.bf16 %v1808_v49, %v1808_v49  ;;  %v7313_v6 = vor.u32 %v8756_v40, %v7310_v47  ;;  %v8795_v47 = vld [vmem:[%s12714_s3 + $0x154] sm:$0xf0] }
 0x275   : > { %v1809_v20 = vsel %vm9521_vm5, %v1770_v13, 0.0  ;;  %v2129_v22 = vunpack.c.l.b16 %v1840_v27  ;;  %v8786_v13 = vld [vmem:[%s12714_s3 + $0x114] sm:$0xf] }
 0x276   : > { %v1841_v58 = vpack.c.bf16 %v1809_v20, %v1809_v20 }
 0x277   : > { %2651 = vmatpush.bf16.msra.mxu1 %v9816_v28 }
 0x278   : > { %v2130_v16 = vunpack.c.l.b16 %v1841_v58 }
 0x27a   : > { %2175 = vrot.lane.b32.xlu0 %v9863_v10, %s9132_s10  ;;  %2962 = vrot.lane.b32.xlu2 %v9851_v52, %s9133_s11  ;;  %v2152_v24 = vpack.c.b16 %v2130_v16, %v2129_v22  ;;  %v7180_v16 = vld [vmem:[%s12714_s3 + $0x120] sm:$0xf]  ;;  %v8789_v22 = vld [vmem:[%s12714_s3 + $0x124] sm:$0xf0] }
 0x27b   : > { %2183 = vrot.lane.b32.xlu1 %v2155_v48, %s9132_s10  ;;  %2652 = vmatpush.bf16.msra.mxu1 %v9785_v7 }
 0x27f   : > { %2653 = vmatpush.bf16.msra.mxu1 %v2155_v48 }
 0x282   : > { %2944 = vrot.lane.b32.xlu0 %v9709_v33, %s9133_s11  ;;  %2956 = vrot.lane.b32.xlu2 %v2155_v48, %s9133_s11 }
 0x283   : > { %2163 = vrot.lane.b32.xlu1 %v9601_v51, %s9132_s10  ;;  %2654 = vmatpush.bf16.msra.mxu1 %v9829_v35 }
 0x287   : > { %2655 = vmatpush.bf16.msra.mxu1 %v9814_v34 }
 0x28a   : > { %2958 = vrot.lane.b32.xlu0 %v9785_v7, %s9133_s11  ;;  %2936 = vrot.lane.b32.xlu2 %v9601_v51, %s9133_s11 }
 0x28b   : > { %2177 = vrot.lane.b32.xlu1 %v2152_v24, %s9132_s10  ;;  %2656 = vmatpush.bf16.msra.mxu1 %v2152_v24 }
 0x28f   : > { %2657 = vmatpush.bf16.msra.mxu1 %v9863_v10 }
 0x292   : > { %2938 = vrot.lane.b32.xlu0 %v9629_v43, %s9133_s11  ;;  %2950 = vrot.lane.b32.xlu2 %v2152_v24, %s9133_s11 }
 0x293   : > { %2946 = vrot.lane.b32.xlu1 %v9723_v14, %s9133_s11  ;;  %2658 = vmatmul.bf16.vlgmr.msra.gmra.mxu1 %v7297_v46 }
 0x29a   : > { %2952 = vrot.lane.b32.xlu0 %v9814_v34, %s9133_s11  ;;  %3848 = vrot.lane.b32.xlu2 %v9723_v14, %s9135_s13 }
 0x29b   : > { %2960 = vrot.lane.b32.xlu1 %v9816_v28, %s9133_s11 }
 0x2a2   : > { %2932 = vrot.lane.b32.xlu0 %v9541_v11, %s9133_s11  ;;  %3395 = vrot.lane.b32.xlu2 %v9709_v33, %s9134_s12 }
 0x2a3   : > { %2940 = vrot.lane.b32.xlu1 %v12726_v32, %s9133_s11  ;;  %2663 = vmatmul.bf16.gmra.mxu1 %v7305_v55  ;;  %v7332_v55 = vld [vmem:[%s12714_s3 + $0x50] sm:$0xf] }
 0x2aa   : > { %3846 = vrot.lane.b32.xlu0 %v9709_v33, %s9135_s13  ;;  %3860 = vrot.lane.b32.xlu2 %v9785_v7, %s9135_s13 }
 0x2ab   : > { %2954 = vrot.lane.b32.xlu1 %v9829_v35, %s9133_s11 }
 0x2ac   : > { %v2186_v44 = vpop.permute.xlu2 %2185 }
 0x2b2   : > { %3411 = vrot.lane.b32.xlu0 %v9816_v28, %s9134_s12  ;;  %3842 = vrot.lane.b32.xlu2 %v12726_v32, %s9135_s13 }
 0x2b3   : > { %2934 = vrot.lane.b32.xlu1 %v9571_v39, %s9133_s11  ;;  %2668 = vmatmul.bf16.gmra.mxu1 %v7313_v6  ;;  %v8765_v6 = vld [vmem:[%s12714_s3 + $0x64] sm:$0xf0] }
 0x2b4   : > { %v2166_v37 = vpop.permute.xlu2 %2165 }
 0x2b5   : > { %2211 = vmatpush.bf16.msra.mxu2 %v2166_v37 }
 0x2ba   : > { %3393 = vrot.lane.b32.xlu0 %v9683_v15, %s9134_s12  ;;  %3407 = vrot.lane.b32.xlu2 %v2155_v48, %s9134_s12 }
 0x2bb   : > { %2948 = vrot.lane.b32.xlu1 %v9863_v10, %s9133_s11 }
 0x2bc   : > { %v2180_v33 = vpop.permute.xlu2 %2179 }
 0x2c2   : > { %3858 = vrot.lane.b32.xlu0 %v2155_v48, %s9135_s13  ;;  %3389 = vrot.lane.b32.xlu2 %v9629_v43, %s9134_s12 }
 0x2c3   : > { %3397 = vrot.lane.b32.xlu1 %v9723_v14, %s9134_s12 }
 0x2c4   : > { %v2160_v8 = vpop.permute.xlu2 %2159 }
 0x2ca   : > { %3840 = vrot.lane.b32.xlu0 %v9629_v43, %s9135_s13  ;;  %3413 = vrot.lane.b32.xlu2 %v9851_v52, %s9134_s12 }
 0x2cb   : > { %3862 = vrot.lane.b32.xlu1 %v9816_v28, %s9135_s13 }
 0x2cc   : > { %v9935_v17 = vpop.permute.xlu2 %2942 }
 0x2d2   : > { %3405 = vrot.lane.b32.xlu0 %v9829_v35, %s9134_s12  ;;  %3854 = vrot.lane.b32.xlu2 %v9814_v34, %s9135_s13 }
 0x2d3   : > { %3844 = vrot.lane.b32.xlu1 %v9683_v15, %s9135_s13 }
 0x2d4   : > { %v2188_v14 = vpop.permute.xlu0 %2187  ;;  %v2963_v26 = vpop.permute.xlu2 %2962 }
 0x2da   : > { %3864 = vrot.lane.b32.xlu0 %v9851_v52, %s9135_s13  ;;  %3836 = vrot.lane.b32.xlu2 %v9571_v39, %s9135_s13  ;;  %v7172_v52 = vld [vmem:[%s12714_s3 + $0x110] sm:$0xf] }
 0x2db   : > { %3409 = vrot.lane.b32.xlu1 %v9785_v7, %s9134_s12  ;;  %v7292_v7 = vld [vmem:[%s12714_s3] sm:$0xf]  ;;  %v7173_v48 = vor.u32 %v8787_v38, %v7172_v52  ;;  %v8792_v52 = vld [vmem:[%s12714_s3 + $0x144] sm:$0xf]  ;;  %v7198_v38 = vld [vmem:[%s12714_s3 + $0x148] sm:$0xf0] }
 0x2dc   : > { %v2182_v43 = vpop.permute.xlu0 %2181  ;;  %v9949_v28 = vpop.permute.xlu2 %2956  ;;  %v7293_v23 = vor.u32 %v8753_v5, %v7292_v7 }
 0x2de   : > { %2569 = vmatmul.bf16.vlgmr.msrb.gmra.mxu0 %v7293_v23  ;;  %v8791_v23 = vld [vmem:[%s12714_s3 + $0x134] sm:$0xf0] }
 0x2e2   : > { %3387 = vrot.lane.b32.xlu0 %v9601_v51, %s9134_s12  ;;  %3401 = vrot.lane.b32.xlu2 %v2152_v24, %s9134_s12 }
 0x2e3   : > { %3391 = vrot.lane.b32.xlu1 %v12726_v32, %s9134_s12  ;;  %v8759_v32 = vld [vmem:[%s12714_s3 + $0x34] sm:$0xf0] }
 0x2e4   : > { %v2162_v15 = vpop.permute.xlu0 %2161  ;;  %v9956_v36 = vpop.permute.xlu2 %2936 }
 0x2e5   : > { %v2190_v3 = vpop.permute.xlu1 %2189 }
 0x2e6   : > { %2296 = vmatpush.bf16.msra.mxu3 %v2190_v3 }
 0x2ea   : > { %2297 = vmatpush.bf16.msra.mxu3 %v2188_v14  ;;  %3852 = vrot.lane.b32.xlu0 %v2152_v24, %s9135_s13  ;;  %v7316_v24 = vld [vmem:[%s12714_s3 + $0x30] sm:$0xf] }
 0x2eb   : > { %3383 = vrot.lane.b32.xlu2 %v9541_v11, %s9134_s12  ;;  %3856 = vrot.lane.b32.xlu1 %v9829_v35, %s9135_s13  ;;  %v7317_v37 = vor.u32 %v8759_v32, %v7316_v24 }
 0x2ec   : > { %v2176_v57 = vpop.permute.xlu0 %2175  ;;  %v9975_v59 = vpop.permute.xlu2 %2950 }
 0x2ed   : > { %v2184_v2 = vpop.permute.xlu1 %2183 }
 0x2ee   : > { %2298 = vmatpush.bf16.msra.mxu3 %v2186_v44  ;;  %v8758_v44 = vld [vmem:[%s12714_s3 + $0x34] sm:$0xf] }
 0x2f2   : > { %2299 = vmatpush.bf16.msra.mxu3 %v2184_v2  ;;  %3834 = vrot.lane.b32.xlu0 %v9541_v11, %s9135_s13  ;;  %v7300_v11 = vld [vmem:[%s12714_s3 + $0x10] sm:$0xf]  ;;  %v7326_v2 = vld [vmem:[%s12714_s3 + $0x48] sm:$0xf0] }
 0x2f3   : > { %3838 = vrot.lane.b32.xlu1 %v9601_v51, %s9135_s13  ;;  %v8755_v51 = vld [vmem:[%s12714_s3 + $0x14] sm:$0xf0] }
 0x2f4   : > { %v2945_v35 = vpop.permute.xlu0 %2944  ;;  %v9981_v42 = vpop.permute.xlu2 %3848  ;;  %v7301_v25 = vor.u32 %v8755_v51, %v7300_v11  ;;  %v8790_v11 = vld [vmem:[%s12714_s3 + $0x134] sm:$0xf]  ;;  %v7190_v51 = vld [vmem:[%s12714_s3 + $0x138] sm:$0xf0] }
 0x2f5   : > { %v2164_v1 = vpop.permute.xlu1 %2163 }
 0x2f6   : > { %2212 = vmatpush.bf16.msra.mxu2 %v2164_v1  ;;  %2300 = vmatpush.bf16.msra.mxu3 %v2182_v43  ;;  %v7181_v43 = vor.u32 %v8789_v22, %v7180_v16  ;;  %v7206_v16 = vld [vmem:[%s12714_s3 + $0x158] sm:$0xf0] }
 0x2f7   : > { %2574 = vmatmul.bf16.gmra.mxu0 %v7301_v25 }
 0x2fa   : > { %2213 = vmatpush.bf16.msra.mxu2 %v2162_v15  ;;  %2301 = vmatpush.bf16.msra.mxu3 %v2180_v33  ;;  %v7318_v33 = vld [vmem:[%s12714_s3 + $0x38] sm:$0xf0]  ;;  %v7182_v15 = vld [vmem:[%s12714_s3 + $0x128] sm:$0xf0] }
 0x2fb   : > { %3399 = vrot.lane.b32.xlu0 %v9863_v10, %s9134_s12  ;;  %3403 = vrot.lane.b32.xlu1 %v9814_v34, %s9134_s12  ;;  %v7166_v34 = vld [vmem:[%s12714_s3 + $0x108] sm:$0xf0]  ;;  %v7321_v14 = vor.u32 %v8758_v44, %v7318_v33  ;;  %v7212_v44 = vld [vmem:[%s12714_s3 + $0x160] sm:$0xf] }
 0x2fc   : > { %v2959_v63 = vpop.permute.xlu0 %2958  ;;  %v10005_v21 = vpop.permute.xlu2 %3395  ;;  %v7169_v30 = vor.u32 %v8784_v12, %v7166_v34  ;;  %v7334_v34 = vld [vmem:[%s12714_s3 + $0x58] sm:$0xf0]  ;;  %v8767_v33 = vld [vmem:[%s12714_s3 + $0x74] sm:$0xf0] }
 0x2fd   : > { %v2178_v0 = vpop.permute.xlu1 %2177  ;;  %2673 = vmatmul.bf16.gmra.mxu1 %v7321_v14  ;;  %v8766_v14 = vld [vmem:[%s12714_s3 + $0x74] sm:$0xf] }
 0x2fe   : > { %2214 = vmatpush.bf16.msra.mxu2 %v2160_v8  ;;  %2302 = vmatpush.bf16.msra.mxu3 %v2178_v0  ;;  %v8763_v0 = vld [vmem:[%s12714_s3 + $0x54] sm:$0xf0] }
 0x2ff   : > { %v7333_v12 = vor.u32 %v8763_v0, %v7332_v55 }
 0x301   : > { %2215 = vmatmul.bf16.vlgmr.msra.gmra.mxu2 %v7165_v61 }
 0x302   : > { %2303 = vmatpush.bf16.msra.mxu3 %v2176_v57  ;;  %v8761_v57 = vld [vmem:[%s12714_s3 + $0x44] sm:$0xf0] }
 0x303   : > { %3385 = vrot.lane.b32.xlu1 %v9571_v39, %s9134_s12  ;;  %v7308_v39 = vld [vmem:[%s12714_s3 + $0x20] sm:$0xf]  ;;  %v7325_v46 = vor.u32 %v8761_v57, %v7324_v4  ;;  %v8799_v4 = vld [vmem:[%s12714_s3 + $0x174] sm:$0xf0] }
 0x304   : > { %v2939_v62 = vpop.permute.xlu0 %2938  ;;  %v10015_v29 = vpop.permute.xlu2 %3860  ;;  %v7309_v56 = vor.u32 %v8757_v19, %v7308_v39  ;;  %v7201_v39 = vor.u32 %v8792_v52, %v7198_v38  ;;  %v8771_v52 = vld [vmem:[%s12714_s3 + $0x94] sm:$0xf0]  ;;  %v8770_v38 = vld [vmem:[%s12714_s3 + $0x94] sm:$0xf] }
 0x305   : > { %2304 = vmatmul.bf16.vlgmr.msra.gmra.mxu3 %v7169_v30  ;;  %v2947_v60 = vpop.permute.xlu1 %2946 }
 0x306   : > { %3069 = vmatpush.bf16.msrb.mxu3 %v2963_v26  ;;  %2980 = vmatpush.bf16.msrb.mxu2 %v2947_v60 }
 0x307   : > { %2579 = vmatmul.bf16.gmra.mxu0 %v7309_v56  ;;  %v7204_v56 = vld [vmem:[%s12714_s3 + $0x150] sm:$0xf] }
 0x30a   : > { %2981 = vmatpush.bf16.msrb.mxu2 %v2945_v35 }
 0x30b   : > { %3850 = vrot.lane.b32.xlu1 %v9863_v10, %s9135_s13  ;;  %v7174_v10 = vld [vmem:[%s12714_s3 + $0x118] sm:$0xf0] }
 0x30c   : > { %v2953_v50 = vpop.permute.xlu0 %2952  ;;  %v10037_v18 = vpop.permute.xlu2 %3842  ;;  %v7177_v20 = vor.u32 %v8786_v13, %v7174_v10 }
 0x30d   : > { %v2961_v9 = vpop.permute.xlu1 %2960 }
 0x30e   : > { %2982 = vmatpush.bf16.msrb.mxu2 %v9935_v17  ;;  %3070 = vmatpush.bf16.msrb.mxu3 %v2961_v9 }
 0x311   : > { %2220 = vmatmul.bf16.gmra.mxu2 %v7173_v48  ;;  %v8764_v48 = vld [vmem:[%s12714_s3 + $0x64] sm:$0xf] }
 0x312   : > { %3071 = vmatpush.bf16.msrb.mxu3 %v2959_v63  ;;  %v8793_v63 = vld [vmem:[%s12714_s3 + $0x144] sm:$0xf0] }
 0x314   : > { %v2933_v49 = vpop.permute.xlu0 %2932  ;;  %v10046_v58 = vpop.permute.xlu2 %3407 }
 0x315   : > { %2309 = vmatmul.bf16.gmra.mxu3 %v7177_v20  ;;  %v2941_v27 = vpop.permute.xlu1 %2940 }
 0x316   : > { %2983 = vmatpush.bf16.msrb.mxu2 %v2941_v27  ;;  %3072 = vmatpush.bf16.msrb.mxu3 %v9949_v28  ;;  %v8788_v28 = vld [vmem:[%s12714_s3 + $0x124] sm:$0xf]  ;;  %v8794_v27 = vld [vmem:[%s12714_s3 + $0x154] sm:$0xf] }
 0x317   : > { %2584 = vmatmul.bf16.gmra.mxu0 %v7317_v37  ;;  %v7185_v3 = vor.u32 %v8788_v28, %v7182_v15  ;;  %v7209_v22 = vor.u32 %v8794_v27, %v7206_v16  ;;  %v8797_v37 = vld [vmem:[%s12714_s3 + $0x164] sm:$0xf0]  ;;  %v8796_v15 = vld [vmem:[%s12714_s3 + $0x164] sm:$0xf]  ;;  %v7236_v27 = vld [vmem:[%s12714_s3 + $0x190] sm:$0xf] }
 0x318   : > { %v7213_v28 = vor.u32 %v8797_v37, %v7212_v44  ;;  %v8803_v16 = vld [vmem:[%s12714_s3 + $0x194] sm:$0xf0]  ;;  %v8773_v44 = vld [vmem:[%s12714_s3 + $0xa4] sm:$0xf0]  ;;  %v8772_v37 = vld [vmem:[%s12714_s3 + $0xa4] sm:$0xf] }
 0x31a   : > { %2984 = vmatpush.bf16.msrb.mxu2 %v2939_v62  ;;  %v7197_v62 = vor.u32 %v8793_v63, %v7196_v45 }
 0x31c   : > { %v3847_v8 = vpop.permute.xlu0 %3846  ;;  %v10067_v17 = vpop.permute.xlu2 %3389 }
 0x31d   : > { %v2955_v26 = vpop.permute.xlu1 %2954 }
 0x31e   : > { %2985 = vmatpush.bf16.msrb.mxu2 %v9956_v36  ;;  %3073 = vmatpush.bf16.msrb.mxu3 %v2955_v26  ;;  %v7188_v36 = vld [vmem:[%s12714_s3 + $0x130] sm:$0xf] }
 0x31f   : > { %v7189_v41 = vor.u32 %v8791_v23, %v7188_v36  ;;  %v7220_v23 = vld [vmem:[%s12714_s3 + $0x170] sm:$0xf] }
 0x321   : > { %2225 = vmatmul.bf16.gmra.mxu2 %v7181_v43 }
 0x322   : > { %3074 = vmatpush.bf16.msrb.mxu3 %v2953_v50  ;;  %v7340_v50 = vld [vmem:[%s12714_s3 + $0x60] sm:$0xf] }
 0x323   : > { %v7341_v9 = vor.u32 %v8765_v6, %v7340_v50  ;;  %v8800_v6 = vld [vmem:[%s12714_s3 + $0x184] sm:$0xf] }
 0x324   : > { %v3412_v7 = vpop.permute.xlu0 %3411  ;;  %v3414_v5 = vpop.permute.xlu2 %3413 }
 0x325   : > { %2314 = vmatmul.bf16.gmra.mxu3 %v7185_v3  ;;  %v2935_v54 = vpop.permute.xlu1 %2934  ;;  %3520 = vmatpush.bf16.msrb.mxu1 %v3414_v5  ;;  %v7214_v3 = vld [vmem:[%s12714_s3 + $0x168] sm:$0xf0] }
 0x326   : > { %2986 = vmatpush.bf16.msrb.mxu2 %v2935_v54  ;;  %3075 = vmatpush.bf16.msrb.mxu3 %v9975_v59  ;;  %v8760_v59 = vld [vmem:[%s12714_s3 + $0x44] sm:$0xf]  ;;  %v7217_v5 = vor.u32 %v8796_v15, %v7214_v3 }
 0x327   : > { %v7329_v1 = vor.u32 %v8760_v59, %v7326_v2  ;;  %2589 = vmatmul.bf16.gmra.mxu0 %v7325_v46  ;;  %v10185_v46 = vpop.f32.mrf.mxu1  ;;  %v7356_v2 = vld [vmem:[%s12714_s3 + $0x80] sm:$0xf] }
 0x329   : > { %3521 = vmatpush.bf16.msrb.mxu1 %v3412_v7 }
 0x32a   : > { %2987 = vmatpush.bf16.msrb.mxu2 %v2933_v49  ;;  %2678 = vmatmul.bf16.gmra.mxu1 %v7329_v1  ;;  %v7205_v49 = vor.u32 %v8795_v47, %v7204_v56  ;;  %v8768_v1 = vld [vmem:[%s12714_s3 + $0x84] sm:$0xf] }
 0x32c   : > { %v3394_v35 = vpop.permute.xlu0 %3393 }
 0x32d   : > { %v2949_v53 = vpop.permute.xlu1 %2948 }
 0x32e   : > { %3882 = vmatpush.bf16.msra.mxu2 %v9981_v42  ;;  %3076 = vmatpush.bf16.msrb.mxu3 %v2949_v53  ;;  %v7193_v42 = vor.u32 %v8790_v11, %v7190_v51  ;;  %v7221_v51 = vor.u32 %v8799_v4, %v7220_v23 }
 0x32f   : > { %v2661_v0 = vpop.f32.mrf.mxu1 }
 0x331   : > { %2230 = vmatmul.bf16.gmra.mxu2 %v7189_v41  ;;  %v7358_v41 = vld [vmem:[%s12714_s3 + $0x88] sm:$0xf0] }
 0x332   : > { %3883 = vmatpush.bf16.msra.mxu2 %v3847_v8  ;;  %v3855_v8 = vpop.permute.xlu2 %3854 }
 0x334   : > { %v3859_v31 = vpop.permute.xlu0 %3858 }
 0x335   : > { %2319 = vmatmul.bf16.gmra.mxu3 %v7193_v42  ;;  %v3398_v25 = vpop.permute.xlu1 %3397  ;;  %v7361_v42 = vor.u32 %v8768_v1, %v7358_v41  ;;  %v8775_v41 = vld [vmem:[%s12714_s3 + $0xb4] sm:$0xf0] }
 0x336   : > { %3431 = vmatpush.bf16.msra.mxu0 %v3398_v25  ;;  %v7222_v25 = vld [vmem:[%s12714_s3 + $0x178] sm:$0xf0] }
 0x337   : > { %2594 = vmatmul.bf16.gmra.mxu0 %v7333_v12 }
 0x33a   : > { %3432 = vmatpush.bf16.msra.mxu0 %v10005_v21  ;;  %v8762_v21 = vld [vmem:[%s12714_s3 + $0x54] sm:$0xf]  ;;  %v3837_v54 = vpop.permute.xlu2 %3836 }
 0x33b   : > { %v7337_v60 = vor.u32 %v8762_v21, %v7334_v34  ;;  %v7228_v34 = vld [vmem:[%s12714_s3 + $0x180] sm:$0xf] }
 0x33c   : > { %v3841_v61 = vpop.permute.xlu0 %3840 }
 0x33d   : > { %v3863_v30 = vpop.permute.xlu1 %3862  ;;  %2683 = vmatmul.bf16.gmra.mxu1 %v7337_v60  ;;  %v7364_v60 = vld [vmem:[%s12714_s3 + $0x90] sm:$0xf] }
 0x33e   : > { %3433 = vmatpush.bf16.msra.mxu0 %v3394_v35  ;;  %v8769_v35 = vld [vmem:[%s12714_s3 + $0x84] sm:$0xf0] }
 0x33f   : > { %v7357_v53 = vor.u32 %v8769_v35, %v7356_v2  ;;  %v8805_v2 = vld [vmem:[%s12714_s3 + $0x1a4] sm:$0xf0] }
 0x341   : > { %2235 = vmatmul.bf16.gmra.mxu2 %v7197_v62 }
 0x342   : > { %v3402_v45 = vpop.permute.xlu2 %3401 }
 0x344   : > { %v3406_v19 = vpop.permute.xlu0 %3405 }
 0x345   : > { %2324 = vmatmul.bf16.gmra.mxu3 %v7201_v39  ;;  %v3845_v40 = vpop.permute.xlu1 %3844  ;;  %v2664_v39 = vpop.f32.mrf.mxu1 }
 0x346   : > { %3884 = vmatpush.bf16.msra.mxu2 %v3845_v40  ;;  %v7366_v40 = vld [vmem:[%s12714_s3 + $0x98] sm:$0xf0] }
 0x347   : > { %2599 = vmatmul.bf16.gmra.mxu0 %v7341_v9  ;;  %v7369_v50 = vor.u32 %v8770_v38, %v7366_v40  ;;  %v7230_v9 = vld [vmem:[%s12714_s3 + $0x188] sm:$0xf0]  ;;  %v7252_v40 = vld [vmem:[%s12714_s3 + $0x1b0] sm:$0xf] }
 0x34a   : > { %3885 = vmatpush.bf16.msra.mxu2 %v10037_v18  ;;  %v7342_v18 = vld [vmem:[%s12714_s3 + $0x68] sm:$0xf0]  ;;  %v3384_v12 = vpop.permute.xlu2 %3383 }
 0x34b   : > { %v7345_v10 = vor.u32 %v8764_v48, %v7342_v18  ;;  %v7233_v48 = vor.u32 %v8800_v6, %v7230_v9  ;;  %v7388_v6 = vld [vmem:[%s12714_s3 + $0xc0] sm:$0xf]  ;;  %v8777_v9 = vld [vmem:[%s12714_s3 + $0xc4] sm:$0xf0] }
 0x34c   : > { %v3865_v13 = vpop.permute.xlu0 %3864 }
 0x34d   : > { %v3410_v20 = vpop.permute.xlu1 %3409  ;;  %3971 = vmatpush.bf16.msra.mxu3 %v3865_v13  ;;  %2688 = vmatmul.bf16.gmra.mxu1 %v7345_v10  ;;  %v2666_v10 = vpop.f32.mrf.mxu1 }
 0x34e   : > { %3522 = vmatpush.bf16.msrb.mxu1 %v3410_v20  ;;  %3886 = vmatpush.bf16.msra.mxu2 %v3841_v61 }
 0x351   : > { %2240 = vmatmul.bf16.gmra.mxu2 %v7205_v49  ;;  %3972 = vmatpush.bf16.msra.mxu3 %v3863_v30  ;;  %v8801_v30 = vld [vmem:[%s12714_s3 + $0x184] sm:$0xf0] }
 0x352   : > { %3523 = vmatpush.bf16.msrb.mxu1 %v10046_v58  ;;  %v7348_v58 = vld [vmem:[%s12714_s3 + $0x70] sm:$0xf]  ;;  %v7229_v47 = vor.u32 %v8801_v30, %v7228_v34 }
 0x354   : > { %v3388_v32 = vpop.permute.xlu0 %3387 }
 0x355   : > { %2329 = vmatmul.bf16.gmra.mxu3 %v7209_v22  ;;  %v3392_v24 = vpop.permute.xlu1 %3391 }
 0x356   : > { %3434 = vmatpush.bf16.msra.mxu0 %v3392_v24  ;;  %3524 = vmatpush.bf16.msrb.mxu1 %v3406_v19  ;;  %v7365_v19 = vor.u32 %v8771_v52, %v7364_v60 }
 0x357   : > { %3973 = vmatpush.bf16.msra.mxu3 %v10015_v29  ;;  %v7349_v29 = vor.u32 %v8767_v33, %v7348_v58  ;;  %v10244_v33 = vpop.f32.mrf.mxu1 }
 0x359   : > { %2604 = vmatmul.bf16.gmra.mxu0 %v7349_v29  ;;  %v7374_v29 = vld [vmem:[%s12714_s3 + $0xa8] sm:$0xf0] }
 0x35a   : > { %3435 = vmatpush.bf16.msra.mxu0 %v10067_v17  ;;  %v7350_v17 = vld [vmem:[%s12714_s3 + $0x78] sm:$0xf0] }
 0x35b   : > { %3974 = vmatpush.bf16.msra.mxu3 %v3859_v31  ;;  %v7353_v26 = vor.u32 %v8766_v14, %v7350_v17  ;;  %v2570_v57 = vpop.f32.mrf.mxu0  ;;  %v8798_v31 = vld [vmem:[%s12714_s3 + $0x174] sm:$0xf]  ;;  %v7237_v17 = vor.u32 %v8803_v16, %v7236_v27 }
 0x35c   : > { %v3853_v7 = vpop.permute.xlu0 %3852  ;;  %v7225_v63 = vor.u32 %v8798_v31, %v7222_v25  ;;  %v7382_v25 = vld [vmem:[%s12714_s3 + $0xb8] sm:$0xf0] }
 0x35d   : > { %v3857_v43 = vpop.permute.xlu1 %3856  ;;  %2693 = vmatmul.bf16.gmra.mxu1 %v7353_v26  ;;  %v7377_v26 = vor.u32 %v8772_v37, %v7374_v29 }
 0x35e   : > { %3436 = vmatpush.bf16.msra.mxu0 %v3388_v32  ;;  %v7372_v32 = vld [vmem:[%s12714_s3 + $0xa0] sm:$0xf] }
 0x35f   : > { %3975 = vmatpush.bf16.msra.mxu3 %v3857_v43  ;;  %v8802_v43 = vld [vmem:[%s12714_s3 + $0x194] sm:$0xf]  ;;  %v2671_v23 = vpop.f32.mrf.mxu1 }
 0x361   : > { %2245 = vmatmul.bf16.gmra.mxu2 %v7213_v28  ;;  %v7238_v28 = vld [vmem:[%s12714_s3 + $0x198] sm:$0xf0] }
 0x363   : > { %3976 = vmatpush.bf16.msra.mxu3 %v3855_v8  ;;  %v2572_v55 = vpop.f32.mrf.mxu0  ;;  %v7373_v8 = vor.u32 %v8773_v44, %v7372_v32 }
 0x364   : > { %v3835_v59 = vpop.permute.xlu0 %3834 }
 0x365   : > { %2334 = vmatmul.bf16.gmra.mxu3 %v7217_v5  ;;  %v3839_v36 = vpop.permute.xlu1 %3838 }
 0x366   : > { %3887 = vmatpush.bf16.msra.mxu2 %v3839_v36 }
 0x367   : > { %3977 = vmatpush.bf16.msra.mxu3 %v3853_v7  ;;  %v7241_v7 = vor.u32 %v8802_v43, %v7238_v28  ;;  %v7260_v28 = vld [vmem:[%s12714_s3 + $0x1c0] sm:$0xf] }
 0x369   : > { %2609 = vmatmul.bf16.gmra.mxu0 %v7357_v53  ;;  %v7380_v53 = vld [vmem:[%s12714_s3 + $0xb0] sm:$0xf] }
 0x36a   : > { %3888 = vmatpush.bf16.msra.mxu2 %v3837_v54  ;;  %v7381_v31 = vor.u32 %v8775_v41, %v7380_v53  ;;  %v8808_v53 = vld [vmem:[%s12714_s3 + $0x1c4] sm:$0xf]  ;;  %v7262_v41 = vld [vmem:[%s12714_s3 + $0x1c8] sm:$0xf0] }
 0x36d   : > { %v3404_v11 = vpop.permute.xlu1 %3403  ;;  %2698 = vmatmul.bf16.gmra.mxu1 %v7361_v42  ;;  %v3400_v21 = vpop.permute.xlu0 %3399 }
 0x36e   : > { %3525 = vmatpush.bf16.msrb.mxu1 %v3404_v11  ;;  %3889 = vmatpush.bf16.msra.mxu2 %v3835_v59  ;;  %v8774_v11 = vld [vmem:[%s12714_s3 + $0xb4] sm:$0xf] }
 0x371   : > { %2250 = vmatmul.bf16.gmra.mxu2 %v7221_v51 }
 0x372   : > { %3526 = vmatpush.bf16.msrb.mxu1 %v3402_v45 }
 0x374   : > { %v2575_v62 = vpop.f32.mrf.mxu0 }
 0x375   : > { %2339 = vmatmul.bf16.gmra.mxu3 %v7225_v63  ;;  %v3386_v61 = vpop.permute.xlu1 %3385 }
 0x376   : > { %3437 = vmatpush.bf16.msra.mxu0 %v3386_v61  ;;  %3527 = vmatpush.bf16.msrb.mxu1 %v3400_v21  ;;  %v7246_v21 = vld [vmem:[%s12714_s3 + $0x1a8] sm:$0xf0] }
 0x379   : > { %2614 = vmatmul.bf16.gmra.mxu0 %v7365_v19 }
 0x37a   : > { %3438 = vmatpush.bf16.msra.mxu0 %v3384_v12  ;;  %v2674_v42 = vpop.f32.mrf.mxu1 }
 0x37c   : > { %v2577_v18 = vpop.f32.mrf.mxu0 }
 0x37d   : > { %v3851_v56 = vpop.permute.xlu1 %3850  ;;  %2703 = vmatmul.bf16.gmra.mxu1 %v7369_v50 }
 0x37e   : > { %3978 = vmatpush.bf16.msra.mxu3 %v3851_v56  ;;  %v8807_v56 = vld [vmem:[%s12714_s3 + $0x1b4] sm:$0xf0] }
 0x37f   : > { %v7253_v27 = vor.u32 %v8807_v56, %v7252_v40  ;;  %v7406_v56 = vld [vmem:[%s12714_s3 + $0xe8] sm:$0xf0] }
 0x381   : > { %2255 = vmatmul.bf16.gmra.mxu2 %v7229_v47 }
 0x382   : > { %v2676_v52 = vpop.f32.mrf.mxu1 }
 0x384   : > { %v2216_v13 = vpop.f32.mrf.mxu2  ;;  %v2580_v22 = vpop.f32.mrf.mxu0 }
 0x385   : > { %2344 = vmatmul.bf16.gmra.mxu3 %v7233_v48  ;;  %v8776_v48 = vld [vmem:[%s12714_s3 + $0xc4] sm:$0xf] }
 0x388   : > { %v2305_v20 = vpop.f32.mrf.mxu3 }
 0x389   : > { %v2306_v49 = vadd.f32 %v2305_v20, %v2216_v13  ;;  %2619 = vmatmul.bf16.gmra.mxu0 %v7373_v8  ;;  %v7390_v20 = vld [vmem:[%s12714_s3 + $0xc8] sm:$0xf0] }
 0x38a   : > { %v7393_v16 = vor.u32 %v8776_v48, %v7390_v20  ;;  %v8810_v48 = vld [vmem:[%s12714_s3 + $0x1d4] sm:$0xf] }
 0x38b   : > { %v2571_v24 = vadd.f32 %v2570_v57, %v2306_v49 }
 0x38c   : > { %v2218_v58 = vpop.f32.mrf.mxu2  ;;  %v2582_v5 = vpop.f32.mrf.mxu0 }
 0x38d   : > { %v10250_v14 = vadd.f32 %v10185_v46, %v2571_v24  ;;  %2708 = vmatmul.bf16.gmra.mxu1 %v7377_v26  ;;  %v7244_v46 = vld [vmem:[%s12714_s3 + $0x1a0] sm:$0xf]  ;;  %v7254_v24 = vld [vmem:[%s12714_s3 + $0x1b8] sm:$0xf0] }
 0x38e   : > { %v7245_v63 = vor.u32 %v8805_v2, %v7244_v46 }
 0x390   : > { %v2307_v15 = vpop.f32.mrf.mxu3 }
 0x391   : > { %v2308_v3 = vadd.f32 %v2307_v15, %v2218_v58  ;;  %2260 = vmatmul.bf16.gmra.mxu2 %v7237_v17  ;;  %v8809_v15 = vld [vmem:[%s12714_s3 + $0x1c4] sm:$0xf0] }
 0x392   : > { %v7261_v2 = vor.u32 %v8809_v15, %v7260_v28 }
 0x393   : > { %v2573_v54 = vadd.f32 %v2572_v55, %v2308_v3  ;;  %v7385_v55 = vor.u32 %v8774_v11, %v7382_v25 }
 0x394   : > { %v2221_v36 = vpop.f32.mrf.mxu2  ;;  %v2585_v35 = vpop.f32.mrf.mxu0 }
 0x395   : > { %v10258_v4 = vadd.f32 %v2661_v0, %v2573_v54  ;;  %2349 = vmatmul.bf16.gmra.mxu3 %v7241_v7  ;;  %v8804_v0 = vld [vmem:[%s12714_s3 + $0x1a4] sm:$0xf]  ;;  %v7396_v7 = vld [vmem:[%s12714_s3 + $0xd0] sm:$0xf]  ;;  %v8778_v54 = vld [vmem:[%s12714_s3 + $0xd4] sm:$0xf] }
 0x396   : > { %v7249_v34 = vor.u32 %v8804_v0, %v7246_v21 }
 0x398   : > { %v2310_v57 = vpop.f32.mrf.mxu3 }
 0x399   : > { %v2311_v59 = vadd.f32 %v2310_v57, %v2221_v36  ;;  %2624 = vmatmul.bf16.gmra.mxu0 %v7381_v31  ;;  %v7265_v31 = vor.u32 %v8808_v53, %v7262_v41 }
 0x39b   : > { %v2576_v1 = vadd.f32 %v2575_v62, %v2311_v59  ;;  %v7398_v59 = vld [vmem:[%s12714_s3 + $0xd8] sm:$0xf0] }
 0x39c   : > { %v2223_v51 = vpop.f32.mrf.mxu2  ;;  %v2587_v30 = vpop.f32.mrf.mxu0 }
 0x39d   : > { %v10278_v45 = vadd.f32 %v2664_v39, %v2576_v1  ;;  %2713 = vmatmul.bf16.gmra.mxu1 %v7385_v55  ;;  %v7401_v1 = vor.u32 %v8778_v54, %v7398_v59  ;;  %v7278_v59 = vld [vmem:[%s12714_s3 + $0x1e8] sm:$0xf0] }
 0x3a0   : > { %v2312_v61 = vpop.f32.mrf.mxu3 }
 0x3a1   : > { %v2313_v12 = vadd.f32 %v2312_v61, %v2223_v51  ;;  %2265 = vmatmul.bf16.gmra.mxu2 %v7245_v63 }
 0x3a3   : > { %v2578_v62 = vadd.f32 %v2577_v18, %v2313_v12  ;;  %v7268_v12 = vld [vmem:[%s12714_s3 + $0x1d0] sm:$0xf] }
 0x3a4   : > { %v2226_v60 = vpop.f32.mrf.mxu2  ;;  %v2590_v47 = vpop.f32.mrf.mxu0 }
 0x3a5   : > { %v10286_v38 = vadd.f32 %v2666_v10, %v2578_v62  ;;  %2354 = vmatmul.bf16.gmra.mxu3 %v7249_v34  ;;  %v7389_v10 = vor.u32 %v8777_v9, %v7388_v6  ;;  %v8811_v34 = vld [vmem:[%s12714_s3 + $0x1d4] sm:$0xf0] }
 0x3a7   : > { %v2679_v13 = vpop.f32.mrf.mxu1 }
 0x3a8   : > { %v2315_v39 = vpop.f32.mrf.mxu3 }
 0x3a9   : > { %v2316_v19 = vadd.f32 %v2315_v39, %v2226_v60  ;;  %2629 = vmatmul.bf16.gmra.mxu0 %v7389_v10  ;;  %v8781_v60 = vld [vmem:[%s12714_s3 + $0xe4] sm:$0xf0] }
 0x3ab   : > { %v2581_v50 = vadd.f32 %v2580_v22, %v2316_v19  ;;  %v8806_v22 = vld [vmem:[%s12714_s3 + $0x1b4] sm:$0xf] }
 0x3ac   : > { %v2228_v18 = vpop.f32.mrf.mxu2  ;;  %v7257_v37 = vor.u32 %v8806_v22, %v7254_v24  ;;  %v2592_v58 = vpop.f32.mrf.mxu0 }
 0x3ad   : > { %v10307_v49 = vadd.f32 %v10244_v33, %v2581_v50  ;;  %2718 = vmatmul.bf16.gmra.mxu1 %v7393_v16  ;;  %v7269_v50 = vor.u32 %v8811_v34, %v7268_v12  ;;  %v8848_v34 = vld [vmem:[%s12714_s3 + $0x304] sm:$0xf] }
 0x3af   : > { %v2681_v29 = vpop.f32.mrf.mxu1 }
 0x3b0   : > { %v2317_v32 = vpop.f32.mrf.mxu3 }
 0x3b1   : > { %v2318_v44 = vadd.f32 %v2317_v32, %v2228_v18  ;;  %2270 = vmatmul.bf16.gmra.mxu2 %v7253_v27  ;;  %v7270_v18 = vld [vmem:[%s12714_s3 + $0x1d8] sm:$0xf0] }
 0x3b2   : > { %v7273_v27 = vor.u32 %v8810_v48, %v7270_v18 }
 0x3b3   : > { %v2583_v8 = vadd.f32 %v2582_v5, %v2318_v44  ;;  %v8779_v5 = vld [vmem:[%s12714_s3 + $0xd4] sm:$0xf0] }
 0x3b4   : > { %v2231_v33 = vpop.f32.mrf.mxu2  ;;  %v7397_v57 = vor.u32 %v8779_v5, %v7396_v7  ;;  %v7414_v7 = vld [vmem:[%s12714_s3 + $0xf8] sm:$0xf0] }
 0x3b5   : > { %v10315_v17 = vadd.f32 %v2671_v23, %v2583_v8  ;;  %2359 = vmatmul.bf16.gmra.mxu3 %v7257_v37  ;;  %v2595_v23 = vpop.f32.mrf.mxu0  ;;  %v7276_v8 = vld [vmem:[%s12714_s3 + $0x1e0] sm:$0xf] }
 0x3b8   : > { %v2320_v26 = vpop.f32.mrf.mxu3 }
 0x3b9   : > { %v2321_v43 = vadd.f32 %v2320_v26, %v2231_v33  ;;  %2634 = vmatmul.bf16.gmra.mxu0 %v7397_v57  ;;  %v8813_v33 = vld [vmem:[%s12714_s3 + $0x1e4] sm:$0xf0]  ;;  %v8812_v57 = vld [vmem:[%s12714_s3 + $0x1e4] sm:$0xf] }
 0x3ba   : > { %v7277_v54 = vor.u32 %v8813_v33, %v7276_v8  ;;  %v7281_v53 = vor.u32 %v8812_v57, %v7278_v59  ;;  %v7452_v8 = vld [vmem:[%s12714_s3 + $0x200] sm:$0xf]  ;;  %v8817_v33 = vld [vmem:[%s12714_s3 + $0x204] sm:$0xf0]  ;;  %v8816_v57 = vld [vmem:[%s12714_s3 + $0x204] sm:$0xf] }
 0x3bb   : > { %v2586_v3 = vadd.f32 %v2585_v35, %v2321_v43  ;;  %v2684_v35 = vpop.f32.mrf.mxu1  ;;  %v8782_v43 = vld [vmem:[%s12714_s3 + $0xf4] sm:$0xf]  ;;  %v7454_v59 = vld [vmem:[%s12714_s3 + $0x208] sm:$0xf0] }
 0x3bc   : > { %v2233_v36 = vpop.f32.mrf.mxu2 }
 0x3bd   : > { %v10335_v46 = vadd.f32 %v2674_v42, %v2586_v3  ;;  %2723 = vmatmul.bf16.gmra.mxu1 %v7401_v1  ;;  %v2597_v63 = vpop.f32.mrf.mxu0 }
 0x3c0   : > { %v2322_v11 = vpop.f32.mrf.mxu3 }
 0x3c1   : > { %v2323_v51 = vadd.f32 %v2322_v11, %v2233_v36  ;;  %2275 = vmatmul.bf16.gmra.mxu2 %v7261_v2 }
 0x3c3   : > { %v2588_v25 = vadd.f32 %v2587_v30, %v2323_v51  ;;  %v2686_v0 = vpop.f32.mrf.mxu1  ;;  %v7404_v30 = vld [vmem:[%s12714_s3 + $0xe0] sm:$0xf] }
 0x3c4   : > { %v2236_v42 = vpop.f32.mrf.mxu2  ;;  %v7405_v40 = vor.u32 %v8781_v60, %v7404_v30 }
 0x3c5   : > { %v10343_v55 = vadd.f32 %v2676_v52, %v2588_v25  ;;  %2364 = vmatmul.bf16.gmra.mxu3 %v7265_v31  ;;  %v8780_v52 = vld [vmem:[%s12714_s3 + $0xe4] sm:$0xf]  ;;  %v2600_v19 = vpop.f32.mrf.mxu0 }
 0x3c6   : > { %v7409_v9 = vor.u32 %v8780_v52, %v7406_v56  ;;  %v7614_v52 = vld [vmem:[%s12714_s3 + $0x308] sm:$0xf0] }
 0x3c7   : > { %v7617_v56 = vor.u32 %v8848_v34, %v7614_v52  ;;  %v8852_v34 = vld [vmem:[%s12714_s3 + $0x324] sm:$0xf] }
 0x3c8   : > { %v2325_v21 = vpop.f32.mrf.mxu3 }
 0x3c9   : > { %v2326_v61 = vadd.f32 %v2325_v21, %v2236_v42  ;;  %2639 = vmatmul.bf16.gmra.mxu0 %v7405_v40  ;;  %v7284_v21 = vld [vmem:[%s12714_s3 + $0x1f0] sm:$0xf] }
 0x3cb   : > { %v2591_v62 = vadd.f32 %v2590_v47, %v2326_v61  ;;  %v2689_v6 = vpop.f32.mrf.mxu1  ;;  %v8815_v61 = vld [vmem:[%s12714_s3 + $0x1f4] sm:$0xf0] }
 0x3cc   : > { %v2238_v39 = vpop.f32.mrf.mxu2 }
 0x3cd   : > { %v10363_v47 = vadd.f32 %v2679_v13, %v2591_v62  ;;  %2728 = vmatmul.bf16.gmra.mxu1 %v7409_v9  ;;  %v2602_v22 = vpop.f32.mrf.mxu0  ;;  %v7286_v9 = vld [vmem:[%s12714_s3 + $0x1f8] sm:$0xf0] }
 0x3d0   : > { %v2327_v10 = vpop.f32.mrf.mxu3 }
 0x3d1   : > { %v2328_v20 = vadd.f32 %v2327_v10, %v2238_v39  ;;  %2280 = vmatmul.bf16.gmra.mxu2 %v7269_v50  ;;  %v8814_v50 = vld [vmem:[%s12714_s3 + $0x1f4] sm:$0xf] }
 0x3d2   : > { %v7289_v10 = vor.u32 %v8814_v50, %v7286_v9 }
 0x3d3   : > { %v2593_v16 = vadd.f32 %v2592_v58, %v2328_v20  ;;  %v2691_v32 = vpop.f32.mrf.mxu1  ;;  %v7412_v58 = vld [vmem:[%s12714_s3 + $0xf0] sm:$0xf] }
 0x3d4   : > { %v2241_v13 = vpop.f32.mrf.mxu2 }
 0x3d5   : > { %v10371_v24 = vadd.f32 %v2681_v29, %v2593_v16  ;;  %2369 = vmatmul.bf16.gmra.mxu3 %v7273_v27  ;;  %v8783_v29 = vld [vmem:[%s12714_s3 + $0xf4] sm:$0xf0] }
 0x3d6   : > { %v2605_v15 = vpop.f32.mrf.mxu0  ;;  %v7413_v3 = vor.u32 %v8783_v29, %v7412_v58  ;;  %v8850_v58 = vld [vmem:[%s12714_s3 + $0x314] sm:$0xf] }
 0x3d8   : > { %v2330_v44 = vpop.f32.mrf.mxu3 }
 0x3d9   : > { %v2331_v37 = vadd.f32 %v2330_v44, %v2241_v13  ;;  %2644 = vmatmul.bf16.gmra.mxu0 %v7413_v3  ;;  %v7622_v3 = vld [vmem:[%s12714_s3 + $0x318] sm:$0xf0] }
 0x3db   : > { %v2596_v26 = vadd.f32 %v2595_v23, %v2331_v37  ;;  %v2694_v36 = vpop.f32.mrf.mxu1  ;;  %v7417_v23 = vor.u32 %v8782_v43, %v7414_v7  ;;  %v7453_v7 = vor.u32 %v8817_v33, %v7452_v8 }
 0x3dc   : > { %v2243_v28 = vpop.f32.mrf.mxu2 }
 0x3dd   : > { %v10391_v5 = vadd.f32 %v2684_v35, %v2596_v26  ;;  %2733 = vmatmul.bf16.gmra.mxu1 %v7417_v23  ;;  %v7625_v23 = vor.u32 %v8850_v58, %v7622_v3  ;;  %v8821_v58 = vld [vmem:[%s12714_s3 + $0x224] sm:$0xf0] }
 0x3de   : > { %v2607_v11 = vpop.f32.mrf.mxu0 }
 0x3e0   : > { %v2332_v2 = vpop.f32.mrf.mxu3 }
 0x3e1   : > { %v2333_v1 = vadd.f32 %v2332_v2, %v2243_v28  ;;  %2285 = vmatmul.bf16.gmra.mxu2 %v7277_v54 }
 0x3e3   : > { %v2598_v41 = vadd.f32 %v2597_v63, %v2333_v1  ;;  %v2696_v31 = vpop.f32.mrf.mxu1  ;;  %v7612_v63 = vld [vmem:[%s12714_s3 + $0x300] sm:$0xf] }
 0x3e4   : > { %v2246_v35 = vpop.f32.mrf.mxu2 }
 0x3e5   : > { %v10399_v51 = vadd.f32 %v2686_v0, %v2598_v41  ;;  %2374 = vmatmul.bf16.gmra.mxu3 %v7281_v53  ;;  %v8849_v0 = vld [vmem:[%s12714_s3 + $0x304] sm:$0xf0]  ;;  %v7457_v53 = vor.u32 %v8816_v57, %v7454_v59  ;;  %v7638_v57 = vld [vmem:[%s12714_s3 + $0x338] sm:$0xf0] }
 0x3e6   : > { %v2610_v30 = vpop.f32.mrf.mxu0  ;;  %v7613_v60 = vor.u32 %v8849_v0, %v7612_v63  ;;  %v8819_v63 = vld [vmem:[%s12714_s3 + $0x214] sm:$0xf0] }
 0x3e8   : > { %v2335_v25 = vpop.f32.mrf.mxu3 }
 0x3e9   : > { %v2336_v42 = vadd.f32 %v2335_v25, %v2246_v35  ;;  %3439 = vmatmul.bf16.vlgmr.msra.gmra.mxu0 %v7613_v60 }
 0x3eb   : > { %v2601_v12 = vadd.f32 %v2600_v19, %v2336_v42  ;;  %v7285_v19 = vor.u32 %v8815_v61, %v7284_v21  ;;  %v2699_v40 = vpop.f32.mrf.mxu1 }
 0x3ec   : > { %v2248_v62 = vpop.f32.mrf.mxu2 }
 0x3ed   : > { %v10419_v39 = vadd.f32 %v2689_v6, %v2601_v12  ;;  %3528 = vmatmul.bf16.vlgmr.msrb.gmra.mxu1 %v7617_v56  ;;  %v7460_v12 = vld [vmem:[%s12714_s3 + $0x210] sm:$0xf] }
 0x3ee   : > { %v2612_v27 = vpop.f32.mrf.mxu0  ;;  %v7461_v56 = vor.u32 %v8819_v63, %v7460_v12 }
 0x3f0   : > { %v2337_v48 = vpop.f32.mrf.mxu3 }
 0x3f1   : > { %v2338_v18 = vadd.f32 %v2337_v48, %v2248_v62  ;;  %2290 = vmatmul.bf16.gmra.mxu2 %v7285_v19  ;;  %v7630_v19 = vld [vmem:[%s12714_s3 + $0x328] sm:$0xf0]  ;;  %v8818_v48 = vld [vmem:[%s12714_s3 + $0x214] sm:$0xf] }
 0x3f2   : > { %v7633_v9 = vor.u32 %v8852_v34, %v7630_v19 }
 0x3f3   : > { %v2603_v20 = vadd.f32 %v2602_v22, %v2338_v18  ;;  %v2701_v13 = vpop.f32.mrf.mxu1  ;;  %v7620_v22 = vld [vmem:[%s12714_s3 + $0x310] sm:$0xf]  ;;  %v7462_v18 = vld [vmem:[%s12714_s3 + $0x218] sm:$0xf0] }
 0x3f4   : > { %v2251_v6 = vpop.f32.mrf.mxu2 }
 0x3f5   : > { %v10427_v16 = vadd.f32 %v2691_v32, %v2603_v20  ;;  %2379 = vmatmul.bf16.gmra.mxu3 %v7289_v10  ;;  %v8851_v32 = vld [vmem:[%s12714_s3 + $0x314] sm:$0xf0] }
 0x3f6   : > { %v2615_v43 = vpop.f32.mrf.mxu0  ;;  %v7621_v28 = vor.u32 %v8851_v32, %v7620_v22  ;;  %v7468_v32 = vld [vmem:[%s12714_s3 + $0x220] sm:$0xf] }
 0x3f7   : > { %v7469_v59 = vor.u32 %v8821_v58, %v7468_v32 }
 0x3f8   : > { %v2340_v44 = vpop.f32.mrf.mxu3 }
 0x3f9   : > { %v2341_v37 = vadd.f32 %v2340_v44, %v2251_v6  ;;  %3444 = vmatmul.bf16.gmra.mxu0 %v7621_v28  ;;  %v7465_v6 = vor.u32 %v8818_v48, %v7462_v18  ;;  %v8854_v28 = vld [vmem:[%s12714_s3 + $0x334] sm:$0xf] }
 0x3fb   : > { %v2606_v26 = vadd.f32 %v2605_v15, %v2341_v37  ;;  %v2704_v54 = vpop.f32.mrf.mxu1 }
 0x3fc   : > { %v2253_v29 = vpop.f32.mrf.mxu2 }
 0x3fd   : > { %v10447_v15 = vadd.f32 %v2694_v36, %v2606_v26  ;;  %3533 = vmatmul.bf16.gmra.mxu1 %v7625_v23 }
 0x3fe   : > { %v2617_v35 = vpop.f32.mrf.mxu0 }
 0x400   : > { %v2342_v2 = vpop.f32.mrf.mxu3 }
 0x401   : > { %v2343_v1 = vadd.f32 %v2342_v2, %v2253_v29  ;;  %2988 = vmatmul.bf16.vlgmr.msrb.gmra.mxu2 %v7453_v7 }
 0x403   : > { %v2608_v41 = vadd.f32 %v2607_v11, %v2343_v1  ;;  %v2706_v42 = vpop.f32.mrf.mxu1  ;;  %v7628_v11 = vld [vmem:[%s12714_s3 + $0x320] sm:$0xf]  ;;  %v7641_v1 = vor.u32 %v8854_v28, %v7638_v57 }
 0x404   : > { %v2256_v36 = vpop.f32.mrf.mxu2  ;;  %v7484_v57 = vld [vmem:[%s12714_s3 + $0x240] sm:$0xf] }
 0x405   : > { %v10455_v25 = vadd.f32 %v2696_v31, %v2608_v41  ;;  %3077 = vmatmul.bf16.vlgmr.msrb.gmra.mxu3 %v7457_v53  ;;  %v8853_v31 = vld [vmem:[%s12714_s3 + $0x324] sm:$0xf0]  ;;  %v8820_v53 = vld [vmem:[%s12714_s3 + $0x224] sm:$0xf]  ;;  %v7470_v41 = vld [vmem:[%s12714_s3 + $0x228] sm:$0xf0] }
 0x406   : > { %v2620_v60 = vpop.f32.mrf.mxu0  ;;  %v7629_v52 = vor.u32 %v8853_v31, %v7628_v11 }
 0x408   : > { %v2345_v21 = vpop.f32.mrf.mxu3 }
 0x409   : > { %v2346_v61 = vadd.f32 %v2345_v21, %v2256_v36  ;;  %3449 = vmatmul.bf16.gmra.mxu0 %v7629_v52  ;;  %v8823_v52 = vld [vmem:[%s12714_s3 + $0x234] sm:$0xf0] }
 0x40b   : > { %v2611_v0 = vadd.f32 %v2610_v30, %v2346_v61  ;;  %v2709_v50 = vpop.f32.mrf.mxu1  ;;  %v7473_v61 = vor.u32 %v8820_v53, %v7470_v41  ;;  %v8858_v53 = vld [vmem:[%s12714_s3 + $0x354] sm:$0xf] }
 0x40c   : > { %v2258_v62 = vpop.f32.mrf.mxu2 }
 0x40d   : > { %v10475_v30 = vadd.f32 %v2699_v40, %v2611_v0  ;;  %3538 = vmatmul.bf16.gmra.mxu1 %v7633_v9 }
 0x40e   : > { %v2622_v37 = vpop.f32.mrf.mxu0 }
 0x410   : > { %v2347_v10 = vpop.f32.mrf.mxu3 }
 0x411   : > { %v2348_v20 = vadd.f32 %v2347_v10, %v2258_v62  ;;  %2993 = vmatmul.bf16.gmra.mxu2 %v7461_v56  ;;  %v7476_v62 = vld [vmem:[%s12714_s3 + $0x230] sm:$0xf]  ;;  %v8856_v56 = vld [vmem:[%s12714_s3 + $0x344] sm:$0xf]  ;;  %v7646_v10 = vld [vmem:[%s12714_s3 + $0x348] sm:$0xf0] }
 0x413   : > { %v2613_v44 = vadd.f32 %v2612_v27, %v2348_v20  ;;  %v2711_v33 = vpop.f32.mrf.mxu1  ;;  %v7636_v27 = vld [vmem:[%s12714_s3 + $0x330] sm:$0xf]  ;;  %v7477_v20 = vor.u32 %v8823_v52, %v7476_v62  ;;  %v7486_v62 = vld [vmem:[%s12714_s3 + $0x248] sm:$0xf0] }
 0x414   : > { %v2261_v40 = vpop.f32.mrf.mxu2 }
 0x415   : > { %v10483_v8 = vadd.f32 %v2701_v13, %v2613_v44  ;;  %3082 = vmatmul.bf16.gmra.mxu3 %v7465_v6  ;;  %v8855_v13 = vld [vmem:[%s12714_s3 + $0x334] sm:$0xf0]  ;;  %v7649_v44 = vor.u32 %v8856_v56, %v7646_v10 }
 0x416   : > { %v2625_v7 = vpop.f32.mrf.mxu0  ;;  %v7637_v23 = vor.u32 %v8855_v13, %v7636_v27 }
 0x418   : > { %v2350_v26 = vpop.f32.mrf.mxu3 }
 0x419   : > { %v2351_v22 = vadd.f32 %v2350_v26, %v2261_v40  ;;  %3454 = vmatmul.bf16.gmra.mxu0 %v7637_v23  ;;  %v8822_v40 = vld [vmem:[%s12714_s3 + $0x234] sm:$0xf]  ;;  %v7478_v26 = vld [vmem:[%s12714_s3 + $0x238] sm:$0xf0] }
 0x41a   : > { %v7481_v58 = vor.u32 %v8822_v40, %v7478_v26  ;;  %v8827_v40 = vld [vmem:[%s12714_s3 + $0x254] sm:$0xf0] }
 0x41b   : > { %v2616_v29 = vadd.f32 %v2615_v43, %v2351_v22  ;;  %v2714_v2 = vpop.f32.mrf.mxu1 }
 0x41c   : > { %v2263_v3 = vpop.f32.mrf.mxu2 }
 0x41d   : > { %v10503_v43 = vadd.f32 %v2704_v54, %v2616_v29  ;;  %3543 = vmatmul.bf16.gmra.mxu1 %v7641_v1 }
 0x41e   : > { %v2627_v63 = vpop.f32.mrf.mxu0 }
 0x420   : > { %v2352_v36 = vpop.f32.mrf.mxu3 }
 0x421   : > { %v2353_v21 = vadd.f32 %v2352_v36, %v2263_v3  ;;  %2998 = vmatmul.bf16.gmra.mxu2 %v7469_v59  ;;  %v8825_v59 = vld [vmem:[%s12714_s3 + $0x244] sm:$0xf0] }
 0x423   : > { %v2618_v12 = vadd.f32 %v2617_v35, %v2353_v21  ;;  %v2716_v11 = vpop.f32.mrf.mxu1  ;;  %v7644_v35 = vld [vmem:[%s12714_s3 + $0x340] sm:$0xf] }
 0x424   : > { %v2266_v54 = vpop.f32.mrf.mxu2 }
 0x425   : > { %v10511_v0 = vadd.f32 %v2706_v42, %v2618_v12  ;;  %3087 = vmatmul.bf16.gmra.mxu3 %v7473_v61  ;;  %v8857_v42 = vld [vmem:[%s12714_s3 + $0x344] sm:$0xf0]  ;;  %v7654_v61 = vld [vmem:[%s12714_s3 + $0x358] sm:$0xf0]  ;;  %v7485_v12 = vor.u32 %v8825_v59, %v7484_v57  ;;  %v8826_v59 = vld [vmem:[%s12714_s3 + $0x254] sm:$0xf] }
 0x426   : > { %v2630_v48 = vpop.f32.mrf.mxu0  ;;  %v7645_v18 = vor.u32 %v8857_v42, %v7644_v35 }
 0x428   : > { %v2355_v31 = vpop.f32.mrf.mxu3 }
 0x429   : > { %v2356_v34 = vadd.f32 %v2355_v31, %v2266_v54  ;;  %3459 = vmatmul.bf16.gmra.mxu0 %v7645_v18  ;;  %v7657_v31 = vor.u32 %v8858_v53, %v7654_v61 }
 0x42b   : > { %v2621_v19 = vadd.f32 %v2620_v60, %v2356_v34  ;;  %v2719_v6 = vpop.f32.mrf.mxu1  ;;  %v8824_v34 = vld [vmem:[%s12714_s3 + $0x244] sm:$0xf] }
 0x42c   : > { %v2268_v9 = vpop.f32.mrf.mxu2  ;;  %v7489_v35 = vor.u32 %v8824_v34, %v7486_v62  ;;  %v7500_v62 = vld [vmem:[%s12714_s3 + $0x260] sm:$0xf] }
 0x42d   : > { %v10531_v60 = vadd.f32 %v2709_v50, %v2621_v19  ;;  %3548 = vmatmul.bf16.gmra.mxu1 %v7649_v44  ;;  %v7492_v44 = vld [vmem:[%s12714_s3 + $0x250] sm:$0xf] }
 0x42e   : > { %v2632_v27 = vpop.f32.mrf.mxu0 }
 0x430   : > { %v2357_v22 = vpop.f32.mrf.mxu3 }
 0x431   : > { %v2358_v32 = vadd.f32 %v2357_v22, %v2268_v9  ;;  %3003 = vmatmul.bf16.gmra.mxu2 %v7477_v20  ;;  %v8860_v22 = vld [vmem:[%s12714_s3 + $0x364] sm:$0xf] }
 0x433   : > { %v2623_v29 = vadd.f32 %v2622_v37, %v2358_v32  ;;  %v2721_v28 = vpop.f32.mrf.mxu1  ;;  %v7652_v37 = vld [vmem:[%s12714_s3 + $0x350] sm:$0xf] }
 0x434   : > { %v2271_v50 = vpop.f32.mrf.mxu2 }
 0x435   : > { %v10539_v13 = vadd.f32 %v2711_v33, %v2623_v29  ;;  %3092 = vmatmul.bf16.gmra.mxu3 %v7481_v58  ;;  %v8859_v33 = vld [vmem:[%s12714_s3 + $0x354] sm:$0xf0] }
 0x436   : > { %v2635_v36 = vpop.f32.mrf.mxu0  ;;  %v7653_v21 = vor.u32 %v8859_v33, %v7652_v37 }
 0x438   : > { %v2360_v3 = vpop.f32.mrf.mxu3 }
 0x439   : > { %v2361_v23 = vadd.f32 %v2360_v3, %v2271_v50  ;;  %3464 = vmatmul.bf16.gmra.mxu0 %v7653_v21  ;;  %v7662_v50 = vld [vmem:[%s12714_s3 + $0x368] sm:$0xf0]  ;;  %v7493_v3 = vor.u32 %v8827_v40, %v7492_v44 }
 0x43a   : > { %v7665_v57 = vor.u32 %v8860_v22, %v7662_v50 }
 0x43b   : > { %v2626_v1 = vadd.f32 %v2625_v7, %v2361_v23  ;;  %v2724_v54 = vpop.f32.mrf.mxu1 }
 0x43c   : > { %v2273_v41 = vpop.f32.mrf.mxu2 }
 0x43d   : > { %v10559_v7 = vadd.f32 %v2714_v2, %v2626_v1  ;;  %3553 = vmatmul.bf16.gmra.mxu1 %v7657_v31  ;;  %v7494_v1 = vld [vmem:[%s12714_s3 + $0x258] sm:$0xf0] }
 0x43e   : > { %v2637_v56 = vpop.f32.mrf.mxu0  ;;  %v7497_v53 = vor.u32 %v8826_v59, %v7494_v1 }
 0x440   : > { %v2362_v52 = vpop.f32.mrf.mxu3 }
 0x441   : > { %v2363_v19 = vadd.f32 %v2362_v52, %v2273_v41  ;;  %3008 = vmatmul.bf16.gmra.mxu2 %v7485_v12  ;;  %v8829_v52 = vld [vmem:[%s12714_s3 + $0x264] sm:$0xf0] }
 0x442   : > { %v7501_v44 = vor.u32 %v8829_v52, %v7500_v62  ;;  %v7678_v52 = vld [vmem:[%s12714_s3 + $0x388] sm:$0xf0] }
 0x443   : > { %v2628_v42 = vadd.f32 %v2627_v63, %v2363_v19  ;;  %v2726_v18 = vpop.f32.mrf.mxu1  ;;  %v7660_v63 = vld [vmem:[%s12714_s3 + $0x360] sm:$0xf] }
 0x444   : > { %v2276_v2 = vpop.f32.mrf.mxu2 }
 0x445   : > { %v10567_v9 = vadd.f32 %v2716_v11, %v2628_v42  ;;  %3097 = vmatmul.bf16.gmra.mxu3 %v7489_v35  ;;  %v8861_v11 = vld [vmem:[%s12714_s3 + $0x364] sm:$0xf0]  ;;  %v8862_v35 = vld [vmem:[%s12714_s3 + $0x374] sm:$0xf] }
 0x446   : > { %v2640_v58 = vpop.f32.mrf.mxu0  ;;  %v7661_v29 = vor.u32 %v8861_v11, %v7660_v63  ;;  %v8828_v63 = vld [vmem:[%s12714_s3 + $0x264] sm:$0xf]  ;;  %v7502_v11 = vld [vmem:[%s12714_s3 + $0x268] sm:$0xf0] }
 0x448   : > { %v2365_v10 = vpop.f32.mrf.mxu3 }
 0x449   : > { %v2366_v20 = vadd.f32 %v2365_v10, %v2276_v2  ;;  %3469 = vmatmul.bf16.gmra.mxu0 %v7661_v29  ;;  %v7505_v29 = vor.u32 %v8828_v63, %v7502_v11 }
 0x44b   : > { %v2631_v26 = vadd.f32 %v2630_v48, %v2366_v20  ;;  %v2729_v23 = vpop.f32.mrf.mxu1  ;;  %v7670_v20 = vld [vmem:[%s12714_s3 + $0x378] sm:$0xf0] }
 0x44c   : > { %v2278_v32 = vpop.f32.mrf.mxu2 }
 0x44d   : > { %v10587_v48 = vadd.f32 %v2719_v6, %v2631_v26  ;;  %3558 = vmatmul.bf16.gmra.mxu1 %v7665_v57  ;;  %v7673_v26 = vor.u32 %v8862_v35, %v7670_v20  ;;  %v8830_v35 = vld [vmem:[%s12714_s3 + $0x274] sm:$0xf] }
 0x44e   : > { %v2642_v21 = vpop.f32.mrf.mxu0 }
 0x450   : > { %v2367_v37 = vpop.f32.mrf.mxu3 }
 0x451   : > { %v2368_v33 = vadd.f32 %v2367_v37, %v2278_v32  ;;  %3013 = vmatmul.bf16.gmra.mxu2 %v7493_v3 }
 0x453   : > { %v2633_v41 = vadd.f32 %v2632_v27, %v2368_v33  ;;  %v2731_v12 = vpop.f32.mrf.mxu1  ;;  %v7668_v27 = vld [vmem:[%s12714_s3 + $0x370] sm:$0xf] }
 0x454   : > { %v2281_v6 = vpop.f32.mrf.mxu2  ;;  %v7508_v33 = vld [vmem:[%s12714_s3 + $0x270] sm:$0xf] }
 0x455   : > { %v10595_v61 = vadd.f32 %v2721_v28, %v2633_v41  ;;  %3102 = vmatmul.bf16.gmra.mxu3 %v7497_v53  ;;  %v8863_v28 = vld [vmem:[%s12714_s3 + $0x374] sm:$0xf0] }
 0x456   : > { %v2645_v2 = vpop.f32.mrf.mxu0  ;;  %v7669_v10 = vor.u32 %v8863_v28, %v7668_v27  ;;  %v8831_v53 = vld [vmem:[%s12714_s3 + $0x274] sm:$0xf0] }
 0x458   : > { %v2370_v31 = vpop.f32.mrf.mxu3 }
 0x459   : > { %v2371_v34 = vadd.f32 %v2370_v31, %v2281_v6  ;;  %3474 = vmatmul.bf16.gmra.mxu0 %v7669_v10  ;;  %v8864_v6 = vld [vmem:[%s12714_s3 + $0x384] sm:$0xf] }
 0x45a   : > { %v7681_v28 = vor.u32 %v8864_v6, %v7678_v52  ;;  %v7686_v6 = vld [vmem:[%s12714_s3 + $0x398] sm:$0xf0]  ;;  %v8832_v52 = vld [vmem:[%s12714_s3 + $0x284] sm:$0xf] }
 0x45b   : > { %v2636_v19 = vadd.f32 %v2635_v36, %v2371_v34  ;;  %v2734_v40 = vpop.f32.mrf.mxu1 }
 0x45c   : > { %v2283_v42 = vpop.f32.mrf.mxu2 }
 0x45d   : > { %v10615_v36 = vadd.f32 %v2724_v54, %v2636_v19  ;;  %3563 = vmatmul.bf16.gmra.mxu1 %v7673_v26  ;;  %v7509_v19 = vor.u32 %v8831_v53, %v7508_v33  ;;  %v8866_v53 = vld [vmem:[%s12714_s3 + $0x394] sm:$0xf] }
 0x45e   : > { %v2647_v3 = vpop.f32.mrf.mxu0 }
 0x460   : > { %v2372_v22 = vpop.f32.mrf.mxu3 }
 0x461   : > { %v2373_v32 = vadd.f32 %v2372_v22, %v2283_v42  ;;  %3018 = vmatmul.bf16.gmra.mxu2 %v7501_v44  ;;  %v7510_v42 = vld [vmem:[%s12714_s3 + $0x278] sm:$0xf0] }
 0x462   : > { %v7513_v26 = vor.u32 %v8830_v35, %v7510_v42 }
 0x463   : > { %v2638_v50 = vadd.f32 %v2637_v56, %v2373_v32  ;;  %v2736_v59 = vpop.f32.mrf.mxu1  ;;  %v7676_v56 = vld [vmem:[%s12714_s3 + $0x380] sm:$0xf] }
 0x464   : > { %v2286_v54 = vpop.f32.mrf.mxu2 }
 0x465   : > { %v10623_v57 = vadd.f32 %v2726_v18, %v2638_v50  ;;  %3107 = vmatmul.bf16.gmra.mxu3 %v7505_v29  ;;  %v8865_v18 = vld [vmem:[%s12714_s3 + $0x384] sm:$0xf0] }
 0x466   : > { %v3440_v34 = vpop.f32.mrf.mxu0  ;;  %v7677_v62 = vor.u32 %v8865_v18, %v7676_v56 }
 0x468   : > { %v2375_v1 = vpop.f32.mrf.mxu3 }
 0x469   : > { %v2376_v37 = vadd.f32 %v2375_v1, %v2286_v54  ;;  %3479 = vmatmul.bf16.gmra.mxu0 %v7677_v62  ;;  %v7516_v1 = vld [vmem:[%s12714_s3 + $0x280] sm:$0xf]  ;;  %v7689_v62 = vor.u32 %v8866_v53, %v7686_v6  ;;  %v7694_v53 = vld [vmem:[%s12714_s3 + $0x3a8] sm:$0xf0]  ;;  %v8834_v6 = vld [vmem:[%s12714_s3 + $0x294] sm:$0xf] }
 0x46b   : > { %v2641_v41 = vadd.f32 %v2640_v58, %v2376_v37  ;;  %v3529_v27 = vpop.f32.mrf.mxu1  ;;  %v8833_v37 = vld [vmem:[%s12714_s3 + $0x284] sm:$0xf0] }
 0x46c   : > { %v2288_v31 = vpop.f32.mrf.mxu2  ;;  %v3530_v10 = vadd.f32 %v3529_v27, %v3440_v34 }
 0x46d   : > { %v10643_v58 = vadd.f32 %v2729_v23, %v2641_v41  ;;  %3568 = vmatmul.bf16.gmra.mxu1 %v7681_v28 }
 0x46e   : > { %v3442_v11 = vpop.f32.mrf.mxu0 }
 0x470   : > { %v2377_v20 = vpop.f32.mrf.mxu3 }
 0x471   : > { %v2378_v44 = vadd.f32 %v2377_v20, %v2288_v31  ;;  %3023 = vmatmul.bf16.gmra.mxu2 %v7509_v19  ;;  %v7517_v31 = vor.u32 %v8833_v37, %v7516_v1  ;;  %v7518_v19 = vld [vmem:[%s12714_s3 + $0x288] sm:$0xf0]  ;;  %v8868_v37 = vld [vmem:[%s12714_s3 + $0x3a4] sm:$0xf] }
 0x472   : > { %v7521_v42 = vor.u32 %v8832_v52, %v7518_v19 }
 0x473   : > { %v2643_v23 = vadd.f32 %v2642_v21, %v2378_v44  ;;  %v3531_v32 = vpop.f32.mrf.mxu1  ;;  %v7684_v21 = vld [vmem:[%s12714_s3 + $0x390] sm:$0xf] }
 0x474   : > { %v2291_v63 = vpop.f32.mrf.mxu2  ;;  %v3532_v29 = vadd.f32 %v3531_v32, %v3442_v11 }
 0x475   : > { %v10651_v22 = vadd.f32 %v2731_v12, %v2643_v23  ;;  %3112 = vmatmul.bf16.gmra.mxu3 %v7513_v26  ;;  %v8867_v12 = vld [vmem:[%s12714_s3 + $0x394] sm:$0xf0] }
 0x476   : > { %v3445_v56 = vpop.f32.mrf.mxu0  ;;  %v7685_v18 = vor.u32 %v8867_v12, %v7684_v21 }
 0x478   : > { %v2380_v50 = vpop.f32.mrf.mxu3 }
 0x479   : > { %v2381_v54 = vadd.f32 %v2380_v50, %v2291_v63  ;;  %3484 = vmatmul.bf16.gmra.mxu0 %v7685_v18  ;;  %v7524_v50 = vld [vmem:[%s12714_s3 + $0x290] sm:$0xf]  ;;  %v7697_v18 = vor.u32 %v8868_v37, %v7694_v53  ;;  %v7702_v37 = vld [vmem:[%s12714_s3 + $0x3b8] sm:$0xf0]  ;;  %v8836_v53 = vld [vmem:[%s12714_s3 + $0x2a4] sm:$0xf] }
 0x47b   : > { %v2646_v33 = vadd.f32 %v2645_v2, %v2381_v54  ;;  %v3534_v34 = vpop.f32.mrf.mxu1  ;;  %v8835_v54 = vld [vmem:[%s12714_s3 + $0x294] sm:$0xf0] }
 0x47c   : > { %v2293_v41 = vpop.f32.mrf.mxu2  ;;  %v3535_v27 = vadd.f32 %v3534_v34, %v3445_v56 }
 0x47d   : > { %v10671_v2 = vadd.f32 %v2734_v40, %v2646_v33  ;;  %3573 = vmatmul.bf16.gmra.mxu1 %v7689_v62 }
 0x47e   : > { %v3447_v44 = vpop.f32.mrf.mxu0 }
 0x480   : > { %v2382_v28 = vpop.f32.mrf.mxu3 }
 0x481   : > { %v2383_v35 = vadd.f32 %v2382_v28, %v2293_v41  ;;  %3028 = vmatmul.bf16.gmra.mxu2 %v7517_v31  ;;  %v7525_v41 = vor.u32 %v8835_v54, %v7524_v50  ;;  %v7526_v31 = vld [vmem:[%s12714_s3 + $0x298] sm:$0xf0]  ;;  %v8870_v54 = vld [vmem:[%s12714_s3 + $0x3b4] sm:$0xf] }
 0x482   : > { %v7529_v19 = vor.u32 %v8834_v6, %v7526_v31 }
 0x483   : > { %v2648_v40 = vadd.f32 %v2647_v3, %v2383_v35  ;;  %v3536_v23 = vpop.f32.mrf.mxu1  ;;  %v7692_v3 = vld [vmem:[%s12714_s3 + $0x3a0] sm:$0xf] }
 0x484   : > { %v2989_v20 = vpop.f32.mrf.mxu2  ;;  %v3537_v63 = vadd.f32 %v3536_v23, %v3447_v44 }
 0x485   : > { %v10679_v26 = vadd.f32 %v2736_v59, %v2648_v40  ;;  %3117 = vmatmul.bf16.gmra.mxu3 %v7521_v42  ;;  %v8869_v59 = vld [vmem:[%s12714_s3 + $0x3a4] sm:$0xf0] }
 0x486   : > { %v3450_v21 = vpop.f32.mrf.mxu0  ;;  %v7693_v12 = vor.u32 %v8869_v59, %v7692_v3 }
 0x488   : > { %v3078_v11 = vpop.f32.mrf.mxu3 }
 0x489   : > { %v3079_v32 = vadd.f32 %v3078_v11, %v2989_v20  ;;  %3489 = vmatmul.bf16.gmra.mxu0 %v7693_v12  ;;  %v7532_v11 = vld [vmem:[%s12714_s3 + $0x2a0] sm:$0xf]  ;;  %v7705_v12 = vor.u32 %v8870_v54, %v7702_v37  ;;  %v8838_v37 = vld [vmem:[%s12714_s3 + $0x2b4] sm:$0xf] }
 0x48b   : > { %v3158_v1 = vadd.f32 %v3079_v32, %v10250_v14  ;;  %v3539_v56 = vpop.f32.mrf.mxu1  ;;  %v8837_v32 = vld [vmem:[%s12714_s3 + $0x2a4] sm:$0xf0] }
 0x48c   : > { %v2991_v33 = vpop.f32.mrf.mxu2  ;;  %v3540_v34 = vadd.f32 %v3539_v56, %v3450_v21 }
 0x48d   : > { %v10700_v14 = vadd.f32 %v3530_v10, %v3158_v1  ;;  %3578 = vmatmul.bf16.gmra.mxu1 %v7697_v18 }
 0x48e   : > { %v3452_v35 = vpop.f32.mrf.mxu0 }
 0x490   : > { %v3080_v62 = vpop.f32.mrf.mxu3 }
 0x491   : > { %v3081_v52 = vadd.f32 %v3080_v62, %v2991_v33  ;;  %3033 = vmatmul.bf16.gmra.mxu2 %v7525_v41  ;;  %v7533_v33 = vor.u32 %v8837_v32, %v7532_v11  ;;  %v7534_v41 = vld [vmem:[%s12714_s3 + $0x2a8] sm:$0xf0]  ;;  %v8872_v32 = vld [vmem:[%s12714_s3 + $0x3c4] sm:$0xf] }
 0x492   : > { %v7537_v31 = vor.u32 %v8836_v53, %v7534_v41 }
 0x493   : > { %v3159_v10 = vadd.f32 %v3081_v52, %v10258_v4  ;;  %v3541_v40 = vpop.f32.mrf.mxu1  ;;  %v7700_v4 = vld [vmem:[%s12714_s3 + $0x3b0] sm:$0xf] }
 0x494   : > { %v2994_v28 = vpop.f32.mrf.mxu2  ;;  %v3542_v20 = vadd.f32 %v3541_v40, %v3452_v35 }
 0x495   : > { %v10709_v42 = vadd.f32 %v3532_v29, %v3159_v10  ;;  %3122 = vmatmul.bf16.gmra.mxu3 %v7529_v19  ;;  %v8871_v29 = vld [vmem:[%s12714_s3 + $0x3b4] sm:$0xf0] }
 0x496   : > { %v3455_v3 = vpop.f32.mrf.mxu0  ;;  %v7701_v59 = vor.u32 %v8871_v29, %v7700_v4 }
 0x498   : > { %v3083_v44 = vpop.f32.mrf.mxu3 }
 0x499   : > { %v3084_v23 = vadd.f32 %v3083_v44, %v2994_v28  ;;  %3494 = vmatmul.bf16.gmra.mxu0 %v7701_v59  ;;  %v7540_v44 = vld [vmem:[%s12714_s3 + $0x2b0] sm:$0xf] }
 0x49b   : > { %v3160_v50 = vadd.f32 %v3084_v23, %v10278_v45  ;;  %v3544_v21 = vpop.f32.mrf.mxu1  ;;  %v8839_v23 = vld [vmem:[%s12714_s3 + $0x2b4] sm:$0xf0] }
 0x49c   : > { %v2996_v1 = vpop.f32.mrf.mxu2  ;;  %v3545_v56 = vadd.f32 %v3544_v21, %v3455_v3 }
 0x49d   : > { %v10730_v45 = vadd.f32 %v3535_v27, %v3160_v50  ;;  %3583 = vmatmul.bf16.gmra.mxu1 %v7705_v12 }
 0x49e   : > { %v3457_v52 = vpop.f32.mrf.mxu0 }
 0x4a0   : > { %v3085_v18 = vpop.f32.mrf.mxu3 }
 0x4a1   : > { %v3086_v6 = vadd.f32 %v3085_v18, %v2996_v1  ;;  %3038 = vmatmul.bf16.gmra.mxu2 %v7533_v33  ;;  %v7541_v1 = vor.u32 %v8839_v23, %v7540_v44  ;;  %v7542_v33 = vld [vmem:[%s12714_s3 + $0x2b8] sm:$0xf0] }
 0x4a2   : > { %v7545_v53 = vor.u32 %v8838_v37, %v7542_v33 }
 0x4a3   : > { %v3161_v27 = vadd.f32 %v3086_v6, %v10286_v38  ;;  %v3546_v10 = vpop.f32.mrf.mxu1  ;;  %v7708_v38 = vld [vmem:[%s12714_s3 + $0x3c0] sm:$0xf] }
 0x4a4   : > { %v2999_v62 = vpop.f32.mrf.mxu2  ;;  %v3547_v28 = vadd.f32 %v3546_v10, %v3457_v52  ;;  %v7548_v52 = vld [vmem:[%s12714_s3 + $0x2c0] sm:$0xf]  ;;  %v8841_v10 = vld [vmem:[%s12714_s3 + $0x2c4] sm:$0xf0] }
 0x4a5   : > { %v10739_v19 = vadd.f32 %v3537_v63, %v3161_v27  ;;  %3127 = vmatmul.bf16.gmra.mxu3 %v7537_v31  ;;  %v8873_v63 = vld [vmem:[%s12714_s3 + $0x3c4] sm:$0xf0] }
 0x4a6   : > { %v10757_v4 = vpop.f32.mrf.mxu0  ;;  %v7709_v29 = vor.u32 %v8873_v63, %v7708_v38  ;;  %v7549_v63 = vor.u32 %v8841_v10, %v7548_v52  ;;  %v8877_v52 = vld [vmem:[%s12714_s3 + $0x3e4] sm:$0xf0]  ;;  %v8876_v10 = vld [vmem:[%s12714_s3 + $0x3e4] sm:$0xf] }
 0x4a8   : > { %v3088_v35 = vpop.f32.mrf.mxu3 }
 0x4a9   : > { %v3089_v40 = vadd.f32 %v3088_v35, %v2999_v62  ;;  %3499 = vmatmul.bf16.gmra.mxu0 %v7709_v29  ;;  %v8875_v35 = vld [vmem:[%s12714_s3 + $0x3d4] sm:$0xf0]  ;;  %v8840_v29 = vld [vmem:[%s12714_s3 + $0x2c4] sm:$0xf] }
 0x4ab   : > { %v3162_v11 = vadd.f32 %v3089_v40, %v10307_v49  ;;  %v7710_v49 = vld [vmem:[%s12714_s3 + $0x3c8] sm:$0xf0]  ;;  %v10764_v3 = vpop.f32.mrf.mxu1  ;;  %v8874_v40 = vld [vmem:[%s12714_s3 + $0x3d4] sm:$0xf] }
 0x4ac   : > { %v3001_v50 = vpop.f32.mrf.mxu2  ;;  %v7713_v59 = vor.u32 %v8872_v32, %v7710_v49  ;;  %v7550_v49 = vld [vmem:[%s12714_s3 + $0x2c8] sm:$0xf0] }
 0x4ad   : > { %v10762_v54 = vadd.f32 %v3540_v34, %v3162_v11  ;;  %v7553_v37 = vor.u32 %v8840_v29, %v7550_v49 }
 0x4ae   : > { %3588 = vmatmul.bf16.gmra.mxu1 %v7713_v59  ;;  %v10773_v18 = vpop.f32.mrf.mxu0 }
 0x4b0   : > { %v3090_v21 = vpop.f32.mrf.mxu3 }
 0x4b1   : > { %v3091_v12 = vadd.f32 %v3090_v21, %v3001_v50  ;;  %3043 = vmatmul.bf16.gmra.mxu2 %v7541_v1 }
 0x4b3   : > { %v3163_v34 = vadd.f32 %v3091_v12, %v10315_v17  ;;  %v10777_v31 = vpop.f32.mrf.mxu1 }
 0x4b4   : > { %v3004_v41 = vpop.f32.mrf.mxu2 }
 0x4b5   : > { %v10775_v6 = vadd.f32 %v3542_v20, %v3163_v34  ;;  %3132 = vmatmul.bf16.gmra.mxu3 %v7545_v53  ;;  %v7716_v20 = vld [vmem:[%s12714_s3 + $0x3d0] sm:$0xf] }
 0x4b6   : > { %v10795_v23 = vpop.f32.mrf.mxu0  ;;  %v7717_v11 = vor.u32 %v8875_v35, %v7716_v20 }
 0x4b8   : > { %v3093_v27 = vpop.f32.mrf.mxu3 }
 0x4b9   : > { %v3094_v62 = vadd.f32 %v3093_v27, %v3004_v41  ;;  %3504 = vmatmul.bf16.gmra.mxu0 %v7717_v11  ;;  %v7556_v27 = vld [vmem:[%s12714_s3 + $0x2d0] sm:$0xf] }
 0x4bb   : > { %v3164_v17 = vadd.f32 %v3094_v62, %v10335_v46  ;;  %v7718_v46 = vld [vmem:[%s12714_s3 + $0x3d8] sm:$0xf0]  ;;  %v10802_v32 = vpop.f32.mrf.mxu1  ;;  %v8843_v62 = vld [vmem:[%s12714_s3 + $0x2d4] sm:$0xf0] }
 0x4bc   : > { %v3006_v44 = vpop.f32.mrf.mxu2  ;;  %v7721_v50 = vor.u32 %v8874_v40, %v7718_v46  ;;  %v7557_v40 = vor.u32 %v8843_v62, %v7556_v27  ;;  %v8842_v46 = vld [vmem:[%s12714_s3 + $0x2d4] sm:$0xf]  ;;  %v8845_v27 = vld [vmem:[%s12714_s3 + $0x2e4] sm:$0xf0] }
 0x4bd   : > { %v10800_v38 = vadd.f32 %v3545_v56, %v3164_v17 }
 0x4be   : > { %3593 = vmatmul.bf16.gmra.mxu1 %v7721_v50  ;;  %v10811_v21 = vpop.f32.mrf.mxu0 }
 0x4c0   : > { %v3095_v1 = vpop.f32.mrf.mxu3 }
 0x4c1   : > { %v3096_v59 = vadd.f32 %v3095_v1, %v3006_v44  ;;  %3048 = vmatmul.bf16.gmra.mxu2 %v7549_v63  ;;  %v7558_v63 = vld [vmem:[%s12714_s3 + $0x2d8] sm:$0xf0] }
 0x4c2   : > { %v7561_v49 = vor.u32 %v8842_v46, %v7558_v63  ;;  %v8844_v46 = vld [vmem:[%s12714_s3 + $0x2e4] sm:$0xf]  ;;  %v7566_v63 = vld [vmem:[%s12714_s3 + $0x2e8] sm:$0xf0] }
 0x4c3   : > { %v3165_v56 = vadd.f32 %v3096_v59, %v10343_v55  ;;  %v10815_v53 = vpop.f32.mrf.mxu1 }
 0x4c4   : > { %v3009_v33 = vpop.f32.mrf.mxu2 }
 0x4c5   : > { %v10813_v12 = vadd.f32 %v3547_v28, %v3165_v56  ;;  %3137 = vmatmul.bf16.gmra.mxu3 %v7553_v37  ;;  %v7724_v28 = vld [vmem:[%s12714_s3 + $0x3e0] sm:$0xf] }
 0x4c6   : > { %v10835_v20 = vpop.f32.mrf.mxu0  ;;  %v7725_v35 = vor.u32 %v8877_v52, %v7724_v28  ;;  %v8879_v28 = vld [vmem:[%s12714_s3 + $0x3f4] sm:$0xf0]  ;;  %v8878_v52 = vld [vmem:[%s12714_s3 + $0x3f4] sm:$0xf] }
 0x4c8   : > { %v3098_v34 = vpop.f32.mrf.mxu3 }
 0x4c9   : > { %v3099_v41 = vadd.f32 %v3098_v34, %v3009_v33  ;;  %3509 = vmatmul.bf16.gmra.mxu0 %v7725_v35 }
 0x4cb   : > { %v10824_v55 = vadd.f32 %v3099_v41, %v10363_v47  ;;  %v7726_v47 = vld [vmem:[%s12714_s3 + $0x3e8] sm:$0xf0]  ;;  %v10840_v44 = vpop.f32.mrf.mxu1  ;;  %v7564_v41 = vld [vmem:[%s12714_s3 + $0x2e0] sm:$0xf] }
 0x4cc   : > { %v3011_v17 = vpop.f32.mrf.mxu2  ;;  %v7729_v11 = vor.u32 %v8876_v10, %v7726_v47  ;;  %v7565_v47 = vor.u32 %v8845_v27, %v7564_v41 }
 0x4ce   : > { %3598 = vmatmul.bf16.gmra.mxu1 %v7729_v11  ;;  %v10851_v37 = vpop.f32.mrf.mxu0 }
 0x4d0   : > { %v3100_v50 = vpop.f32.mrf.mxu3 }
 0x4d1   : > { %v3101_v29 = vadd.f32 %v3100_v50, %v3011_v17  ;;  %3053 = vmatmul.bf16.gmra.mxu2 %v7557_v40 }
 0x4d3   : > { %v10849_v1 = vadd.f32 %v3101_v29, %v10371_v24  ;;  %v10853_v56 = vpop.f32.mrf.mxu1  ;;  %v7732_v24 = vld [vmem:[%s12714_s3 + $0x3f0] sm:$0xf] }
 0x4d4   : > { %v3014_v59 = vpop.f32.mrf.mxu2  ;;  %v7733_v35 = vor.u32 %v8879_v28, %v7732_v24  ;;  %v7572_v28 = vld [vmem:[%s12714_s3 + $0x2f0] sm:$0xf] }
 0x4d5   : > { %3142 = vmatmul.bf16.gmra.mxu3 %v7561_v49  ;;  %v7569_v49 = vor.u32 %v8844_v46, %v7566_v63  ;;  %v7574_v46 = vld [vmem:[%s12714_s3 + $0x2f8] sm:$0xf0] }
 0x4d6   : > { %v10873_v17 = vpop.f32.mrf.mxu0 }
 0x4d8   : > { %v3103_v33 = vpop.f32.mrf.mxu3 }
 0x4d9   : > { %v3104_v34 = vadd.f32 %v3103_v33, %v3014_v59  ;;  %3514 = vmatmul.bf16.gmra.mxu0 %v7733_v35 }
 0x4db   : > { %v10862_v62 = vadd.f32 %v3104_v34, %v10391_v5  ;;  %v7734_v5 = vld [vmem:[%s12714_s3 + $0x3f8] sm:$0xf0]  ;;  %v10878_v40 = vpop.f32.mrf.mxu1 }
 0x4dc   : > { %v3016_v10 = vpop.f32.mrf.mxu2  ;;  %v7737_v11 = vor.u32 %v8878_v52, %v7734_v5  ;;  %v8847_v52 = vld [vmem:[%s12714_s3 + $0x2f4] sm:$0xf0] }
 0x4dd   : > { %v7573_v5 = vor.u32 %v8847_v52, %v7572_v28 }
 0x4de   : > { %3603 = vmatmul.bf16.gmra.mxu1 %v7737_v11  ;;  %v10889_v34 = vpop.f32.mrf.mxu0  ;;  %v8846_v11 = vld [vmem:[%s12714_s3 + $0x2f4] sm:$0xf] }
 0x4df   : > { %12727 = vst [vmem:[#allocation3_spill] sm:$0xff] %v10889_v34  ;;  %v7780_v34 = vld [vmem:[%s12714_s3 + $0x410] sm:$0xf] }
 0x4e0   : > { %v3105_v50 = vpop.f32.mrf.mxu3 }
 0x4e1   : > { %v3106_v29 = vadd.f32 %v3105_v50, %v3016_v10  ;;  %3058 = vmatmul.bf16.gmra.mxu2 %v7565_v47 }
 0x4e3   : > { %v10887_v59 = vadd.f32 %v3106_v29, %v10399_v51  ;;  %v10891_v41 = vpop.f32.mrf.mxu1 }
 0x4e4   : > { %v3019_v33 = vpop.f32.mrf.mxu2  ;;  %12728 = vst [vmem:[#allocation4_spill] sm:$0xff] %v10891_v41  ;;  %v7772_v41 = vld [vmem:[%s12714_s3 + $0x400] sm:$0xf] }
 0x4e5   : > { %3147 = vmatmul.bf16.gmra.mxu3 %v7569_v49  ;;  %v7577_v49 = vor.u32 %v8846_v11, %v7574_v46  ;;  %v8880_v46 = vld [vmem:[%s12714_s3 + $0x404] sm:$0xf] }
 0x4e6   : > { %v3480_v35 = vpop.f32.mrf.mxu0 }
 0x4e8   : > { %v3108_v27 = vpop.f32.mrf.mxu3 }
 0x4e9   : > { %v3109_v24 = vadd.f32 %v3108_v27, %v3019_v33 }
 0x4eb   : > { %v10900_v10 = vadd.f32 %v3109_v24, %v10419_v39  ;;  %v3569_v47 = vpop.f32.mrf.mxu1 }
 0x4ec   : > { %v3021_v51 = vpop.f32.mrf.mxu2  ;;  %v3570_v63 = vadd.f32 %v3569_v47, %v3480_v35 }
 0x4ee   : > { %v10911_v27 = vpop.f32.mrf.mxu0 }
 0x4ef   : > { %12729 = vst [vmem:[#allocation5_spill] sm:$0xff] %v10911_v27 }
 0x4f0   : > { %v3110_v50 = vpop.f32.mrf.mxu3 }
 0x4f1   : > { %v3111_v29 = vadd.f32 %v3110_v50, %v3021_v51  ;;  %3063 = vmatmul.bf16.gmra.mxu2 %v7573_v5  ;;  %v8881_v51 = vld [vmem:[%s12714_s3 + $0x404] sm:$0xf0]  ;;  %v7774_v50 = vld [vmem:[%s12714_s3 + $0x408] sm:$0xf0] }
 0x4f2   : > { %v7773_v47 = vor.u32 %v8881_v51, %v7772_v41 }
 0x4f3   : > { %v10909_v39 = vadd.f32 %v3111_v29, %v10427_v16  ;;  %v10913_v24 = vpop.f32.mrf.mxu1 }
 0x4f4   : > { %v3024_v33 = vpop.f32.mrf.mxu2  ;;  %12730 = vst [vmem:[#allocation6_spill] sm:$0xff] %v10913_v24 }
 0x4f5   : > { %3152 = vmatmul.bf16.gmra.mxu3 %v7577_v49 }
 0x4f6   : > { %v3485_v5 = vpop.f32.mrf.mxu0 }
 0x4f8   : > { %v3113_v28 = vpop.f32.mrf.mxu3 }
 0x4f9   : > { %v3114_v52 = vadd.f32 %v3113_v28, %v3024_v33  ;;  %v7777_v28 = vor.u32 %v8880_v46, %v7774_v50 }
 0x4fb   : > { %v10922_v35 = vadd.f32 %v3114_v52, %v10447_v15  ;;  %v3574_v11 = vpop.f32.mrf.mxu1 }
 0x4fc   : > { %v3026_v16 = vpop.f32.mrf.mxu2  ;;  %v3575_v29 = vadd.f32 %v3574_v11, %v3485_v5 }
 0x4fe   : > { %v10933_v24 = vpop.f32.mrf.mxu0 }
 0x4ff   : > { %12731 = vst [vmem:[#allocation7_spill] sm:$0xff] %v10933_v24  ;;  %v7788_v24 = vld [vmem:[%s12714_s3 + $0x420] sm:$0xf] }
 0x500   : > { %v3115_v49 = vpop.f32.mrf.mxu3 }
 0x501   : > { %v3116_v33 = vadd.f32 %v3115_v49, %v3026_v16  ;;  %3890 = vmatmul.bf16.vlgmr.msra.gmra.mxu2 %v7773_v47  ;;  %v8883_v16 = vld [vmem:[%s12714_s3 + $0x414] sm:$0xf0]  ;;  %v8882_v49 = vld [vmem:[%s12714_s3 + $0x414] sm:$0xf] }
 0x502   : > { %v7781_v46 = vor.u32 %v8883_v16, %v7780_v34 }
 0x503   : > { %v10931_v15 = vadd.f32 %v3116_v33, %v10455_v25  ;;  %v10935_v41 = vpop.f32.mrf.mxu1  ;;  %v7782_v33 = vld [vmem:[%s12714_s3 + $0x418] sm:$0xf0] }
 0x504   : > { %v3029_v52 = vpop.f32.mrf.mxu2  ;;  %12732 = vst [vmem:[#allocation8_spill] sm:$0xff] %v10935_v41  ;;  %v7785_v41 = vor.u32 %v8882_v49, %v7782_v33  ;;  %v8884_v33 = vld [vmem:[%s12714_s3 + $0x424] sm:$0xf] }
 0x505   : > { %3979 = vmatmul.bf16.vlgmr.msra.gmra.mxu3 %v7777_v28 }
 0x506   : > { %v3490_v47 = vpop.f32.mrf.mxu0 }
 0x508   : > { %v3118_v51 = vpop.f32.mrf.mxu3 }
 0x509   : > { %v3119_v27 = vadd.f32 %v3118_v51, %v3029_v52 }
 0x50b   : > { %v3174_v5 = vadd.f32 %v3119_v27, %v10475_v30  ;;  %v3579_v50 = vpop.f32.mrf.mxu1 }
 0x50c   : > { %v3031_v25 = vpop.f32.mrf.mxu2  ;;  %v3580_v28 = vadd.f32 %v3579_v50, %v3490_v47 }
 0x50d   : > { %v10944_v11 = vadd.f32 %v3570_v63, %v3174_v5 }
 0x50e   : > { %v10955_v27 = vpop.f32.mrf.mxu0 }
 0x50f   : > { %12733 = vst [vmem:[#allocation9_spill] sm:$0xff] %v10955_v27  ;;  %v7796_v27 = vld [vmem:[%s12714_s3 + $0x430] sm:$0xf] }
 0x510   : > { %v3120_v52 = vpop.f32.mrf.mxu3 }
 0x511   : > { %v3121_v51 = vadd.f32 %v3120_v52, %v3031_v25  ;;  %3895 = vmatmul.bf16.gmra.mxu2 %v7781_v46  ;;  %v8885_v25 = vld [vmem:[%s12714_s3 + $0x424] sm:$0xf0]  ;;  %v7790_v52 = vld [vmem:[%s12714_s3 + $0x428] sm:$0xf0] }
 0x512   : > { %v7789_v49 = vor.u32 %v8885_v25, %v7788_v24 }
 0x513   : > { %v10953_v30 = vadd.f32 %v3121_v51, %v10483_v8  ;;  %v10957_v34 = vpop.f32.mrf.mxu1 }
 0x514   : > { %v3034_v63 = vpop.f32.mrf.mxu2  ;;  %12734 = vst [vmem:[#allocation10_spill] sm:$0xff] %v10957_v34  ;;  %v7793_v34 = vor.u32 %v8884_v33, %v7790_v52  ;;  %v8886_v52 = vld [vmem:[%s12714_s3 + $0x434] sm:$0xf] }
 0x515   : > { %3984 = vmatmul.bf16.gmra.mxu3 %v7785_v41 }
 0x516   : > { %v3495_v46 = vpop.f32.mrf.mxu0 }
 0x518   : > { %v3123_v16 = vpop.f32.mrf.mxu3 }
 0x519   : > { %v3124_v5 = vadd.f32 %v3123_v16, %v3034_v63 }
 0x51b   : > { %v3176_v47 = vadd.f32 %v3124_v5, %v10503_v43  ;;  %v3584_v41 = vpop.f32.mrf.mxu1 }
 0x51c   : > { %v3036_v8 = vpop.f32.mrf.mxu2  ;;  %v3585_v51 = vadd.f32 %v3584_v41, %v3495_v46 }
 0x51d   : > { %v10966_v50 = vadd.f32 %v3575_v29, %v3176_v47 }
 0x51e   : > { %v10977_v5 = vpop.f32.mrf.mxu0 }
 0x520   : > { %v3125_v63 = vpop.f32.mrf.mxu3 }
 0x521   : > { %v3126_v16 = vadd.f32 %v3125_v63, %v3036_v8  ;;  %3900 = vmatmul.bf16.gmra.mxu2 %v7789_v49  ;;  %v8887_v8 = vld [vmem:[%s12714_s3 + $0x434] sm:$0xf0]  ;;  %v7798_v63 = vld [vmem:[%s12714_s3 + $0x438] sm:$0xf0] }
 0x522   : > { %v7797_v33 = vor.u32 %v8887_v8, %v7796_v27  ;;  %v7804_v8 = vld [vmem:[%s12714_s3 + $0x440] sm:$0xf] }
 0x523   : > { %v10975_v43 = vadd.f32 %v3126_v16, %v10511_v0  ;;  %v10979_v24 = vpop.f32.mrf.mxu1 }
 0x524   : > { %v3039_v29 = vpop.f32.mrf.mxu2  ;;  %12735 = vst [vmem:[#allocation11_spill] sm:$0xff] %v10979_v24  ;;  %v7801_v24 = vor.u32 %v8886_v52, %v7798_v63 }
 0x525   : > { %3989 = vmatmul.bf16.gmra.mxu3 %v7793_v34 }
 0x526   : > { %v3500_v49 = vpop.f32.mrf.mxu0 }
 0x528   : > { %v3128_v25 = vpop.f32.mrf.mxu3 }
 0x529   : > { %v3129_v47 = vadd.f32 %v3128_v25, %v3039_v29 }
 0x52b   : > { %v3178_v46 = vadd.f32 %v3129_v47, %v10531_v60  ;;  %v3589_v34 = vpop.f32.mrf.mxu1 }
 0x52c   : > { %v3041_v0 = vpop.f32.mrf.mxu2  ;;  %v3590_v16 = vadd.f32 %v3589_v34, %v3500_v49 }
 0x52d   : > { %v10988_v41 = vadd.f32 %v3580_v28, %v3178_v46  ;;  %v8889_v46 = vld [vmem:[%s12714_s3 + $0x444] sm:$0xf0] }
 0x52e   : > { %v7805_v34 = vor.u32 %v8889_v46, %v7804_v8 }
 0x530   : > { %v3130_v29 = vpop.f32.mrf.mxu3 }
 0x531   : > { %v3131_v25 = vadd.f32 %v3130_v29, %v3041_v0  ;;  %3905 = vmatmul.bf16.gmra.mxu2 %v7797_v33 }
 0x533   : > { %v10997_v60 = vadd.f32 %v3131_v25, %v10539_v13  ;;  %v8888_v13 = vld [vmem:[%s12714_s3 + $0x444] sm:$0xf] }
 0x534   : > { %v3044_v28 = vpop.f32.mrf.mxu2 }
 0x535   : > { %3994 = vmatmul.bf16.gmra.mxu3 %v7801_v24  ;;  %v7806_v24 = vld [vmem:[%s12714_s3 + $0x448] sm:$0xf0] }
 0x536   : > { %v7809_v29 = vor.u32 %v8888_v13, %v7806_v24 }
 0x538   : > { %v3133_v27 = vpop.f32.mrf.mxu3 }
 0x539   : > { %v3134_v47 = vadd.f32 %v3133_v27, %v3044_v28  ;;  %v7812_v27 = vld [vmem:[%s12714_s3 + $0x450] sm:$0xf] }
 0x53b   : > { %v3180_v49 = vadd.f32 %v3134_v47, %v10559_v7  ;;  %v8891_v47 = vld [vmem:[%s12714_s3 + $0x454] sm:$0xf0] }
 0x53c   : > { %v3046_v0 = vpop.f32.mrf.mxu2 }
 0x53d   : > { %v11006_v33 = vadd.f32 %v3585_v51, %v3180_v49 }
 0x540   : > { %v3135_v52 = vpop.f32.mrf.mxu3 }
 0x541   : > { %v3136_v63 = vadd.f32 %v3135_v52, %v3046_v0  ;;  %3910 = vmatmul.bf16.gmra.mxu2 %v7805_v34  ;;  %v7813_v0 = vor.u32 %v8891_v47, %v7812_v27  ;;  %v7814_v34 = vld [vmem:[%s12714_s3 + $0x458] sm:$0xf0] }
 0x543   : > { %v11015_v25 = vadd.f32 %v3136_v63, %v10567_v9  ;;  %v8890_v9 = vld [vmem:[%s12714_s3 + $0x454] sm:$0xf] }
 0x544   : > { %v3049_v7 = vpop.f32.mrf.mxu2  ;;  %v7817_v52 = vor.u32 %v8890_v9, %v7814_v34 }
 0x545   : > { %3999 = vmatmul.bf16.gmra.mxu3 %v7809_v29 }
 0x548   : > { %v3138_v51 = vpop.f32.mrf.mxu3 }
 0x549   : > { %v3139_v28 = vadd.f32 %v3138_v51, %v3049_v7  ;;  %v7820_v7 = vld [vmem:[%s12714_s3 + $0x460] sm:$0xf]  ;;  %v8893_v51 = vld [vmem:[%s12714_s3 + $0x464] sm:$0xf0] }
 0x54a   : > { %v7821_v47 = vor.u32 %v8893_v51, %v7820_v7  ;;  %v7830_v51 = vld [vmem:[%s12714_s3 + $0x478] sm:$0xf0] }
 0x54b   : > { %v3182_v8 = vadd.f32 %v3139_v28, %v10587_v48 }
 0x54c   : > { %v3051_v46 = vpop.f32.mrf.mxu2 }
 0x54d   : > { %v11024_v49 = vadd.f32 %v3590_v16, %v3182_v8  ;;  %v7822_v8 = vld [vmem:[%s12714_s3 + $0x468] sm:$0xf0] }
 0x550   : > { %v3140_v13 = vpop.f32.mrf.mxu3 }
 0x551   : > { %v3141_v24 = vadd.f32 %v3140_v13, %v3051_v46  ;;  %3915 = vmatmul.bf16.gmra.mxu2 %v7813_v0 }
 0x553   : > { %v11033_v63 = vadd.f32 %v3141_v24, %v10595_v61  ;;  %v8892_v61 = vld [vmem:[%s12714_s3 + $0x464] sm:$0xf] }
 0x554   : > { %v3054_v48 = vpop.f32.mrf.mxu2  ;;  %v7825_v9 = vor.u32 %v8892_v61, %v7822_v8 }
 0x555   : > { %4004 = vmatmul.bf16.gmra.mxu3 %v7817_v52  ;;  %v7828_v52 = vld [vmem:[%s12714_s3 + $0x470] sm:$0xf] }
 0x558   : > { %v3143_v16 = vpop.f32.mrf.mxu3 }
 0x559   : > { %v3144_v29 = vadd.f32 %v3143_v16, %v3054_v48  ;;  %v8895_v48 = vld [vmem:[%s12714_s3 + $0x474] sm:$0xf0] }
 0x55a   : > { %v7829_v7 = vor.u32 %v8895_v48, %v7828_v52  ;;  %v7838_v48 = vld [vmem:[%s12714_s3 + $0x488] sm:$0xf0] }
 0x55b   : > { %v11042_v28 = vadd.f32 %v3144_v29, %v10615_v36 }
 0x55c   : > { %v3056_v27 = vpop.f32.mrf.mxu2 }
 0x560   : > { %v3145_v46 = vpop.f32.mrf.mxu3 }
 0x561   : > { %v3146_v0 = vadd.f32 %v3145_v46, %v3056_v27  ;;  %3920 = vmatmul.bf16.gmra.mxu2 %v7821_v47 }
 0x563   : > { %v11051_v34 = vadd.f32 %v3146_v0, %v10623_v57  ;;  %v8894_v57 = vld [vmem:[%s12714_s3 + $0x474] sm:$0xf] }
 0x564   : > { %v3059_v13 = vpop.f32.mrf.mxu2  ;;  %v7833_v61 = vor.u32 %v8894_v57, %v7830_v51 }
 0x565   : > { %4009 = vmatmul.bf16.gmra.mxu3 %v7825_v9  ;;  %v7836_v9 = vld [vmem:[%s12714_s3 + $0x480] sm:$0xf] }
 0x568   : > { %v3148_v36 = vpop.f32.mrf.mxu3 }
 0x569   : > { %v3149_v24 = vadd.f32 %v3148_v36, %v3059_v13  ;;  %v8897_v13 = vld [vmem:[%s12714_s3 + $0x484] sm:$0xf0] }
 0x56a   : > { %v7837_v52 = vor.u32 %v8897_v13, %v7836_v9 }
 0x56b   : > { %v11060_v16 = vadd.f32 %v3149_v24, %v10643_v58 }
 0x56c   : > { %v3061_v29 = vpop.f32.mrf.mxu2 }
 0x570   : > { %v3150_v27 = vpop.f32.mrf.mxu3 }
 0x571   : > { %v3151_v47 = vadd.f32 %v3150_v27, %v3061_v29  ;;  %3925 = vmatmul.bf16.gmra.mxu2 %v7829_v7 }
 0x573   : > { %v11069_v8 = vadd.f32 %v3151_v47, %v10651_v22  ;;  %v8896_v22 = vld [vmem:[%s12714_s3 + $0x484] sm:$0xf] }
 0x574   : > { %v3064_v46 = vpop.f32.mrf.mxu2  ;;  %v7841_v57 = vor.u32 %v8896_v22, %v7838_v48 }
 0x575   : > { %4014 = vmatmul.bf16.gmra.mxu3 %v7833_v61  ;;  %v7844_v61 = vld [vmem:[%s12714_s3 + $0x490] sm:$0xf] }
 0x578   : > { %v3153_v58 = vpop.f32.mrf.mxu3 }
 0x579   : > { %v3154_v0 = vadd.f32 %v3153_v58, %v3064_v46  ;;  %v8899_v46 = vld [vmem:[%s12714_s3 + $0x494] sm:$0xf0] }
 0x57a   : > { %v7845_v9 = vor.u32 %v8899_v46, %v7844_v61 }
 0x57b   : > { %v11078_v36 = vadd.f32 %v3154_v0, %v10671_v2  ;;  %v12738_v0 = vld [vmem:[#allocation2_spill] sm:$0xff] }
 0x57c   : > { %v3066_v24 = vpop.f32.mrf.mxu2  ;;  %vm4092_vm6 = vcmp.ge.s32.totalorder %v12738_v0, 2  ;;  %vm4093_vm7 = vcmp.lt.s32.totalorder %v12738_v0, 18 }
 0x57d   : > { %12736 = vst [vmem:[#allocation12_spill] sm:$0xff] %v11078_v36  ;;  %vm11098_vm8 = vmand %vm4092_vm6, %vm4093_vm7 }
 0x580   : > { %v3155_v29 = vpop.f32.mrf.mxu3 }
 0x581   : > { %v3156_v7 = vadd.f32 %v3155_v29, %v3066_v24  ;;  %3930 = vmatmul.bf16.gmra.mxu2 %v7837_v52  ;;  %v8898_v24 = vld [vmem:[%s12714_s3 + $0x494] sm:$0xf]  ;;  %v7846_v52 = vld [vmem:[%s12714_s3 + $0x498] sm:$0xf0] }
 0x582   : > { %v7849_v29 = vor.u32 %v8898_v24, %v7846_v52  ;;  %v8900_v52 = vld [vmem:[%s12714_s3 + $0x4a4] sm:$0xf] }
 0x583   : > { %v11087_v51 = vadd.f32 %v3156_v7, %v10679_v26 }
 0x584   : > { %v3891_v27 = vpop.f32.mrf.mxu2 }
 0x585   : > { %12737 = vst [vmem:[#allocation13_spill] sm:$0xff] %v11087_v51  ;;  %4019 = vmatmul.bf16.gmra.mxu3 %v7841_v57 }
 0x588   : > { %v3980_v2 = vpop.f32.mrf.mxu3 }
 0x589   : > { %v3981_v47 = vadd.f32 %v3980_v2, %v3891_v27 }
 0x58b   : > { %v4060_v58 = vadd.f32 %v3981_v47, %v10700_v14 }
 0x58c   : > { %v3893_v26 = vpop.f32.mrf.mxu2 }
 0x58d   : > { %v4097_v14 = vsel %vm11098_vm8, %v4060_v58, 0.0  ;;  %v7852_v58 = vld [vmem:[%s12714_s3 + $0x4a0] sm:$0xf] }
 0x58e   : > { %v4129_v57 = vpack.c.bf16 %v4097_v14, %v4097_v14 }
 0x590   : > { %v3982_v22 = vpop.f32.mrf.mxu3  ;;  %v4418_v61 = vunpack.c.l.b16 %v4129_v57 }
 0x591   : > { %v3983_v48 = vadd.f32 %v3982_v22, %v3893_v26  ;;  %3935 = vmatmul.bf16.gmra.mxu2 %v7845_v9  ;;  %v7854_v22 = vld [vmem:[%s12714_s3 + $0x4a8] sm:$0xf0] }
 0x593   : > { %v4061_v7 = vadd.f32 %v3983_v48, %v10709_v42  ;;  %v8901_v42 = vld [vmem:[%s12714_s3 + $0x4a4] sm:$0xf0] }
 0x594   : > { %v3896_v27 = vpop.f32.mrf.mxu2  ;;  %v7853_v24 = vor.u32 %v8901_v42, %v7852_v58  ;;  %v7860_v42 = vld [vmem:[%s12714_s3 + $0x4b0] sm:$0xf] }
 0x595   : > { %v4098_v2 = vsel %vm11098_vm8, %v4061_v7, 0.0  ;;  %4024 = vmatmul.bf16.gmra.mxu3 %v7849_v29  ;;  %v7857_v7 = vor.u32 %v8900_v52, %v7854_v22  ;;  %v8902_v52 = vld [vmem:[%s12714_s3 + $0x4b4] sm:$0xf]  ;;  %v7862_v22 = vld [vmem:[%s12714_s3 + $0x4b8] sm:$0xf0] }
 0x596   : > { %v4130_v47 = vpack.c.bf16 %v4098_v2, %v4098_v2 }
 0x598   : > { %v4419_v46 = vunpack.c.l.b16 %v4130_v47  ;;  %v3985_v0 = vpop.f32.mrf.mxu3 }
 0x599   : > { %v3986_v51 = vadd.f32 %v3985_v0, %v3896_v27 }
 0x59a   : > { %v11113_v36 = vpack.c.b16 %v4419_v46, %v4418_v61 }
 0x59b   : > { %v4062_v26 = vadd.f32 %v3986_v51, %v10730_v45 }
 0x59c   : > { %v3898_v9 = vpop.f32.mrf.mxu2 }
 0x59d   : > { %v4099_v48 = vsel %vm11098_vm8, %v4062_v26, 0.0 }
 0x59e   : > { %v4131_v45 = vpack.c.bf16 %v4099_v48, %v4099_v48 }
 0x5a0   : > { %v3987_v14 = vpop.f32.mrf.mxu3  ;;  %v4420_v47 = vunpack.c.l.b16 %v4131_v45 }
 0x5a1   : > { %v3988_v29 = vadd.f32 %v3987_v14, %v3898_v9  ;;  %3940 = vmatmul.bf16.gmra.mxu2 %v7853_v24 }
 0x5a3   : > { %v4063_v57 = vadd.f32 %v3988_v29, %v10739_v19  ;;  %v8903_v19 = vld [vmem:[%s12714_s3 + $0x4b4] sm:$0xf0] }
 0x5a4   : > { %v3901_v51 = vpop.f32.mrf.mxu2  ;;  %v7861_v24 = vor.u32 %v8903_v19, %v7860_v42  ;;  %v7868_v42 = vld [vmem:[%s12714_s3 + $0x4c0] sm:$0xf] }
 0x5a5   : > { %v4100_v27 = vsel %vm11098_vm8, %v4063_v57, 0.0  ;;  %4029 = vmatmul.bf16.gmra.mxu3 %v7857_v7  ;;  %v7865_v7 = vor.u32 %v8902_v52, %v7862_v22  ;;  %v7870_v52 = vld [vmem:[%s12714_s3 + $0x4c8] sm:$0xf0] }
 0x5a6   : > { %v4132_v2 = vpack.c.bf16 %v4100_v27, %v4100_v27 }
 0x5a8   : > { %v4421_v61 = vunpack.c.l.b16 %v4132_v2  ;;  %v3990_v46 = vpop.f32.mrf.mxu3 }
 0x5a9   : > { %v3991_v0 = vadd.f32 %v3990_v46, %v3901_v51 }
 0x5aa   : > { %v11133_v58 = vpack.c.b16 %v4421_v61, %v4420_v47 }
 0x5ab   : > { %v4064_v26 = vadd.f32 %v3991_v0, %v10762_v54 }
 0x5ac   : > { %v3903_v9 = vpop.f32.mrf.mxu2 }
 0x5ad   : > { %v4101_v48 = vsel %vm11098_vm8, %v4064_v26, 0.0 }
 0x5ae   : > { %v4133_v54 = vpack.c.bf16 %v4101_v48, %v4101_v48 }
 0x5b0   : > { %v3992_v14 = vpop.f32.mrf.mxu3  ;;  %v4422_v2 = vunpack.c.l.b16 %v4133_v54 }
 0x5b1   : > { %v3993_v29 = vadd.f32 %v3992_v14, %v3903_v9  ;;  %3945 = vmatmul.bf16.gmra.mxu2 %v7861_v24  ;;  %v8904_v24 = vld [vmem:[%s12714_s3 + $0x4c4] sm:$0xf] }
 0x5b3   : > { %v4065_v57 = vadd.f32 %v3993_v29, %v10775_v6  ;;  %v8905_v6 = vld [vmem:[%s12714_s3 + $0x4c4] sm:$0xf0]  ;;  %v7873_v29 = vor.u32 %v8904_v24, %v7870_v52  ;;  %v7878_v24 = vld [vmem:[%s12714_s3 + $0x4d8] sm:$0xf0] }
 0x5b4   : > { %v3906_v45 = vpop.f32.mrf.mxu2  ;;  %v7869_v9 = vor.u32 %v8905_v6, %v7868_v42  ;;  %v8907_v42 = vld [vmem:[%s12714_s3 + $0x4d4] sm:$0xf0] }
 0x5b5   : > { %v4102_v51 = vsel %vm11098_vm8, %v4065_v57, 0.0  ;;  %4034 = vmatmul.bf16.gmra.mxu3 %v7865_v7 }
 0x5b6   : > { %v4134_v27 = vpack.c.bf16 %v4102_v51, %v4102_v51  ;;  %v3550_v51 = vadd.f32 %v10764_v3, %v10757_v4  ;;  %v3552_v4 = vadd.f32 %v10777_v31, %v10773_v18 }
 0x5b8   : > { %v4423_v47 = vunpack.c.l.b16 %v4134_v27  ;;  %v3995_v61 = vpop.f32.mrf.mxu3  ;;  %v3617_v6 = vadd.f32 %v3550_v51, %v10824_v55 }
 0x5b9   : > { %v3996_v46 = vadd.f32 %v3995_v61, %v3906_v45 }
 0x5ba   : > { %v11153_v0 = vpack.c.b16 %v4423_v47, %v4422_v2 }
 0x5bb   : > { %v4066_v19 = vadd.f32 %v3996_v46, %v10800_v38 }
 0x5bc   : > { %v3908_v26 = vpop.f32.mrf.mxu2 }
 0x5bd   : > { %v4103_v14 = vsel %vm11098_vm8, %v4066_v19, 0.0 }
 0x5be   : > { %v4135_v38 = vpack.c.bf16 %v4103_v14, %v4103_v14 }
 0x5c0   : > { %v3997_v22 = vpop.f32.mrf.mxu3  ;;  %v4424_v27 = vunpack.c.l.b16 %v4135_v38 }
 0x5c1   : > { %v3998_v48 = vadd.f32 %v3997_v22, %v3908_v26  ;;  %3950 = vmatmul.bf16.gmra.mxu2 %v7869_v9  ;;  %v8906_v9 = vld [vmem:[%s12714_s3 + $0x4d4] sm:$0xf]  ;;  %v3618_v22 = vadd.f32 %v3552_v4, %v10849_v1 }
 0x5c3   : > { %v4067_v7 = vadd.f32 %v3998_v48, %v10813_v12  ;;  %v7876_v12 = vld [vmem:[%s12714_s3 + $0x4d0] sm:$0xf]  ;;  %v7881_v48 = vor.u32 %v8906_v9, %v7878_v24 }
 0x5c4   : > { %v3911_v57 = vpop.f32.mrf.mxu2  ;;  %v7877_v26 = vor.u32 %v8907_v42, %v7876_v12 }
 0x5c5   : > { %v4104_v54 = vsel %vm11098_vm8, %v4067_v7, 0.0  ;;  %4039 = vmatmul.bf16.gmra.mxu3 %v7873_v29 }
 0x5c6   : > { %v4136_v45 = vpack.c.bf16 %v4104_v54, %v4104_v54 }
 0x5c8   : > { %v4425_v2 = vunpack.c.l.b16 %v4136_v45  ;;  %v4000_v47 = vpop.f32.mrf.mxu3 }
 0x5c9   : > { %v4001_v61 = vadd.f32 %v4000_v47, %v3911_v57  ;;  %v3555_v57 = vadd.f32 %v10802_v32, %v10795_v23  ;;  %v8909_v47 = vld [vmem:[%s12714_s3 + $0x4e4] sm:$0xf0]  ;;  %v3557_v23 = vadd.f32 %v10815_v53, %v10811_v21 }
 0x5ca   : > { %v11175_v46 = vpack.c.b16 %v4425_v2, %v4424_v27  ;;  %v7884_v2 = vld [vmem:[%s12714_s3 + $0x4e0] sm:$0xf] }
 0x5cb   : > { %v4068_v3 = vadd.f32 %v4001_v61, %v3617_v6  ;;  %v3619_v61 = vadd.f32 %v3555_v57, %v10862_v62  ;;  %v7885_v42 = vor.u32 %v8909_v47, %v7884_v2  ;;  %v8908_v6 = vld [vmem:[%s12714_s3 + $0x4e4] sm:$0xf]  ;;  %v3620_v62 = vadd.f32 %v3557_v23, %v10887_v59 }
 0x5cc   : > { %v3913_v19 = vpop.f32.mrf.mxu2 }
 0x5cd   : > { %v4105_v55 = vsel %vm11098_vm8, %v4068_v3, 0.0 }
 0x5ce   : > { %v4137_v31 = vpack.c.bf16 %v4105_v55, %v4105_v55  ;;  %v3560_v55 = vadd.f32 %v10840_v44, %v10835_v20  ;;  %v3562_v20 = vadd.f32 %v10853_v56, %v10851_v37 }
 0x5d0   : > { %v4002_v52 = vpop.f32.mrf.mxu3  ;;  %v4426_v54 = vunpack.c.l.b16 %v4137_v31 }
 0x5d1   : > { %v4003_v14 = vadd.f32 %v4002_v52, %v3913_v19  ;;  %3955 = vmatmul.bf16.gmra.mxu2 %v7877_v26  ;;  %v7886_v19 = vld [vmem:[%s12714_s3 + $0x4e8] sm:$0xf0] }
 0x5d2   : > { %v7889_v9 = vor.u32 %v8908_v6, %v7886_v19 }
 0x5d3   : > { %v4069_v18 = vadd.f32 %v4003_v14, %v3618_v22 }
 0x5d4   : > { %v3916_v29 = vpop.f32.mrf.mxu2 }
 0x5d5   : > { %v4106_v7 = vsel %vm11098_vm8, %v4069_v18, 0.0  ;;  %4044 = vmatmul.bf16.gmra.mxu3 %v7881_v48 }
 0x5d6   : > { %v4138_v38 = vpack.c.bf16 %v4106_v7, %v4106_v7  ;;  %v8911_v7 = vld [vmem:[%s12714_s3 + $0x4f4] sm:$0xf0] }
 0x5d8   : > { %v4427_v45 = vunpack.c.l.b16 %v4138_v38  ;;  %v4005_v1 = vpop.f32.mrf.mxu3  ;;  %v3621_v38 = vadd.f32 %v3560_v55, %v10900_v10  ;;  %v3622_v10 = vadd.f32 %v3562_v20, %v10909_v39 }
 0x5d9   : > { %v4006_v51 = vadd.f32 %v4005_v1, %v3916_v29  ;;  %v7892_v29 = vld [vmem:[%s12714_s3 + $0x4f0] sm:$0xf]  ;;  %v7894_v1 = vld [vmem:[%s12714_s3 + $0x4f8] sm:$0xf0] }
 0x5da   : > { %v11199_v27 = vpack.c.b16 %v4427_v45, %v4426_v54  ;;  %v7893_v54 = vor.u32 %v8911_v7, %v7892_v29  ;;  %v8910_v45 = vld [vmem:[%s12714_s3 + $0x4f4] sm:$0xf] }
 0x5db   : > { %v4070_v32 = vadd.f32 %v4006_v51, %v3619_v61  ;;  %v7897_v61 = vor.u32 %v8910_v45, %v7894_v1 }
 0x5dc   : > { %v3918_v12 = vpop.f32.mrf.mxu2  ;;  %4474 = vrot.lane.b32.xlu1 %v11199_v27, %s9132_s10 }
 0x5dd   : > { %v4107_v3 = vsel %vm11098_vm8, %v4070_v32, 0.0 }
 0x5de   : > { %v4139_v53 = vpack.c.bf16 %v4107_v3, %v4107_v3 }
 0x5e0   : > { %v4007_v4 = vpop.f32.mrf.mxu3  ;;  %v4428_v14 = vunpack.c.l.b16 %v4139_v53 }
 0x5e1   : > { %v4008_v26 = vadd.f32 %v4007_v4, %v3918_v12  ;;  %3960 = vmatmul.bf16.gmra.mxu2 %v7885_v42  ;;  %v3565_v42 = vadd.f32 %v10878_v40, %v10873_v17 }
 0x5e3   : > { %v4071_v21 = vadd.f32 %v4008_v26, %v3620_v62  ;;  %v3623_v3 = vadd.f32 %v3565_v42, %v10922_v35 }
 0x5e4   : > { %v3921_v24 = vpop.f32.mrf.mxu2 }
 0x5e5   : > { %v4108_v52 = vsel %vm11098_vm8, %v4071_v21, 0.0  ;;  %4049 = vmatmul.bf16.gmra.mxu3 %v7889_v9  ;;  %v12741_v9 = vld [vmem:[#allocation3_spill] sm:$0xff]  ;;  %v12742_v21 = vld [vmem:[#allocation4_spill] sm:$0xff] }
 0x5e6   : > { %v4140_v22 = vpack.c.bf16 %v4108_v52, %v4108_v52  ;;  %v3567_v53 = vadd.f32 %v12742_v21, %v12741_v9 }
 0x5e8   : > { %v4429_v48 = vunpack.c.l.b16 %v4140_v22  ;;  %v4010_v59 = vpop.f32.mrf.mxu3  ;;  %v3624_v22 = vadd.f32 %v3567_v53, %v10931_v15 }
 0x5e9   : > { %v4011_v18 = vadd.f32 %v4010_v59, %v3921_v24 }
 0x5ea   : > { %v11225_v31 = vpack.c.b16 %v4429_v48, %v4428_v14 }
 0x5eb   : > { %v4072_v44 = vadd.f32 %v4011_v18, %v3621_v38 }
 0x5ec   : > { %v3923_v57 = vpop.f32.mrf.mxu2  ;;  %4476 = vrot.lane.b32.xlu2 %v11225_v31, %s9132_s10 }
 0x5ed   : > { %v4109_v2 = vsel %vm11098_vm8, %v4072_v44, 0.0  ;;  %v12743_v44 = vld [vmem:[#allocation5_spill] sm:$0xff] }
 0x5ee   : > { %v4141_v56 = vpack.c.bf16 %v4109_v2, %v4109_v2 }
 0x5f0   : > { %v4012_v51 = vpop.f32.mrf.mxu3  ;;  %v4430_v6 = vunpack.c.l.b16 %v4141_v56 }
 0x5f1   : > { %v4013_v47 = vadd.f32 %v4012_v51, %v3923_v57  ;;  %3965 = vmatmul.bf16.gmra.mxu2 %v7893_v54  ;;  %v12744_v54 = vld [vmem:[#allocation6_spill] sm:$0xff] }
 0x5f2   : > { %v3572_v45 = vadd.f32 %v12744_v54, %v12743_v44 }
 0x5f3   : > { %v4073_v37 = vadd.f32 %v4013_v47, %v3622_v10 }
 0x5f4   : > { %v3926_v12 = vpop.f32.mrf.mxu2  ;;  %v3626_v51 = vadd.f32 %v3572_v45, %v10953_v30 }
 0x5f5   : > { %v4110_v23 = vsel %vm11098_vm8, %v4073_v37, 0.0  ;;  %4054 = vmatmul.bf16.gmra.mxu3 %v7897_v61 }
 0x5f6   : > { %v4142_v32 = vpack.c.bf16 %v4110_v23, %v4110_v23 }
 0x5f8   : > { %v4431_v19 = vunpack.c.l.b16 %v4142_v32  ;;  %v4015_v39 = vpop.f32.mrf.mxu3 }
 0x5f9   : > { %v4016_v4 = vadd.f32 %v4015_v39, %v3926_v12  ;;  %v12745_v39 = vld [vmem:[#allocation7_spill] sm:$0xff] }
 0x5fa   : > { %v11251_v62 = vpack.c.b16 %v4431_v19, %v4430_v6 }
 0x5fb   : > { %v4074_v24 = vadd.f32 %v4016_v4, %v3623_v3  ;;  %v12746_v4 = vld [vmem:[#allocation8_spill] sm:$0xff] }
 0x5fc   : > { %v3928_v26 = vpop.f32.mrf.mxu2  ;;  %4478 = vrot.lane.b32.xlu0 %v11251_v62, %s9132_s10  ;;  %v3577_v3 = vadd.f32 %v12746_v4, %v12745_v39 }
 0x5fd   : > { %v4111_v17 = vsel %vm11098_vm8, %v4074_v24, 0.0 }
 0x5fe   : > { %v4143_v14 = vpack.c.bf16 %v4111_v17, %v4111_v17  ;;  %v3628_v9 = vadd.f32 %v3577_v3, %v10975_v43 }
 0x600   : > { %v4017_v52 = vpop.f32.mrf.mxu3  ;;  %v4432_v18 = vunpack.c.l.b16 %v4143_v14 }
 0x601   : > { %v4018_v40 = vadd.f32 %v4017_v52, %v3928_v26 }
 0x603   : > { %v4075_v55 = vadd.f32 %v4018_v40, %v3624_v22 }
 0x604   : > { %v3931_v48 = vpop.f32.mrf.mxu2 }
 0x605   : > { %v4112_v35 = vsel %vm11098_vm8, %v4075_v55, 0.0 }
 0x606   : > { %v4144_v59 = vpack.c.bf16 %v4112_v35, %v4112_v35 }
 0x608   : > { %v4433_v29 = vunpack.c.l.b16 %v4144_v59  ;;  %v4020_v7 = vpop.f32.mrf.mxu3 }
 0x609   : > { %v4021_v38 = vadd.f32 %v4020_v7, %v3931_v48 }
 0x60a   : > { %v11263_v57 = vpack.c.b16 %v4433_v29, %v4432_v18  ;;  %v12747_v18 = vld [vmem:[#allocation9_spill] sm:$0xff]  ;;  %v12748_v29 = vld [vmem:[#allocation10_spill] sm:$0xff] }
 0x60b   : > { %v4076_v20 = vadd.f32 %v4021_v38, %v10944_v11  ;;  %v3582_v7 = vadd.f32 %v12748_v29, %v12747_v18 }
 0x60c   : > { %v3933_v15 = vpop.f32.mrf.mxu2  ;;  %4868 = vmatpush.bf16.msrb.mxu2 %v11263_v57  ;;  %4480 = vrot.lane.b32.xlu1 %v11263_v57, %s9132_s10 }
 0x60d   : > { %v4113_v10 = vsel %vm11098_vm8, %v4076_v20, 0.0  ;;  %v3630_v20 = vadd.f32 %v3582_v7, %v10997_v60 }
 0x60e   : > { %v4145_v11 = vpack.c.bf16 %v4113_v10, %v4113_v10 }
 0x610   : > { %v4022_v1 = vpop.f32.mrf.mxu3  ;;  %4869 = vmatpush.bf16.msrb.mxu2 %v11251_v62  ;;  %v4434_v12 = vunpack.c.l.b16 %v4145_v11 }
 0x611   : > { %v4023_v2 = vadd.f32 %v4022_v1, %v3933_v15 }
 0x613   : > { %v4077_v47 = vadd.f32 %v4023_v2, %v3626_v51 }
 0x614   : > { %v3936_v61 = vpop.f32.mrf.mxu2  ;;  %4870 = vmatpush.bf16.msrb.mxu2 %v11225_v31 }
 0x615   : > { %v4114_v37 = vsel %vm11098_vm8, %v4077_v47, 0.0 }
 0x616   : > { %v4146_v56 = vpack.c.bf16 %v4114_v37, %v4114_v37 }
 0x618   : > { %v4435_v23 = vunpack.c.l.b16 %v4146_v56  ;;  %v4025_v32 = vpop.f32.mrf.mxu3  ;;  %4871 = vmatpush.bf16.msrb.mxu2 %v11199_v27  ;;  %v12749_v56 = vld [vmem:[#allocation11_spill] sm:$0xff] }
 0x619   : > { %v4026_v42 = vadd.f32 %v4025_v32, %v3936_v61  ;;  %v3591_v32 = vpop.f32.mrf.mxu1 }
 0x61a   : > { %v11279_v30 = vpack.c.b16 %v4435_v23, %v4434_v12  ;;  %v3587_v12 = vadd.f32 %v12749_v56, %v10977_v5  ;;  %v3502_v23 = vpop.f32.mrf.mxu0 }
 0x61b   : > { %v4078_v6 = vadd.f32 %v4026_v42, %v10966_v50 }
 0x61c   : > { %v3938_v19 = vpop.f32.mrf.mxu2  ;;  %4872 = vmatpush.bf16.msrb.mxu2 %v11175_v46 }
 0x61d   : > { %v4115_v21 = vsel %vm11098_vm8, %v4078_v6, 0.0  ;;  %v3632_v6 = vadd.f32 %v3587_v12, %v11015_v25 }
 0x61e   : > { %v4147_v52 = vpack.c.bf16 %v4115_v21, %v4115_v21 }
 0x620   : > { %v4027_v26 = vpop.f32.mrf.mxu3  ;;  %4873 = vmatpush.bf16.msrb.mxu2 %v11153_v0  ;;  %v4436_v40 = vunpack.c.l.b16 %v4147_v52 }
 0x621   : > { %v4028_v53 = vadd.f32 %v4027_v26, %v3938_v19 }
 0x622   : > { %v3505_v21 = vpop.f32.mrf.mxu0 }
 0x623   : > { %v4079_v24 = vadd.f32 %v4028_v53, %v3628_v9  ;;  %v3594_v53 = vpop.f32.mrf.mxu1 }
 0x624   : > { %v3941_v22 = vpop.f32.mrf.mxu2  ;;  %4874 = vmatpush.bf16.msrb.mxu2 %v11133_v58 }
 0x625   : > { %v4116_v50 = vsel %vm11098_vm8, %v4079_v24, 0.0 }
 0x626   : > { %v4148_v17 = vpack.c.bf16 %v4116_v50, %v4116_v50 }
 0x628   : > { %v4437_v55 = vunpack.c.l.b16 %v4148_v17  ;;  %v4030_v14 = vpop.f32.mrf.mxu3  ;;  %4875 = vmatpush.bf16.msrb.mxu2 %v11113_v36 }
 0x629   : > { %v4031_v48 = vadd.f32 %v4030_v14, %v3941_v22 }
 0x62a   : > { %v11293_v43 = vpack.c.b16 %v4437_v55, %v4436_v40  ;;  %v3592_v40 = vadd.f32 %v3591_v32, %v3502_v23 }
 0x62b   : > { %v4080_v35 = vadd.f32 %v4031_v48, %v10988_v41  ;;  %v3507_v48 = vpop.f32.mrf.mxu0  ;;  %v3596_v18 = vpop.f32.mrf.mxu1 }
 0x62c   : > { %v3943_v59 = vpop.f32.mrf.mxu2  ;;  %v3634_v14 = vadd.f32 %v3592_v40, %v11033_v63 }
 0x62d   : > { %v4117_v15 = vsel %vm11098_vm8, %v4080_v35, 0.0 }
 0x62e   : > { %v4149_v45 = vpack.c.bf16 %v4117_v15, %v4117_v15 }
 0x630   : > { %v4032_v38 = vpop.f32.mrf.mxu3  ;;  %v4438_v2 = vunpack.c.l.b16 %v4149_v45 }
 0x631   : > { %v4033_v44 = vadd.f32 %v4032_v38, %v3943_v59 }
 0x633   : > { %v4081_v54 = vadd.f32 %v4033_v44, %v3630_v20  ;;  %v3595_v44 = vadd.f32 %v3594_v53, %v3505_v21 }
 0x634   : > { %v3946_v1 = vpop.f32.mrf.mxu2 }
 0x635   : > { %v4118_v51 = vsel %vm11098_vm8, %v4081_v54, 0.0  ;;  %v3635_v63 = vadd.f32 %v3595_v44, %v11042_v28 }
 0x636   : > { %v4150_v10 = vpack.c.bf16 %v4118_v51, %v4118_v51 }
 0x638   : > { %v4439_v41 = vunpack.c.l.b16 %v4150_v10  ;;  %v4035_v47 = vpop.f32.mrf.mxu3  ;;  %v3510_v10 = vpop.f32.mrf.mxu0 }
 0x639   : > { %v4036_v11 = vadd.f32 %v4035_v47, %v3946_v1  ;;  %v3597_v47 = vadd.f32 %v3596_v18, %v3507_v48 }
 0x63a   : > { %v11303_v61 = vpack.c.b16 %v4439_v41, %v4438_v2  ;;  %v3599_v2 = vpop.f32.mrf.mxu1 }
 0x63b   : > { %v4082_v37 = vadd.f32 %v4036_v11, %v11006_v33 }
 0x63c   : > { %v3948_v60 = vpop.f32.mrf.mxu2 }
 0x63d   : > { %v4119_v19 = vsel %vm11098_vm8, %v4082_v37, 0.0 }
 0x63e   : > { %v4151_v3 = vpack.c.bf16 %v4119_v19, %v4119_v19 }
 0x640   : > { %v4037_v42 = vpop.f32.mrf.mxu3  ;;  %v4440_v24 = vunpack.c.l.b16 %v4151_v3 }
 0x641   : > { %v4038_v39 = vadd.f32 %v4037_v42, %v3948_v60  ;;  %v3636_v60 = vadd.f32 %v3597_v47, %v11051_v34  ;;  %v12751_v47 = vld [vmem:[#allocation13_spill] sm:$0xff] }
 0x642   : > { %v3601_v28 = vpop.f32.mrf.mxu1 }
 0x643   : > { %v4083_v4 = vadd.f32 %v4038_v39, %v3632_v6  ;;  %v3512_v6 = vpop.f32.mrf.mxu0 }
 0x644   : > { %v3951_v26 = vpop.f32.mrf.mxu2 }
 0x645   : > { %v4120_v9 = vsel %vm11098_vm8, %v4083_v4, 0.0  ;;  %v3600_v4 = vadd.f32 %v3599_v2, %v3510_v10 }
 0x646   : > { %v4152_v33 = vpack.c.bf16 %v4120_v9, %v4120_v9 }
 0x647   : > { %v3637_v34 = vadd.f32 %v3600_v4, %v11060_v16  ;;  %v8062_v4 = vld [vmem:[%s12715_s4 + $0x8] sm:$0xf0] }
 0x648   : > { %v4441_v5 = vunpack.c.l.b16 %v4152_v33  ;;  %v4040_v52 = vpop.f32.mrf.mxu3 }
 0x649   : > { %v4041_v22 = vadd.f32 %v4040_v52, %v3951_v26 }
 0x64a   : > { %v11313_v50 = vpack.c.b16 %v4441_v5, %v4440_v24  ;;  %v3602_v24 = vadd.f32 %v3601_v28, %v3512_v6 }
 0x64b   : > { %v4084_v25 = vadd.f32 %v4041_v22, %v11024_v49  ;;  %v3515_v52 = vpop.f32.mrf.mxu0  ;;  %v3604_v22 = vpop.f32.mrf.mxu1 }
 0x64c   : > { %v3953_v17 = vpop.f32.mrf.mxu2 }
 0x64d   : > { %v4121_v35 = vsel %vm11098_vm8, %v4084_v25, 0.0 }
 0x64e   : > { %v4153_v7 = vpack.c.bf16 %v4121_v35, %v4121_v35  ;;  %v4475_v35 = vpop.permute.xlu1 %4474 }
 0x650   : > { %v4042_v55 = vpop.f32.mrf.mxu3  ;;  %v4442_v49 = vunpack.c.l.b16 %v4153_v7 }
 0x651   : > { %v4043_v59 = vadd.f32 %v4042_v55, %v3953_v17  ;;  %v3638_v17 = vadd.f32 %v3602_v24, %v11069_v8  ;;  %v8070_v24 = vld [vmem:[%s12715_s4 + $0x18] sm:$0xf0] }
 0x653   : > { %v4085_v29 = vadd.f32 %v4043_v59, %v3634_v14  ;;  %v3606_v44 = vpop.f32.mrf.mxu1 }
 0x654   : > { %v3956_v38 = vpop.f32.mrf.mxu2 }
 0x655   : > { %v4122_v20 = vsel %vm11098_vm8, %v4085_v29, 0.0  ;;  %v3605_v29 = vadd.f32 %v3604_v22, %v3515_v52 }
 0x656   : > { %v4154_v15 = vpack.c.bf16 %v4122_v20, %v4122_v20 }
 0x658   : > { %v4443_v54 = vunpack.c.l.b16 %v4154_v15  ;;  %v4045_v45 = vpop.f32.mrf.mxu3  ;;  %v3517_v15 = vpop.f32.mrf.mxu0 }
 0x659   : > { %v4046_v1 = vadd.f32 %v4045_v45, %v3956_v38 }
 0x65a   : > { %v11321_v51 = vpack.c.b16 %v4443_v54, %v4442_v49  ;;  %v12750_v54 = vld [vmem:[#allocation12_spill] sm:$0xff] }
 0x65b   : > { %v4086_v11 = vadd.f32 %v4046_v1, %v3635_v63  ;;  %v3639_v45 = vadd.f32 %v3605_v29, %v12750_v54  ;;  %v3607_v1 = vadd.f32 %v3606_v44, %v3517_v15  ;;  %v8916_v29 = vld [vmem:[%s12715_s4 + $0x24] sm:$0xf] }
 0x65c   : > { %v3958_v41 = vpop.f32.mrf.mxu2 }
 0x65d   : > { %v4123_v56 = vsel %vm11098_vm8, %v4086_v11, 0.0  ;;  %v3640_v11 = vadd.f32 %v3607_v1, %v12751_v47  ;;  %v7942_v47 = vld [vmem:[%s12715_s4 + $0x118] sm:$0xf0] }
 0x65e   : > { %v4155_v32 = vpack.c.bf16 %v4123_v56, %v4123_v56 }
 0x660   : > { %v4047_v37 = vpop.f32.mrf.mxu3  ;;  %v4444_v3 = vunpack.c.l.b16 %v4155_v32 }
 0x661   : > { %v4048_v12 = vadd.f32 %v4047_v37, %v3958_v41 }
 0x663   : > { %v4087_v23 = vadd.f32 %v4048_v12, %v3636_v60 }
 0x664   : > { %v3961_v42 = vpop.f32.mrf.mxu2 }
 0x665   : > { %v4124_v19 = vsel %vm11098_vm8, %v4087_v23, 0.0 }
 0x666   : > { %v4156_v39 = vpack.c.bf16 %v4124_v19, %v4124_v19 }
 0x668   : > { %v4445_v26 = vunpack.c.l.b16 %v4156_v39  ;;  %v4050_v9 = vpop.f32.mrf.mxu3 }
 0x669   : > { %v4051_v33 = vadd.f32 %v4050_v9, %v3961_v42  ;;  %v4477_v42 = vpop.permute.xlu2 %4476 }
 0x66a   : > { %v11329_v21 = vpack.c.b16 %v4445_v26, %v4444_v3  ;;  %v8913_v26 = vld [vmem:[%s12715_s4 + $0x4] sm:$0xf0] }
 0x66b   : > { %v4088_v5 = vadd.f32 %v4051_v33, %v3637_v34 }
 0x66c   : > { %v3963_v53 = vpop.f32.mrf.mxu2  ;;  %4492 = vrot.lane.b32.xlu0 %v11329_v21, %s9132_s10 }
 0x66d   : > { %v4125_v40 = vsel %vm11098_vm8, %v4088_v5, 0.0 }
 0x66e   : > { %v4157_v48 = vpack.c.bf16 %v4125_v40, %v4125_v40  ;;  %v4479_v56 = vpop.permute.xlu0 %4478 }
 0x670   : > { %v4052_v25 = vpop.f32.mrf.mxu3  ;;  %v4446_v7 = vunpack.c.l.b16 %v4157_v48 }
 0x671   : > { %v4053_v55 = vadd.f32 %v4052_v25, %v3963_v53  ;;  %v8068_v25 = vld [vmem:[%s12715_s4 + $0x10] sm:$0xf] }
 0x673   : > { %v4089_v14 = vadd.f32 %v4053_v55, %v3638_v17  ;;  %v8915_v17 = vld [vmem:[%s12715_s4 + $0x14] sm:$0xf0] }
 0x674   : > { %4472 = vrot.lane.b32.xlu0 %v11175_v46, %s9132_s10  ;;  %v3966_v18 = vpop.f32.mrf.mxu2  ;;  %v8069_v55 = vor.u32 %v8915_v17, %v8068_v25  ;;  %v8102_v25 = vld [vmem:[%s12715_s4 + $0x58] sm:$0xf0]  ;;  %v8950_v17 = vld [vmem:[%s12715_s4 + $0x134] sm:$0xf] }
 0x675   : > { %v4126_v16 = vsel %vm11098_vm8, %v4089_v14, 0.0 }
 0x676   : > { %v4158_v59 = vpack.c.bf16 %v4126_v16, %v4126_v16 }
 0x678   : > { %v4447_v38 = vunpack.c.l.b16 %v4158_v59  ;;  %v4055_v20 = vpop.f32.mrf.mxu3  ;;  %v8945_v59 = vld [vmem:[%s12715_s4 + $0x104] sm:$0xf0] }
 0x679   : > { %v4056_v8 = vadd.f32 %v4055_v20, %v3966_v18  ;;  %v7934_v18 = vld [vmem:[%s12715_s4 + $0x108] sm:$0xf0]  ;;  %v8076_v20 = vld [vmem:[%s12715_s4 + $0x20] sm:$0xf] }
 0x67a   : > { %v11341_v49 = vpack.c.b16 %v4447_v38, %v4446_v7  ;;  %v8078_v7 = vld [vmem:[%s12715_s4 + $0x28] sm:$0xf0] }
 0x67b   : > { %v4090_v63 = vadd.f32 %v4056_v8, %v3639_v45  ;;  %v8917_v8 = vld [vmem:[%s12715_s4 + $0x24] sm:$0xf0] }
 0x67c   : > { %4494 = vrot.lane.b32.xlu1 %v11341_v49, %s9132_s10  ;;  %4486 = vrot.lane.b32.xlu0 %v11303_v61, %s9132_s10  ;;  %v3968_v2 = vpop.f32.mrf.mxu2  ;;  %v8077_v54 = vor.u32 %v8917_v8, %v8076_v20  ;;  %v8953_v20 = vld [vmem:[%s12715_s4 + $0x144] sm:$0xf0]  ;;  %v8952_v8 = vld [vmem:[%s12715_s4 + $0x144] sm:$0xf] }
 0x67d   : > { %v4127_v37 = vsel %vm11098_vm8, %v4090_v63, 0.0  ;;  %v7940_v63 = vld [vmem:[%s12715_s4 + $0x110] sm:$0xf] }
 0x67e   : > { %v4481_v10 = vpop.permute.xlu1 %4480  ;;  %v4159_v23 = vpack.c.bf16 %v4127_v37, %v4127_v37 }
 0x67f   : > { %4514 = vmatpush.bf16.msrb.mxu0 %v4481_v10  ;;  %v8947_v10 = vld [vmem:[%s12715_s4 + $0x114] sm:$0xf0] }
 0x680   : > { %v4057_v41 = vpop.f32.mrf.mxu3  ;;  %v4448_v19 = vunpack.c.l.b16 %v4159_v23 }
 0x681   : > { %v4058_v60 = vadd.f32 %v4057_v41, %v3968_v2  ;;  %v8918_v2 = vld [vmem:[%s12715_s4 + $0x34] sm:$0xf] }
 0x682   : > { %v8946_v41 = vld [vmem:[%s12715_s4 + $0x114] sm:$0xf] }
 0x683   : > { %v4091_v12 = vadd.f32 %v4058_v60, %v3640_v11  ;;  %4515 = vmatpush.bf16.msrb.mxu0 %v4479_v56  ;;  %v7941_v11 = vor.u32 %v8947_v10, %v7940_v63  ;;  %v8084_v56 = vld [vmem:[%s12715_s4 + $0x30] sm:$0xf]  ;;  %v8925_v63 = vld [vmem:[%s12715_s4 + $0x64] sm:$0xf0] }
 0x684   : > { %4488 = vrot.lane.b32.xlu1 %v11313_v50, %s9132_s10  ;;  %4466 = vrot.lane.b32.xlu0 %v11113_v36, %s9132_s10 }
 0x685   : > { %v4128_v32 = vsel %vm11098_vm8, %v4091_v12, 0.0 }
 0x686   : > { %v4160_v6 = vpack.c.bf16 %v4128_v32, %v4128_v32  ;;  %v7945_v32 = vor.u32 %v8946_v41, %v7942_v47 }
 0x687   : > { %4516 = vmatpush.bf16.msrb.mxu0 %v4477_v42 }
 0x688   : > { %v4449_v28 = vunpack.c.l.b16 %v4160_v6 }
 0x68a   : > { %v11357_v39 = vpack.c.b16 %v4449_v28, %v4448_v19  ;;  %v7948_v28 = vld [vmem:[%s12715_s4 + $0x120] sm:$0xf] }
 0x68b   : > { %4517 = vmatpush.bf16.msrb.mxu0 %v4475_v35  ;;  %v7932_v35 = vld [vmem:[%s12715_s4 + $0x100] sm:$0xf] }
 0x68c   : > { %4957 = vmatpush.bf16.msrb.mxu3 %v11357_v39  ;;  %4496 = vrot.lane.b32.xlu2 %v11357_v39, %s9132_s10 }
 0x68d   : > { %4468 = vrot.lane.b32.xlu1 %v11133_v58, %s9132_s10  ;;  %5249 = vrot.lane.b32.xlu0 %v11225_v31, %s9133_s11 }
 0x690   : > { %4958 = vmatpush.bf16.msrb.mxu3 %v11341_v49 }
 0x694   : > { %4959 = vmatpush.bf16.msrb.mxu3 %v11329_v21  ;;  %4490 = vrot.lane.b32.xlu2 %v11321_v51, %s9132_s10 }
 0x695   : > { %4482 = vrot.lane.b32.xlu1 %v11279_v30, %s9132_s10  ;;  %5269 = vrot.lane.b32.xlu0 %v11357_v39, %s9133_s11 }
 0x698   : > { %4960 = vmatpush.bf16.msrb.mxu3 %v11321_v51 }
 0x69c   : > { %4961 = vmatpush.bf16.msrb.mxu3 %v11313_v50  ;;  %4470 = vrot.lane.b32.xlu2 %v11153_v0, %s9132_s10 }
 0x69d   : > { %5251 = vrot.lane.b32.xlu1 %v11251_v62, %s9133_s11  ;;  %5263 = vrot.lane.b32.xlu0 %v11321_v51, %s9133_s11 }
 0x6a0   : > { %4962 = vmatpush.bf16.msrb.mxu3 %v11303_v61 }
 0x6a4   : > { %4963 = vmatpush.bf16.msrb.mxu3 %v11293_v43  ;;  %4484 = vrot.lane.b32.xlu2 %v11293_v43, %s9132_s10 }
 0x6a5   : > { %5265 = vrot.lane.b32.xlu1 %v11329_v21, %s9133_s11  ;;  %5243 = vrot.lane.b32.xlu0 %v11153_v0, %s9133_s11 }
 0x6a8   : > { %4964 = vmatpush.bf16.msrb.mxu3 %v11279_v30 }
 0x6ac   : > { %5253 = vrot.lane.b32.xlu2 %v11263_v57, %s9133_s11 }
 0x6ad   : > { %5245 = vrot.lane.b32.xlu1 %v11175_v46, %s9133_s11  ;;  %5257 = vrot.lane.b32.xlu0 %v11293_v43, %s9133_s11 }
 0x6b4   : > { %5267 = vrot.lane.b32.xlu2 %v11341_v49, %s9133_s11 }
 0x6b5   : > { %5259 = vrot.lane.b32.xlu1 %v11303_v61, %s9133_s11  ;;  %5704 = vrot.lane.b32.xlu0 %v11263_v57, %s9134_s12 }
 0x6bc   : > { %5247 = vrot.lane.b32.xlu2 %v11199_v27, %s9133_s11 }
 0x6bd   : > { %5239 = vrot.lane.b32.xlu1 %v11113_v36, %s9133_s11  ;;  %5718 = vrot.lane.b32.xlu0 %v11341_v49, %s9134_s12 }
 0x6c4   : > { %5261 = vrot.lane.b32.xlu2 %v11313_v50, %s9133_s11 }
 0x6c5   : > { %5700 = vrot.lane.b32.xlu1 %v11225_v31, %s9134_s12  ;;  %6155 = vrot.lane.b32.xlu0 %v11263_v57, %s9135_s13  ;;  %v8912_v57 = vld [vmem:[%s12715_s4 + $0x4] sm:$0xf] }
 0x6c6   : > { %v8065_v3 = vor.u32 %v8912_v57, %v8062_v4  ;;  %v8948_v57 = vld [vmem:[%s12715_s4 + $0x124] sm:$0xf]  ;;  %v7950_v4 = vld [vmem:[%s12715_s4 + $0x128] sm:$0xf0] }
 0x6c8   : > { %4965 = vmatmul.bf16.vlgmr.msrb.gmra.mxu3 %v8065_v3 }
 0x6cc   : > { %5241 = vrot.lane.b32.xlu2 %v11133_v58, %s9133_s11 }
 0x6cd   : > { %6153 = vrot.lane.b32.xlu1 %v11251_v62, %s9135_s13  ;;  %5714 = vrot.lane.b32.xlu0 %v11321_v51, %s9134_s12 }
 0x6d4   : > { %5255 = vrot.lane.b32.xlu2 %v11279_v30, %s9133_s11  ;;  %s12689_s11 = scalar_lea.vmem %s12716_s5, %s8669_s26 }
 0x6d5   : > { %5712 = vrot.lane.b32.xlu1 %v11313_v50, %s9134_s12  ;;  %5696 = vrot.lane.b32.xlu0 %v11175_v46, %s9134_s12 }
 0x6dc   : > { %5702 = vrot.lane.b32.xlu2 %v11251_v62, %s9134_s12  ;;  %v8060_v62 = vld [vmem:[%s12715_s4] sm:$0xf] }
 0x6dd   : > { %5694 = vrot.lane.b32.xlu1 %v11153_v0, %s9134_s12  ;;  %6167 = vrot.lane.b32.xlu0 %v11329_v21, %s9135_s13 }
 0x6de   : > { %v4493_v13 = vpop.permute.xlu0 %4492 }
 0x6e4   : > { %5716 = vrot.lane.b32.xlu2 %v11329_v21, %s9134_s12  ;;  %v8061_v21 = vor.u32 %v8913_v26, %v8060_v62 }
 0x6e5   : > { %6165 = vrot.lane.b32.xlu1 %v11321_v51, %s9135_s13  ;;  %6149 = vrot.lane.b32.xlu0 %v11199_v27, %s9135_s13 }
 0x6e6   : > { %v4497_v9 = vpop.permute.xlu2 %4496  ;;  %v4473_v33 = vpop.permute.xlu0 %4472  ;;  %4876 = vmatmul.bf16.vlgmr.msrb.gmra.mxu2 %v8061_v21 }
 0x6e7   : > { %4518 = vmatpush.bf16.msrb.mxu0 %v4473_v33  ;;  %4603 = vmatpush.bf16.msra.mxu1 %v4497_v9  ;;  %v8092_v9 = vld [vmem:[%s12715_s4 + $0x40] sm:$0xf]  ;;  %v8921_v33 = vld [vmem:[%s12715_s4 + $0x44] sm:$0xf0] }
 0x6ec   : > { %5698 = vrot.lane.b32.xlu2 %v11199_v27, %s9134_s12  ;;  %v8914_v27 = vld [vmem:[%s12715_s4 + $0x14] sm:$0xf] }
 0x6ed   : > { %5720 = vrot.lane.b32.xlu1 %v11357_v39, %s9134_s12  ;;  %5708 = vrot.lane.b32.xlu0 %v11293_v43, %s9134_s12  ;;  %v8073_v22 = vor.u32 %v8914_v27, %v8070_v24 }
 0x6ee   : > { %v4491_v51 = vpop.permute.xlu2 %4490  ;;  %v4495_v34 = vpop.permute.xlu1 %4494 }
 0x6ef   : > { %v4487_v53 = vpop.permute.xlu0 %4486  ;;  %4604 = vmatpush.bf16.msra.mxu1 %v4495_v34  ;;  %4970 = vmatmul.bf16.gmra.mxu3 %v8073_v22  ;;  %v8093_v34 = vor.u32 %v8921_v33, %v8092_v9  ;;  %v8922_v22 = vld [vmem:[%s12715_s4 + $0x54] sm:$0xf]  ;;  %v8957_v9 = vld [vmem:[%s12715_s4 + $0x164] sm:$0xf0]  ;;  %v8956_v33 = vld [vmem:[%s12715_s4 + $0x164] sm:$0xf] }
 0x6f3   : > { %4605 = vmatpush.bf16.msra.mxu1 %v4493_v13  ;;  %v8920_v13 = vld [vmem:[%s12715_s4 + $0x44] sm:$0xf] }
 0x6f4   : > { %6169 = vrot.lane.b32.xlu2 %v11341_v49, %s9135_s13 }
 0x6f5   : > { %6171 = vrot.lane.b32.xlu1 %v11357_v39, %s9135_s13  ;;  %5690 = vrot.lane.b32.xlu0 %v11113_v36, %s9134_s12  ;;  %v8949_v39 = vld [vmem:[%s12715_s4 + $0x124] sm:$0xf0] }
 0x6f6   : > { %v4489_v5 = vpop.permute.xlu1 %4488  ;;  %v4471_v52 = vpop.permute.xlu2 %4470  ;;  %4881 = vmatmul.bf16.gmra.mxu2 %v8069_v55  ;;  %v7949_v62 = vor.u32 %v8949_v39, %v7948_v28  ;;  %v8927_v28 = vld [vmem:[%s12715_s4 + $0x74] sm:$0xf0] }
 0x6f7   : > { %v4467_v40 = vpop.permute.xlu0 %4466  ;;  %4519 = vmatpush.bf16.msrb.mxu0 %v4471_v52  ;;  %4606 = vmatpush.bf16.msra.mxu1 %v4491_v51  ;;  %v7953_v51 = vor.u32 %v8948_v57, %v7950_v4  ;;  %v8951_v52 = vld [vmem:[%s12715_s4 + $0x134] sm:$0xf0] }
 0x6fb   : > { %4607 = vmatpush.bf16.msra.mxu1 %v4489_v5  ;;  %v7956_v5 = vld [vmem:[%s12715_s4 + $0x130] sm:$0xf] }
 0x6fc   : > { %6151 = vrot.lane.b32.xlu2 %v11225_v31, %s9135_s13  ;;  %v7933_v31 = vor.u32 %v8945_v59, %v7932_v35  ;;  %v7957_v55 = vor.u32 %v8951_v52, %v7956_v5  ;;  %v8923_v35 = vld [vmem:[%s12715_s4 + $0x54] sm:$0xf0]  ;;  %v8124_v5 = vld [vmem:[%s12715_s4 + $0x80] sm:$0xf] }
 0x6fd   : > { %6147 = vrot.lane.b32.xlu1 %v11175_v46, %s9135_s13  ;;  %6161 = vrot.lane.b32.xlu0 %v11303_v61, %s9135_s13  ;;  %v8944_v46 = vld [vmem:[%s12715_s4 + $0x104] sm:$0xf] }
 0x6fe   : > { %v4485_v14 = vpop.permute.xlu2 %4484  ;;  %v7937_v49 = vor.u32 %v8944_v46, %v7934_v18 }
 0x6ff   : > { %v4469_v48 = vpop.permute.xlu1 %4468  ;;  %v5250_v16 = vpop.permute.xlu0 %5249  ;;  %4608 = vmatpush.bf16.msra.mxu1 %v4487_v53 }
 0x700   : > { %4520 = vmatpush.bf16.msrb.mxu0 %v4469_v48  ;;  %v8105_v48 = vor.u32 %v8922_v22, %v8102_v25 }
 0x703   : > { %4609 = vmatpush.bf16.msra.mxu1 %v4485_v14 }
 0x704   : > { %4521 = vmatpush.bf16.msrb.mxu0 %v4467_v40  ;;  %5710 = vrot.lane.b32.xlu2 %v11303_v61, %s9134_s12  ;;  %v8081_v61 = vor.u32 %v8916_v29, %v8078_v7  ;;  %v7958_v40 = vld [vmem:[%s12715_s4 + $0x138] sm:$0xf0] }
 0x705   : > { %5706 = vrot.lane.b32.xlu1 %v11279_v30, %s9134_s12  ;;  %6141 = vrot.lane.b32.xlu0 %v11113_v36, %s9135_s13 }
 0x706   : > { %v5254_v38 = vpop.permute.xlu2 %5253  ;;  %4975 = vmatmul.bf16.gmra.mxu3 %v8081_v61  ;;  %4886 = vmatmul.bf16.gmra.mxu2 %v8077_v54 }
 0x707   : > { %v4483_v15 = vpop.permute.xlu1 %4482  ;;  %v5270_v44 = vpop.permute.xlu0 %5269  ;;  %4522 = vmatmul.bf16.vlgmr.msrb.gmra.mxu0 %v7933_v31  ;;  %v7961_v31 = vor.u32 %v8950_v17, %v7958_v40 }
 0x708   : > { %5287 = vmatpush.bf16.msra.mxu0 %v5254_v38  ;;  %4610 = vmatpush.bf16.msra.mxu1 %v4483_v15  ;;  %v7964_v38 = vld [vmem:[%s12715_s4 + $0x140] sm:$0xf]  ;;  %v7966_v15 = vld [vmem:[%s12715_s4 + $0x148] sm:$0xf0] }
 0x709   : > { %v7965_v54 = vor.u32 %v8953_v20, %v7964_v38  ;;  %v8930_v38 = vld [vmem:[%s12715_s4 + $0x94] sm:$0xf] }
 0x70b   : > { %4611 = vmatmul.bf16.vlgmr.msra.gmra.mxu1 %v7937_v49  ;;  %v8110_v49 = vld [vmem:[%s12715_s4 + $0x68] sm:$0xf0] }
 0x70c   : > { %5376 = vmatpush.bf16.msrb.mxu1 %v5270_v44  ;;  %5692 = vrot.lane.b32.xlu2 %v11133_v58, %s9134_s12  ;;  %v8924_v44 = vld [vmem:[%s12715_s4 + $0x64] sm:$0xf] }
 0x70d   : > { %6143 = vrot.lane.b32.xlu1 %v11133_v58, %s9135_s13  ;;  %v8086_v58 = vld [vmem:[%s12715_s4 + $0x38] sm:$0xf0] }
 0x70e   : > { %v5268_v36 = vpop.permute.xlu2 %5267  ;;  %v8089_v37 = vor.u32 %v8918_v2, %v8086_v58  ;;  %v7969_v58 = vor.u32 %v8952_v8, %v7966_v15  ;;  %v8134_v15 = vld [vmem:[%s12715_s4 + $0x98] sm:$0xf0] }
 0x70f   : > { %v5252_v45 = vpop.permute.xlu1 %5251  ;;  %v5264_v1 = vpop.permute.xlu0 %5263 }
 0x710   : > { %5377 = vmatpush.bf16.msrb.mxu1 %v5268_v36  ;;  %5288 = vmatpush.bf16.msra.mxu0 %v5252_v45  ;;  %v8113_v45 = vor.u32 %v8924_v44, %v8110_v49 }
 0x714   : > { %5289 = vmatpush.bf16.msra.mxu0 %v5250_v16  ;;  %6163 = vrot.lane.b32.xlu2 %v11313_v50, %s9135_s13  ;;  %v8919_v50 = vld [vmem:[%s12715_s4 + $0x34] sm:$0xf0]  ;;  %v8100_v16 = vld [vmem:[%s12715_s4 + $0x50] sm:$0xf] }
 0x715   : > { %6157 = vrot.lane.b32.xlu1 %v11279_v30, %s9135_s13  ;;  %v8085_v42 = vor.u32 %v8919_v50, %v8084_v56  ;;  %v8101_v18 = vor.u32 %v8923_v35, %v8100_v16  ;;  %v8955_v56 = vld [vmem:[%s12715_s4 + $0x154] sm:$0xf0]  ;;  %v8954_v50 = vld [vmem:[%s12715_s4 + $0x154] sm:$0xf]  ;;  %v7988_v16 = vld [vmem:[%s12715_s4 + $0x170] sm:$0xf] }
 0x716   : > { %v5248_v60 = vpop.permute.xlu2 %5247  ;;  %4980 = vmatmul.bf16.gmra.mxu3 %v8089_v37  ;;  %v8959_v35 = vld [vmem:[%s12715_s4 + $0x174] sm:$0xf0] }
 0x717   : > { %v5266_v12 = vpop.permute.xlu1 %5265  ;;  %v5244_v23 = vpop.permute.xlu0 %5243  ;;  %4527 = vmatmul.bf16.gmra.mxu0 %v7941_v11  ;;  %4891 = vmatmul.bf16.gmra.mxu2 %v8085_v42  ;;  %v8118_v42 = vld [vmem:[%s12715_s4 + $0x78] sm:$0xf0] }
 0x718   : > { %5290 = vmatpush.bf16.msra.mxu0 %v5248_v60  ;;  %5378 = vmatpush.bf16.msrb.mxu1 %v5266_v12  ;;  %v7972_v60 = vld [vmem:[%s12715_s4 + $0x150] sm:$0xf]  ;;  %v7974_v12 = vld [vmem:[%s12715_s4 + $0x158] sm:$0xf0] }
 0x71b   : > { %4616 = vmatmul.bf16.gmra.mxu1 %v7945_v32  ;;  %v8926_v32 = vld [vmem:[%s12715_s4 + $0x74] sm:$0xf] }
 0x71c   : > { %5379 = vmatpush.bf16.msrb.mxu1 %v5264_v1  ;;  %6145 = vrot.lane.b32.xlu2 %v11153_v0, %s9135_s13  ;;  %v8094_v0 = vld [vmem:[%s12715_s4 + $0x48] sm:$0xf0]  ;;  %v8108_v1 = vld [vmem:[%s12715_s4 + $0x60] sm:$0xf] }
 0x71d   : > { %v8097_v26 = vor.u32 %v8920_v13, %v8094_v0  ;;  %v8109_v41 = vor.u32 %v8925_v63, %v8108_v1  ;;  %v7977_v0 = vor.u32 %v8954_v50, %v7974_v12  ;;  %v8140_v12 = vld [vmem:[%s12715_s4 + $0xa0] sm:$0xf] }
 0x71e   : > { %v5262_v30 = vpop.permute.xlu2 %5261 }
 0x71f   : > { %v5246_v6 = vpop.permute.xlu1 %5245  ;;  %v5258_v19 = vpop.permute.xlu0 %5257 }
 0x720   : > { %5291 = vmatpush.bf16.msra.mxu0 %v5246_v6  ;;  %5380 = vmatpush.bf16.msrb.mxu1 %v5262_v30  ;;  %v8121_v6 = vor.u32 %v8926_v32, %v8118_v42  ;;  %v8932_v32 = vld [vmem:[%s12715_s4 + $0xa4] sm:$0xf] }
 0x724   : > { %5292 = vmatpush.bf16.msra.mxu0 %v5244_v23  ;;  %6159 = vrot.lane.b32.xlu2 %v11293_v43, %s9135_s13  ;;  %v7973_v23 = vor.u32 %v8955_v56, %v7972_v60 }
 0x726   : > { %v5242_v3 = vpop.permute.xlu2 %5241  ;;  %4985 = vmatmul.bf16.gmra.mxu3 %v8097_v26  ;;  %v7980_v26 = vld [vmem:[%s12715_s4 + $0x160] sm:$0xf] }
 0x727   : > { %v5260_v43 = vpop.permute.xlu1 %5259  ;;  %v5705_v21 = vpop.permute.xlu0 %5704  ;;  %4532 = vmatmul.bf16.gmra.mxu0 %v7949_v62  ;;  %4896 = vmatmul.bf16.gmra.mxu2 %v8093_v34  ;;  %v7981_v34 = vor.u32 %v8957_v9, %v7980_v26 }
 0x728   : > { %5293 = vmatpush.bf16.msra.mxu0 %v5242_v3  ;;  %5381 = vmatpush.bf16.msrb.mxu1 %v5260_v43  ;;  %v7982_v43 = vld [vmem:[%s12715_s4 + $0x168] sm:$0xf0] }
 0x729   : > { %5738 = vmatpush.bf16.msra.mxu2 %v5705_v21  ;;  %v8928_v21 = vld [vmem:[%s12715_s4 + $0x84] sm:$0xf]  ;;  %v7985_v22 = vor.u32 %v8956_v33, %v7982_v43  ;;  %v8004_v33 = vld [vmem:[%s12715_s4 + $0x190] sm:$0xf]  ;;  %v8963_v43 = vld [vmem:[%s12715_s4 + $0x194] sm:$0xf0] }
 0x72b   : > { %4621 = vmatmul.bf16.gmra.mxu1 %v7953_v51  ;;  %v8126_v51 = vld [vmem:[%s12715_s4 + $0x88] sm:$0xf0] }
 0x72c   : > { %5382 = vmatpush.bf16.msrb.mxu1 %v5258_v19  ;;  %v8116_v19 = vld [vmem:[%s12715_s4 + $0x70] sm:$0xf] }
 0x72d   : > { %v8117_v57 = vor.u32 %v8927_v28, %v8116_v19 }
 0x72e   : > { %v5256_v53 = vpop.permute.xlu2 %5255 }
 0x72f   : > { %v5240_v27 = vpop.permute.xlu1 %5239  ;;  %v11571_v24 = vpop.permute.xlu0 %5718 }
 0x730   : > { %5294 = vmatpush.bf16.msra.mxu0 %v5240_v27  ;;  %5383 = vmatpush.bf16.msrb.mxu1 %v5256_v53  ;;  %v8129_v27 = vor.u32 %v8928_v21, %v8126_v51  ;;  %v8962_v51 = vld [vmem:[%s12715_s4 + $0x194] sm:$0xf] }
 0x736   : > { %v5703_v14 = vpop.permute.xlu2 %5702  ;;  %4990 = vmatmul.bf16.gmra.mxu3 %v8105_v48 }
 0x737   : > { %v5701_v59 = vpop.permute.xlu1 %5700  ;;  %v6156_v46 = vpop.permute.xlu0 %6155  ;;  %5739 = vmatpush.bf16.msra.mxu2 %v5703_v14  ;;  %4537 = vmatmul.bf16.gmra.mxu0 %v7957_v55 }
 0x738   : > { %6189 = vmatpush.bf16.msrb.mxu0 %v6156_v46  ;;  %4901 = vmatmul.bf16.gmra.mxu2 %v8101_v18  ;;  %v7990_v18 = vld [vmem:[%s12715_s4 + $0x178] sm:$0xf0] }
 0x73b   : > { %4626 = vmatmul.bf16.gmra.mxu1 %v7961_v31  ;;  %5740 = vmatpush.bf16.msra.mxu2 %v5701_v59  ;;  %v8958_v31 = vld [vmem:[%s12715_s4 + $0x174] sm:$0xf] }
 0x73c   : > { %v7993_v49 = vor.u32 %v8958_v31, %v7990_v18 }
 0x73e   : > { %v11597_v29 = vpop.permute.xlu2 %5716 }
 0x73f   : > { %v6154_v7 = vpop.permute.xlu1 %6153  ;;  %v11599_v61 = vpop.permute.xlu0 %5714 }
 0x740   : > { %6190 = vmatpush.bf16.msrb.mxu0 %v6154_v7  ;;  %v8132_v7 = vld [vmem:[%s12715_s4 + $0x90] sm:$0xf] }
 0x746   : > { %v5699_v36 = vpop.permute.xlu2 %5698  ;;  %4995 = vmatmul.bf16.gmra.mxu3 %v8113_v45 }
 0x747   : > { %v11625_v10 = vpop.permute.xlu1 %5712  ;;  %v5697_v2 = vpop.permute.xlu0 %5696  ;;  %5741 = vmatpush.bf16.msra.mxu2 %v5699_v36  ;;  %4542 = vmatmul.bf16.gmra.mxu0 %v7965_v54  ;;  %v8137_v54 = vor.u32 %v8930_v38, %v8134_v15  ;;  %v8012_v38 = vld [vmem:[%s12715_s4 + $0x1a0] sm:$0xf]  ;;  %v8964_v15 = vld [vmem:[%s12715_s4 + $0x1a4] sm:$0xf] }
 0x748   : > { %4906 = vmatmul.bf16.gmra.mxu2 %v8109_v41 }
 0x74b   : > { %4631 = vmatmul.bf16.gmra.mxu1 %v7969_v58  ;;  %5742 = vmatpush.bf16.msra.mxu2 %v5697_v2  ;;  %v11679_v55 = vpop.f32.mrf.mxu3  ;;  %v7996_v2 = vld [vmem:[%s12715_s4 + $0x180] sm:$0xf]  ;;  %v8961_v58 = vld [vmem:[%s12715_s4 + $0x184] sm:$0xf0] }
 0x74c   : > { %v7997_v50 = vor.u32 %v8961_v58, %v7996_v2 }
 0x74e   : > { %v6170_v47 = vpop.permute.xlu2 %6169 }
 0x74f   : > { %v5695_v11 = vpop.permute.xlu1 %5694  ;;  %v6168_v37 = vpop.permute.xlu0 %6167 }
 0x750   : > { %5743 = vmatpush.bf16.msra.mxu2 %v5695_v11  ;;  %v8960_v11 = vld [vmem:[%s12715_s4 + $0x184] sm:$0xf] }
 0x753   : > { %v11691_v46 = vpop.f32.mrf.mxu3 }
 0x756   : > { %v6152_v30 = vpop.permute.xlu2 %6151  ;;  %5000 = vmatmul.bf16.gmra.mxu3 %v8121_v6 }
 0x757   : > { %v6166_v39 = vpop.permute.xlu1 %6165  ;;  %v6150_v13 = vpop.permute.xlu0 %6149  ;;  %6191 = vmatpush.bf16.msrb.mxu0 %v6152_v30  ;;  %v8142_v30 = vld [vmem:[%s12715_s4 + $0xa8] sm:$0xf0] }
 0x758   : > { %4547 = vmatmul.bf16.gmra.mxu0 %v7973_v23  ;;  %4911 = vmatmul.bf16.gmra.mxu2 %v8117_v57  ;;  %v8933_v23 = vld [vmem:[%s12715_s4 + $0xa4] sm:$0xf0]  ;;  %v8145_v28 = vor.u32 %v8932_v32, %v8142_v30 }
 0x759   : > { %v8141_v42 = vor.u32 %v8933_v23, %v8140_v12 }
 0x75b   : > { %4636 = vmatmul.bf16.gmra.mxu1 %v7977_v0  ;;  %6192 = vmatpush.bf16.msrb.mxu0 %v6150_v13 }
 0x75e   : > { %v5711_v4 = vpop.permute.xlu2 %5710 }
 0x75f   : > { %v5721_v62 = vpop.permute.xlu1 %5720  ;;  %v5709_v3 = vpop.permute.xlu0 %5708 }
 0x760   : > { %5827 = vmatpush.bf16.msra.mxu3 %v5721_v62 }
 0x764   : > { %5828 = vmatpush.bf16.msra.mxu3 %v11571_v24  ;;  %v8929_v24 = vld [vmem:[%s12715_s4 + $0x84] sm:$0xf0] }
 0x765   : > { %v8125_v25 = vor.u32 %v8929_v24, %v8124_v5  ;;  %v8005_v5 = vor.u32 %v8963_v43, %v8004_v33  ;;  %v8938_v33 = vld [vmem:[%s12715_s4 + $0xd4] sm:$0xf] }
 0x766   : > { %v5693_v53 = vpop.permute.xlu2 %5692  ;;  %5005 = vmatmul.bf16.gmra.mxu3 %v8129_v27 }
 0x767   : > { %v6172_v52 = vpop.permute.xlu1 %6171  ;;  %5744 = vmatpush.bf16.msra.mxu2 %v5693_v53  ;;  %v5691_v17 = vpop.permute.xlu0 %5690 }
 0x768   : > { %5829 = vmatpush.bf16.msra.mxu3 %v11597_v29  ;;  %6278 = vmatpush.bf16.msra.mxu1 %v6172_v52  ;;  %v7989_v29 = vor.u32 %v8959_v35, %v7988_v16  ;;  %v8148_v52 = vld [vmem:[%s12715_s4 + $0xb0] sm:$0xf] }
 0x769   : > { %4552 = vmatmul.bf16.gmra.mxu0 %v7981_v34  ;;  %4916 = vmatmul.bf16.gmra.mxu2 %v8125_v25  ;;  %v11677_v40 = vpop.f32.mrf.mxu2  ;;  %v8006_v34 = vld [vmem:[%s12715_s4 + $0x198] sm:$0xf0]  ;;  %v8934_v25 = vld [vmem:[%s12715_s4 + $0xb4] sm:$0xf] }
 0x76b   : > { %4641 = vmatmul.bf16.gmra.mxu1 %v7985_v22  ;;  %5745 = vmatpush.bf16.msra.mxu2 %v5691_v17  ;;  %v8935_v22 = vld [vmem:[%s12715_s4 + $0xb4] sm:$0xf0] }
 0x76c   : > { %5830 = vmatpush.bf16.msra.mxu3 %v11599_v61  ;;  %6279 = vmatpush.bf16.msra.mxu1 %v6170_v47  ;;  %v8931_v61 = vld [vmem:[%s12715_s4 + $0x94] sm:$0xf0] }
 0x76d   : > { %v8133_v8 = vor.u32 %v8931_v61, %v8132_v7 }
 0x76e   : > { %v6164_v14 = vpop.permute.xlu2 %6163 }
 0x76f   : > { %v6148_v48 = vpop.permute.xlu1 %6147  ;;  %v6162_v36 = vpop.permute.xlu0 %6161 }
 0x770   : > { %5831 = vmatpush.bf16.msra.mxu3 %v11625_v10  ;;  %6193 = vmatpush.bf16.msrb.mxu0 %v6148_v48 }
 0x771   : > { %6280 = vmatpush.bf16.msra.mxu1 %v6168_v37  ;;  %v11689_v59 = vpop.f32.mrf.mxu2  ;;  %v7998_v37 = vld [vmem:[%s12715_s4 + $0x188] sm:$0xf0] }
 0x772   : > { %v11711_v45 = vpop.f32.mrf.mxu3  ;;  %v8001_v19 = vor.u32 %v8960_v11, %v7998_v37 }
 0x774   : > { %5832 = vmatpush.bf16.msra.mxu3 %v5711_v4 }
 0x775   : > { %6281 = vmatpush.bf16.msra.mxu1 %v6166_v39 }
 0x776   : > { %v6146_v20 = vpop.permute.xlu2 %6145  ;;  %5010 = vmatmul.bf16.gmra.mxu3 %v8137_v54 }
 0x777   : > { %v5707_v44 = vpop.permute.xlu1 %5706  ;;  %6194 = vmatpush.bf16.msrb.mxu0 %v6146_v20  ;;  %v6142_v41 = vpop.permute.xlu0 %6141  ;;  %v8965_v20 = vld [vmem:[%s12715_s4 + $0x1a4] sm:$0xf0] }
 0x778   : > { %5833 = vmatpush.bf16.msra.mxu3 %v5709_v3 }
 0x779   : > { %6282 = vmatpush.bf16.msra.mxu1 %v6164_v14  ;;  %4557 = vmatmul.bf16.gmra.mxu0 %v7989_v29  ;;  %v4882_v1 = vpop.f32.mrf.mxu2  ;;  %v8009_v14 = vor.u32 %v8962_v51, %v8006_v34  ;;  %v8166_v51 = vld [vmem:[%s12715_s4 + $0xd8] sm:$0xf0] }
 0x77a   : > { %4921 = vmatmul.bf16.gmra.mxu2 %v8133_v8  ;;  %v11719_v47 = vpop.f32.mrf.mxu3 }
 0x77b   : > { %4646 = vmatmul.bf16.gmra.mxu1 %v7993_v49 }
 0x77c   : > { %5834 = vmatpush.bf16.msra.mxu3 %v5707_v44  ;;  %v8014_v44 = vld [vmem:[%s12715_s4 + $0x1a8] sm:$0xf0] }
 0x77d   : > { %6283 = vmatpush.bf16.msra.mxu1 %v6162_v36  ;;  %v8013_v36 = vor.u32 %v8965_v20, %v8012_v38  ;;  %v8172_v38 = vld [vmem:[%s12715_s4 + $0xe0] sm:$0xf]  ;;  %v8941_v20 = vld [vmem:[%s12715_s4 + $0xe4] sm:$0xf0] }
 0x77e   : > { %v6160_v63 = vpop.permute.xlu2 %6159 }
 0x77f   : > { %v6144_v10 = vpop.permute.xlu1 %6143 }
 0x780   : > { %6195 = vmatpush.bf16.msrb.mxu0 %v6144_v10  ;;  %v8936_v10 = vld [vmem:[%s12715_s4 + $0xc4] sm:$0xf] }
 0x781   : > { %6284 = vmatpush.bf16.msra.mxu1 %v6160_v63  ;;  %v4884_v60 = vpop.f32.mrf.mxu2  ;;  %v8937_v63 = vld [vmem:[%s12715_s4 + $0xc4] sm:$0xf0] }
 0x784   : > { %6196 = vmatpush.bf16.msrb.mxu0 %v6142_v41  ;;  %v4523_v56 = vpop.f32.mrf.mxu0  ;;  %v8158_v41 = vld [vmem:[%s12715_s4 + $0xc8] sm:$0xf0] }
 0x785   : > { %v8161_v11 = vor.u32 %v8936_v10, %v8158_v41 }
 0x786   : > { %5015 = vmatmul.bf16.gmra.mxu3 %v8145_v28 }
 0x787   : > { %v6158_v6 = vpop.permute.xlu1 %6157 }
 0x788   : > { %v4612_v39 = vpop.f32.mrf.mxu1  ;;  %6285 = vmatpush.bf16.msra.mxu1 %v6158_v6  ;;  %v8020_v6 = vld [vmem:[%s12715_s4 + $0x1b0] sm:$0xf] }
 0x789   : > { %v4613_v13 = vadd.f32 %v4612_v39, %v4523_v56  ;;  %4562 = vmatmul.bf16.gmra.mxu0 %v7997_v50  ;;  %v4976_v57 = vpop.f32.mrf.mxu3  ;;  %v4887_v3 = vpop.f32.mrf.mxu2  ;;  %v8966_v39 = vld [vmem:[%s12715_s4 + $0x1b4] sm:$0xf] }
 0x78a   : > { %4926 = vmatmul.bf16.gmra.mxu2 %v8141_v42 }
 0x78b   : > { %v4878_v0 = vadd.f32 %v11677_v40, %v4613_v13  ;;  %4651 = vmatmul.bf16.gmra.mxu1 %v8001_v19  ;;  %v8149_v40 = vor.u32 %v8935_v22, %v8148_v52  ;;  %v8967_v19 = vld [vmem:[%s12715_s4 + $0x1b4] sm:$0xf0]  ;;  %v8022_v13 = vld [vmem:[%s12715_s4 + $0x1b8] sm:$0xf0] }
 0x78c   : > { %v4525_v62 = vpop.f32.mrf.mxu0  ;;  %v8025_v34 = vor.u32 %v8966_v39, %v8022_v13  ;;  %v8943_v39 = vld [vmem:[%s12715_s4 + $0xf4] sm:$0xf0]  ;;  %v8942_v13 = vld [vmem:[%s12715_s4 + $0xf4] sm:$0xf] }
 0x78d   : > { %v11741_v4 = vadd.f32 %v11679_v55, %v4878_v0  ;;  %v8150_v55 = vld [vmem:[%s12715_s4 + $0xb8] sm:$0xf0] }
 0x78e   : > { %v8153_v48 = vor.u32 %v8934_v25, %v8150_v55 }
 0x790   : > { %v4614_v26 = vpop.f32.mrf.mxu1 }
 0x791   : > { %v4615_v9 = vadd.f32 %v4614_v26, %v4525_v62  ;;  %v4978_v53 = vpop.f32.mrf.mxu3  ;;  %v4889_v24 = vpop.f32.mrf.mxu2  ;;  %v8164_v26 = vld [vmem:[%s12715_s4 + $0xd0] sm:$0xf] }
 0x793   : > { %v4880_v21 = vadd.f32 %v11689_v59, %v4615_v9  ;;  %v8939_v9 = vld [vmem:[%s12715_s4 + $0xd4] sm:$0xf0] }
 0x794   : > { %v4528_v17 = vpop.f32.mrf.mxu0 }
 0x795   : > { %v11757_v27 = vadd.f32 %v11691_v46, %v4880_v21  ;;  %v8165_v21 = vor.u32 %v8939_v9, %v8164_v26 }
 0x796   : > { %5020 = vmatmul.bf16.gmra.mxu3 %v8153_v48  ;;  %v8028_v48 = vld [vmem:[%s12715_s4 + $0x1c0] sm:$0xf] }
 0x798   : > { %v4617_v16 = vpop.f32.mrf.mxu1 }
 0x799   : > { %v4618_v35 = vadd.f32 %v4617_v16, %v4528_v17  ;;  %4567 = vmatmul.bf16.gmra.mxu0 %v8005_v5  ;;  %v4981_v46 = vpop.f32.mrf.mxu3  ;;  %v8969_v16 = vld [vmem:[%s12715_s4 + $0x1c4] sm:$0xf0] }
 0x79a   : > { %4931 = vmatmul.bf16.gmra.mxu2 %v8149_v40  ;;  %v4892_v18 = vpop.f32.mrf.mxu2 }
 0x79b   : > { %v4883_v59 = vadd.f32 %v4882_v1, %v4618_v35  ;;  %4656 = vmatmul.bf16.gmra.mxu1 %v8009_v14  ;;  %v8156_v1 = vld [vmem:[%s12715_s4 + $0xc0] sm:$0xf] }
 0x79c   : > { %v4530_v29 = vpop.f32.mrf.mxu0  ;;  %v8157_v58 = vor.u32 %v8937_v63, %v8156_v1 }
 0x79d   : > { %v11772_v31 = vadd.f32 %v11711_v45, %v4883_v59  ;;  %v8968_v59 = vld [vmem:[%s12715_s4 + $0x1c4] sm:$0xf] }
 0x7a0   : > { %v4619_v7 = vpop.f32.mrf.mxu1 }
 0x7a1   : > { %v4620_v61 = vadd.f32 %v4619_v7, %v4530_v29  ;;  %v4983_v49 = vpop.f32.mrf.mxu3  ;;  %v8029_v29 = vor.u32 %v8969_v16, %v8028_v48 }
 0x7a2   : > { %v4894_v45 = vpop.f32.mrf.mxu2 }
 0x7a3   : > { %v4885_v8 = vadd.f32 %v4884_v60, %v4620_v61 }
 0x7a4   : > { %v4533_v2 = vpop.f32.mrf.mxu0 }
 0x7a5   : > { %v11787_v54 = vadd.f32 %v11719_v47, %v4885_v8  ;;  %v8017_v47 = vor.u32 %v8964_v15, %v8014_v44  ;;  %v8940_v8 = vld [vmem:[%s12715_s4 + $0xe4] sm:$0xf]  ;;  %v8173_v44 = vor.u32 %v8941_v20, %v8172_v38 }
 0x7a6   : > { %5025 = vmatmul.bf16.gmra.mxu3 %v8161_v11 }
 0x7a8   : > { %v4622_v37 = vpop.f32.mrf.mxu1 }
 0x7a9   : > { %v4623_v60 = vadd.f32 %v4622_v37, %v4533_v2  ;;  %4572 = vmatmul.bf16.gmra.mxu0 %v8013_v36  ;;  %v4986_v23 = vpop.f32.mrf.mxu3 }
 0x7aa   : > { %4936 = vmatmul.bf16.gmra.mxu2 %v8157_v58  ;;  %v4897_v12 = vpop.f32.mrf.mxu2 }
 0x7ab   : > { %v4888_v56 = vadd.f32 %v4887_v3, %v4623_v60  ;;  %4661 = vmatmul.bf16.gmra.mxu1 %v8017_v47  ;;  %v8036_v60 = vld [vmem:[%s12715_s4 + $0x1d0] sm:$0xf] }
 0x7ac   : > { %v4535_v32 = vpop.f32.mrf.mxu0 }
 0x7ad   : > { %v11801_v50 = vadd.f32 %v4976_v57, %v4888_v56  ;;  %v8021_v57 = vor.u32 %v8967_v19, %v8020_v6  ;;  %v8971_v56 = vld [vmem:[%s12715_s4 + $0x1d4] sm:$0xf0] }
 0x7b0   : > { %v4624_v42 = vpop.f32.mrf.mxu1 }
 0x7b1   : > { %v4625_v30 = vadd.f32 %v4624_v42, %v4535_v32  ;;  %v4988_v3 = vpop.f32.mrf.mxu3 }
 0x7b2   : > { %v4899_v62 = vpop.f32.mrf.mxu2 }
 0x7b3   : > { %v4890_v28 = vadd.f32 %v4889_v24, %v4625_v30  ;;  %v8037_v30 = vor.u32 %v8971_v56, %v8036_v60  ;;  %v8975_v60 = vld [vmem:[%s12715_s4 + $0x1f4] sm:$0xf0] }
 0x7b4   : > { %v4538_v43 = vpop.f32.mrf.mxu0 }
 0x7b5   : > { %v11815_v0 = vadd.f32 %v4978_v53, %v4890_v28  ;;  %v8169_v53 = vor.u32 %v8938_v33, %v8166_v51  ;;  %v8180_v28 = vld [vmem:[%s12715_s4 + $0xf0] sm:$0xf] }
 0x7b7   : > { %5030 = vmatmul.bf16.gmra.mxu3 %v8169_v53 }
 0x7b8   : > { %v4627_v5 = vpop.f32.mrf.mxu1 }
 0x7b9   : > { %v4628_v24 = vadd.f32 %v4627_v5, %v4538_v43  ;;  %4577 = vmatmul.bf16.gmra.mxu0 %v8021_v57  ;;  %v4991_v17 = vpop.f32.mrf.mxu3 }
 0x7ba   : > { %4941 = vmatmul.bf16.gmra.mxu2 %v8165_v21 }
 0x7bb   : > { %v4893_v52 = vadd.f32 %v4892_v18, %v4628_v24  ;;  %4666 = vmatmul.bf16.gmra.mxu1 %v8025_v34  ;;  %v4902_v25 = vpop.f32.mrf.mxu2 }
 0x7bc   : > { %v4540_v40 = vpop.f32.mrf.mxu0 }
 0x7bd   : > { %v11829_v22 = vadd.f32 %v4981_v46, %v4893_v52  ;;  %v8030_v46 = vld [vmem:[%s12715_s4 + $0x1c8] sm:$0xf0] }
 0x7be   : > { %v8033_v36 = vor.u32 %v8968_v59, %v8030_v46  ;;  %v8380_v46 = vld [vmem:[%s12715_s4 + $0x300] sm:$0xf] }
 0x7c0   : > { %v4629_v55 = vpop.f32.mrf.mxu1 }
 0x7c1   : > { %v4630_v14 = vadd.f32 %v4629_v55, %v4540_v40  ;;  %v4993_v61 = vpop.f32.mrf.mxu3  ;;  %v8044_v40 = vld [vmem:[%s12715_s4 + $0x1e0] sm:$0xf]  ;;  %v8973_v55 = vld [vmem:[%s12715_s4 + $0x1e4] sm:$0xf0] }
 0x7c2   : > { %v8045_v16 = vor.u32 %v8973_v55, %v8044_v40  ;;  %v8220_v55 = vld [vmem:[%s12715_s4 + $0x200] sm:$0xf] }
 0x7c3   : > { %v4895_v35 = vadd.f32 %v4894_v45, %v4630_v14  ;;  %v4904_v7 = vpop.f32.mrf.mxu2 }
 0x7c4   : > { %v4543_v15 = vpop.f32.mrf.mxu0 }
 0x7c5   : > { %v11843_v18 = vadd.f32 %v4983_v49, %v4895_v35  ;;  %v8174_v49 = vld [vmem:[%s12715_s4 + $0xe8] sm:$0xf0] }
 0x7c6   : > { %v8177_v45 = vor.u32 %v8940_v8, %v8174_v49 }
 0x7c8   : > { %v4632_v1 = vpop.f32.mrf.mxu1  ;;  %5035 = vmatmul.bf16.gmra.mxu3 %v8177_v45 }
 0x7c9   : > { %v4633_v63 = vadd.f32 %v4632_v1, %v4543_v15  ;;  %4582 = vmatmul.bf16.gmra.mxu0 %v8029_v29  ;;  %v4996_v41 = vpop.f32.mrf.mxu3  ;;  %v9009_v29 = vld [vmem:[%s12715_s4 + $0x304] sm:$0xf0] }
 0x7ca   : > { %4946 = vmatmul.bf16.gmra.mxu2 %v8173_v44  ;;  %v8381_v20 = vor.u32 %v9009_v29, %v8380_v46 }
 0x7cb   : > { %v4898_v10 = vadd.f32 %v4897_v12, %v4633_v63  ;;  %4671 = vmatmul.bf16.gmra.mxu1 %v8033_v36  ;;  %v4907_v58 = vpop.f32.mrf.mxu2  ;;  %v8970_v12 = vld [vmem:[%s12715_s4 + $0x1d4] sm:$0xf] }
 0x7cc   : > { %v4545_v47 = vpop.f32.mrf.mxu0 }
 0x7cd   : > { %v11857_v2 = vadd.f32 %v4986_v23, %v4898_v10  ;;  %v8038_v23 = vld [vmem:[%s12715_s4 + $0x1d8] sm:$0xf0] }
 0x7ce   : > { %v8041_v26 = vor.u32 %v8970_v12, %v8038_v23 }
 0x7d0   : > { %v4634_v11 = vpop.f32.mrf.mxu1 }
 0x7d1   : > { %v4635_v37 = vadd.f32 %v4634_v11, %v4545_v47  ;;  %v4998_v19 = vpop.f32.mrf.mxu3 }
 0x7d3   : > { %v4900_v32 = vadd.f32 %v4899_v62, %v4635_v37  ;;  %v4909_v6 = vpop.f32.mrf.mxu2  ;;  %v8181_v62 = vor.u32 %v8943_v39, %v8180_v28  ;;  %v8052_v37 = vld [vmem:[%s12715_s4 + $0x1f0] sm:$0xf]  ;;  %v9010_v39 = vld [vmem:[%s12715_s4 + $0x314] sm:$0xf] }
 0x7d4   : > { %v8053_v12 = vor.u32 %v8975_v60, %v8052_v37  ;;  %v8388_v28 = vld [vmem:[%s12715_s4 + $0x310] sm:$0xf] }
 0x7d5   : > { %v11871_v42 = vadd.f32 %v4988_v3, %v4900_v32  ;;  %v4548_v57 = vpop.f32.mrf.mxu0  ;;  %v8182_v3 = vld [vmem:[%s12715_s4 + $0xf8] sm:$0xf0] }
 0x7d6   : > { %v8185_v9 = vor.u32 %v8942_v13, %v8182_v3 }
 0x7d8   : > { %v4637_v33 = vpop.f32.mrf.mxu1  ;;  %5040 = vmatmul.bf16.gmra.mxu3 %v8185_v9 }
 0x7d9   : > { %v4638_v43 = vadd.f32 %v4637_v33, %v4548_v57  ;;  %4587 = vmatmul.bf16.gmra.mxu0 %v8037_v30  ;;  %v5001_v53 = vpop.f32.mrf.mxu3 }
 0x7da   : > { %4951 = vmatmul.bf16.gmra.mxu2 %v8181_v62 }
 0x7db   : > { %v4903_v21 = vadd.f32 %v4902_v25, %v4638_v43  ;;  %4676 = vmatmul.bf16.gmra.mxu1 %v8041_v26  ;;  %v4912_v34 = vpop.f32.mrf.mxu2  ;;  %v8972_v25 = vld [vmem:[%s12715_s4 + $0x1e4] sm:$0xf] }
 0x7dd   : > { %v11885_v51 = vadd.f32 %v4991_v17, %v4903_v21  ;;  %v4550_v5 = vpop.f32.mrf.mxu0  ;;  %v8046_v17 = vld [vmem:[%s12715_s4 + $0x1e8] sm:$0xf0] }
 0x7de   : > { %v8049_v8 = vor.u32 %v8972_v25, %v8046_v17 }
 0x7e0   : > { %v4639_v24 = vpop.f32.mrf.mxu1 }
 0x7e1   : > { %v4640_v52 = vadd.f32 %v4639_v24, %v4550_v5  ;;  %v5003_v59 = vpop.f32.mrf.mxu3 }
 0x7e3   : > { %v4905_v14 = vadd.f32 %v4904_v7, %v4640_v52  ;;  %v4914_v35 = vpop.f32.mrf.mxu2  ;;  %v9008_v7 = vld [vmem:[%s12715_s4 + $0x304] sm:$0xf] }
 0x7e5   : > { %v11899_v48 = vadd.f32 %v4993_v61, %v4905_v14  ;;  %v8382_v61 = vld [vmem:[%s12715_s4 + $0x308] sm:$0xf0]  ;;  %v8977_v14 = vld [vmem:[%s12715_s4 + $0x204] sm:$0xf0] }
 0x7e6   : > { %v4553_v38 = vpop.f32.mrf.mxu0  ;;  %v8385_v15 = vor.u32 %v9008_v7, %v8382_v61  ;;  %v8396_v7 = vld [vmem:[%s12715_s4 + $0x320] sm:$0xf] }
 0x7e8   : > { %v4642_v44 = vpop.f32.mrf.mxu1  ;;  %5835 = vmatmul.bf16.vlgmr.msra.gmra.mxu3 %v8385_v15 }
 0x7e9   : > { %v4643_v49 = vadd.f32 %v4642_v44, %v4553_v38  ;;  %4592 = vmatmul.bf16.gmra.mxu0 %v8045_v16  ;;  %v5006_v63 = vpop.f32.mrf.mxu3  ;;  %v8221_v16 = vor.u32 %v8977_v14, %v8220_v55  ;;  %v9012_v38 = vld [vmem:[%s12715_s4 + $0x324] sm:$0xf] }
 0x7ea   : > { %5746 = vmatmul.bf16.vlgmr.msra.gmra.mxu2 %v8381_v20 }
 0x7eb   : > { %v4908_v36 = vadd.f32 %v4907_v58, %v4643_v49  ;;  %4681 = vmatmul.bf16.gmra.mxu1 %v8049_v8  ;;  %v8974_v58 = vld [vmem:[%s12715_s4 + $0x1f4] sm:$0xf] }
 0x7ec   : > { %v4917_v1 = vpop.f32.mrf.mxu2 }
 0x7ed   : > { %v11913_v45 = vadd.f32 %v4996_v41, %v4908_v36  ;;  %v8054_v41 = vld [vmem:[%s12715_s4 + $0x1f8] sm:$0xf0] }
 0x7ee   : > { %v4555_v10 = vpop.f32.mrf.mxu0  ;;  %v8057_v62 = vor.u32 %v8974_v58, %v8054_v41  ;;  %v8228_v58 = vld [vmem:[%s12715_s4 + $0x210] sm:$0xf]  ;;  %v8979_v41 = vld [vmem:[%s12715_s4 + $0x214] sm:$0xf0] }
 0x7f0   : > { %v4644_v47 = vpop.f32.mrf.mxu1 }
 0x7f1   : > { %v4645_v11 = vadd.f32 %v4644_v47, %v4555_v10  ;;  %v5008_v30 = vpop.f32.mrf.mxu3 }
 0x7f3   : > { %v4910_v56 = vadd.f32 %v4909_v6, %v4645_v11  ;;  %v9011_v6 = vld [vmem:[%s12715_s4 + $0x314] sm:$0xf0] }
 0x7f4   : > { %v4919_v23 = vpop.f32.mrf.mxu2  ;;  %v8389_v57 = vor.u32 %v9011_v6, %v8388_v28  ;;  %v8229_v6 = vor.u32 %v8979_v41, %v8228_v58 }
 0x7f5   : > { %v11927_v32 = vadd.f32 %v4998_v19, %v4910_v56  ;;  %v8390_v19 = vld [vmem:[%s12715_s4 + $0x318] sm:$0xf0] }
 0x7f6   : > { %v4558_v13 = vpop.f32.mrf.mxu0  ;;  %v8393_v3 = vor.u32 %v9010_v39, %v8390_v19  ;;  %v9014_v19 = vld [vmem:[%s12715_s4 + $0x334] sm:$0xf] }
 0x7f8   : > { %v4647_v26 = vpop.f32.mrf.mxu1  ;;  %5840 = vmatmul.bf16.gmra.mxu3 %v8393_v3 }
 0x7f9   : > { %v4648_v9 = vadd.f32 %v4647_v26, %v4558_v13  ;;  %4597 = vmatmul.bf16.gmra.mxu0 %v8053_v12  ;;  %v5011_v5 = vpop.f32.mrf.mxu3 }
 0x7fa   : > { %5751 = vmatmul.bf16.gmra.mxu2 %v8389_v57  ;;  %v8404_v57 = vld [vmem:[%s12715_s4 + $0x330] sm:$0xf] }
 0x7fb   : > { %v4913_v33 = vadd.f32 %v4912_v34, %v4648_v9  ;;  %4686 = vmatmul.bf16.gmra.mxu1 %v8057_v62  ;;  %v8976_v34 = vld [vmem:[%s12715_s4 + $0x204] sm:$0xf] }
 0x7fd   : > { %v11941_v43 = vadd.f32 %v5001_v53, %v4913_v33  ;;  %v4922_v21 = vpop.f32.mrf.mxu2  ;;  %v8222_v53 = vld [vmem:[%s12715_s4 + $0x208] sm:$0xf0] }
 0x7fe   : > { %v4560_v24 = vpop.f32.mrf.mxu0  ;;  %v8225_v8 = vor.u32 %v8976_v34, %v8222_v53 }
 0x800   : > { %v4649_v52 = vpop.f32.mrf.mxu1 }
 0x801   : > { %v4650_v40 = vadd.f32 %v4649_v52, %v4560_v24  ;;  %v5013_v29 = vpop.f32.mrf.mxu3 }
 0x803   : > { %v4915_v25 = vadd.f32 %v4914_v35, %v4650_v40  ;;  %v9013_v35 = vld [vmem:[%s12715_s4 + $0x324] sm:$0xf0] }
 0x804   : > { %v8397_v61 = vor.u32 %v9013_v35, %v8396_v7  ;;  %v8981_v7 = vld [vmem:[%s12715_s4 + $0x224] sm:$0xf0] }
 0x805   : > { %v11955_v17 = vadd.f32 %v5003_v59, %v4915_v25  ;;  %v4924_v46 = vpop.f32.mrf.mxu2  ;;  %v8398_v59 = vld [vmem:[%s12715_s4 + $0x328] sm:$0xf0] }
 0x806   : > { %v4563_v20 = vpop.f32.mrf.mxu0  ;;  %v8401_v15 = vor.u32 %v9012_v38, %v8398_v59 }
 0x808   : > { %v4652_v44 = vpop.f32.mrf.mxu1  ;;  %5845 = vmatmul.bf16.gmra.mxu3 %v8401_v15  ;;  %v9016_v15 = vld [vmem:[%s12715_s4 + $0x344] sm:$0xf] }
 0x809   : > { %v4653_v49 = vadd.f32 %v4652_v44, %v4563_v20  ;;  %5295 = vmatmul.bf16.vlgmr.msra.gmra.mxu0 %v8221_v16  ;;  %v5016_v11 = vpop.f32.mrf.mxu3  ;;  %v8236_v16 = vld [vmem:[%s12715_s4 + $0x220] sm:$0xf] }
 0x80a   : > { %5756 = vmatmul.bf16.gmra.mxu2 %v8397_v61  ;;  %v8237_v20 = vor.u32 %v8981_v7, %v8236_v16 }
 0x80b   : > { %v4918_v36 = vadd.f32 %v4917_v1, %v4653_v49  ;;  %5384 = vmatmul.bf16.vlgmr.msrb.gmra.mxu1 %v8225_v8  ;;  %v8978_v1 = vld [vmem:[%s12715_s4 + $0x214] sm:$0xf]  ;;  %v8412_v8 = vld [vmem:[%s12715_s4 + $0x340] sm:$0xf] }
 0x80d   : > { %v11969_v10 = vadd.f32 %v5006_v63, %v4918_v36  ;;  %v4927_v47 = vpop.f32.mrf.mxu2  ;;  %v8230_v63 = vld [vmem:[%s12715_s4 + $0x218] sm:$0xf0] }
 0x80e   : > { %v4565_v37 = vpop.f32.mrf.mxu0  ;;  %v8233_v26 = vor.u32 %v8978_v1, %v8230_v63 }
 0x810   : > { %v4654_v60 = vpop.f32.mrf.mxu1 }
 0x811   : > { %v4655_v56 = vadd.f32 %v4654_v60, %v4565_v37  ;;  %v5018_v13 = vpop.f32.mrf.mxu3 }
 0x813   : > { %v4920_v12 = vadd.f32 %v4919_v23, %v4655_v56  ;;  %v9015_v23 = vld [vmem:[%s12715_s4 + $0x334] sm:$0xf0] }
 0x814   : > { %v8405_v3 = vor.u32 %v9015_v23, %v8404_v57  ;;  %v8244_v23 = vld [vmem:[%s12715_s4 + $0x230] sm:$0xf] }
 0x815   : > { %v11983_v28 = vadd.f32 %v5008_v30, %v4920_v12  ;;  %v4929_v39 = vpop.f32.mrf.mxu2  ;;  %v8406_v30 = vld [vmem:[%s12715_s4 + $0x338] sm:$0xf0] }
 0x816   : > { %v4568_v62 = vpop.f32.mrf.mxu0  ;;  %v8409_v9 = vor.u32 %v9014_v19, %v8406_v30  ;;  %v8983_v19 = vld [vmem:[%s12715_s4 + $0x234] sm:$0xf0] }
 0x817   : > { %v8245_v30 = vor.u32 %v8983_v19, %v8244_v23 }
 0x818   : > { %v4657_v33 = vpop.f32.mrf.mxu1  ;;  %5850 = vmatmul.bf16.gmra.mxu3 %v8409_v9 }
 0x819   : > { %v4658_v24 = vadd.f32 %v4657_v33, %v4568_v62  ;;  %5300 = vmatmul.bf16.gmra.mxu0 %v8229_v6  ;;  %v5021_v14 = vpop.f32.mrf.mxu3  ;;  %v8420_v33 = vld [vmem:[%s12715_s4 + $0x350] sm:$0xf] }
 0x81a   : > { %5761 = vmatmul.bf16.gmra.mxu2 %v8405_v3 }
 0x81b   : > { %v4923_v52 = vadd.f32 %v4922_v21, %v4658_v24  ;;  %5389 = vmatmul.bf16.gmra.mxu1 %v8233_v26  ;;  %v8980_v21 = vld [vmem:[%s12715_s4 + $0x224] sm:$0xf]  ;;  %v9018_v24 = vld [vmem:[%s12715_s4 + $0x354] sm:$0xf] }
 0x81d   : > { %v11997_v40 = vadd.f32 %v5011_v5, %v4923_v52  ;;  %v4932_v55 = vpop.f32.mrf.mxu2  ;;  %v8238_v5 = vld [vmem:[%s12715_s4 + $0x228] sm:$0xf0] }
 0x81e   : > { %v4570_v25 = vpop.f32.mrf.mxu0  ;;  %v8241_v36 = vor.u32 %v8980_v21, %v8238_v5 }
 0x820   : > { %v4659_v34 = vpop.f32.mrf.mxu1 }
 0x821   : > { %v4660_v53 = vadd.f32 %v4659_v34, %v4570_v25  ;;  %v5023_v59 = vpop.f32.mrf.mxu3 }
 0x823   : > { %v4925_v35 = vadd.f32 %v4924_v46, %v4660_v53  ;;  %v9017_v46 = vld [vmem:[%s12715_s4 + $0x344] sm:$0xf0] }
 0x824   : > { %v8413_v49 = vor.u32 %v9017_v46, %v8412_v8 }
 0x825   : > { %v12011_v38 = vadd.f32 %v5013_v29, %v4925_v35  ;;  %v4934_v61 = vpop.f32.mrf.mxu2  ;;  %v8414_v29 = vld [vmem:[%s12715_s4 + $0x348] sm:$0xf0] }
 0x826   : > { %v4573_v44 = vpop.f32.mrf.mxu0  ;;  %v8417_v37 = vor.u32 %v9016_v15, %v8414_v29 }
 0x828   : > { %v4662_v60 = vpop.f32.mrf.mxu1  ;;  %5855 = vmatmul.bf16.gmra.mxu3 %v8417_v37 }
 0x829   : > { %v4663_v56 = vadd.f32 %v4662_v60, %v4573_v44  ;;  %5305 = vmatmul.bf16.gmra.mxu0 %v8237_v20  ;;  %v5026_v1 = vpop.f32.mrf.mxu3  ;;  %v8252_v44 = vld [vmem:[%s12715_s4 + $0x240] sm:$0xf] }
 0x82a   : > { %5766 = vmatmul.bf16.gmra.mxu2 %v8413_v49  ;;  %v8985_v49 = vld [vmem:[%s12715_s4 + $0x244] sm:$0xf0] }
 0x82b   : > { %v4928_v58 = vadd.f32 %v4927_v47, %v4663_v56  ;;  %5394 = vmatmul.bf16.gmra.mxu1 %v8241_v36  ;;  %v8982_v47 = vld [vmem:[%s12715_s4 + $0x234] sm:$0xf]  ;;  %v8253_v37 = vor.u32 %v8985_v49, %v8252_v44 }
 0x82d   : > { %v12025_v41 = vadd.f32 %v5016_v11, %v4928_v58  ;;  %v4937_v12 = vpop.f32.mrf.mxu2  ;;  %v8246_v11 = vld [vmem:[%s12715_s4 + $0x238] sm:$0xf0]  ;;  %v8428_v58 = vld [vmem:[%s12715_s4 + $0x360] sm:$0xf] }
 0x82e   : > { %v4575_v63 = vpop.f32.mrf.mxu0  ;;  %v8249_v34 = vor.u32 %v8982_v47, %v8246_v11 }
 0x830   : > { %v4664_v6 = vpop.f32.mrf.mxu1 }
 0x831   : > { %v4665_v57 = vadd.f32 %v4664_v6, %v4575_v63  ;;  %v5028_v9 = vpop.f32.mrf.mxu3  ;;  %v9020_v63 = vld [vmem:[%s12715_s4 + $0x364] sm:$0xf] }
 0x833   : > { %v4930_v62 = vadd.f32 %v4929_v39, %v4665_v57  ;;  %v9019_v39 = vld [vmem:[%s12715_s4 + $0x354] sm:$0xf0] }
 0x834   : > { %v8421_v25 = vor.u32 %v9019_v39, %v8420_v33 }
 0x835   : > { %v12039_v3 = vadd.f32 %v5018_v13, %v4930_v62  ;;  %v4939_v26 = vpop.f32.mrf.mxu2  ;;  %v8422_v13 = vld [vmem:[%s12715_s4 + $0x358] sm:$0xf0] }
 0x836   : > { %v4578_v52 = vpop.f32.mrf.mxu0  ;;  %v8425_v53 = vor.u32 %v9018_v24, %v8422_v13  ;;  %v8260_v13 = vld [vmem:[%s12715_s4 + $0x250] sm:$0xf] }
 0x838   : > { %v4667_v16 = vpop.f32.mrf.mxu1  ;;  %5860 = vmatmul.bf16.gmra.mxu3 %v8425_v53 }
 0x839   : > { %v4668_v7 = vadd.f32 %v4667_v16, %v4578_v52  ;;  %5310 = vmatmul.bf16.gmra.mxu0 %v8245_v30 }
 0x83a   : > { %5771 = vmatmul.bf16.gmra.mxu2 %v8421_v25  ;;  %v5031_v20 = vpop.f32.mrf.mxu3 }
 0x83b   : > { %v4933_v35 = vadd.f32 %v4932_v55, %v4668_v7  ;;  %5399 = vmatmul.bf16.gmra.mxu1 %v8249_v34  ;;  %v8984_v55 = vld [vmem:[%s12715_s4 + $0x244] sm:$0xf]  ;;  %v8987_v34 = vld [vmem:[%s12715_s4 + $0x254] sm:$0xf0] }
 0x83c   : > { %v8261_v7 = vor.u32 %v8987_v34, %v8260_v13  ;;  %v8444_v13 = vld [vmem:[%s12715_s4 + $0x380] sm:$0xf]  ;;  %v9024_v34 = vld [vmem:[%s12715_s4 + $0x384] sm:$0xf] }
 0x83d   : > { %v12053_v21 = vadd.f32 %v5021_v14, %v4933_v35  ;;  %v4942_v5 = vpop.f32.mrf.mxu2  ;;  %v8254_v14 = vld [vmem:[%s12715_s4 + $0x248] sm:$0xf0] }
 0x83e   : > { %v4580_v8 = vpop.f32.mrf.mxu0  ;;  %v8257_v23 = vor.u32 %v8984_v55, %v8254_v14 }
 0x840   : > { %v4669_v46 = vpop.f32.mrf.mxu1 }
 0x841   : > { %v4670_v15 = vadd.f32 %v4669_v46, %v4580_v8  ;;  %v8436_v46 = vld [vmem:[%s12715_s4 + $0x370] sm:$0xf] }
 0x842   : > { %v5033_v56 = vpop.f32.mrf.mxu3 }
 0x843   : > { %v4935_v29 = vadd.f32 %v4934_v61, %v4670_v15  ;;  %v9021_v61 = vld [vmem:[%s12715_s4 + $0x364] sm:$0xf0]  ;;  %v9022_v15 = vld [vmem:[%s12715_s4 + $0x374] sm:$0xf] }
 0x844   : > { %v8429_v57 = vor.u32 %v9021_v61, %v8428_v58 }
 0x845   : > { %v12067_v36 = vadd.f32 %v5023_v59, %v4935_v29  ;;  %v4944_v60 = vpop.f32.mrf.mxu2  ;;  %v8430_v59 = vld [vmem:[%s12715_s4 + $0x368] sm:$0xf0] }
 0x846   : > { %v4583_v6 = vpop.f32.mrf.mxu0  ;;  %v8433_v19 = vor.u32 %v9020_v63, %v8430_v59 }
 0x848   : > { %v4672_v62 = vpop.f32.mrf.mxu1  ;;  %5865 = vmatmul.bf16.gmra.mxu3 %v8433_v19  ;;  %v8268_v19 = vld [vmem:[%s12715_s4 + $0x260] sm:$0xf] }
 0x849   : > { %v4673_v47 = vadd.f32 %v4672_v62, %v4583_v6  ;;  %5315 = vmatmul.bf16.gmra.mxu0 %v8253_v37  ;;  %v8989_v62 = vld [vmem:[%s12715_s4 + $0x264] sm:$0xf0] }
 0x84a   : > { %5776 = vmatmul.bf16.gmra.mxu2 %v8429_v57 }
 0x84b   : > { %v4938_v11 = vadd.f32 %v4937_v12, %v4673_v47  ;;  %5404 = vmatmul.bf16.gmra.mxu1 %v8257_v23  ;;  %v5036_v39 = vpop.f32.mrf.mxu3  ;;  %v8986_v12 = vld [vmem:[%s12715_s4 + $0x254] sm:$0xf] }
 0x84d   : > { %v12081_v30 = vadd.f32 %v5026_v1, %v4938_v11  ;;  %v4947_v33 = vpop.f32.mrf.mxu2  ;;  %v8262_v1 = vld [vmem:[%s12715_s4 + $0x258] sm:$0xf0] }
 0x84e   : > { %v4585_v24 = vpop.f32.mrf.mxu0  ;;  %v8265_v29 = vor.u32 %v8986_v12, %v8262_v1 }
 0x850   : > { %v4674_v52 = vpop.f32.mrf.mxu1 }
 0x851   : > { %v4675_v25 = vadd.f32 %v4674_v52, %v4585_v24  ;;  %v8269_v24 = vor.u32 %v8989_v62, %v8268_v19 }
 0x853   : > { %v4940_v53 = vadd.f32 %v4939_v26, %v4675_v25  ;;  %v5038_v8 = vpop.f32.mrf.mxu3  ;;  %v9023_v26 = vld [vmem:[%s12715_s4 + $0x374] sm:$0xf0] }
 0x854   : > { %v8437_v49 = vor.u32 %v9023_v26, %v8436_v46 }
 0x855   : > { %v12095_v16 = vadd.f32 %v5028_v9, %v4940_v53  ;;  %v4949_v35 = vpop.f32.mrf.mxu2  ;;  %v8438_v9 = vld [vmem:[%s12715_s4 + $0x378] sm:$0xf0] }
 0x856   : > { %v4588_v44 = vpop.f32.mrf.mxu0  ;;  %v8441_v55 = vor.u32 %v9022_v15, %v8438_v9 }
 0x858   : > { %v4677_v14 = vpop.f32.mrf.mxu1  ;;  %5870 = vmatmul.bf16.gmra.mxu3 %v8441_v55 }
 0x859   : > { %v4678_v37 = vadd.f32 %v4677_v14, %v4588_v44  ;;  %5320 = vmatmul.bf16.gmra.mxu0 %v8261_v7 }
 0x85a   : > { %5781 = vmatmul.bf16.gmra.mxu2 %v8437_v49 }
 0x85b   : > { %v4943_v58 = vadd.f32 %v4942_v5, %v4678_v37  ;;  %5409 = vmatmul.bf16.gmra.mxu1 %v8265_v29  ;;  %v5041_v6 = vpop.f32.mrf.mxu3  ;;  %v8988_v5 = vld [vmem:[%s12715_s4 + $0x264] sm:$0xf] }
 0x85d   : > { %v12109_v61 = vadd.f32 %v5031_v20, %v4943_v58  ;;  %v4952_v63 = vpop.f32.mrf.mxu2  ;;  %v8270_v20 = vld [vmem:[%s12715_s4 + $0x268] sm:$0xf0]  ;;  %v8276_v58 = vld [vmem:[%s12715_s4 + $0x270] sm:$0xf] }
 0x85e   : > { %v4590_v57 = vpop.f32.mrf.mxu0  ;;  %v8273_v1 = vor.u32 %v8988_v5, %v8270_v20  ;;  %v8452_v5 = vld [vmem:[%s12715_s4 + $0x390] sm:$0xf]  ;;  %v9026_v20 = vld [vmem:[%s12715_s4 + $0x394] sm:$0xf] }
 0x860   : > { %v4679_v59 = vpop.f32.mrf.mxu1 }
 0x861   : > { %v4680_v23 = vadd.f32 %v4679_v59, %v4590_v57  ;;  %v8991_v57 = vld [vmem:[%s12715_s4 + $0x274] sm:$0xf0] }
 0x862   : > { %v8277_v19 = vor.u32 %v8991_v57, %v8276_v58 }
 0x863   : > { %v4945_v47 = vadd.f32 %v4944_v60, %v4680_v23  ;;  %v5043_v25 = vpop.f32.mrf.mxu3  ;;  %v9025_v60 = vld [vmem:[%s12715_s4 + $0x384] sm:$0xf0] }
 0x864   : > { %v8445_v12 = vor.u32 %v9025_v60, %v8444_v13 }
 0x865   : > { %v12123_v11 = vadd.f32 %v5033_v56, %v4945_v47  ;;  %v4954_v52 = vpop.f32.mrf.mxu2  ;;  %v8446_v56 = vld [vmem:[%s12715_s4 + $0x388] sm:$0xf0] }
 0x866   : > { %v4593_v53 = vpop.f32.mrf.mxu0  ;;  %v8449_v7 = vor.u32 %v9024_v34, %v8446_v56 }
 0x868   : > { %v4682_v46 = vpop.f32.mrf.mxu1  ;;  %5875 = vmatmul.bf16.gmra.mxu3 %v8449_v7 }
 0x869   : > { %v4683_v26 = vadd.f32 %v4682_v46, %v4593_v53  ;;  %5325 = vmatmul.bf16.gmra.mxu0 %v8269_v24 }
 0x86a   : > { %5786 = vmatmul.bf16.gmra.mxu2 %v8445_v12 }
 0x86b   : > { %v4948_v15 = vadd.f32 %v4947_v33, %v4683_v26  ;;  %5414 = vmatmul.bf16.gmra.mxu1 %v8273_v1  ;;  %v5836_v9 = vpop.f32.mrf.mxu3  ;;  %v8990_v33 = vld [vmem:[%s12715_s4 + $0x274] sm:$0xf] }
 0x86d   : > { %v12137_v44 = vadd.f32 %v5036_v39, %v4948_v15  ;;  %v5747_v49 = vpop.f32.mrf.mxu2  ;;  %v8278_v39 = vld [vmem:[%s12715_s4 + $0x278] sm:$0xf0] }
 0x86e   : > { %v4595_v29 = vpop.f32.mrf.mxu0  ;;  %v5837_v55 = vadd.f32 %v5836_v9, %v5747_v49  ;;  %v8281_v34 = vor.u32 %v8990_v33, %v8278_v39 }
 0x870   : > { %v4684_v14 = vpop.f32.mrf.mxu1 }
 0x871   : > { %v4685_v37 = vadd.f32 %v4684_v14, %v4595_v29  ;;  %v8284_v14 = vld [vmem:[%s12715_s4 + $0x280] sm:$0xf] }
 0x873   : > { %v4950_v59 = vadd.f32 %v4949_v35, %v4685_v37  ;;  %v5838_v47 = vpop.f32.mrf.mxu3  ;;  %v9027_v35 = vld [vmem:[%s12715_s4 + $0x394] sm:$0xf0]  ;;  %v8993_v37 = vld [vmem:[%s12715_s4 + $0x284] sm:$0xf0] }
 0x874   : > { %v8453_v60 = vor.u32 %v9027_v35, %v8452_v5 }
 0x875   : > { %v12151_v23 = vadd.f32 %v5038_v8, %v4950_v59  ;;  %v5749_v62 = vpop.f32.mrf.mxu2  ;;  %v8454_v8 = vld [vmem:[%s12715_s4 + $0x398] sm:$0xf0]  ;;  %v8285_v59 = vor.u32 %v8993_v37, %v8284_v14 }
 0x876   : > { %v4598_v24 = vpop.f32.mrf.mxu0  ;;  %v5839_v13 = vadd.f32 %v5838_v47, %v5749_v62  ;;  %v8457_v53 = vor.u32 %v9026_v20, %v8454_v8  ;;  %v9028_v62 = vld [vmem:[%s12715_s4 + $0x3a4] sm:$0xf] }
 0x878   : > { %v4687_v12 = vpop.f32.mrf.mxu1  ;;  %5880 = vmatmul.bf16.gmra.mxu3 %v8457_v53 }
 0x879   : > { %v4688_v56 = vadd.f32 %v4687_v12, %v4598_v24  ;;  %5330 = vmatmul.bf16.gmra.mxu0 %v8277_v19  ;;  %v8460_v19 = vld [vmem:[%s12715_s4 + $0x3a0] sm:$0xf] }
 0x87a   : > { %5791 = vmatmul.bf16.gmra.mxu2 %v8453_v60 }
 0x87b   : > { %v4953_v1 = vadd.f32 %v4952_v63, %v4688_v56  ;;  %5419 = vmatmul.bf16.gmra.mxu1 %v8281_v34  ;;  %v5841_v26 = vpop.f32.mrf.mxu3  ;;  %v8992_v63 = vld [vmem:[%s12715_s4 + $0x284] sm:$0xf] }
 0x87d   : > { %v12165_v7 = vadd.f32 %v5041_v6, %v4953_v1  ;;  %v5752_v46 = vpop.f32.mrf.mxu2  ;;  %v8286_v6 = vld [vmem:[%s12715_s4 + $0x288] sm:$0xf0] }
 0x87e   : > { %v4600_v15 = vpop.f32.mrf.mxu0  ;;  %v5842_v49 = vadd.f32 %v5841_v26, %v5752_v46  ;;  %v8289_v20 = vor.u32 %v8992_v63, %v8286_v6 }
 0x880   : > { %v4689_v9 = vpop.f32.mrf.mxu1 }
 0x881   : > { %v4690_v29 = vadd.f32 %v4689_v9, %v4600_v15  ;;  %v8292_v9 = vld [vmem:[%s12715_s4 + $0x290] sm:$0xf] }
 0x883   : > { %v4955_v58 = vadd.f32 %v4954_v52, %v4690_v29  ;;  %v5843_v39 = vpop.f32.mrf.mxu3  ;;  %v9029_v52 = vld [vmem:[%s12715_s4 + $0x3a4] sm:$0xf0]  ;;  %v8995_v29 = vld [vmem:[%s12715_s4 + $0x294] sm:$0xf0] }
 0x884   : > { %v8461_v35 = vor.u32 %v9029_v52, %v8460_v19 }
 0x885   : > { %v12179_v57 = vadd.f32 %v5043_v25, %v4955_v58  ;;  %v5754_v33 = vpop.f32.mrf.mxu2  ;;  %v8462_v25 = vld [vmem:[%s12715_s4 + $0x3a8] sm:$0xf0]  ;;  %v8293_v58 = vor.u32 %v8995_v29, %v8292_v9 }
 0x886   : > { %v5296_v47 = vpop.f32.mrf.mxu0  ;;  %v5844_v5 = vadd.f32 %v5843_v39, %v5754_v33  ;;  %v8465_v24 = vor.u32 %v9028_v62, %v8462_v25  ;;  %v9030_v33 = vld [vmem:[%s12715_s4 + $0x3b4] sm:$0xf] }
 0x888   : > { %v5385_v60 = vpop.f32.mrf.mxu1  ;;  %5885 = vmatmul.bf16.gmra.mxu3 %v8465_v24 }
 0x889   : > { %v5386_v8 = vadd.f32 %v5385_v60, %v5296_v47  ;;  %5335 = vmatmul.bf16.gmra.mxu0 %v8285_v59  ;;  %v8468_v59 = vld [vmem:[%s12715_s4 + $0x3b0] sm:$0xf] }
 0x88a   : > { %5796 = vmatmul.bf16.gmra.mxu2 %v8461_v35 }
 0x88b   : > { %v5465_v34 = vadd.f32 %v5386_v8, %v11741_v4  ;;  %5424 = vmatmul.bf16.gmra.mxu1 %v8289_v20  ;;  %v5846_v56 = vpop.f32.mrf.mxu3  ;;  %v8994_v4 = vld [vmem:[%s12715_s4 + $0x294] sm:$0xf] }
 0x88d   : > { %v12194_v53 = vadd.f32 %v5837_v55, %v5465_v34  ;;  %v5757_v12 = vpop.f32.mrf.mxu2  ;;  %v8294_v55 = vld [vmem:[%s12715_s4 + $0x298] sm:$0xf0] }
 0x88e   : > { %v5298_v1 = vpop.f32.mrf.mxu0  ;;  %v5847_v46 = vadd.f32 %v5846_v56, %v5757_v12  ;;  %v8297_v62 = vor.u32 %v8994_v4, %v8294_v55 }
 0x890   : > { %v5387_v26 = vpop.f32.mrf.mxu1 }
 0x891   : > { %v5388_v15 = vadd.f32 %v5387_v26, %v5298_v1  ;;  %v8300_v26 = vld [vmem:[%s12715_s4 + $0x2a0] sm:$0xf] }
 0x893   : > { %v5466_v14 = vadd.f32 %v5388_v15, %v11757_v27  ;;  %v5848_v6 = vpop.f32.mrf.mxu3  ;;  %v9031_v27 = vld [vmem:[%s12715_s4 + $0x3b4] sm:$0xf0]  ;;  %v8997_v15 = vld [vmem:[%s12715_s4 + $0x2a4] sm:$0xf0] }
 0x894   : > { %v8469_v52 = vor.u32 %v9031_v27, %v8468_v59 }
 0x895   : > { %v12209_v37 = vadd.f32 %v5839_v13, %v5466_v14  ;;  %v5759_v63 = vpop.f32.mrf.mxu2  ;;  %v8470_v13 = vld [vmem:[%s12715_s4 + $0x3b8] sm:$0xf0]  ;;  %v8301_v14 = vor.u32 %v8997_v15, %v8300_v26 }
 0x896   : > { %v5301_v39 = vpop.f32.mrf.mxu0  ;;  %v5849_v19 = vadd.f32 %v5848_v6, %v5759_v63  ;;  %v8473_v47 = vor.u32 %v9030_v33, %v8470_v13  ;;  %v9032_v63 = vld [vmem:[%s12715_s4 + $0x3c4] sm:$0xf] }
 0x898   : > { %v5390_v35 = vpop.f32.mrf.mxu1  ;;  %5890 = vmatmul.bf16.gmra.mxu3 %v8473_v47 }
 0x899   : > { %v5391_v25 = vadd.f32 %v5390_v35, %v5301_v39  ;;  %5340 = vmatmul.bf16.gmra.mxu0 %v8293_v58  ;;  %v8476_v58 = vld [vmem:[%s12715_s4 + $0x3c0] sm:$0xf] }
 0x89a   : > { %5801 = vmatmul.bf16.gmra.mxu2 %v8469_v52 }
 0x89b   : > { %v5467_v20 = vadd.f32 %v5391_v25, %v11772_v31  ;;  %5429 = vmatmul.bf16.gmra.mxu1 %v8297_v62  ;;  %v5851_v8 = vpop.f32.mrf.mxu3  ;;  %v8996_v31 = vld [vmem:[%s12715_s4 + $0x2a4] sm:$0xf] }
 0x89d   : > { %v12224_v24 = vadd.f32 %v5842_v49, %v5467_v20  ;;  %v5762_v60 = vpop.f32.mrf.mxu2  ;;  %v8302_v49 = vld [vmem:[%s12715_s4 + $0x2a8] sm:$0xf0] }
 0x89e   : > { %v5303_v34 = vpop.f32.mrf.mxu0  ;;  %v5852_v12 = vadd.f32 %v5851_v8, %v5762_v60  ;;  %v8305_v33 = vor.u32 %v8996_v31, %v8302_v49 }
 0x8a0   : > { %v5392_v56 = vpop.f32.mrf.mxu1 }
 0x8a1   : > { %v5393_v1 = vadd.f32 %v5392_v56, %v5303_v34  ;;  %v8308_v56 = vld [vmem:[%s12715_s4 + $0x2b0] sm:$0xf] }
 0x8a3   : > { %v5468_v9 = vadd.f32 %v5393_v1, %v11787_v54  ;;  %v5853_v55 = vpop.f32.mrf.mxu3  ;;  %v9033_v54 = vld [vmem:[%s12715_s4 + $0x3c4] sm:$0xf0]  ;;  %v8999_v1 = vld [vmem:[%s12715_s4 + $0x2b4] sm:$0xf0] }
 0x8a4   : > { %v8477_v27 = vor.u32 %v9033_v54, %v8476_v58 }
 0x8a5   : > { %v12239_v29 = vadd.f32 %v5844_v5, %v5468_v9  ;;  %v5764_v4 = vpop.f32.mrf.mxu2  ;;  %v8478_v5 = vld [vmem:[%s12715_s4 + $0x3c8] sm:$0xf0]  ;;  %v8309_v9 = vor.u32 %v8999_v1, %v8308_v56 }
 0x8a6   : > { %v5306_v6 = vpop.f32.mrf.mxu0  ;;  %v5854_v59 = vadd.f32 %v5853_v55, %v5764_v4  ;;  %v8481_v39 = vor.u32 %v9032_v63, %v8478_v5  ;;  %v9034_v4 = vld [vmem:[%s12715_s4 + $0x3d4] sm:$0xf] }
 0x8a8   : > { %v5395_v52 = vpop.f32.mrf.mxu1  ;;  %5895 = vmatmul.bf16.gmra.mxu3 %v8481_v39 }
 0x8a9   : > { %v5396_v13 = vadd.f32 %v5395_v52, %v5306_v6  ;;  %5345 = vmatmul.bf16.gmra.mxu0 %v8301_v14  ;;  %v8484_v14 = vld [vmem:[%s12715_s4 + $0x3d0] sm:$0xf] }
 0x8aa   : > { %5806 = vmatmul.bf16.gmra.mxu2 %v8477_v27 }
 0x8ab   : > { %v5469_v62 = vadd.f32 %v5396_v13, %v11801_v50  ;;  %5434 = vmatmul.bf16.gmra.mxu1 %v8305_v33  ;;  %v5856_v25 = vpop.f32.mrf.mxu3  ;;  %v8998_v50 = vld [vmem:[%s12715_s4 + $0x2b4] sm:$0xf] }
 0x8ad   : > { %v12254_v47 = vadd.f32 %v5847_v46, %v5469_v62  ;;  %v5767_v35 = vpop.f32.mrf.mxu2  ;;  %v8310_v46 = vld [vmem:[%s12715_s4 + $0x2b8] sm:$0xf0] }
 0x8ae   : > { %v5308_v20 = vpop.f32.mrf.mxu0  ;;  %v5857_v60 = vadd.f32 %v5856_v25, %v5767_v35  ;;  %v8313_v63 = vor.u32 %v8998_v50, %v8310_v46 }
 0x8b0   : > { %v5397_v8 = vpop.f32.mrf.mxu1 }
 0x8b1   : > { %v5398_v34 = vadd.f32 %v5397_v8, %v5308_v20  ;;  %v8316_v8 = vld [vmem:[%s12715_s4 + $0x2c0] sm:$0xf] }
 0x8b3   : > { %v5470_v26 = vadd.f32 %v5398_v34, %v11815_v0  ;;  %v5858_v49 = vpop.f32.mrf.mxu3  ;;  %v9035_v0 = vld [vmem:[%s12715_s4 + $0x3d4] sm:$0xf0]  ;;  %v9001_v34 = vld [vmem:[%s12715_s4 + $0x2c4] sm:$0xf0] }
 0x8b4   : > { %v8485_v54 = vor.u32 %v9035_v0, %v8484_v14 }
 0x8b5   : > { %v12269_v15 = vadd.f32 %v5849_v19, %v5470_v26  ;;  %v5769_v31 = vpop.f32.mrf.mxu2  ;;  %v8486_v19 = vld [vmem:[%s12715_s4 + $0x3d8] sm:$0xf0]  ;;  %v8317_v26 = vor.u32 %v9001_v34, %v8316_v8 }
 0x8b6   : > { %v5311_v55 = vpop.f32.mrf.mxu0  ;;  %v5859_v58 = vadd.f32 %v5858_v49, %v5769_v31  ;;  %v8489_v6 = vor.u32 %v9034_v4, %v8486_v19  ;;  %v9036_v31 = vld [vmem:[%s12715_s4 + $0x3e4] sm:$0xf] }
 0x8b8   : > { %v5400_v27 = vpop.f32.mrf.mxu1  ;;  %5900 = vmatmul.bf16.gmra.mxu3 %v8489_v6 }
 0x8b9   : > { %v5401_v5 = vadd.f32 %v5400_v27, %v5311_v55  ;;  %5350 = vmatmul.bf16.gmra.mxu0 %v8309_v9  ;;  %v8492_v9 = vld [vmem:[%s12715_s4 + $0x3e0] sm:$0xf] }
 0x8ba   : > { %5811 = vmatmul.bf16.gmra.mxu2 %v8485_v54 }
 0x8bb   : > { %v5471_v33 = vadd.f32 %v5401_v5, %v11829_v22  ;;  %5439 = vmatmul.bf16.gmra.mxu1 %v8313_v63  ;;  %v5861_v13 = vpop.f32.mrf.mxu3  ;;  %v9000_v22 = vld [vmem:[%s12715_s4 + $0x2c4] sm:$0xf] }
 0x8bd   : > { %v12284_v39 = vadd.f32 %v5852_v12, %v5471_v33  ;;  %v5772_v52 = vpop.f32.mrf.mxu2  ;;  %v8318_v12 = vld [vmem:[%s12715_s4 + $0x2c8] sm:$0xf0] }
 0x8be   : > { %v5313_v62 = vpop.f32.mrf.mxu0  ;;  %v5862_v35 = vadd.f32 %v5861_v13, %v5772_v52  ;;  %v8321_v4 = vor.u32 %v9000_v22, %v8318_v12 }
 0x8c0   : > { %v5402_v25 = vpop.f32.mrf.mxu1 }
 0x8c1   : > { %v5403_v20 = vadd.f32 %v5402_v25, %v5313_v62  ;;  %v8324_v25 = vld [vmem:[%s12715_s4 + $0x2d0] sm:$0xf] }
 0x8c3   : > { %v5472_v56 = vadd.f32 %v5403_v20, %v11843_v18  ;;  %v5863_v46 = vpop.f32.mrf.mxu3  ;;  %v9037_v18 = vld [vmem:[%s12715_s4 + $0x3e4] sm:$0xf0]  ;;  %v9003_v20 = vld [vmem:[%s12715_s4 + $0x2d4] sm:$0xf0] }
 0x8c4   : > { %v8493_v0 = vor.u32 %v9037_v18, %v8492_v9 }
 0x8c5   : > { %v12299_v1 = vadd.f32 %v5854_v59, %v5472_v56  ;;  %v5774_v50 = vpop.f32.mrf.mxu2  ;;  %v8494_v59 = vld [vmem:[%s12715_s4 + $0x3e8] sm:$0xf0]  ;;  %v8325_v56 = vor.u32 %v9003_v20, %v8324_v25 }
 0x8c6   : > { %v5316_v49 = vpop.f32.mrf.mxu0  ;;  %v5864_v14 = vadd.f32 %v5863_v46, %v5774_v50  ;;  %v8497_v55 = vor.u32 %v9036_v31, %v8494_v59  ;;  %v9038_v50 = vld [vmem:[%s12715_s4 + $0x3f4] sm:$0xf] }
 0x8c8   : > { %v5405_v54 = vpop.f32.mrf.mxu1  ;;  %5905 = vmatmul.bf16.gmra.mxu3 %v8497_v55 }
 0x8c9   : > { %v5406_v19 = vadd.f32 %v5405_v54, %v5316_v49  ;;  %5355 = vmatmul.bf16.gmra.mxu0 %v8317_v26  ;;  %v8500_v26 = vld [vmem:[%s12715_s4 + $0x3f0] sm:$0xf] }
 0x8ca   : > { %5816 = vmatmul.bf16.gmra.mxu2 %v8493_v0 }
 0x8cb   : > { %v5473_v63 = vadd.f32 %v5406_v19, %v11857_v2  ;;  %5444 = vmatmul.bf16.gmra.mxu1 %v8321_v4  ;;  %v5866_v5 = vpop.f32.mrf.mxu3  ;;  %v9002_v2 = vld [vmem:[%s12715_s4 + $0x2d4] sm:$0xf] }
 0x8cd   : > { %v12314_v6 = vadd.f32 %v5857_v60, %v5473_v63  ;;  %v5777_v27 = vpop.f32.mrf.mxu2  ;;  %v8326_v60 = vld [vmem:[%s12715_s4 + $0x2d8] sm:$0xf0] }
 0x8ce   : > { %v5318_v33 = vpop.f32.mrf.mxu0  ;;  %v5867_v52 = vadd.f32 %v5866_v5, %v5777_v27  ;;  %v8329_v31 = vor.u32 %v9002_v2, %v8326_v60 }
 0x8d0   : > { %v5407_v13 = vpop.f32.mrf.mxu1 }
 0x8d1   : > { %v5408_v62 = vadd.f32 %v5407_v13, %v5318_v33  ;;  %v8332_v13 = vld [vmem:[%s12715_s4 + $0x2e0] sm:$0xf] }
 0x8d3   : > { %v5474_v8 = vadd.f32 %v5408_v62, %v11871_v42  ;;  %v5868_v12 = vpop.f32.mrf.mxu3  ;;  %v9039_v42 = vld [vmem:[%s12715_s4 + $0x3f4] sm:$0xf0]  ;;  %v9005_v62 = vld [vmem:[%s12715_s4 + $0x2e4] sm:$0xf0] }
 0x8d4   : > { %v8501_v18 = vor.u32 %v9039_v42, %v8500_v26 }
 0x8d5   : > { %v12329_v34 = vadd.f32 %v5859_v58, %v5474_v8  ;;  %v5779_v22 = vpop.f32.mrf.mxu2  ;;  %v8502_v58 = vld [vmem:[%s12715_s4 + $0x3f8] sm:$0xf0]  ;;  %v8333_v8 = vor.u32 %v9005_v62, %v8332_v13 }
 0x8d6   : > { %v5321_v46 = vpop.f32.mrf.mxu0  ;;  %v5869_v9 = vadd.f32 %v5868_v12, %v5779_v22  ;;  %v8505_v49 = vor.u32 %v9038_v50, %v8502_v58 }
 0x8d8   : > { %v5410_v0 = vpop.f32.mrf.mxu1  ;;  %5910 = vmatmul.bf16.gmra.mxu3 %v8505_v49 }
 0x8d9   : > { %v5411_v59 = vadd.f32 %v5410_v0, %v5321_v46  ;;  %5360 = vmatmul.bf16.gmra.mxu0 %v8325_v56  ;;  %v8340_v0 = vld [vmem:[%s12715_s4 + $0x2f0] sm:$0xf] }
 0x8da   : > { %5821 = vmatmul.bf16.gmra.mxu2 %v8501_v18 }
 0x8db   : > { %v5475_v4 = vadd.f32 %v5411_v59, %v11885_v51  ;;  %5449 = vmatmul.bf16.gmra.mxu1 %v8329_v31  ;;  %v5871_v19 = vpop.f32.mrf.mxu3  ;;  %v9004_v51 = vld [vmem:[%s12715_s4 + $0x2e4] sm:$0xf]  ;;  %v9007_v59 = vld [vmem:[%s12715_s4 + $0x2f4] sm:$0xf0] }
 0x8dd   : > { %v12344_v55 = vadd.f32 %v5862_v35, %v5475_v4  ;;  %v5782_v54 = vpop.f32.mrf.mxu2  ;;  %v8334_v35 = vld [vmem:[%s12715_s4 + $0x2e8] sm:$0xf0] }
 0x8de   : > { %v5323_v63 = vpop.f32.mrf.mxu0  ;;  %v5872_v27 = vadd.f32 %v5871_v19, %v5782_v54  ;;  %v8337_v12 = vor.u32 %v9004_v51, %v8334_v35  ;;  %v8341_v19 = vor.u32 %v9007_v59, %v8340_v0 }
 0x8e0   : > { %v5412_v5 = vpop.f32.mrf.mxu1 }
 0x8e1   : > { %v5413_v33 = vadd.f32 %v5412_v5, %v5323_v63 }
 0x8e3   : > { %v5476_v25 = vadd.f32 %v5413_v33, %v11899_v48  ;;  %v5873_v60 = vpop.f32.mrf.mxu3 }
 0x8e5   : > { %v12359_v20 = vadd.f32 %v5864_v14, %v5476_v25  ;;  %v5784_v2 = vpop.f32.mrf.mxu2 }
 0x8e6   : > { %v5326_v56 = vpop.f32.mrf.mxu0  ;;  %v5874_v22 = vadd.f32 %v5873_v60, %v5784_v2 }
 0x8e8   : > { %v5415_v26 = vpop.f32.mrf.mxu1 }
 0x8e9   : > { %v5416_v42 = vadd.f32 %v5415_v26, %v5326_v56  ;;  %5365 = vmatmul.bf16.gmra.mxu0 %v8333_v8  ;;  %v8540_v26 = vld [vmem:[%s12715_s4 + $0x400] sm:$0xf] }
 0x8eb   : > { %v5477_v48 = vadd.f32 %v5416_v42, %v11913_v45  ;;  %5454 = vmatmul.bf16.gmra.mxu1 %v8337_v12  ;;  %v5876_v18 = vpop.f32.mrf.mxu3  ;;  %v9006_v45 = vld [vmem:[%s12715_s4 + $0x2f4] sm:$0xf]  ;;  %v9041_v42 = vld [vmem:[%s12715_s4 + $0x404] sm:$0xf0] }
 0x8ed   : > { %v12362_v50 = vadd.f32 %v5867_v52, %v5477_v48  ;;  %v5787_v46 = vpop.f32.mrf.mxu2  ;;  %v8342_v52 = vld [vmem:[%s12715_s4 + $0x2f8] sm:$0xf0] }
 0x8ee   : > { %v5328_v58 = vpop.f32.mrf.mxu0  ;;  %v5877_v31 = vadd.f32 %v5876_v18, %v5787_v46  ;;  %v8345_v62 = vor.u32 %v9006_v45, %v8342_v52  ;;  %v8541_v18 = vor.u32 %v9041_v42, %v8540_v26 }
 0x8f0   : > { %v5417_v14 = vpop.f32.mrf.mxu1 }
 0x8f1   : > { %v5418_v49 = vadd.f32 %v5417_v14, %v5328_v58 }
 0x8f3   : > { %v5478_v4 = vadd.f32 %v5418_v49, %v11927_v32  ;;  %v5878_v5 = vpop.f32.mrf.mxu3 }
 0x8f5   : > { %v12377_v54 = vadd.f32 %v5869_v9, %v5478_v4  ;;  %v5789_v63 = vpop.f32.mrf.mxu2 }
 0x8f6   : > { %v5331_v33 = vpop.f32.mrf.mxu0  ;;  %v5879_v13 = vadd.f32 %v5878_v5, %v5789_v63 }
 0x8f8   : > { %v5420_v25 = vpop.f32.mrf.mxu1 }
 0x8f9   : > { %v5421_v51 = vadd.f32 %v5420_v25, %v5331_v33  ;;  %5370 = vmatmul.bf16.gmra.mxu0 %v8341_v19  ;;  %v9043_v33 = vld [vmem:[%s12715_s4 + $0x414] sm:$0xf0] }
 0x8fb   : > { %v5479_v32 = vadd.f32 %v5421_v51, %v11941_v43  ;;  %5459 = vmatmul.bf16.gmra.mxu1 %v8345_v62  ;;  %v5881_v2 = vpop.f32.mrf.mxu3  ;;  %v9040_v43 = vld [vmem:[%s12715_s4 + $0x404] sm:$0xf] }
 0x8fd   : > { %v12380_v35 = vadd.f32 %v5872_v27, %v5479_v32  ;;  %v5792_v8 = vpop.f32.mrf.mxu2  ;;  %v8542_v27 = vld [vmem:[%s12715_s4 + $0x408] sm:$0xf0] }
 0x8fe   : > { %v5333_v60 = vpop.f32.mrf.mxu0  ;;  %v5882_v56 = vadd.f32 %v5881_v2, %v5792_v8  ;;  %v8545_v59 = vor.u32 %v9040_v43, %v8542_v27 }
 0x900   : > { %v5422_v9 = vpop.f32.mrf.mxu1 }
 0x901   : > { %v5423_v12 = vadd.f32 %v5422_v9, %v5333_v60 }
 0x903   : > { %v5480_v48 = vadd.f32 %v5423_v12, %v11955_v17  ;;  %v5883_v14 = vpop.f32.mrf.mxu3 }
 0x905   : > { %v12395_v46 = vadd.f32 %v5874_v22, %v5480_v48  ;;  %v5794_v58 = vpop.f32.mrf.mxu2  ;;  %v8548_v22 = vld [vmem:[%s12715_s4 + $0x410] sm:$0xf]  ;;  %v8556_v48 = vld [vmem:[%s12715_s4 + $0x420] sm:$0xf] }
 0x906   : > { %v5336_v49 = vpop.f32.mrf.mxu0  ;;  %v5884_v0 = vadd.f32 %v5883_v14, %v5794_v58  ;;  %v8549_v51 = vor.u32 %v9043_v33, %v8548_v22 }
 0x908   : > { %v5425_v4 = vpop.f32.mrf.mxu1 }
 0x909   : > { %v5426_v45 = vadd.f32 %v5425_v4, %v5336_v49  ;;  %6197 = vmatmul.bf16.vlgmr.msrb.gmra.mxu0 %v8541_v18 }
 0x90b   : > { %v5481_v17 = vadd.f32 %v5426_v45, %v11969_v10  ;;  %6286 = vmatmul.bf16.vlgmr.msra.gmra.mxu1 %v8545_v59  ;;  %v9042_v10 = vld [vmem:[%s12715_s4 + $0x414] sm:$0xf] }
 0x90d   : > { %v12398_v52 = vadd.f32 %v5877_v31, %v5481_v17  ;;  %v8550_v31 = vld [vmem:[%s12715_s4 + $0x418] sm:$0xf0] }
 0x90e   : > { %v5338_v19 = vpop.f32.mrf.mxu0  ;;  %v8553_v8 = vor.u32 %v9042_v10, %v8550_v31 }
 0x910   : > { %v5427_v63 = vpop.f32.mrf.mxu1 }
 0x911   : > { %v5428_v5 = vadd.f32 %v5427_v63, %v5338_v19  ;;  %v8564_v19 = vld [vmem:[%s12715_s4 + $0x430] sm:$0xf] }
 0x913   : > { %v5482_v62 = vadd.f32 %v5428_v5, %v11983_v28  ;;  %v8566_v5 = vld [vmem:[%s12715_s4 + $0x438] sm:$0xf0] }
 0x915   : > { %v12413_v25 = vadd.f32 %v5879_v13, %v5482_v62  ;;  %v9045_v13 = vld [vmem:[%s12715_s4 + $0x424] sm:$0xf0] }
 0x916   : > { %v5341_v32 = vpop.f32.mrf.mxu0  ;;  %v8557_v18 = vor.u32 %v9045_v13, %v8556_v48 }
 0x918   : > { %v5430_v2 = vpop.f32.mrf.mxu1 }
 0x919   : > { %v5431_v60 = vadd.f32 %v5430_v2, %v5341_v32  ;;  %6202 = vmatmul.bf16.gmra.mxu0 %v8549_v51  ;;  %v8572_v2 = vld [vmem:[%s12715_s4 + $0x440] sm:$0xf] }
 0x91b   : > { %v5483_v9 = vadd.f32 %v5431_v60, %v11997_v40  ;;  %6291 = vmatmul.bf16.gmra.mxu1 %v8553_v8  ;;  %v9044_v40 = vld [vmem:[%s12715_s4 + $0x424] sm:$0xf]  ;;  %v9049_v60 = vld [vmem:[%s12715_s4 + $0x444] sm:$0xf0] }
 0x91d   : > { %v12416_v28 = vadd.f32 %v5882_v56, %v5483_v9  ;;  %v8558_v56 = vld [vmem:[%s12715_s4 + $0x428] sm:$0xf0] }
 0x91e   : > { %v5343_v12 = vpop.f32.mrf.mxu0  ;;  %v8561_v14 = vor.u32 %v9044_v40, %v8558_v56 }
 0x920   : > { %v5432_v26 = vpop.f32.mrf.mxu1 }
 0x921   : > { %v5433_v42 = vadd.f32 %v5432_v26, %v5343_v12  ;;  %v8574_v12 = vld [vmem:[%s12715_s4 + $0x448] sm:$0xf0]  ;;  %v8573_v26 = vor.u32 %v9049_v60, %v8572_v2 }
 0x923   : > { %v5484_v43 = vadd.f32 %v5433_v42, %v12011_v38 }
 0x925   : > { %v12431_v27 = vadd.f32 %v5884_v0, %v5484_v43  ;;  %v9047_v0 = vld [vmem:[%s12715_s4 + $0x434] sm:$0xf0] }
 0x926   : > { %v5346_v58 = vpop.f32.mrf.mxu0  ;;  %v8565_v22 = vor.u32 %v9047_v0, %v8564_v19 }
 0x928   : > { %v5435_v49 = vpop.f32.mrf.mxu1 }
 0x929   : > { %v5436_v59 = vadd.f32 %v5435_v49, %v5346_v58  ;;  %6207 = vmatmul.bf16.gmra.mxu0 %v8557_v18  ;;  %v8580_v58 = vld [vmem:[%s12715_s4 + $0x450] sm:$0xf] }
 0x92b   : > { %v12434_v4 = vadd.f32 %v5436_v59, %v12025_v41  ;;  %6296 = vmatmul.bf16.gmra.mxu1 %v8561_v14  ;;  %v9046_v41 = vld [vmem:[%s12715_s4 + $0x434] sm:$0xf]  ;;  %v9051_v14 = vld [vmem:[%s12715_s4 + $0x454] sm:$0xf0]  ;;  %v8582_v59 = vld [vmem:[%s12715_s4 + $0x458] sm:$0xf0] }
 0x92c   : > { %v8569_v62 = vor.u32 %v9046_v41, %v8566_v5 }
 0x92e   : > { %v5348_v38 = vpop.f32.mrf.mxu0 }
 0x930   : > { %v5437_v45 = vpop.f32.mrf.mxu1 }
 0x931   : > { %v5438_v17 = vadd.f32 %v5437_v45, %v5348_v38  ;;  %v8581_v38 = vor.u32 %v9051_v14, %v8580_v58 }
 0x933   : > { %v12443_v63 = vadd.f32 %v5438_v17, %v12039_v3 }
 0x936   : > { %v5351_v33 = vpop.f32.mrf.mxu0 }
 0x938   : > { %v5440_v10 = vpop.f32.mrf.mxu1 }
 0x939   : > { %v5441_v31 = vadd.f32 %v5440_v10, %v5351_v33  ;;  %6212 = vmatmul.bf16.gmra.mxu0 %v8565_v22  ;;  %v8588_v33 = vld [vmem:[%s12715_s4 + $0x460] sm:$0xf] }
 0x93b   : > { %v12452_v51 = vadd.f32 %v5441_v31, %v12053_v21  ;;  %6301 = vmatmul.bf16.gmra.mxu1 %v8569_v62  ;;  %v9048_v21 = vld [vmem:[%s12715_s4 + $0x444] sm:$0xf]  ;;  %v9053_v62 = vld [vmem:[%s12715_s4 + $0x464] sm:$0xf0]  ;;  %v8590_v31 = vld [vmem:[%s12715_s4 + $0x468] sm:$0xf0] }
 0x93c   : > { %v8577_v48 = vor.u32 %v9048_v21, %v8574_v12 }
 0x93e   : > { %v5353_v3 = vpop.f32.mrf.mxu0 }
 0x940   : > { %v5442_v32 = vpop.f32.mrf.mxu1 }
 0x941   : > { %v5443_v8 = vadd.f32 %v5442_v32, %v5353_v3  ;;  %v8589_v3 = vor.u32 %v9053_v62, %v8588_v33 }
 0x943   : > { %v12461_v9 = vadd.f32 %v5443_v8, %v12067_v36 }
 0x946   : > { %v5356_v42 = vpop.f32.mrf.mxu0 }
 0x948   : > { %v5445_v13 = vpop.f32.mrf.mxu1 }
 0x949   : > { %v5446_v43 = vadd.f32 %v5445_v13, %v5356_v42  ;;  %6217 = vmatmul.bf16.gmra.mxu0 %v8573_v26  ;;  %v8596_v42 = vld [vmem:[%s12715_s4 + $0x470] sm:$0xf] }
 0x94b   : > { %v12470_v40 = vadd.f32 %v5446_v43, %v12081_v30  ;;  %6306 = vmatmul.bf16.gmra.mxu1 %v8577_v48  ;;  %v9050_v30 = vld [vmem:[%s12715_s4 + $0x454] sm:$0xf]  ;;  %v9055_v48 = vld [vmem:[%s12715_s4 + $0x474] sm:$0xf0]  ;;  %v8598_v43 = vld [vmem:[%s12715_s4 + $0x478] sm:$0xf0] }
 0x94c   : > { %v8585_v17 = vor.u32 %v9050_v30, %v8582_v59 }
 0x94e   : > { %v5358_v36 = vpop.f32.mrf.mxu0 }
 0x950   : > { %v5447_v56 = vpop.f32.mrf.mxu1 }
 0x951   : > { %v5448_v18 = vadd.f32 %v5447_v56, %v5358_v36  ;;  %v8597_v36 = vor.u32 %v9055_v48, %v8596_v42 }
 0x953   : > { %v12479_v49 = vadd.f32 %v5448_v18, %v12095_v16 }
 0x956   : > { %v5361_v45 = vpop.f32.mrf.mxu0 }
 0x958   : > { %v5450_v19 = vpop.f32.mrf.mxu1 }
 0x959   : > { %v5451_v0 = vadd.f32 %v5450_v19, %v5361_v45  ;;  %6222 = vmatmul.bf16.gmra.mxu0 %v8581_v38  ;;  %v8604_v45 = vld [vmem:[%s12715_s4 + $0x480] sm:$0xf] }
 0x95b   : > { %v12488_v41 = vadd.f32 %v5451_v0, %v12109_v61  ;;  %6311 = vmatmul.bf16.gmra.mxu1 %v8585_v17  ;;  %v9052_v61 = vld [vmem:[%s12715_s4 + $0x464] sm:$0xf]  ;;  %v9057_v17 = vld [vmem:[%s12715_s4 + $0x484] sm:$0xf0]  ;;  %v8606_v0 = vld [vmem:[%s12715_s4 + $0x488] sm:$0xf0] }
 0x95c   : > { %v8593_v8 = vor.u32 %v9052_v61, %v8590_v31 }
 0x95e   : > { %v5363_v16 = vpop.f32.mrf.mxu0 }
 0x960   : > { %v5452_v5 = vpop.f32.mrf.mxu1 }
 0x961   : > { %v5453_v22 = vadd.f32 %v5452_v5, %v5363_v16  ;;  %v8605_v16 = vor.u32 %v9057_v17, %v8604_v45 }
 0x963   : > { %v12497_v10 = vadd.f32 %v5453_v22, %v12123_v11 }
 0x966   : > { %v5366_v32 = vpop.f32.mrf.mxu0 }
 0x968   : > { %v5455_v2 = vpop.f32.mrf.mxu1 }
 0x969   : > { %v5456_v60 = vadd.f32 %v5455_v2, %v5366_v32  ;;  %6227 = vmatmul.bf16.gmra.mxu0 %v8589_v3  ;;  %v8612_v32 = vld [vmem:[%s12715_s4 + $0x490] sm:$0xf] }
 0x96b   : > { %v12506_v21 = vadd.f32 %v5456_v60, %v12137_v44  ;;  %6316 = vmatmul.bf16.gmra.mxu1 %v8593_v8  ;;  %v9054_v44 = vld [vmem:[%s12715_s4 + $0x474] sm:$0xf]  ;;  %v9059_v8 = vld [vmem:[%s12715_s4 + $0x494] sm:$0xf0]  ;;  %v8614_v60 = vld [vmem:[%s12715_s4 + $0x498] sm:$0xf0] }
 0x96c   : > { %v8601_v18 = vor.u32 %v9054_v44, %v8598_v43 }
 0x96e   : > { %v5368_v11 = vpop.f32.mrf.mxu0 }
 0x970   : > { %v5457_v12 = vpop.f32.mrf.mxu1 }
 0x971   : > { %v5458_v26 = vadd.f32 %v5457_v12, %v5368_v11  ;;  %v8613_v11 = vor.u32 %v9059_v8, %v8612_v32 }
 0x973   : > { %v12515_v13 = vadd.f32 %v5458_v26, %v12151_v23 }
 0x976   : > { %v5371_v56 = vpop.f32.mrf.mxu0 }
 0x978   : > { %v5460_v58 = vpop.f32.mrf.mxu1 }
 0x979   : > { %v5461_v14 = vadd.f32 %v5460_v58, %v5371_v56  ;;  %6232 = vmatmul.bf16.gmra.mxu0 %v8597_v36  ;;  %v8620_v56 = vld [vmem:[%s12715_s4 + $0x4a0] sm:$0xf] }
 0x97b   : > { %v12524_v30 = vadd.f32 %v5461_v14, %v12165_v7  ;;  %6321 = vmatmul.bf16.gmra.mxu1 %v8601_v18  ;;  %v9056_v7 = vld [vmem:[%s12715_s4 + $0x484] sm:$0xf]  ;;  %v9061_v18 = vld [vmem:[%s12715_s4 + $0x4a4] sm:$0xf0]  ;;  %v8622_v14 = vld [vmem:[%s12715_s4 + $0x4a8] sm:$0xf0] }
 0x97c   : > { %v8609_v22 = vor.u32 %v9056_v7, %v8606_v0 }
 0x97e   : > { %v5373_v23 = vpop.f32.mrf.mxu0 }
 0x980   : > { %v5462_v59 = vpop.f32.mrf.mxu1 }
 0x981   : > { %v5463_v38 = vadd.f32 %v5462_v59, %v5373_v23  ;;  %v8621_v23 = vor.u32 %v9061_v18, %v8620_v56 }
 0x983   : > { %v12533_v19 = vadd.f32 %v5463_v38, %v12179_v57 }
 0x986   : > { %v6198_v5 = vpop.f32.mrf.mxu0 }
 0x988   : > { %v6287_v33 = vpop.f32.mrf.mxu1 }
 0x989   : > { %v6288_v62 = vadd.f32 %v6287_v33, %v6198_v5  ;;  %6237 = vmatmul.bf16.gmra.mxu0 %v8605_v16  ;;  %v9063_v33 = vld [vmem:[%s12715_s4 + $0x4b4] sm:$0xf0] }
 0x98b   : > { %v12542_v61 = vadd.f32 %v6288_v62, %v12194_v53  ;;  %6326 = vmatmul.bf16.gmra.mxu1 %v8609_v22  ;;  %v9058_v53 = vld [vmem:[%s12715_s4 + $0x494] sm:$0xf]  ;;  %v8628_v22 = vld [vmem:[%s12715_s4 + $0x4b0] sm:$0xf] }
 0x98c   : > { %v8617_v26 = vor.u32 %v9058_v53, %v8614_v60 }
 0x98e   : > { %v6200_v57 = vpop.f32.mrf.mxu0 }
 0x990   : > { %v6289_v31 = vpop.f32.mrf.mxu1 }
 0x991   : > { %v6290_v3 = vadd.f32 %v6289_v31, %v6200_v57  ;;  %v8629_v31 = vor.u32 %v9063_v33, %v8628_v22 }
 0x993   : > { %v12551_v2 = vadd.f32 %v6290_v3, %v12209_v37 }
 0x996   : > { %v6203_v12 = vpop.f32.mrf.mxu0 }
 0x998   : > { %v6292_v42 = vpop.f32.mrf.mxu1 }
 0x999   : > { %v6293_v48 = vadd.f32 %v6292_v42, %v6203_v12  ;;  %6242 = vmatmul.bf16.gmra.mxu0 %v8613_v11  ;;  %v8636_v42 = vld [vmem:[%s12715_s4 + $0x4c0] sm:$0xf] }
 0x99b   : > { %v12560_v44 = vadd.f32 %v6293_v48, %v12224_v24  ;;  %6331 = vmatmul.bf16.gmra.mxu1 %v8617_v26  ;;  %v9060_v24 = vld [vmem:[%s12715_s4 + $0x4a4] sm:$0xf] }
 0x99c   : > { %v8625_v38 = vor.u32 %v9060_v24, %v8622_v14 }
 0x99e   : > { %v6205_v37 = vpop.f32.mrf.mxu0 }
 0x9a0   : > { %v6294_v43 = vpop.f32.mrf.mxu1 }
 0x9a1   : > { %v6295_v36 = vadd.f32 %v6294_v43, %v6205_v37 }
 0x9a3   : > { %v12569_v58 = vadd.f32 %v6295_v36, %v12239_v29 }
 0x9a6   : > { %v6208_v59 = vpop.f32.mrf.mxu0 }
 0x9a8   : > { %v6297_v45 = vpop.f32.mrf.mxu1 }
 0x9a9   : > { %v6298_v17 = vadd.f32 %v6297_v45, %v6208_v59  ;;  %6247 = vmatmul.bf16.gmra.mxu0 %v8621_v23  ;;  %v8644_v45 = vld [vmem:[%s12715_s4 + $0x4d0] sm:$0xf] }
 0x9ab   : > { %v6371_v7 = vadd.f32 %v6298_v17, %v12254_v47  ;;  %6336 = vmatmul.bf16.gmra.mxu1 %v8625_v38  ;;  %v9062_v47 = vld [vmem:[%s12715_s4 + $0x4b4] sm:$0xf] }
 0x9ad   : > { %v6399_v29 = vmax.f32 %v12542_v61, %v6371_v7  ;;  %v8630_v61 = vld [vmem:[%s12715_s4 + $0x4b8] sm:$0xf0] }
 0x9ae   : > { %v6210_v0 = vpop.f32.mrf.mxu0  ;;  %v8633_v32 = vor.u32 %v9062_v47, %v8630_v61  ;;  %v8646_v7 = vld [vmem:[%s12715_s4 + $0x4d8] sm:$0xf0] }
 0x9b0   : > { %v6299_v16 = vpop.f32.mrf.mxu1 }
 0x9b1   : > { %v6300_v5 = vadd.f32 %v6299_v16, %v6210_v0 }
 0x9b3   : > { %v6372_v62 = vadd.f32 %v6300_v5, %v12269_v15 }
 0x9b5   : > { %v6400_v57 = vmax.f32 %v12551_v2, %v6372_v62  ;;  %v9065_v2 = vld [vmem:[%s12715_s4 + $0x4c4] sm:$0xf0] }
 0x9b6   : > { %v6213_v3 = vpop.f32.mrf.mxu0  ;;  %v8637_v43 = vor.u32 %v9065_v2, %v8636_v42 }
 0x9b8   : > { %v6302_v8 = vpop.f32.mrf.mxu1 }
 0x9b9   : > { %v6303_v53 = vadd.f32 %v6302_v8, %v6213_v3  ;;  %6252 = vmatmul.bf16.gmra.mxu0 %v8629_v31  ;;  %v8652_v3 = vld [vmem:[%s12715_s4 + $0x4e0] sm:$0xf]  ;;  %v9068_v8 = vld [vmem:[%s12715_s4 + $0x4e4] sm:$0xf] }
 0x9bb   : > { %v6373_v60 = vadd.f32 %v6303_v53, %v12284_v39  ;;  %6341 = vmatmul.bf16.gmra.mxu1 %v8633_v32  ;;  %v9064_v39 = vld [vmem:[%s12715_s4 + $0x4c4] sm:$0xf] }
 0x9bd   : > { %v6401_v15 = vmax.f32 %v12560_v44, %v6373_v60  ;;  %v8638_v44 = vld [vmem:[%s12715_s4 + $0x4c8] sm:$0xf0] }
 0x9be   : > { %v6215_v11 = vpop.f32.mrf.mxu0  ;;  %v8641_v56 = vor.u32 %v9064_v39, %v8638_v44  ;;  %v8660_v44 = vld [vmem:[%s12715_s4 + $0x4f0] sm:$0xf] }
 0x9c0   : > { %v6304_v12 = vpop.f32.mrf.mxu1 }
 0x9c1   : > { %v6305_v26 = vadd.f32 %v6304_v12, %v6215_v11 }
 0x9c3   : > { %v6374_v48 = vadd.f32 %v6305_v26, %v12299_v1 }
 0x9c5   : > { %v6402_v37 = vmax.f32 %v12569_v58, %v6374_v48  ;;  %v9067_v58 = vld [vmem:[%s12715_s4 + $0x4d4] sm:$0xf0] }
 0x9c6   : > { %v6218_v36 = vpop.f32.mrf.mxu0  ;;  %v8645_v0 = vor.u32 %v9067_v58, %v8644_v45 }
 0x9c8   : > { %v6307_v18 = vpop.f32.mrf.mxu1 }
 0x9c9   : > { %v6308_v24 = vadd.f32 %v6307_v18, %v6218_v36  ;;  %6257 = vmatmul.bf16.gmra.mxu0 %v8637_v43  ;;  %v8662_v36 = vld [vmem:[%s12715_s4 + $0x4f8] sm:$0xf0] }
 0x9cb   : > { %v6375_v14 = vadd.f32 %v6308_v24, %v12314_v6  ;;  %6346 = vmatmul.bf16.gmra.mxu1 %v8641_v56  ;;  %v9066_v6 = vld [vmem:[%s12715_s4 + $0x4d4] sm:$0xf] }
 0x9cc   : > { %v8649_v5 = vor.u32 %v9066_v6, %v8646_v7 }
 0x9cd   : > { %v12610_v1 = vmax.f32 %v6399_v29, %v6375_v14 }
 0x9ce   : > { %v6220_v23 = vpop.f32.mrf.mxu0 }
 0x9d0   : > { %v6309_v59 = vpop.f32.mrf.mxu1 }
 0x9d1   : > { %v6310_v38 = vadd.f32 %v6309_v59, %v6220_v23 }
 0x9d3   : > { %v6376_v17 = vadd.f32 %v6310_v38, %v12329_v34 }
 0x9d5   : > { %v12625_v29 = vmax.f32 %v6400_v57, %v6376_v17  ;;  %v9069_v57 = vld [vmem:[%s12715_s4 + $0x4e4] sm:$0xf0] }
 0x9d6   : > { %v6223_v16 = vpop.f32.mrf.mxu0  ;;  %v8653_v60 = vor.u32 %v9069_v57, %v8652_v3 }
 0x9d8   : > { %v6312_v22 = vpop.f32.mrf.mxu1 }
 0x9d9   : > { %v6313_v33 = vadd.f32 %v6312_v22, %v6223_v16  ;;  %6262 = vmatmul.bf16.gmra.mxu0 %v8645_v0  ;;  %v5886_v22 = vpop.f32.mrf.mxu3 }
 0x9db   : > { %v6377_v62 = vadd.f32 %v6313_v33, %v12344_v55  ;;  %6351 = vmatmul.bf16.gmra.mxu1 %v8649_v5  ;;  %v8654_v55 = vld [vmem:[%s12715_s4 + $0x4e8] sm:$0xf0] }
 0x9dc   : > { %v8657_v11 = vor.u32 %v9068_v8, %v8654_v55 }
 0x9dd   : > { %v6405_v34 = vmax.f32 %v6401_v15, %v6377_v62 }
 0x9de   : > { %v6225_v47 = vpop.f32.mrf.mxu0 }
 0x9e0   : > { %v6314_v61 = vpop.f32.mrf.mxu1 }
 0x9e1   : > { %v6315_v31 = vadd.f32 %v6314_v61, %v6225_v47  ;;  %v5888_v3 = vpop.f32.mrf.mxu3 }
 0x9e3   : > { %v6378_v32 = vadd.f32 %v6315_v31, %v12359_v20 }
 0x9e5   : > { %v6406_v53 = vmax.f32 %v6402_v37, %v6378_v32  ;;  %v9071_v37 = vld [vmem:[%s12715_s4 + $0x4f4] sm:$0xf0] }
 0x9e6   : > { %v6228_v15 = vpop.f32.mrf.mxu0  ;;  %v8661_v18 = vor.u32 %v9071_v37, %v8660_v44 }
 0x9e8   : > { %v6317_v12 = vpop.f32.mrf.mxu1 }
 0x9e9   : > { %v6318_v26 = vadd.f32 %v6317_v12, %v6228_v15  ;;  %6267 = vmatmul.bf16.gmra.mxu0 %v8653_v60  ;;  %v5891_v60 = vpop.f32.mrf.mxu3 }
 0x9eb   : > { %v6379_v42 = vadd.f32 %v6318_v26, %v12362_v50  ;;  %6356 = vmatmul.bf16.gmra.mxu1 %v8657_v11  ;;  %v9070_v50 = vld [vmem:[%s12715_s4 + $0x4f4] sm:$0xf] }
 0x9ec   : > { %v8665_v14 = vor.u32 %v9070_v50, %v8662_v36 }
 0x9ed   : > { %v6407_v20 = vmax.f32 %v12610_v1, %v6379_v42 }
 0x9ee   : > { %v6230_v2 = vpop.f32.mrf.mxu0 }
 0x9f0   : > { %v6319_v48 = vpop.f32.mrf.mxu1 }
 0x9f1   : > { %v6320_v39 = vadd.f32 %v6319_v48, %v6230_v2  ;;  %v5893_v44 = vpop.f32.mrf.mxu3 }
 0x9f3   : > { %v6380_v43 = vadd.f32 %v6320_v39, %v12377_v54 }
 0x9f5   : > { %v6408_v56 = vmax.f32 %v12625_v29, %v6380_v43  ;;  %v5797_v29 = vpop.f32.mrf.mxu2 }
 0x9f6   : > { %v6233_v24 = vpop.f32.mrf.mxu0  ;;  %v5887_v26 = vadd.f32 %v5886_v22, %v5797_v29 }
 0x9f8   : > { %v6322_v1 = vpop.f32.mrf.mxu1  ;;  %v5936_v2 = vadd.f32 %v5887_v26, %v12434_v4 }
 0x9f9   : > { %v6323_v23 = vadd.f32 %v6322_v1, %v6233_v24  ;;  %6272 = vmatmul.bf16.gmra.mxu0 %v8661_v18 }
 0x9fb   : > { %v6381_v59 = vadd.f32 %v6323_v23, %v12380_v35  ;;  %6361 = vmatmul.bf16.gmra.mxu1 %v8665_v14  ;;  %v5896_v14 = vpop.f32.mrf.mxu3 }
 0x9fd   : > { %v6409_v54 = vmax.f32 %v6405_v34, %v6381_v59  ;;  %v5799_v61 = vpop.f32.mrf.mxu2 }
 0x9fe   : > { %v6235_v38 = vpop.f32.mrf.mxu0  ;;  %v5889_v37 = vadd.f32 %v5888_v3, %v5799_v61 }
 0xa00   : > { %v6324_v45 = vpop.f32.mrf.mxu1 }
 0xa01   : > { %v6325_v58 = vadd.f32 %v6324_v45, %v6235_v38 }
 0xa03   : > { %v6382_v17 = vadd.f32 %v6325_v58, %v12395_v46 }
 0xa05   : > { %v6410_v6 = vmax.f32 %v6406_v53, %v6382_v17  ;;  %v5802_v53 = vpop.f32.mrf.mxu2 }
 0xa06   : > { %v6238_v7 = vpop.f32.mrf.mxu0  ;;  %v5892_v1 = vadd.f32 %v5891_v60, %v5802_v53 }
 0xa08   : > { %v6327_v0 = vpop.f32.mrf.mxu1 }
 0xa09   : > { %v6328_v16 = vadd.f32 %v6327_v0, %v6238_v7  ;;  %v5898_v7 = vpop.f32.mrf.mxu3 }
 0xa0b   : > { %v6383_v5 = vadd.f32 %v6328_v16, %v12398_v52 }
 0xa0d   : > { %v12660_v33 = vmax.f32 %v6407_v20, %v6383_v5  ;;  %v5804_v48 = vpop.f32.mrf.mxu2 }
 0xa0e   : > { %v6240_v62 = vpop.f32.mrf.mxu0  ;;  %v5894_v58 = vadd.f32 %v5893_v44, %v5804_v48 }
 0xa10   : > { %v6329_v47 = vpop.f32.mrf.mxu1  ;;  %v5939_v16 = vadd.f32 %v5894_v58, %v12461_v9 }
 0xa11   : > { %v6330_v35 = vadd.f32 %v6329_v47, %v6240_v62 }
 0xa13   : > { %v6384_v34 = vadd.f32 %v6330_v35, %v12413_v25  ;;  %v5901_v35 = vpop.f32.mrf.mxu3 }
 0xa15   : > { %v12663_v31 = vmax.f32 %v6408_v56, %v6384_v34  ;;  %v5937_v56 = vadd.f32 %v5889_v37, %v12443_v63 }
 0xa16   : > { %v6243_v46 = vpop.f32.mrf.mxu0 }
 0xa18   : > { %v6332_v57 = vpop.f32.mrf.mxu1 }
 0xa19   : > { %v6333_v32 = vadd.f32 %v6332_v57, %v6243_v46 }
 0xa1b   : > { %v6385_v8 = vadd.f32 %v6333_v32, %v12416_v28 }
 0xa1d   : > { %v12666_v55 = vmax.f32 %v6409_v54, %v6385_v8  ;;  %v5938_v54 = vadd.f32 %v5892_v1, %v12452_v51 }
 0xa1e   : > { %v6245_v52 = vpop.f32.mrf.mxu0 }
 0xa20   : > { %v6334_v15 = vpop.f32.mrf.mxu1 }
 0xa21   : > { %v6335_v11 = vadd.f32 %v6334_v15, %v6245_v52  ;;  %v5903_v52 = vpop.f32.mrf.mxu3 }
 0xa23   : > { %v6386_v12 = vadd.f32 %v6335_v11, %v12431_v27  ;;  %v5807_v27 = vpop.f32.mrf.mxu2 }
 0xa24   : > { %v5897_v22 = vadd.f32 %v5896_v14, %v5807_v27 }
 0xa25   : > { %v12669_v25 = vmax.f32 %v6410_v6, %v6386_v12 }
 0xa26   : > { %v6248_v42 = vpop.f32.mrf.mxu0  ;;  %v5940_v34 = vadd.f32 %v5897_v22, %v12470_v40 }
 0xa28   : > { %v6337_v20 = vpop.f32.mrf.mxu1 }
 0xa29   : > { %v6338_v39 = vadd.f32 %v6337_v20, %v6248_v42  ;;  %v5906_v20 = vpop.f32.mrf.mxu3 }
 0xa2b   : > { %v6387_v28 = vadd.f32 %v6338_v39, %v5936_v2  ;;  %v5809_v17 = vpop.f32.mrf.mxu2 }
 0xa2c   : > { %v5899_v3 = vadd.f32 %v5898_v7, %v5809_v17 }
 0xa2d   : > { %v6415_v43 = vmax.f32 %v12660_v33, %v6387_v28 }
 0xa2e   : > { %v6250_v50 = vpop.f32.mrf.mxu0  ;;  %v5941_v8 = vadd.f32 %v5899_v3, %v12479_v49 }
 0xa30   : > { %v6339_v36 = vpop.f32.mrf.mxu1 }
 0xa31   : > { %v6340_v18 = vadd.f32 %v6339_v36, %v6250_v50 }
 0xa33   : > { %v6388_v24 = vadd.f32 %v6340_v18, %v5937_v56  ;;  %v5812_v47 = vpop.f32.mrf.mxu2  ;;  %v5908_v56 = vpop.f32.mrf.mxu3 }
 0xa34   : > { %v5902_v60 = vadd.f32 %v5901_v35, %v5812_v47 }
 0xa35   : > { %v6416_v23 = vmax.f32 %v12663_v31, %v6388_v24 }
 0xa36   : > { %v6253_v59 = vpop.f32.mrf.mxu0  ;;  %v5942_v26 = vadd.f32 %v5902_v60, %v12488_v41 }
 0xa38   : > { %v6342_v4 = vpop.f32.mrf.mxu1 }
 0xa39   : > { %v6343_v38 = vadd.f32 %v6342_v4, %v6253_v59 }
 0xa3b   : > { %v6389_v45 = vadd.f32 %v6343_v38, %v5938_v54  ;;  %v5814_v9 = vpop.f32.mrf.mxu2  ;;  %v5911_v54 = vpop.f32.mrf.mxu3 }
 0xa3c   : > { %v5904_v2 = vadd.f32 %v5903_v52, %v5814_v9 }
 0xa3d   : > { %v6417_v6 = vmax.f32 %v12666_v55, %v6389_v45 }
 0xa3e   : > { %v6255_v0 = vpop.f32.mrf.mxu0  ;;  %v5943_v49 = vadd.f32 %v5904_v2, %v12497_v10 }
 0xa40   : > { %v6344_v63 = vpop.f32.mrf.mxu1 }
 0xa41   : > { %v6345_v29 = vadd.f32 %v6344_v63, %v6255_v0 }
 0xa43   : > { %v6390_v5 = vadd.f32 %v6345_v29, %v5939_v16  ;;  %v5817_v40 = vpop.f32.mrf.mxu2  ;;  %v5913_v22 = vpop.f32.mrf.mxu3 }
 0xa45   : > { %v6418_v33 = vmax.f32 %v12669_v25, %v6390_v5 }
 0xa46   : > { %v6258_v62 = vpop.f32.mrf.mxu0 }
 0xa48   : > { %v6347_v51 = vpop.f32.mrf.mxu1 }
 0xa49   : > { %v6348_v61 = vadd.f32 %v6347_v51, %v6258_v62 }
 0xa4b   : > { %v6391_v31 = vadd.f32 %v6348_v61, %v5940_v34  ;;  %v5819_v50 = vpop.f32.mrf.mxu2 }
 0xa4c   : > { %v5909_v1 = vadd.f32 %v5908_v56, %v5819_v50 }
 0xa4d   : > { %v6419_v46 = vmax.f32 %v6415_v43, %v6391_v31  ;;  %v5907_v43 = vadd.f32 %v5906_v20, %v5817_v40 }
 0xa4e   : > { %v6260_v57 = vpop.f32.mrf.mxu0 }
 0xa4f   : > { %v5944_v41 = vadd.f32 %v5907_v43, %v12506_v21  ;;  %v5945_v21 = vadd.f32 %v5909_v1, %v12515_v13 }
 0xa50   : > { %v6349_v32 = vpop.f32.mrf.mxu1 }
 0xa51   : > { %v6350_v55 = vadd.f32 %v6349_v32, %v6260_v57 }
 0xa53   : > { %v6392_v53 = vadd.f32 %v6350_v55, %v5941_v8  ;;  %v5822_v59 = vpop.f32.mrf.mxu2 }
 0xa54   : > { %v5912_v17 = vadd.f32 %v5911_v54, %v5822_v59 }
 0xa55   : > { %v6420_v15 = vmax.f32 %v6416_v23, %v6392_v53 }
 0xa56   : > { %v6263_v11 = vpop.f32.mrf.mxu0  ;;  %v5946_v16 = vadd.f32 %v5912_v17, %v12524_v30 }
 0xa58   : > { %v6352_v12 = vpop.f32.mrf.mxu1 }
 0xa59   : > { %v6353_v25 = vadd.f32 %v6352_v12, %v6263_v11 }
 0xa5b   : > { %v6393_v42 = vadd.f32 %v6353_v25, %v5942_v26  ;;  %v5824_v5 = vpop.f32.mrf.mxu2 }
 0xa5c   : > { %v5914_v13 = vadd.f32 %v5913_v22, %v5824_v5 }
 0xa5d   : > { %v6421_v48 = vmax.f32 %v6417_v6, %v6393_v42 }
 0xa5e   : > { %v6265_v39 = vpop.f32.mrf.mxu0  ;;  %v5947_v34 = vadd.f32 %v5914_v13, %v12533_v19 }
 0xa60   : > { %v6354_v44 = vpop.f32.mrf.mxu1 }
 0xa61   : > { %v6355_v28 = vadd.f32 %v6354_v44, %v6265_v39 }
 0xa63   : > { %v6394_v37 = vadd.f32 %v6355_v28, %v5943_v49 }
 0xa65   : > { %v6422_v36 = vmax.f32 %v6418_v33, %v6394_v37 }
 0xa66   : > { %v6268_v18 = vpop.f32.mrf.mxu0 }
 0xa68   : > { %v6357_v27 = vpop.f32.mrf.mxu1 }
 0xa69   : > { %v6358_v24 = vadd.f32 %v6357_v27, %v6268_v18 }
 0xa6b   : > { %v6395_v14 = vadd.f32 %v6358_v24, %v5944_v41 }
 0xa6d   : > { %v6423_v23 = vmax.f32 %v6419_v46, %v6395_v14 }
 0xa6e   : > { %v6270_v10 = vpop.f32.mrf.mxu0 }
 0xa6f   : > { %v6427_v4 = vpack.c.bf16 %v6423_v23, %v6423_v23 }
 0xa70   : > { %v6359_v38 = vpop.f32.mrf.mxu1 }
 0xa71   : > { %6432 = vst.msk [vmem:[%s12689_s11] sm:$0xf] %vm6431_vm9, %v6427_v4  ;;  %v6360_v45 = vadd.f32 %v6359_v38, %v6270_v10 }
 0xa73   : > { %v6396_v58 = vadd.f32 %v6360_v45, %v5945_v21 }
 0xa75   : > { %v6424_v6 = vmax.f32 %v6420_v15, %v6396_v58 }
 0xa76   : > { %v6273_v7 = vpop.f32.mrf.mxu0 }
 0xa77   : > { %v6428_v0 = vpack.c.bf16 %v6424_v6, %v6424_v6 }
 0xa78   : > { %v6362_v63 = vpop.f32.mrf.mxu1 }
 0xa79   : > { %6433 = vst.msk [vmem:[%s12689_s11 + $0x4] sm:$0xf] %vm6431_vm9, %v6428_v0  ;;  %v6363_v29 = vadd.f32 %v6362_v63, %v6273_v7 }
 0xa7b   : > { %v6397_v33 = vadd.f32 %v6363_v29, %v5946_v16 }
 0xa7d   : > { %v6425_v62 = vmax.f32 %v6421_v48, %v6397_v33 }
 0xa7e   : > { %v6275_v35 = vpop.f32.mrf.mxu0 }
 0xa7f   : > { %v6429_v47 = vpack.c.bf16 %v6425_v62, %v6425_v62 }
 0xa80   : > { %v6364_v51 = vpop.f32.mrf.mxu1 }
 0xa81   : > { %6434 = vst.msk [vmem:[%s12689_s11 + $0x8] sm:$0xf] %vm6431_vm9, %v6429_v47  ;;  %v6365_v61 = vadd.f32 %v6364_v51, %v6275_v35 }
 0xa83   : > { %v6398_v31 = vadd.f32 %v6365_v61, %v5947_v34 }
 0xa85   : > { %v6426_v3 = vmax.f32 %v6422_v36, %v6398_v31 }
 0xa87   : > { %v6430_v30 = vpack.c.bf16 %v6426_v3, %v6426_v3 }
 0xa89   : > { %6435 = vst.msk [vmem:[%s12689_s11 + $0xc] sm:$0xf] %vm6431_vm9, %v6430_v30 }
 0xa8a PF: > { %s17_s23 = sadd.s32 1, %s9129_s23   ;;  %s12752_s21 = smov %s9125_s22 }
 0xa8b   : > { %p14_p5 = scmp.ge.s32.totalorder %s17_s23, 4   ;;  %s12753_s22 = smov %s12755_s24 }
 0xa8d   :  { %16 = sbr.rel (!%p14_p5) target bundleno = 2 (0x2), region = 97 }

</bundles_post_ra>
